<compile_context>
chip_gen: v7x
topology: tpu7x:2x2x1
jax: 0.10.0
libtpu: 0.0.40
codegen_flags: <defaults>
</compile_context>

<pallas_src>
import functools
import numpy as np
import jax
import jax.numpy as jnp
from jax import lax
from jax.experimental import pallas as pl
from jax.experimental.pallas import tpu as pltpu

DIM = 384
LN_EPS = 1e-3        # module LayerNorms use eps=0.001
TF_EPS = 1e-5        # TransformerEncoderLayer default layer_norm_eps
LANE = 128
HEAD_OUT = 128       # lane-dense fused head output: [d(2) | w(1) | w_gn(1) | pad]

_W_ORDER = (
    'c_w1', 'c_b1', 'c_w2', 'c_b2', 'c_lg', 'c_lb', 'c_w3', 'c_b3',
    'r_w1', 'r_b1', 'r_lg', 'r_lb', 'r_w2', 'r_b2',
    'n_g', 'n_b',
    't_wi', 't_bi', 't_wqkv', 't_bqkv', 't_wo', 't_bo',
    't_g1', 't_b1', 't_wf1', 't_bf1', 't_wf2', 't_bf2',
    't_g2', 't_b2', 't_wout', 't_bout',
    'g_lng', 'g_lnb', 'g_gw', 'g_gb', 'g_r1w', 'g_r1b', 'g_r2w', 'g_r2b',
    'head_w', 'head_b',
)


# ----------------------------------------------------------------------------
# helpers
# ----------------------------------------------------------------------------
def _round_up(x, m):
    return (x + m - 1) // m * m


def _ln(x, g, b, eps):
    x = x.astype(jnp.float32)
    mu = jnp.mean(x, axis=-1, keepdims=True)
    xc = x - mu
    var = jnp.mean(xc * xc, axis=-1, keepdims=True)
    return xc * lax.rsqrt(var + eps) * g + b


def _bdot(x, w, b):
    """bf16 MXU operands, f32 accumulation, f32 bias add."""
    return jnp.dot(x.astype(jnp.bfloat16), w.astype(jnp.bfloat16),
                   preferred_element_type=jnp.float32) + b


def _row_spec(nrows, ncols):
    return pl.BlockSpec((nrows, ncols), lambda i: (i, 0))


def _const_spec(shape):
    nd = len(shape)
    return pl.BlockSpec(tuple(shape), lambda i, _nd=nd: (0,) * _nd)


def _tpu_vmem_capacity():
    try:
        return int(pltpu.get_tpu_info().vmem_capacity_bytes)
    except Exception:
        return 64 * 1024 * 1024   # conservative fallback (v7x-sized)


def _choose_groups(B, M, target_rows):
    """Groups per grid step.

    Only split the grid when there is enough total work for >= 2 full-size steps;
    otherwise run a single step with all rows (keeps MXU row fill high and avoids
    per-step pipeline overhead on small problems).
    """
    total = B * M
    if total < 2 * target_rows:
        return B                          # single grid step, R = all rows
    G = max(1, target_rows // M)
    G = min(G, B)
    # multi-step grids: keep R a multiple of 16 (bf16 sublane tiling of corr).
    while G < B and (G * M) % 16 != 0:
        G += 1
    if (G * M) % 16 != 0:
        return B
    return G


# ----------------------------------------------------------------------------
# the fused kernel:  pre -> transformer -> gru stack -> heads   (R = G*M rows)
# ----------------------------------------------------------------------------
def _update_kernel(net_ref, inp_ref, corr_ref, resid_ref, *refs,
                   num_heads, num_gru, M):
    w_refs = refs[:len(_W_ORDER)]
    net_out, heads_out = refs[len(_W_ORDER):]
    W = dict(zip(_W_ORDER, w_refs))
    f32, bf16 = jnp.float32, jnp.bfloat16

    R = net_ref.shape[0]
    G = R // M

    # ---------------- stage 1: net = LN(net + inp + corr(corr) + res(resid)) --
    # corr branch: Linear -> ReLU -> Linear -> LayerNorm -> ReLU -> Linear
    c = _bdot(corr_ref[...], W['c_w1'][...], W['c_b1'][...])
    c = jnp.maximum(c, 0.0)
    c = _bdot(c, W['c_w2'][...], W['c_b2'][...])
    c = _ln(c, W['c_lg'][...], W['c_lb'][...], LN_EPS)
    c = jnp.maximum(c, 0.0)
    c = _bdot(c, W['c_w3'][...], W['c_b3'][...])

    # res branch: K=2 contraction done as a VPU outer-product (no MXU push).
    rw1 = W['r_w1'][...]                                   # (2, DIM) f32
    resid = resid_ref[...]                                 # (R, 2) f32
    r = (resid[:, 0:1] * rw1[0:1, :] + resid[:, 1:2] * rw1[1:2, :]
         + W['r_b1'][...])
    r = _ln(r, W['r_lg'][...], W['r_lb'][...], LN_EPS)
    r = jnp.maximum(r, 0.0)
    r = _bdot(r, W['r_w2'][...], W['r_b2'][...])

    x = net_ref[...] + inp_ref[...] + c + r
    x = _ln(x, W['n_g'][...], W['n_b'][...], LN_EPS)       # (R, DIM) f32

    # ---------------- stage 2: transformer + residual add ---------------------
    t = _bdot(x, W['t_wi'][...], W['t_bi'][...])           # (R, T) f32
    T = t.shape[-1]
    hd = T // num_heads

    tb = t.astype(bf16)
    # packed QKV: single (R,T)x(T,3T) matmul; 1/sqrt(hd) already folded into Q.
    qkv = _bdot(tb, W['t_wqkv'][...], W['t_bqkv'][...])    # (R, 3T) f32
    q3 = qkv[:, 0:T].reshape(G, M, T)
    k3 = qkv[:, T:2 * T].reshape(G, M, T)
    v3 = qkv[:, 2 * T:3 * T].reshape(G, M, T)

    # heads are few: unrolled loop, group-batched matmuls, softmax per head.
    ohs = []
    for h in range(num_heads):
        sl = slice(h * hd, (h + 1) * hd)
        qh = q3[..., sl].astype(bf16)
        kh = k3[..., sl].astype(bf16)
        vh = v3[..., sl].astype(bf16)
        s = jnp.einsum('gqd,gkd->gqk', qh, kh,
                       preferred_element_type=f32)                  # (G, M, M)
        s = s - jnp.max(s, axis=-1, keepdims=True)
        p = jnp.exp(s)
        p = p * pl.reciprocal(jnp.sum(p, axis=-1, keepdims=True), approx=True)
        ohs.append(jnp.einsum('gqk,gkd->gqd', p.astype(bf16), vh,
                              preferred_element_type=f32))          # (G, M, hd)
    o = jnp.concatenate(ohs, axis=-1).reshape(R, T)                 # (R, T)
    y = _bdot(o, W['t_wo'][...], W['t_bo'][...])   # ONE full-K output projection

    # post-norm encoder layer (norm_first=False, dropout=0, relu FFN)
    t = _ln(t + y, W['t_g1'][...], W['t_b1'][...], TF_EPS)
    ff = jnp.maximum(_bdot(t, W['t_wf1'][...], W['t_bf1'][...]), 0.0)
    ff = ff.astype(bf16)                            # largest activation: keep bf16
    ff = _bdot(ff, W['t_wf2'][...], W['t_bf2'][...])
    t = _ln(t + ff, W['t_g2'][...], W['t_b2'][...], TF_EPS)

    x = x + _bdot(t, W['t_wout'][...], W['t_bout'][...])   # net = net + transformer_out

    # ---------------- stage 3: num_gru x (LayerNorm -> GatedResidual) ---------
    for l in range(num_gru):
        xn = _ln(x, W['g_lng'][l], W['g_lnb'][l], LN_EPS)
        gate = jax.nn.sigmoid(_bdot(xn, W['g_gw'][l], W['g_gb'][l]))
        gr = jnp.maximum(_bdot(xn, W['g_r1w'][l], W['g_r1b'][l]), 0.0)
        gr = _bdot(gr, W['g_r2w'][l], W['g_r2b'][l])
        x = xn + gate * gr
    net_out[...] = x

    # ---------------- heads: single lane-dense fused matmul -------------------
    xr = jnp.maximum(x, 0.0)
    hh = _bdot(xr, W['head_w'][...], W['head_b'][...])      # (R, 128)
    col = lax.broadcasted_iota(jnp.int32, hh.shape, 1)
    hh = jnp.where((col >= 2) & (col < 4), jax.nn.sigmoid(hh), hh)
    heads_out[...] = hh


# ----------------------------------------------------------------------------
# parameter init (deterministic, synthetic) + kernel-layout preparation
# ----------------------------------------------------------------------------
def init_params(key, *, corr_in, transf_dim, d_ff, num_gru):
    keys = iter(jax.random.split(key, 64))

    def lin(fi, fo):
        kw, kb = jax.random.split(next(keys))
        w = (jax.random.normal(kw, (fi, fo), jnp.float32) / np.sqrt(fi)).astype(jnp.float32)
        b = 0.01 * jax.random.normal(kb, (1, fo), jnp.float32)
        return w, b

    ones = lambda d: jnp.ones((1, d), jnp.float32)
    zeros = lambda d: jnp.zeros((1, d), jnp.float32)

    p = {}
    p['c_w1'], p['c_b1'] = lin(corr_in, DIM)
    p['c_w2'], p['c_b2'] = lin(DIM, DIM)
    p['c_lg'], p['c_lb'] = ones(DIM), zeros(DIM)
    p['c_w3'], p['c_b3'] = lin(DIM, DIM)
    p['r_w1'], p['r_b1'] = lin(2, DIM)
    p['r_lg'], p['r_lb'] = ones(DIM), zeros(DIM)
    p['r_w2'], p['r_b2'] = lin(DIM, DIM)
    p['n_g'], p['n_b'] = ones(DIM), zeros(DIM)
    T = transf_dim
    p['t_wi'], p['t_bi'] = lin(DIM, T)
    p['t_wq'], p['t_bq'] = lin(T, T)
    p['t_wk'], p['t_bk'] = lin(T, T)
    p['t_wv'], p['t_bv'] = lin(T, T)
    p['t_wo'], p['t_bo'] = lin(T, T)
    p['t_g1'], p['t_b1'] = ones(T), zeros(T)
    p['t_wf1'], p['t_bf1'] = lin(T, d_ff)
    p['t_wf2'], p['t_bf2'] = lin(d_ff, T)
    p['t_g2'], p['t_b2'] = ones(T), zeros(T)
    p['t_wout'], p['t_bout'] = lin(T, DIM)
    gws, gbs, r1ws, r1bs, r2ws, r2bs = [], [], [], [], [], []
    for _ in range(num_gru):
        w, b = lin(DIM, DIM); gws.append(w); gbs.append(b)
        w, b = lin(DIM, DIM); r1ws.append(w); r1bs.append(b)
        w, b = lin(DIM, DIM); r2ws.append(w); r2bs.append(b)
    p['g_lng'] = jnp.ones((num_gru, 1, DIM), jnp.float32)
    p['g_lnb'] = jnp.zeros((num_gru, 1, DIM), jnp.float32)
    p['g_gw'], p['g_gb'] = jnp.stack(gws), jnp.stack(gbs)
    p['g_r1w'], p['g_r1b'] = jnp.stack(r1ws), jnp.stack(r1bs)
    p['g_r2w'], p['g_r2b'] = jnp.stack(r2ws), jnp.stack(r2bs)
    p['d_w'], p['d_b'] = lin(DIM, 2)
    p['w_w'], p['w_b'] = lin(DIM, 1)
    p['wgn_w'], p['wgn_b'] = lin(DIM, 1)
    return p


def prepare_params(p, *, corr_in, num_heads):
    """f32 module params -> kernel layout: bf16 weights, zero-padded corr weight,
    packed QKV (softmax scale folded into Q), fused lane-dense head projection.
    LN params / biases stay f32."""
    bf = lambda x: x.astype(jnp.bfloat16)
    Cpad = _round_up(corr_in, LANE)
    q = {}
    q['c_w1'] = bf(jnp.pad(p['c_w1'], ((0, Cpad - corr_in), (0, 0))))  # zero rows: pad is free
    q['c_b1'] = p['c_b1']
    q['c_w2'], q['c_b2'] = bf(p['c_w2']), p['c_b2']
    q['c_lg'], q['c_lb'] = p['c_lg'], p['c_lb']
    q['c_w3'], q['c_b3'] = bf(p['c_w3']), p['c_b3']
    q['r_w1'], q['r_b1'] = p['r_w1'], p['r_b1']        # f32: used on the VPU
    q['r_lg'], q['r_lb'] = p['r_lg'], p['r_lb']
    q['r_w2'], q['r_b2'] = bf(p['r_w2']), p['r_b2']
    q['n_g'], q['n_b'] = p['n_g'], p['n_b']
    # packed QKV with the 1/sqrt(head_dim) scale folded into the Q block
    T = p['t_wq'].shape[0]
    scale = 1.0 / float(np.sqrt(T // num_heads))
    q['t_wqkv'] = bf(jnp.concatenate([p['t_wq'] * scale, p['t_wk'], p['t_wv']],
                                     axis=1))                       # (T, 3T)
    q['t_bqkv'] = jnp.concatenate([p['t_bq'] * scale, p['t_bk'], p['t_bv']],
                                  axis=1)                           # (1, 3T)
    for k in ('t_wi', 't_wo', 't_wf1', 't_wf2', 't_wout'):
        q[k] = bf(p[k])
    for k in ('t_bi', 't_bo', 't_g1', 't_b1', 't_bf1', 't_bf2',
              't_g2', 't_b2', 't_bout'):
        q[k] = p[k]
    q['g_lng'], q['g_lnb'] = p['g_lng'], p['g_lnb']
    q['g_gw'], q['g_gb'] = bf(p['g_gw']), p['g_gb']
    q['g_r1w'], q['g_r1b'] = bf(p['g_r1w']), p['g_r1b']
    q['g_r2w'], q['g_r2b'] = bf(p['g_r2w']), p['g_r2b']
    hw = jnp.concatenate([p['d_w'], p['w_w'], p['wgn_w']], axis=1)     # (DIM, 4)
    hb = jnp.concatenate([p['d_b'], p['w_b'], p['wgn_b']], axis=1)     # (1, 4)
    q['head_w'] = bf(jnp.pad(hw, ((0, 0), (0, HEAD_OUT - 4))))
    q['head_b'] = jnp.pad(hb, ((0, 0), (0, HEAD_OUT - 4)))
    return q


def _first_run_length(ii, jj):
    """counts[0] of torch.unique_consecutive(ii + 12345*jj).
    Host-side, static glue — call once outside the hot path (or pass M=...)."""
    codes = np.asarray(ii).astype(np.int64) + 12345 * np.asarray(jj).astype(np.int64)
    m = 1
    while m < len(codes) and codes[m] == codes[0]:
        m += 1
    return m


# ----------------------------------------------------------------------------
# wrapper
# ----------------------------------------------------------------------------
def update_forward(net, inp, corr, residual, ii, jj, params, *,
                   num_gru, num_heads, M=None, target_rows=None):
    sh = net.shape[:-1]
    D = net.shape[-1]
    assert D == DIM
    N = int(np.prod(sh))
    if M is None:
        M = _first_run_length(ii, jj)   # prefer passing M statically on the hot path
    assert N % M == 0, "flattened edge count must be divisible by group size M"
    B = N // M

    # chip-aware budgets: v5e/v6e (128 MiB VMEM) -> 96 MiB limit, 512-row tiles;
    # v7x (64 MiB VMEM) -> 48 MiB limit, 256-row tiles.
    cap = _tpu_vmem_capacity()
    vmem_limit = max(48 * 1024 * 1024, min(cap * 3 // 4, 110 * 1024 * 1024))
    if target_rows is None:
        target_rows = 512 if cap >= 100 * 1024 * 1024 else 256

    net2 = net.reshape(N, D).astype(jnp.float32)
    inp2 = inp.reshape(N, D).astype(jnp.float32)
    # corr only feeds a bf16 matmul: cast before padding (halves its DMA traffic)
    corr2 = corr.reshape(N, -1).astype(jnp.bfloat16)
    res2 = residual.reshape(N, 2).astype(jnp.float32)   # unpadded (R,2) block is legal

    C = corr2.shape[-1]
    Cpad = _round_up(C, LANE)
    corr2 = jnp.pad(corr2, ((0, 0), (0, Cpad - C)))

    # group batching: R = G*M rows per grid step; pad #groups up to multiple of G.
    G = _choose_groups(B, M, target_rows)
    B_pad = _round_up(B, G)
    N_pad = B_pad * M
    if N_pad > N:
        pr = N_pad - N
        net2 = jnp.pad(net2, ((0, pr), (0, 0)))
        inp2 = jnp.pad(inp2, ((0, pr), (0, 0)))
        corr2 = jnp.pad(corr2, ((0, pr), (0, 0)))
        res2 = jnp.pad(res2, ((0, pr), (0, 0)))
    R = G * M

    weights = [params[k] for k in _W_ORDER]
    in_specs = ([_row_spec(R, DIM), _row_spec(R, DIM),
                 _row_spec(R, Cpad), _row_spec(R, 2)]
                + [_const_spec(w.shape) for w in weights])
    out_specs = (_row_spec(R, DIM), _row_spec(R, HEAD_OUT))
    out_shape = (jax.ShapeDtypeStruct((N_pad, DIM), jnp.float32),
                 jax.ShapeDtypeStruct((N_pad, HEAD_OUT), jnp.float32))

    net_out, head_out = pl.pallas_call(
        functools.partial(_update_kernel, num_heads=num_heads,
                          num_gru=num_gru, M=M),
        out_shape=out_shape,
        grid=(B_pad // G,),
        in_specs=in_specs,
        out_specs=out_specs,
        compiler_params=pltpu.CompilerParams(
            dimension_semantics=("parallel",),
            vmem_limit_bytes=vmem_limit),
    )(net2, inp2, corr2, res2, *weights)

    net_out = net_out[:N].reshape(*sh, D)
    d = head_out[:N, 0:2].reshape(*sh, 2)
    w = head_out[:N, 2].reshape(*sh)
    wgn = head_out[:N, 3].reshape(*sh)
    return net_out, (d, w, wgn)


# ----------------------------------------------------------------------------
if __name__ == "__main__":
    # small but consistent config
    p_patch, grid_rad, corr_planes = 2, 1, 4
    corr_in = corr_planes * (grid_rad * 2 + 1) ** 2 * p_patch * p_patch   # 144
    num_gru, num_heads, transf_dim, d_ff = 3, 4, 64, 2048                  # d_ff = torch default

    sh = (2, 8)          # -> N = 16 flattened edges, M = 8
    N = int(np.prod(sh))

    key = jax.random.PRNGKey(0)
    kp, k1, k2, k3, k4 = jax.random.split(key, 5)
    params_f32 = init_params(kp, corr_in=corr_in, transf_dim=transf_dim,
                             d_ff=d_ff, num_gru=num_gru)
    params = prepare_params(params_f32, corr_in=corr_in, num_heads=num_heads)

    net = jax.random.normal(k1, (*sh, DIM), jnp.float32)
    inp = jax.random.normal(k2, (*sh, DIM), jnp.float32)
    corr = jax.random.normal(k3, (*sh, corr_in), jnp.float32)
    residual = 0.1 * jax.random.normal(k4, (*sh, 2), jnp.float32)

    # ii/jj such that the first consecutive group has length M = 8
    ii = np.repeat(np.arange(2), 8).astype(np.int64)   # [0]*8 + [1]*8
    jj = np.repeat(np.arange(1, 3), 8).astype(np.int64)

    net_out, (d, w, wgn) = update_forward(net, inp, corr, residual, ii, jj, params,
                                          num_gru=num_gru, num_heads=num_heads)
    jax.block_until_ready((net_out, d, w, wgn))

    assert net_out.shape == (*sh, DIM) and net_out.dtype == jnp.float32
    assert d.shape == (*sh, 2) and w.shape == sh and wgn.shape == sh
    assert bool(jnp.all(jnp.isfinite(net_out)))
    assert bool(jnp.all(jnp.isfinite(d)))
    assert bool(jnp.all((w >= 0) & (w <= 1))) and bool(jnp.all((wgn >= 0) & (wgn <= 1)))
    print("KERNEL_OK")
</pallas_src>

<mosaic_0001>
module attributes {stable_mosaic.version = 11 : i64} {
  func.func @_update_kernel(%arg0: i32, %arg1: memref<16x384xf32, #tpu.memory_space<vmem>>, %arg2: memref<16x384xf32, #tpu.memory_space<vmem>>, %arg3: memref<16x256xbf16, #tpu.memory_space<vmem>>, %arg4: memref<16x2xf32, #tpu.memory_space<vmem>>, %arg5: memref<256x384xbf16, #tpu.memory_space<vmem>>, %arg6: memref<1x384xf32, #tpu.memory_space<vmem>>, %arg7: memref<384x384xbf16, #tpu.memory_space<vmem>>, %arg8: memref<1x384xf32, #tpu.memory_space<vmem>>, %arg9: memref<1x384xf32, #tpu.memory_space<vmem>>, %arg10: memref<1x384xf32, #tpu.memory_space<vmem>>, %arg11: memref<384x384xbf16, #tpu.memory_space<vmem>>, %arg12: memref<1x384xf32, #tpu.memory_space<vmem>>, %arg13: memref<2x384xf32, #tpu.memory_space<vmem>>, %arg14: memref<1x384xf32, #tpu.memory_space<vmem>>, %arg15: memref<1x384xf32, #tpu.memory_space<vmem>>, %arg16: memref<1x384xf32, #tpu.memory_space<vmem>>, %arg17: memref<384x384xbf16, #tpu.memory_space<vmem>>, %arg18: memref<1x384xf32, #tpu.memory_space<vmem>>, %arg19: memref<1x384xf32, #tpu.memory_space<vmem>>, %arg20: memref<1x384xf32, #tpu.memory_space<vmem>>, %arg21: memref<384x64xbf16, #tpu.memory_space<vmem>>, %arg22: memref<1x64xf32, #tpu.memory_space<vmem>>, %arg23: memref<64x192xbf16, #tpu.memory_space<vmem>>, %arg24: memref<1x192xf32, #tpu.memory_space<vmem>>, %arg25: memref<64x64xbf16, #tpu.memory_space<vmem>>, %arg26: memref<1x64xf32, #tpu.memory_space<vmem>>, %arg27: memref<1x64xf32, #tpu.memory_space<vmem>>, %arg28: memref<1x64xf32, #tpu.memory_space<vmem>>, %arg29: memref<64x2048xbf16, #tpu.memory_space<vmem>>, %arg30: memref<1x2048xf32, #tpu.memory_space<vmem>>, %arg31: memref<2048x64xbf16, #tpu.memory_space<vmem>>, %arg32: memref<1x64xf32, #tpu.memory_space<vmem>>, %arg33: memref<1x64xf32, #tpu.memory_space<vmem>>, %arg34: memref<1x64xf32, #tpu.memory_space<vmem>>, %arg35: memref<64x384xbf16, #tpu.memory_space<vmem>>, %arg36: memref<1x384xf32, #tpu.memory_space<vmem>>, %arg37: memref<3x1x384xf32, #tpu.memory_space<vmem>>, %arg38: memref<3x1x384xf32, #tpu.memory_space<vmem>>, %arg39: memref<3x384x384xbf16, #tpu.memory_space<vmem>>, %arg40: memref<3x1x384xf32, #tpu.memory_space<vmem>>, %arg41: memref<3x384x384xbf16, #tpu.memory_space<vmem>>, %arg42: memref<3x1x384xf32, #tpu.memory_space<vmem>>, %arg43: memref<3x384x384xbf16, #tpu.memory_space<vmem>>, %arg44: memref<3x1x384xf32, #tpu.memory_space<vmem>>, %arg45: memref<384x128xbf16, #tpu.memory_space<vmem>>, %arg46: memref<1x128xf32, #tpu.memory_space<vmem>>, %arg47: memref<16x384xf32, #tpu.memory_space<vmem>>, %arg48: memref<16x128xf32, #tpu.memory_space<vmem>>) attributes {dimension_semantics = [#tpu.dimension_semantics<parallel>], iteration_bounds = array<i64: 1>, scalar_prefetch = 0 : i64, scratch_operands = 0 : i64, tpu.core_type = #tpu.core_type<tc>, window_params = [{transform_indices = @transform_0, window_bounds = array<i64: 16, 384>}, {transform_indices = @transform_1, window_bounds = array<i64: 16, 384>}, {transform_indices = @transform_2, window_bounds = array<i64: 16, 256>}, {transform_indices = @transform_3, window_bounds = array<i64: 16, 2>}, {pipeline_mode = #tpu.pipeline_mode<synchronous>, transform_indices = @transform_4, window_bounds = array<i64: 256, 384>}, {pipeline_mode = #tpu.pipeline_mode<synchronous>, transform_indices = @transform_5, window_bounds = array<i64: 1, 384>}, {pipeline_mode = #tpu.pipeline_mode<synchronous>, transform_indices = @transform_6, window_bounds = array<i64: 384, 384>}, {pipeline_mode = #tpu.pipeline_mode<synchronous>, transform_indices = @transform_7, window_bounds = array<i64: 1, 384>}, {pipeline_mode = #tpu.pipeline_mode<synchronous>, transform_indices = @transform_8, window_bounds = array<i64: 1, 384>}, {pipeline_mode = #tpu.pipeline_mode<synchronous>, transform_indices = @transform_9, window_bounds = array<i64: 1, 384>}, {pipeline_mode = #tpu.pipeline_mode<synchronous>, transform_indices = @transform_10, window_bounds = array<i64: 384, 384>}, {pipeline_mode = #tpu.pipeline_mode<synchronous>, transform_indices = @transform_11, window_bounds = array<i64: 1, 384>}, {pipeline_mode = #tpu.pipeline_mode<synchronous>, transform_indices = @transform_12, window_bounds = array<i64: 2, 384>}, {pipeline_mode = #tpu.pipeline_mode<synchronous>, transform_indices = @transform_13, window_bounds = array<i64: 1, 384>}, {pipeline_mode = #tpu.pipeline_mode<synchronous>, transform_indices = @transform_14, window_bounds = array<i64: 1, 384>}, {pipeline_mode = #tpu.pipeline_mode<synchronous>, transform_indices = @transform_15, window_bounds = array<i64: 1, 384>}, {pipeline_mode = #tpu.pipeline_mode<synchronous>, transform_indices = @transform_16, window_bounds = array<i64: 384, 384>}, {pipeline_mode = #tpu.pipeline_mode<synchronous>, transform_indices = @transform_17, window_bounds = array<i64: 1, 384>}, {pipeline_mode = #tpu.pipeline_mode<synchronous>, transform_indices = @transform_18, window_bounds = array<i64: 1, 384>}, {pipeline_mode = #tpu.pipeline_mode<synchronous>, transform_indices = @transform_19, window_bounds = array<i64: 1, 384>}, {pipeline_mode = #tpu.pipeline_mode<synchronous>, transform_indices = @transform_20, window_bounds = array<i64: 384, 64>}, {pipeline_mode = #tpu.pipeline_mode<synchronous>, transform_indices = @transform_21, window_bounds = array<i64: 1, 64>}, {pipeline_mode = #tpu.pipeline_mode<synchronous>, transform_indices = @transform_22, window_bounds = array<i64: 64, 192>}, {pipeline_mode = #tpu.pipeline_mode<synchronous>, transform_indices = @transform_23, window_bounds = array<i64: 1, 192>}, {pipeline_mode = #tpu.pipeline_mode<synchronous>, transform_indices = @transform_24, window_bounds = array<i64: 64, 64>}, {pipeline_mode = #tpu.pipeline_mode<synchronous>, transform_indices = @transform_25, window_bounds = array<i64: 1, 64>}, {pipeline_mode = #tpu.pipeline_mode<synchronous>, transform_indices = @transform_26, window_bounds = array<i64: 1, 64>}, {pipeline_mode = #tpu.pipeline_mode<synchronous>, transform_indices = @transform_27, window_bounds = array<i64: 1, 64>}, {pipeline_mode = #tpu.pipeline_mode<synchronous>, transform_indices = @transform_28, window_bounds = array<i64: 64, 2048>}, {pipeline_mode = #tpu.pipeline_mode<synchronous>, transform_indices = @transform_29, window_bounds = array<i64: 1, 2048>}, {pipeline_mode = #tpu.pipeline_mode<synchronous>, transform_indices = @transform_30, window_bounds = array<i64: 2048, 64>}, {pipeline_mode = #tpu.pipeline_mode<synchronous>, transform_indices = @transform_31, window_bounds = array<i64: 1, 64>}, {pipeline_mode = #tpu.pipeline_mode<synchronous>, transform_indices = @transform_32, window_bounds = array<i64: 1, 64>}, {pipeline_mode = #tpu.pipeline_mode<synchronous>, transform_indices = @transform_33, window_bounds = array<i64: 1, 64>}, {pipeline_mode = #tpu.pipeline_mode<synchronous>, transform_indices = @transform_34, window_bounds = array<i64: 64, 384>}, {pipeline_mode = #tpu.pipeline_mode<synchronous>, transform_indices = @transform_35, window_bounds = array<i64: 1, 384>}, {pipeline_mode = #tpu.pipeline_mode<synchronous>, transform_indices = @transform_36, window_bounds = array<i64: 3, 1, 384>}, {pipeline_mode = #tpu.pipeline_mode<synchronous>, transform_indices = @transform_37, window_bounds = array<i64: 3, 1, 384>}, {pipeline_mode = #tpu.pipeline_mode<synchronous>, transform_indices = @transform_38, window_bounds = array<i64: 3, 384, 384>}, {pipeline_mode = #tpu.pipeline_mode<synchronous>, transform_indices = @transform_39, window_bounds = array<i64: 3, 1, 384>}, {pipeline_mode = #tpu.pipeline_mode<synchronous>, transform_indices = @transform_40, window_bounds = array<i64: 3, 384, 384>}, {pipeline_mode = #tpu.pipeline_mode<synchronous>, transform_indices = @transform_41, window_bounds = array<i64: 3, 1, 384>}, {pipeline_mode = #tpu.pipeline_mode<synchronous>, transform_indices = @transform_42, window_bounds = array<i64: 3, 384, 384>}, {pipeline_mode = #tpu.pipeline_mode<synchronous>, transform_indices = @transform_43, window_bounds = array<i64: 3, 1, 384>}, {pipeline_mode = #tpu.pipeline_mode<synchronous>, transform_indices = @transform_44, window_bounds = array<i64: 384, 128>}, {pipeline_mode = #tpu.pipeline_mode<synchronous>, transform_indices = @transform_45, window_bounds = array<i64: 1, 128>}, {transform_indices = @transform_46, window_bounds = array<i64: 16, 384>}, {transform_indices = @transform_47, window_bounds = array<i64: 16, 128>}]} {
    %c0 = arith.constant 0 : index
    %c0_0 = arith.constant 0 : index
    %0 = vector.load %arg3[%c0, %c0_0] : memref<16x256xbf16, #tpu.memory_space<vmem>>, vector<16x256xbf16>
    %c0_1 = arith.constant 0 : index
    %c0_2 = arith.constant 0 : index
    %1 = vector.load %arg5[%c0_1, %c0_2] : memref<256x384xbf16, #tpu.memory_space<vmem>>, vector<256x384xbf16>
    %c0_3 = arith.constant 0 : index
    %c0_4 = arith.constant 0 : index
    %2 = vector.load %arg6[%c0_3, %c0_4] : memref<1x384xf32, #tpu.memory_space<vmem>>, vector<1x384xf32>
    %cst = arith.constant dense<0.000000e+00> : vector<16x384xf32>
    %3 = tpu.matmul %0, %1, %cst {dimension_numbers = #tpu.dot_dimension_numbers<[1], [0], [0], [1], [0, 0, 1, 1], [], []>} : vector<16x256xbf16>, vector<256x384xbf16>, vector<16x384xf32> -> vector<16x384xf32>
    %4 = vector.broadcast %2 : vector<1x384xf32> to vector<16x384xf32>
    %5 = arith.addf %3, %4 : vector<16x384xf32>
    %cst_5 = arith.constant 0.000000e+00 : f32
    %6 = vector.broadcast %cst_5 : f32 to vector<16x384xf32>
    %7 = arith.maximumf %5, %6 : vector<16x384xf32>
    %c0_6 = arith.constant 0 : index
    %c0_7 = arith.constant 0 : index
    %8 = vector.load %arg7[%c0_6, %c0_7] : memref<384x384xbf16, #tpu.memory_space<vmem>>, vector<384x384xbf16>
    %c0_8 = arith.constant 0 : index
    %c0_9 = arith.constant 0 : index
    %9 = vector.load %arg8[%c0_8, %c0_9] : memref<1x384xf32, #tpu.memory_space<vmem>>, vector<1x384xf32>
    %10 = arith.truncf %7 : vector<16x384xf32> to vector<16x384xbf16>
    %cst_10 = arith.constant dense<0.000000e+00> : vector<16x384xf32>
    %11 = tpu.matmul %10, %8, %cst_10 {dimension_numbers = #tpu.dot_dimension_numbers<[1], [0], [0], [1], [0, 0, 1, 1], [], []>} : vector<16x384xbf16>, vector<384x384xbf16>, vector<16x384xf32> -> vector<16x384xf32>
    %12 = vector.broadcast %9 : vector<1x384xf32> to vector<16x384xf32>
    %13 = arith.addf %11, %12 : vector<16x384xf32>
    %c0_11 = arith.constant 0 : index
    %c0_12 = arith.constant 0 : index
    %14 = vector.load %arg9[%c0_11, %c0_12] : memref<1x384xf32, #tpu.memory_space<vmem>>, vector<1x384xf32>
    %c0_13 = arith.constant 0 : index
    %c0_14 = arith.constant 0 : index
    %15 = vector.load %arg10[%c0_13, %c0_14] : memref<1x384xf32, #tpu.memory_space<vmem>>, vector<1x384xf32>
    %cst_15 = arith.constant dense<0.000000e+00> : vector<16xf32>
    %16 = vector.multi_reduction <add>, %13, %cst_15 [1] : vector<16x384xf32> to vector<16xf32>
    %17 = vector.shape_cast %16 : vector<16xf32> to vector<16x1xf32>
    %cst_16 = arith.constant 3.840000e+02 : f32
    %18 = vector.broadcast %cst_16 : f32 to vector<16x1xf32>
    %19 = arith.divf %17, %18 : vector<16x1xf32>
    %20 = vector.broadcast %19 : vector<16x1xf32> to vector<16x384xf32>
    %21 = arith.subf %13, %20 : vector<16x384xf32>
    %22 = arith.mulf %21, %21 : vector<16x384xf32>
    %cst_17 = arith.constant dense<0.000000e+00> : vector<16xf32>
    %23 = vector.multi_reduction <add>, %22, %cst_17 [1] : vector<16x384xf32> to vector<16xf32>
    %24 = vector.shape_cast %23 : vector<16xf32> to vector<16x1xf32>
    %cst_18 = arith.constant 3.840000e+02 : f32
    %25 = vector.broadcast %cst_18 : f32 to vector<16x1xf32>
    %26 = arith.divf %24, %25 : vector<16x1xf32>
    %cst_19 = arith.constant 1.000000e-03 : f32
    %27 = vector.broadcast %cst_19 : f32 to vector<16x1xf32>
    %28 = arith.addf %26, %27 : vector<16x1xf32>
    %29 = math.rsqrt %28 : vector<16x1xf32>
    %30 = vector.broadcast %29 : vector<16x1xf32> to vector<16x384xf32>
    %31 = arith.mulf %21, %30 : vector<16x384xf32>
    %32 = vector.broadcast %14 : vector<1x384xf32> to vector<16x384xf32>
    %33 = arith.mulf %31, %32 : vector<16x384xf32>
    %34 = vector.broadcast %15 : vector<1x384xf32> to vector<16x384xf32>
    %35 = arith.addf %33, %34 : vector<16x384xf32>
    %cst_20 = arith.constant 0.000000e+00 : f32
    %36 = vector.broadcast %cst_20 : f32 to vector<16x384xf32>
    %37 = arith.maximumf %35, %36 : vector<16x384xf32>
    %c0_21 = arith.constant 0 : index
    %c0_22 = arith.constant 0 : index
    %38 = vector.load %arg11[%c0_21, %c0_22] : memref<384x384xbf16, #tpu.memory_space<vmem>>, vector<384x384xbf16>
    %c0_23 = arith.constant 0 : index
    %c0_24 = arith.constant 0 : index
    %39 = vector.load %arg12[%c0_23, %c0_24] : memref<1x384xf32, #tpu.memory_space<vmem>>, vector<1x384xf32>
    %40 = arith.truncf %37 : vector<16x384xf32> to vector<16x384xbf16>
    %cst_25 = arith.constant dense<0.000000e+00> : vector<16x384xf32>
    %41 = tpu.matmul %40, %38, %cst_25 {dimension_numbers = #tpu.dot_dimension_numbers<[1], [0], [0], [1], [0, 0, 1, 1], [], []>} : vector<16x384xbf16>, vector<384x384xbf16>, vector<16x384xf32> -> vector<16x384xf32>
    %42 = vector.broadcast %39 : vector<1x384xf32> to vector<16x384xf32>
    %43 = arith.addf %41, %42 : vector<16x384xf32>
    %c0_26 = arith.constant 0 : index
    %c0_27 = arith.constant 0 : index
    %44 = vector.load %arg13[%c0_26, %c0_27] : memref<2x384xf32, #tpu.memory_space<vmem>>, vector<2x384xf32>
    %c0_28 = arith.constant 0 : index
    %c0_29 = arith.constant 0 : index
    %45 = vector.load %arg4[%c0_28, %c0_29] : memref<16x2xf32, #tpu.memory_space<vmem>>, vector<16x2xf32>
    %46 = vector.extract_strided_slice %45 {offsets = [0, 0], sizes = [16, 1], strides = [1, 1]} : vector<16x2xf32> to vector<16x1xf32>
    %47 = vector.extract_strided_slice %44 {offsets = [0, 0], sizes = [1, 384], strides = [1, 1]} : vector<2x384xf32> to vector<1x384xf32>
    %48 = vector.broadcast %46 : vector<16x1xf32> to vector<16x384xf32>
    %49 = vector.broadcast %47 : vector<1x384xf32> to vector<16x384xf32>
    %50 = arith.mulf %48, %49 : vector<16x384xf32>
    %51 = vector.extract_strided_slice %45 {offsets = [0, 1], sizes = [16, 1], strides = [1, 1]} : vector<16x2xf32> to vector<16x1xf32>
    %52 = vector.extract_strided_slice %44 {offsets = [1, 0], sizes = [1, 384], strides = [1, 1]} : vector<2x384xf32> to vector<1x384xf32>
    %53 = vector.broadcast %51 : vector<16x1xf32> to vector<16x384xf32>
    %54 = vector.broadcast %52 : vector<1x384xf32> to vector<16x384xf32>
    %55 = arith.mulf %53, %54 : vector<16x384xf32>
    %56 = arith.addf %50, %55 : vector<16x384xf32>
    %c0_30 = arith.constant 0 : index
    %c0_31 = arith.constant 0 : index
    %57 = vector.load %arg14[%c0_30, %c0_31] : memref<1x384xf32, #tpu.memory_space<vmem>>, vector<1x384xf32>
    %58 = vector.broadcast %57 : vector<1x384xf32> to vector<16x384xf32>
    %59 = arith.addf %56, %58 : vector<16x384xf32>
    %c0_32 = arith.constant 0 : index
    %c0_33 = arith.constant 0 : index
    %60 = vector.load %arg15[%c0_32, %c0_33] : memref<1x384xf32, #tpu.memory_space<vmem>>, vector<1x384xf32>
    %c0_34 = arith.constant 0 : index
    %c0_35 = arith.constant 0 : index
    %61 = vector.load %arg16[%c0_34, %c0_35] : memref<1x384xf32, #tpu.memory_space<vmem>>, vector<1x384xf32>
    %cst_36 = arith.constant dense<0.000000e+00> : vector<16xf32>
    %62 = vector.multi_reduction <add>, %59, %cst_36 [1] : vector<16x384xf32> to vector<16xf32>
    %63 = vector.shape_cast %62 : vector<16xf32> to vector<16x1xf32>
    %cst_37 = arith.constant 3.840000e+02 : f32
    %64 = vector.broadcast %cst_37 : f32 to vector<16x1xf32>
    %65 = arith.divf %63, %64 : vector<16x1xf32>
    %66 = vector.broadcast %65 : vector<16x1xf32> to vector<16x384xf32>
    %67 = arith.subf %59, %66 : vector<16x384xf32>
    %68 = arith.mulf %67, %67 : vector<16x384xf32>
    %cst_38 = arith.constant dense<0.000000e+00> : vector<16xf32>
    %69 = vector.multi_reduction <add>, %68, %cst_38 [1] : vector<16x384xf32> to vector<16xf32>
    %70 = vector.shape_cast %69 : vector<16xf32> to vector<16x1xf32>
    %cst_39 = arith.constant 3.840000e+02 : f32
    %71 = vector.broadcast %cst_39 : f32 to vector<16x1xf32>
    %72 = arith.divf %70, %71 : vector<16x1xf32>
    %cst_40 = arith.constant 1.000000e-03 : f32
    %73 = vector.broadcast %cst_40 : f32 to vector<16x1xf32>
    %74 = arith.addf %72, %73 : vector<16x1xf32>
    %75 = math.rsqrt %74 : vector<16x1xf32>
    %76 = vector.broadcast %75 : vector<16x1xf32> to vector<16x384xf32>
    %77 = arith.mulf %67, %76 : vector<16x384xf32>
    %78 = vector.broadcast %60 : vector<1x384xf32> to vector<16x384xf32>
    %79 = arith.mulf %77, %78 : vector<16x384xf32>
    %80 = vector.broadcast %61 : vector<1x384xf32> to vector<16x384xf32>
    %81 = arith.addf %79, %80 : vector<16x384xf32>
    %cst_41 = arith.constant 0.000000e+00 : f32
    %82 = vector.broadcast %cst_41 : f32 to vector<16x384xf32>
    %83 = arith.maximumf %81, %82 : vector<16x384xf32>
    %c0_42 = arith.constant 0 : index
    %c0_43 = arith.constant 0 : index
    %84 = vector.load %arg17[%c0_42, %c0_43] : memref<384x384xbf16, #tpu.memory_space<vmem>>, vector<384x384xbf16>
    %c0_44 = arith.constant 0 : index
    %c0_45 = arith.constant 0 : index
    %85 = vector.load %arg18[%c0_44, %c0_45] : memref<1x384xf32, #tpu.memory_space<vmem>>, vector<1x384xf32>
    %86 = arith.truncf %83 : vector<16x384xf32> to vector<16x384xbf16>
    %cst_46 = arith.constant dense<0.000000e+00> : vector<16x384xf32>
    %87 = tpu.matmul %86, %84, %cst_46 {dimension_numbers = #tpu.dot_dimension_numbers<[1], [0], [0], [1], [0, 0, 1, 1], [], []>} : vector<16x384xbf16>, vector<384x384xbf16>, vector<16x384xf32> -> vector<16x384xf32>
    %88 = vector.broadcast %85 : vector<1x384xf32> to vector<16x384xf32>
    %89 = arith.addf %87, %88 : vector<16x384xf32>
    %c0_47 = arith.constant 0 : index
    %c0_48 = arith.constant 0 : index
    %90 = vector.load %arg1[%c0_47, %c0_48] : memref<16x384xf32, #tpu.memory_space<vmem>>, vector<16x384xf32>
    %c0_49 = arith.constant 0 : index
    %c0_50 = arith.constant 0 : index
    %91 = vector.load %arg2[%c0_49, %c0_50] : memref<16x384xf32, #tpu.memory_space<vmem>>, vector<16x384xf32>
    %92 = arith.addf %90, %91 : vector<16x384xf32>
    %93 = arith.addf %92, %43 : vector<16x384xf32>
    %94 = arith.addf %93, %89 : vector<16x384xf32>
    %c0_51 = arith.constant 0 : index
    %c0_52 = arith.constant 0 : index
    %95 = vector.load %arg19[%c0_51, %c0_52] : memref<1x384xf32, #tpu.memory_space<vmem>>, vector<1x384xf32>
    %c0_53 = arith.constant 0 : index
    %c0_54 = arith.constant 0 : index
    %96 = vector.load %arg20[%c0_53, %c0_54] : memref<1x384xf32, #tpu.memory_space<vmem>>, vector<1x384xf32>
    %cst_55 = arith.constant dense<0.000000e+00> : vector<16xf32>
    %97 = vector.multi_reduction <add>, %94, %cst_55 [1] : vector<16x384xf32> to vector<16xf32>
    %98 = vector.shape_cast %97 : vector<16xf32> to vector<16x1xf32>
    %cst_56 = arith.constant 3.840000e+02 : f32
    %99 = vector.broadcast %cst_56 : f32 to vector<16x1xf32>
    %100 = arith.divf %98, %99 : vector<16x1xf32>
    %101 = vector.broadcast %100 : vector<16x1xf32> to vector<16x384xf32>
    %102 = arith.subf %94, %101 : vector<16x384xf32>
    %103 = arith.mulf %102, %102 : vector<16x384xf32>
    %cst_57 = arith.constant dense<0.000000e+00> : vector<16xf32>
    %104 = vector.multi_reduction <add>, %103, %cst_57 [1] : vector<16x384xf32> to vector<16xf32>
    %105 = vector.shape_cast %104 : vector<16xf32> to vector<16x1xf32>
    %cst_58 = arith.constant 3.840000e+02 : f32
    %106 = vector.broadcast %cst_58 : f32 to vector<16x1xf32>
    %107 = arith.divf %105, %106 : vector<16x1xf32>
    %cst_59 = arith.constant 1.000000e-03 : f32
    %108 = vector.broadcast %cst_59 : f32 to vector<16x1xf32>
    %109 = arith.addf %107, %108 : vector<16x1xf32>
    %110 = math.rsqrt %109 : vector<16x1xf32>
    %111 = vector.broadcast %110 : vector<16x1xf32> to vector<16x384xf32>
    %112 = arith.mulf %102, %111 : vector<16x384xf32>
    %113 = vector.broadcast %95 : vector<1x384xf32> to vector<16x384xf32>
    %114 = arith.mulf %112, %113 : vector<16x384xf32>
    %115 = vector.broadcast %96 : vector<1x384xf32> to vector<16x384xf32>
    %116 = arith.addf %114, %115 : vector<16x384xf32>
    %c0_60 = arith.constant 0 : index
    %c0_61 = arith.constant 0 : index
    %117 = vector.load %arg21[%c0_60, %c0_61] : memref<384x64xbf16, #tpu.memory_space<vmem>>, vector<384x64xbf16>
    %c0_62 = arith.constant 0 : index
    %c0_63 = arith.constant 0 : index
    %118 = vector.load %arg22[%c0_62, %c0_63] : memref<1x64xf32, #tpu.memory_space<vmem>>, vector<1x64xf32>
    %119 = arith.truncf %116 : vector<16x384xf32> to vector<16x384xbf16>
    %cst_64 = arith.constant dense<0.000000e+00> : vector<16x64xf32>
    %120 = tpu.matmul %119, %117, %cst_64 {dimension_numbers = #tpu.dot_dimension_numbers<[1], [0], [0], [1], [0, 0, 1, 1], [], []>} : vector<16x384xbf16>, vector<384x64xbf16>, vector<16x64xf32> -> vector<16x64xf32>
    %121 = vector.broadcast %118 : vector<1x64xf32> to vector<16x64xf32>
    %122 = arith.addf %120, %121 : vector<16x64xf32>
    %123 = arith.truncf %122 : vector<16x64xf32> to vector<16x64xbf16>
    %c0_65 = arith.constant 0 : index
    %c0_66 = arith.constant 0 : index
    %124 = vector.load %arg23[%c0_65, %c0_66] : memref<64x192xbf16, #tpu.memory_space<vmem>>, vector<64x192xbf16>
    %c0_67 = arith.constant 0 : index
    %c0_68 = arith.constant 0 : index
    %125 = vector.load %arg24[%c0_67, %c0_68] : memref<1x192xf32, #tpu.memory_space<vmem>>, vector<1x192xf32>
    %cst_69 = arith.constant dense<0.000000e+00> : vector<16x192xf32>
    %126 = tpu.matmul %123, %124, %cst_69 {dimension_numbers = #tpu.dot_dimension_numbers<[1], [0], [0], [1], [0, 0, 1, 1], [], []>} : vector<16x64xbf16>, vector<64x192xbf16>, vector<16x192xf32> -> vector<16x192xf32>
    %127 = vector.broadcast %125 : vector<1x192xf32> to vector<16x192xf32>
    %128 = arith.addf %126, %127 : vector<16x192xf32>
    %129 = vector.extract_strided_slice %128 {offsets = [0, 0], sizes = [16, 64], strides = [1, 1]} : vector<16x192xf32> to vector<16x64xf32>
    %130 = vector.shape_cast %129 : vector<16x64xf32> to vector<2x8x64xf32>
    %131 = vector.extract_strided_slice %128 {offsets = [0, 64], sizes = [16, 64], strides = [1, 1]} : vector<16x192xf32> to vector<16x64xf32>
    %132 = vector.shape_cast %131 : vector<16x64xf32> to vector<2x8x64xf32>
    %133 = vector.extract_strided_slice %128 {offsets = [0, 128], sizes = [16, 64], strides = [1, 1]} : vector<16x192xf32> to vector<16x64xf32>
    %134 = vector.shape_cast %133 : vector<16x64xf32> to vector<2x8x64xf32>
    %135 = vector.extract_strided_slice %130 {offsets = [0, 0, 0], sizes = [2, 8, 16], strides = [1, 1, 1]} : vector<2x8x64xf32> to vector<2x8x16xf32>
    %136 = arith.truncf %135 : vector<2x8x16xf32> to vector<2x8x16xbf16>
    %137 = vector.extract_strided_slice %132 {offsets = [0, 0, 0], sizes = [2, 8, 16], strides = [1, 1, 1]} : vector<2x8x64xf32> to vector<2x8x16xf32>
    %138 = arith.truncf %137 : vector<2x8x16xf32> to vector<2x8x16xbf16>
    %139 = vector.extract_strided_slice %134 {offsets = [0, 0, 0], sizes = [2, 8, 16], strides = [1, 1, 1]} : vector<2x8x64xf32> to vector<2x8x16xf32>
    %140 = arith.truncf %139 : vector<2x8x16xf32> to vector<2x8x16xbf16>
    "tpu.trace_start"() <{level = 10 : i32, message = "gqd,gkd->gqk"}> : () -> ()
    %cst_70 = arith.constant dense<0.000000e+00> : vector<2x8x8xf32>
    %141 = tpu.matmul %136, %138, %cst_70 {dimension_numbers = #tpu.dot_dimension_numbers<[2], [2], [1], [1], [0, 0, 0, 1, 1, 1], [0], [0]>} : vector<2x8x16xbf16>, vector<2x8x16xbf16>, vector<2x8x8xf32> -> vector<2x8x8xf32>
    "tpu.trace_stop"() : () -> ()
    %cst_71 = arith.constant dense<0xFF800000> : vector<2x8xf32>
    %142 = vector.multi_reduction <maximumf>, %141, %cst_71 [2] : vector<2x8x8xf32> to vector<2x8xf32>
    %143 = vector.shape_cast %142 : vector<2x8xf32> to vector<2x8x1xf32>
    %144 = vector.broadcast %143 : vector<2x8x1xf32> to vector<2x8x8xf32>
    %145 = arith.subf %141, %144 : vector<2x8x8xf32>
    %146 = math.exp %145 : vector<2x8x8xf32>
    %cst_72 = arith.constant dense<0.000000e+00> : vector<2x8xf32>
    %147 = vector.multi_reduction <add>, %146, %cst_72 [2] : vector<2x8x8xf32> to vector<2x8xf32>
    %148 = vector.shape_cast %147 : vector<2x8xf32> to vector<2x8x1xf32>
    %149 = tpu.reciprocal %148 {approx = true} : vector<2x8x1xf32> -> vector<2x8x1xf32>
    %150 = vector.broadcast %149 : vector<2x8x1xf32> to vector<2x8x8xf32>
    %151 = arith.mulf %146, %150 : vector<2x8x8xf32>
    %152 = arith.truncf %151 : vector<2x8x8xf32> to vector<2x8x8xbf16>
    "tpu.trace_start"() <{level = 10 : i32, message = "gqk,gkd->gqd"}> : () -> ()
    %cst_73 = arith.constant dense<0.000000e+00> : vector<2x8x16xf32>
    %153 = tpu.matmul %152, %140, %cst_73 {dimension_numbers = #tpu.dot_dimension_numbers<[2], [1], [1], [2], [0, 0, 0, 1, 1, 2], [0], [0]>} : vector<2x8x8xbf16>, vector<2x8x16xbf16>, vector<2x8x16xf32> -> vector<2x8x16xf32>
    "tpu.trace_stop"() : () -> ()
    %154 = vector.extract_strided_slice %130 {offsets = [0, 0, 16], sizes = [2, 8, 16], strides = [1, 1, 1]} : vector<2x8x64xf32> to vector<2x8x16xf32>
    %155 = arith.truncf %154 : vector<2x8x16xf32> to vector<2x8x16xbf16>
    %156 = vector.extract_strided_slice %132 {offsets = [0, 0, 16], sizes = [2, 8, 16], strides = [1, 1, 1]} : vector<2x8x64xf32> to vector<2x8x16xf32>
    %157 = arith.truncf %156 : vector<2x8x16xf32> to vector<2x8x16xbf16>
    %158 = vector.extract_strided_slice %134 {offsets = [0, 0, 16], sizes = [2, 8, 16], strides = [1, 1, 1]} : vector<2x8x64xf32> to vector<2x8x16xf32>
    %159 = arith.truncf %158 : vector<2x8x16xf32> to vector<2x8x16xbf16>
    "tpu.trace_start"() <{level = 10 : i32, message = "gqd,gkd->gqk"}> : () -> ()
    %cst_74 = arith.constant dense<0.000000e+00> : vector<2x8x8xf32>
    %160 = tpu.matmul %155, %157, %cst_74 {dimension_numbers = #tpu.dot_dimension_numbers<[2], [2], [1], [1], [0, 0, 0, 1, 1, 1], [0], [0]>} : vector<2x8x16xbf16>, vector<2x8x16xbf16>, vector<2x8x8xf32> -> vector<2x8x8xf32>
    "tpu.trace_stop"() : () -> ()
    %cst_75 = arith.constant dense<0xFF800000> : vector<2x8xf32>
    %161 = vector.multi_reduction <maximumf>, %160, %cst_75 [2] : vector<2x8x8xf32> to vector<2x8xf32>
    %162 = vector.shape_cast %161 : vector<2x8xf32> to vector<2x8x1xf32>
    %163 = vector.broadcast %162 : vector<2x8x1xf32> to vector<2x8x8xf32>
    %164 = arith.subf %160, %163 : vector<2x8x8xf32>
    %165 = math.exp %164 : vector<2x8x8xf32>
    %cst_76 = arith.constant dense<0.000000e+00> : vector<2x8xf32>
    %166 = vector.multi_reduction <add>, %165, %cst_76 [2] : vector<2x8x8xf32> to vector<2x8xf32>
    %167 = vector.shape_cast %166 : vector<2x8xf32> to vector<2x8x1xf32>
    %168 = tpu.reciprocal %167 {approx = true} : vector<2x8x1xf32> -> vector<2x8x1xf32>
    %169 = vector.broadcast %168 : vector<2x8x1xf32> to vector<2x8x8xf32>
    %170 = arith.mulf %165, %169 : vector<2x8x8xf32>
    %171 = arith.truncf %170 : vector<2x8x8xf32> to vector<2x8x8xbf16>
    "tpu.trace_start"() <{level = 10 : i32, message = "gqk,gkd->gqd"}> : () -> ()
    %cst_77 = arith.constant dense<0.000000e+00> : vector<2x8x16xf32>
    %172 = tpu.matmul %171, %159, %cst_77 {dimension_numbers = #tpu.dot_dimension_numbers<[2], [1], [1], [2], [0, 0, 0, 1, 1, 2], [0], [0]>} : vector<2x8x8xbf16>, vector<2x8x16xbf16>, vector<2x8x16xf32> -> vector<2x8x16xf32>
    "tpu.trace_stop"() : () -> ()
    %173 = vector.extract_strided_slice %130 {offsets = [0, 0, 32], sizes = [2, 8, 16], strides = [1, 1, 1]} : vector<2x8x64xf32> to vector<2x8x16xf32>
    %174 = arith.truncf %173 : vector<2x8x16xf32> to vector<2x8x16xbf16>
    %175 = vector.extract_strided_slice %132 {offsets = [0, 0, 32], sizes = [2, 8, 16], strides = [1, 1, 1]} : vector<2x8x64xf32> to vector<2x8x16xf32>
    %176 = arith.truncf %175 : vector<2x8x16xf32> to vector<2x8x16xbf16>
    %177 = vector.extract_strided_slice %134 {offsets = [0, 0, 32], sizes = [2, 8, 16], strides = [1, 1, 1]} : vector<2x8x64xf32> to vector<2x8x16xf32>
    %178 = arith.truncf %177 : vector<2x8x16xf32> to vector<2x8x16xbf16>
    "tpu.trace_start"() <{level = 10 : i32, message = "gqd,gkd->gqk"}> : () -> ()
    %cst_78 = arith.constant dense<0.000000e+00> : vector<2x8x8xf32>
    %179 = tpu.matmul %174, %176, %cst_78 {dimension_numbers = #tpu.dot_dimension_numbers<[2], [2], [1], [1], [0, 0, 0, 1, 1, 1], [0], [0]>} : vector<2x8x16xbf16>, vector<2x8x16xbf16>, vector<2x8x8xf32> -> vector<2x8x8xf32>
    "tpu.trace_stop"() : () -> ()
    %cst_79 = arith.constant dense<0xFF800000> : vector<2x8xf32>
    %180 = vector.multi_reduction <maximumf>, %179, %cst_79 [2] : vector<2x8x8xf32> to vector<2x8xf32>
    %181 = vector.shape_cast %180 : vector<2x8xf32> to vector<2x8x1xf32>
    %182 = vector.broadcast %181 : vector<2x8x1xf32> to vector<2x8x8xf32>
    %183 = arith.subf %179, %182 : vector<2x8x8xf32>
    %184 = math.exp %183 : vector<2x8x8xf32>
    %cst_80 = arith.constant dense<0.000000e+00> : vector<2x8xf32>
    %185 = vector.multi_reduction <add>, %184, %cst_80 [2] : vector<2x8x8xf32> to vector<2x8xf32>
    %186 = vector.shape_cast %185 : vector<2x8xf32> to vector<2x8x1xf32>
    %187 = tpu.reciprocal %186 {approx = true} : vector<2x8x1xf32> -> vector<2x8x1xf32>
    %188 = vector.broadcast %187 : vector<2x8x1xf32> to vector<2x8x8xf32>
    %189 = arith.mulf %184, %188 : vector<2x8x8xf32>
    %190 = arith.truncf %189 : vector<2x8x8xf32> to vector<2x8x8xbf16>
    "tpu.trace_start"() <{level = 10 : i32, message = "gqk,gkd->gqd"}> : () -> ()
    %cst_81 = arith.constant dense<0.000000e+00> : vector<2x8x16xf32>
    %191 = tpu.matmul %190, %178, %cst_81 {dimension_numbers = #tpu.dot_dimension_numbers<[2], [1], [1], [2], [0, 0, 0, 1, 1, 2], [0], [0]>} : vector<2x8x8xbf16>, vector<2x8x16xbf16>, vector<2x8x16xf32> -> vector<2x8x16xf32>
    "tpu.trace_stop"() : () -> ()
    %192 = vector.extract_strided_slice %130 {offsets = [0, 0, 48], sizes = [2, 8, 16], strides = [1, 1, 1]} : vector<2x8x64xf32> to vector<2x8x16xf32>
    %193 = arith.truncf %192 : vector<2x8x16xf32> to vector<2x8x16xbf16>
    %194 = vector.extract_strided_slice %132 {offsets = [0, 0, 48], sizes = [2, 8, 16], strides = [1, 1, 1]} : vector<2x8x64xf32> to vector<2x8x16xf32>
    %195 = arith.truncf %194 : vector<2x8x16xf32> to vector<2x8x16xbf16>
    %196 = vector.extract_strided_slice %134 {offsets = [0, 0, 48], sizes = [2, 8, 16], strides = [1, 1, 1]} : vector<2x8x64xf32> to vector<2x8x16xf32>
    %197 = arith.truncf %196 : vector<2x8x16xf32> to vector<2x8x16xbf16>
    "tpu.trace_start"() <{level = 10 : i32, message = "gqd,gkd->gqk"}> : () -> ()
    %cst_82 = arith.constant dense<0.000000e+00> : vector<2x8x8xf32>
    %198 = tpu.matmul %193, %195, %cst_82 {dimension_numbers = #tpu.dot_dimension_numbers<[2], [2], [1], [1], [0, 0, 0, 1, 1, 1], [0], [0]>} : vector<2x8x16xbf16>, vector<2x8x16xbf16>, vector<2x8x8xf32> -> vector<2x8x8xf32>
    "tpu.trace_stop"() : () -> ()
    %cst_83 = arith.constant dense<0xFF800000> : vector<2x8xf32>
    %199 = vector.multi_reduction <maximumf>, %198, %cst_83 [2] : vector<2x8x8xf32> to vector<2x8xf32>
    %200 = vector.shape_cast %199 : vector<2x8xf32> to vector<2x8x1xf32>
    %201 = vector.broadcast %200 : vector<2x8x1xf32> to vector<2x8x8xf32>
    %202 = arith.subf %198, %201 : vector<2x8x8xf32>
    %203 = math.exp %202 : vector<2x8x8xf32>
    %cst_84 = arith.constant dense<0.000000e+00> : vector<2x8xf32>
    %204 = vector.multi_reduction <add>, %203, %cst_84 [2] : vector<2x8x8xf32> to vector<2x8xf32>
    %205 = vector.shape_cast %204 : vector<2x8xf32> to vector<2x8x1xf32>
    %206 = tpu.reciprocal %205 {approx = true} : vector<2x8x1xf32> -> vector<2x8x1xf32>
    %207 = vector.broadcast %206 : vector<2x8x1xf32> to vector<2x8x8xf32>
    %208 = arith.mulf %203, %207 : vector<2x8x8xf32>
    %209 = arith.truncf %208 : vector<2x8x8xf32> to vector<2x8x8xbf16>
    "tpu.trace_start"() <{level = 10 : i32, message = "gqk,gkd->gqd"}> : () -> ()
    %cst_85 = arith.constant dense<0.000000e+00> : vector<2x8x16xf32>
    %210 = tpu.matmul %209, %197, %cst_85 {dimension_numbers = #tpu.dot_dimension_numbers<[2], [1], [1], [2], [0, 0, 0, 1, 1, 2], [0], [0]>} : vector<2x8x8xbf16>, vector<2x8x16xbf16>, vector<2x8x16xf32> -> vector<2x8x16xf32>
    "tpu.trace_stop"() : () -> ()
    %211 = tpu.concatenate %153, %172, %191, %210 in 2 : vector<2x8x16xf32>, vector<2x8x16xf32>, vector<2x8x16xf32>, vector<2x8x16xf32> -> vector<2x8x64xf32>
    %212 = vector.shape_cast %211 : vector<2x8x64xf32> to vector<16x64xf32>
    %c0_86 = arith.constant 0 : index
    %c0_87 = arith.constant 0 : index
    %213 = vector.load %arg25[%c0_86, %c0_87] : memref<64x64xbf16, #tpu.memory_space<vmem>>, vector<64x64xbf16>
    %c0_88 = arith.constant 0 : index
    %c0_89 = arith.constant 0 : index
    %214 = vector.load %arg26[%c0_88, %c0_89] : memref<1x64xf32, #tpu.memory_space<vmem>>, vector<1x64xf32>
    %215 = arith.truncf %212 : vector<16x64xf32> to vector<16x64xbf16>
    %cst_90 = arith.constant dense<0.000000e+00> : vector<16x64xf32>
    %216 = tpu.matmul %215, %213, %cst_90 {dimension_numbers = #tpu.dot_dimension_numbers<[1], [0], [0], [1], [0, 0, 1, 1], [], []>} : vector<16x64xbf16>, vector<64x64xbf16>, vector<16x64xf32> -> vector<16x64xf32>
    %217 = vector.broadcast %214 : vector<1x64xf32> to vector<16x64xf32>
    %218 = arith.addf %216, %217 : vector<16x64xf32>
    %219 = arith.addf %122, %218 : vector<16x64xf32>
    %c0_91 = arith.constant 0 : index
    %c0_92 = arith.constant 0 : index
    %220 = vector.load %arg27[%c0_91, %c0_92] : memref<1x64xf32, #tpu.memory_space<vmem>>, vector<1x64xf32>
    %c0_93 = arith.constant 0 : index
    %c0_94 = arith.constant 0 : index
    %221 = vector.load %arg28[%c0_93, %c0_94] : memref<1x64xf32, #tpu.memory_space<vmem>>, vector<1x64xf32>
    %cst_95 = arith.constant dense<0.000000e+00> : vector<16xf32>
    %222 = vector.multi_reduction <add>, %219, %cst_95 [1] : vector<16x64xf32> to vector<16xf32>
    %223 = vector.shape_cast %222 : vector<16xf32> to vector<16x1xf32>
    %cst_96 = arith.constant 6.400000e+01 : f32
    %224 = vector.broadcast %cst_96 : f32 to vector<16x1xf32>
    %225 = arith.divf %223, %224 : vector<16x1xf32>
    %226 = vector.broadcast %225 : vector<16x1xf32> to vector<16x64xf32>
    %227 = arith.subf %219, %226 : vector<16x64xf32>
    %228 = arith.mulf %227, %227 : vector<16x64xf32>
    %cst_97 = arith.constant dense<0.000000e+00> : vector<16xf32>
    %229 = vector.multi_reduction <add>, %228, %cst_97 [1] : vector<16x64xf32> to vector<16xf32>
    %230 = vector.shape_cast %229 : vector<16xf32> to vector<16x1xf32>
    %cst_98 = arith.constant 6.400000e+01 : f32
    %231 = vector.broadcast %cst_98 : f32 to vector<16x1xf32>
    %232 = arith.divf %230, %231 : vector<16x1xf32>
    %cst_99 = arith.constant 9.99999974E-6 : f32
    %233 = vector.broadcast %cst_99 : f32 to vector<16x1xf32>
    %234 = arith.addf %232, %233 : vector<16x1xf32>
    %235 = math.rsqrt %234 : vector<16x1xf32>
    %236 = vector.broadcast %235 : vector<16x1xf32> to vector<16x64xf32>
    %237 = arith.mulf %227, %236 : vector<16x64xf32>
    %238 = vector.broadcast %220 : vector<1x64xf32> to vector<16x64xf32>
    %239 = arith.mulf %237, %238 : vector<16x64xf32>
    %240 = vector.broadcast %221 : vector<1x64xf32> to vector<16x64xf32>
    %241 = arith.addf %239, %240 : vector<16x64xf32>
    %c0_100 = arith.constant 0 : index
    %c0_101 = arith.constant 0 : index
    %242 = vector.load %arg29[%c0_100, %c0_101] : memref<64x2048xbf16, #tpu.memory_space<vmem>>, vector<64x2048xbf16>
    %c0_102 = arith.constant 0 : index
    %c0_103 = arith.constant 0 : index
    %243 = vector.load %arg30[%c0_102, %c0_103] : memref<1x2048xf32, #tpu.memory_space<vmem>>, vector<1x2048xf32>
    %244 = arith.truncf %241 : vector<16x64xf32> to vector<16x64xbf16>
    %cst_104 = arith.constant dense<0.000000e+00> : vector<16x2048xf32>
    %245 = tpu.matmul %244, %242, %cst_104 {dimension_numbers = #tpu.dot_dimension_numbers<[1], [0], [0], [1], [0, 0, 1, 1], [], []>} : vector<16x64xbf16>, vector<64x2048xbf16>, vector<16x2048xf32> -> vector<16x2048xf32>
    %246 = vector.broadcast %243 : vector<1x2048xf32> to vector<16x2048xf32>
    %247 = arith.addf %245, %246 : vector<16x2048xf32>
    %cst_105 = arith.constant 0.000000e+00 : f32
    %248 = vector.broadcast %cst_105 : f32 to vector<16x2048xf32>
    %249 = arith.maximumf %247, %248 : vector<16x2048xf32>
    %250 = arith.truncf %249 : vector<16x2048xf32> to vector<16x2048xbf16>
    %c0_106 = arith.constant 0 : index
    %c0_107 = arith.constant 0 : index
    %251 = vector.load %arg31[%c0_106, %c0_107] : memref<2048x64xbf16, #tpu.memory_space<vmem>>, vector<2048x64xbf16>
    %c0_108 = arith.constant 0 : index
    %c0_109 = arith.constant 0 : index
    %252 = vector.load %arg32[%c0_108, %c0_109] : memref<1x64xf32, #tpu.memory_space<vmem>>, vector<1x64xf32>
    %cst_110 = arith.constant dense<0.000000e+00> : vector<16x64xf32>
    %253 = tpu.matmul %250, %251, %cst_110 {dimension_numbers = #tpu.dot_dimension_numbers<[1], [0], [0], [1], [0, 0, 1, 1], [], []>} : vector<16x2048xbf16>, vector<2048x64xbf16>, vector<16x64xf32> -> vector<16x64xf32>
    %254 = vector.broadcast %252 : vector<1x64xf32> to vector<16x64xf32>
    %255 = arith.addf %253, %254 : vector<16x64xf32>
    %256 = arith.addf %241, %255 : vector<16x64xf32>
    %c0_111 = arith.constant 0 : index
    %c0_112 = arith.constant 0 : index
    %257 = vector.load %arg33[%c0_111, %c0_112] : memref<1x64xf32, #tpu.memory_space<vmem>>, vector<1x64xf32>
    %c0_113 = arith.constant 0 : index
    %c0_114 = arith.constant 0 : index
    %258 = vector.load %arg34[%c0_113, %c0_114] : memref<1x64xf32, #tpu.memory_space<vmem>>, vector<1x64xf32>
    %cst_115 = arith.constant dense<0.000000e+00> : vector<16xf32>
    %259 = vector.multi_reduction <add>, %256, %cst_115 [1] : vector<16x64xf32> to vector<16xf32>
    %260 = vector.shape_cast %259 : vector<16xf32> to vector<16x1xf32>
    %cst_116 = arith.constant 6.400000e+01 : f32
    %261 = vector.broadcast %cst_116 : f32 to vector<16x1xf32>
    %262 = arith.divf %260, %261 : vector<16x1xf32>
    %263 = vector.broadcast %262 : vector<16x1xf32> to vector<16x64xf32>
    %264 = arith.subf %256, %263 : vector<16x64xf32>
    %265 = arith.mulf %264, %264 : vector<16x64xf32>
    %cst_117 = arith.constant dense<0.000000e+00> : vector<16xf32>
    %266 = vector.multi_reduction <add>, %265, %cst_117 [1] : vector<16x64xf32> to vector<16xf32>
    %267 = vector.shape_cast %266 : vector<16xf32> to vector<16x1xf32>
    %cst_118 = arith.constant 6.400000e+01 : f32
    %268 = vector.broadcast %cst_118 : f32 to vector<16x1xf32>
    %269 = arith.divf %267, %268 : vector<16x1xf32>
    %cst_119 = arith.constant 9.99999974E-6 : f32
    %270 = vector.broadcast %cst_119 : f32 to vector<16x1xf32>
    %271 = arith.addf %269, %270 : vector<16x1xf32>
    %272 = math.rsqrt %271 : vector<16x1xf32>
    %273 = vector.broadcast %272 : vector<16x1xf32> to vector<16x64xf32>
    %274 = arith.mulf %264, %273 : vector<16x64xf32>
    %275 = vector.broadcast %257 : vector<1x64xf32> to vector<16x64xf32>
    %276 = arith.mulf %274, %275 : vector<16x64xf32>
    %277 = vector.broadcast %258 : vector<1x64xf32> to vector<16x64xf32>
    %278 = arith.addf %276, %277 : vector<16x64xf32>
    %c0_120 = arith.constant 0 : index
    %c0_121 = arith.constant 0 : index
    %279 = vector.load %arg35[%c0_120, %c0_121] : memref<64x384xbf16, #tpu.memory_space<vmem>>, vector<64x384xbf16>
    %c0_122 = arith.constant 0 : index
    %c0_123 = arith.constant 0 : index
    %280 = vector.load %arg36[%c0_122, %c0_123] : memref<1x384xf32, #tpu.memory_space<vmem>>, vector<1x384xf32>
    %281 = arith.truncf %278 : vector<16x64xf32> to vector<16x64xbf16>
    %cst_124 = arith.constant dense<0.000000e+00> : vector<16x384xf32>
    %282 = tpu.matmul %281, %279, %cst_124 {dimension_numbers = #tpu.dot_dimension_numbers<[1], [0], [0], [1], [0, 0, 1, 1], [], []>} : vector<16x64xbf16>, vector<64x384xbf16>, vector<16x384xf32> -> vector<16x384xf32>
    %283 = vector.broadcast %280 : vector<1x384xf32> to vector<16x384xf32>
    %284 = arith.addf %282, %283 : vector<16x384xf32>
    %285 = arith.addf %116, %284 : vector<16x384xf32>
    %c0_125 = arith.constant 0 : index
    %c0_126 = arith.constant 0 : index
    %c0_127 = arith.constant 0 : index
    %286 = vector.load %arg37[%c0_125, %c0_126, %c0_127] : memref<3x1x384xf32, #tpu.memory_space<vmem>>, vector<1x1x384xf32>
    %287 = vector.shape_cast %286 : vector<1x1x384xf32> to vector<1x384xf32>
    %c0_128 = arith.constant 0 : index
    %c0_129 = arith.constant 0 : index
    %c0_130 = arith.constant 0 : index
    %288 = vector.load %arg38[%c0_128, %c0_129, %c0_130] : memref<3x1x384xf32, #tpu.memory_space<vmem>>, vector<1x1x384xf32>
    %289 = vector.shape_cast %288 : vector<1x1x384xf32> to vector<1x384xf32>
    %cst_131 = arith.constant dense<0.000000e+00> : vector<16xf32>
    %290 = vector.multi_reduction <add>, %285, %cst_131 [1] : vector<16x384xf32> to vector<16xf32>
    %291 = vector.shape_cast %290 : vector<16xf32> to vector<16x1xf32>
    %cst_132 = arith.constant 3.840000e+02 : f32
    %292 = vector.broadcast %cst_132 : f32 to vector<16x1xf32>
    %293 = arith.divf %291, %292 : vector<16x1xf32>
    %294 = vector.broadcast %293 : vector<16x1xf32> to vector<16x384xf32>
    %295 = arith.subf %285, %294 : vector<16x384xf32>
    %296 = arith.mulf %295, %295 : vector<16x384xf32>
    %cst_133 = arith.constant dense<0.000000e+00> : vector<16xf32>
    %297 = vector.multi_reduction <add>, %296, %cst_133 [1] : vector<16x384xf32> to vector<16xf32>
    %298 = vector.shape_cast %297 : vector<16xf32> to vector<16x1xf32>
    %cst_134 = arith.constant 3.840000e+02 : f32
    %299 = vector.broadcast %cst_134 : f32 to vector<16x1xf32>
    %300 = arith.divf %298, %299 : vector<16x1xf32>
    %cst_135 = arith.constant 1.000000e-03 : f32
    %301 = vector.broadcast %cst_135 : f32 to vector<16x1xf32>
    %302 = arith.addf %300, %301 : vector<16x1xf32>
    %303 = math.rsqrt %302 : vector<16x1xf32>
    %304 = vector.broadcast %303 : vector<16x1xf32> to vector<16x384xf32>
    %305 = arith.mulf %295, %304 : vector<16x384xf32>
    %306 = vector.broadcast %287 : vector<1x384xf32> to vector<16x384xf32>
    %307 = arith.mulf %305, %306 : vector<16x384xf32>
    %308 = vector.broadcast %289 : vector<1x384xf32> to vector<16x384xf32>
    %309 = arith.addf %307, %308 : vector<16x384xf32>
    %c0_136 = arith.constant 0 : index
    %c0_137 = arith.constant 0 : index
    %c0_138 = arith.constant 0 : index
    %310 = vector.load %arg39[%c0_136, %c0_137, %c0_138] : memref<3x384x384xbf16, #tpu.memory_space<vmem>>, vector<1x384x384xbf16>
    %311 = vector.shape_cast %310 : vector<1x384x384xbf16> to vector<384x384xbf16>
    %c0_139 = arith.constant 0 : index
    %c0_140 = arith.constant 0 : index
    %c0_141 = arith.constant 0 : index
    %312 = vector.load %arg40[%c0_139, %c0_140, %c0_141] : memref<3x1x384xf32, #tpu.memory_space<vmem>>, vector<1x1x384xf32>
    %313 = vector.shape_cast %312 : vector<1x1x384xf32> to vector<1x384xf32>
    %314 = arith.truncf %309 : vector<16x384xf32> to vector<16x384xbf16>
    %cst_142 = arith.constant dense<0.000000e+00> : vector<16x384xf32>
    %315 = tpu.matmul %314, %311, %cst_142 {dimension_numbers = #tpu.dot_dimension_numbers<[1], [0], [0], [1], [0, 0, 1, 1], [], []>} : vector<16x384xbf16>, vector<384x384xbf16>, vector<16x384xf32> -> vector<16x384xf32>
    %316 = vector.broadcast %313 : vector<1x384xf32> to vector<16x384xf32>
    %317 = arith.addf %315, %316 : vector<16x384xf32>
    %318 = arith.negf %317 : vector<16x384xf32>
    %319 = math.exp %318 : vector<16x384xf32>
    %cst_143 = arith.constant 1.000000e+00 : f32
    %320 = vector.broadcast %cst_143 : f32 to vector<16x384xf32>
    %321 = arith.addf %320, %319 : vector<16x384xf32>
    %322 = arith.divf %320, %321 : vector<16x384xf32>
    %c0_144 = arith.constant 0 : index
    %c0_145 = arith.constant 0 : index
    %c0_146 = arith.constant 0 : index
    %323 = vector.load %arg41[%c0_144, %c0_145, %c0_146] : memref<3x384x384xbf16, #tpu.memory_space<vmem>>, vector<1x384x384xbf16>
    %324 = vector.shape_cast %323 : vector<1x384x384xbf16> to vector<384x384xbf16>
    %c0_147 = arith.constant 0 : index
    %c0_148 = arith.constant 0 : index
    %c0_149 = arith.constant 0 : index
    %325 = vector.load %arg42[%c0_147, %c0_148, %c0_149] : memref<3x1x384xf32, #tpu.memory_space<vmem>>, vector<1x1x384xf32>
    %326 = vector.shape_cast %325 : vector<1x1x384xf32> to vector<1x384xf32>
    %327 = arith.truncf %309 : vector<16x384xf32> to vector<16x384xbf16>
    %cst_150 = arith.constant dense<0.000000e+00> : vector<16x384xf32>
    %328 = tpu.matmul %327, %324, %cst_150 {dimension_numbers = #tpu.dot_dimension_numbers<[1], [0], [0], [1], [0, 0, 1, 1], [], []>} : vector<16x384xbf16>, vector<384x384xbf16>, vector<16x384xf32> -> vector<16x384xf32>
    %329 = vector.broadcast %326 : vector<1x384xf32> to vector<16x384xf32>
    %330 = arith.addf %328, %329 : vector<16x384xf32>
    %cst_151 = arith.constant 0.000000e+00 : f32
    %331 = vector.broadcast %cst_151 : f32 to vector<16x384xf32>
    %332 = arith.maximumf %330, %331 : vector<16x384xf32>
    %c0_152 = arith.constant 0 : index
    %c0_153 = arith.constant 0 : index
    %c0_154 = arith.constant 0 : index
    %333 = vector.load %arg43[%c0_152, %c0_153, %c0_154] : memref<3x384x384xbf16, #tpu.memory_space<vmem>>, vector<1x384x384xbf16>
    %334 = vector.shape_cast %333 : vector<1x384x384xbf16> to vector<384x384xbf16>
    %c0_155 = arith.constant 0 : index
    %c0_156 = arith.constant 0 : index
    %c0_157 = arith.constant 0 : index
    %335 = vector.load %arg44[%c0_155, %c0_156, %c0_157] : memref<3x1x384xf32, #tpu.memory_space<vmem>>, vector<1x1x384xf32>
    %336 = vector.shape_cast %335 : vector<1x1x384xf32> to vector<1x384xf32>
    %337 = arith.truncf %332 : vector<16x384xf32> to vector<16x384xbf16>
    %cst_158 = arith.constant dense<0.000000e+00> : vector<16x384xf32>
    %338 = tpu.matmul %337, %334, %cst_158 {dimension_numbers = #tpu.dot_dimension_numbers<[1], [0], [0], [1], [0, 0, 1, 1], [], []>} : vector<16x384xbf16>, vector<384x384xbf16>, vector<16x384xf32> -> vector<16x384xf32>
    %339 = vector.broadcast %336 : vector<1x384xf32> to vector<16x384xf32>
    %340 = arith.addf %338, %339 : vector<16x384xf32>
    %341 = arith.mulf %322, %340 : vector<16x384xf32>
    %342 = arith.addf %309, %341 : vector<16x384xf32>
    %c1 = arith.constant 1 : index
    %c0_159 = arith.constant 0 : index
    %c0_160 = arith.constant 0 : index
    %343 = vector.load %arg37[%c1, %c0_159, %c0_160] : memref<3x1x384xf32, #tpu.memory_space<vmem>>, vector<1x1x384xf32>
    %344 = vector.shape_cast %343 : vector<1x1x384xf32> to vector<1x384xf32>
    %c1_161 = arith.constant 1 : index
    %c0_162 = arith.constant 0 : index
    %c0_163 = arith.constant 0 : index
    %345 = vector.load %arg38[%c1_161, %c0_162, %c0_163] : memref<3x1x384xf32, #tpu.memory_space<vmem>>, vector<1x1x384xf32>
    %346 = vector.shape_cast %345 : vector<1x1x384xf32> to vector<1x384xf32>
    %cst_164 = arith.constant dense<0.000000e+00> : vector<16xf32>
    %347 = vector.multi_reduction <add>, %342, %cst_164 [1] : vector<16x384xf32> to vector<16xf32>
    %348 = vector.shape_cast %347 : vector<16xf32> to vector<16x1xf32>
    %cst_165 = arith.constant 3.840000e+02 : f32
    %349 = vector.broadcast %cst_165 : f32 to vector<16x1xf32>
    %350 = arith.divf %348, %349 : vector<16x1xf32>
    %351 = vector.broadcast %350 : vector<16x1xf32> to vector<16x384xf32>
    %352 = arith.subf %342, %351 : vector<16x384xf32>
    %353 = arith.mulf %352, %352 : vector<16x384xf32>
    %cst_166 = arith.constant dense<0.000000e+00> : vector<16xf32>
    %354 = vector.multi_reduction <add>, %353, %cst_166 [1] : vector<16x384xf32> to vector<16xf32>
    %355 = vector.shape_cast %354 : vector<16xf32> to vector<16x1xf32>
    %cst_167 = arith.constant 3.840000e+02 : f32
    %356 = vector.broadcast %cst_167 : f32 to vector<16x1xf32>
    %357 = arith.divf %355, %356 : vector<16x1xf32>
    %cst_168 = arith.constant 1.000000e-03 : f32
    %358 = vector.broadcast %cst_168 : f32 to vector<16x1xf32>
    %359 = arith.addf %357, %358 : vector<16x1xf32>
    %360 = math.rsqrt %359 : vector<16x1xf32>
    %361 = vector.broadcast %360 : vector<16x1xf32> to vector<16x384xf32>
    %362 = arith.mulf %352, %361 : vector<16x384xf32>
    %363 = vector.broadcast %344 : vector<1x384xf32> to vector<16x384xf32>
    %364 = arith.mulf %362, %363 : vector<16x384xf32>
    %365 = vector.broadcast %346 : vector<1x384xf32> to vector<16x384xf32>
    %366 = arith.addf %364, %365 : vector<16x384xf32>
    %c1_169 = arith.constant 1 : index
    %c0_170 = arith.constant 0 : index
    %c0_171 = arith.constant 0 : index
    %367 = vector.load %arg39[%c1_169, %c0_170, %c0_171] : memref<3x384x384xbf16, #tpu.memory_space<vmem>>, vector<1x384x384xbf16>
    %368 = vector.shape_cast %367 : vector<1x384x384xbf16> to vector<384x384xbf16>
    %c1_172 = arith.constant 1 : index
    %c0_173 = arith.constant 0 : index
    %c0_174 = arith.constant 0 : index
    %369 = vector.load %arg40[%c1_172, %c0_173, %c0_174] : memref<3x1x384xf32, #tpu.memory_space<vmem>>, vector<1x1x384xf32>
    %370 = vector.shape_cast %369 : vector<1x1x384xf32> to vector<1x384xf32>
    %371 = arith.truncf %366 : vector<16x384xf32> to vector<16x384xbf16>
    %cst_175 = arith.constant dense<0.000000e+00> : vector<16x384xf32>
    %372 = tpu.matmul %371, %368, %cst_175 {dimension_numbers = #tpu.dot_dimension_numbers<[1], [0], [0], [1], [0, 0, 1, 1], [], []>} : vector<16x384xbf16>, vector<384x384xbf16>, vector<16x384xf32> -> vector<16x384xf32>
    %373 = vector.broadcast %370 : vector<1x384xf32> to vector<16x384xf32>
    %374 = arith.addf %372, %373 : vector<16x384xf32>
    %375 = arith.negf %374 : vector<16x384xf32>
    %376 = math.exp %375 : vector<16x384xf32>
    %cst_176 = arith.constant 1.000000e+00 : f32
    %377 = vector.broadcast %cst_176 : f32 to vector<16x384xf32>
    %378 = arith.addf %377, %376 : vector<16x384xf32>
    %379 = arith.divf %377, %378 : vector<16x384xf32>
    %c1_177 = arith.constant 1 : index
    %c0_178 = arith.constant 0 : index
    %c0_179 = arith.constant 0 : index
    %380 = vector.load %arg41[%c1_177, %c0_178, %c0_179] : memref<3x384x384xbf16, #tpu.memory_space<vmem>>, vector<1x384x384xbf16>
    %381 = vector.shape_cast %380 : vector<1x384x384xbf16> to vector<384x384xbf16>
    %c1_180 = arith.constant 1 : index
    %c0_181 = arith.constant 0 : index
    %c0_182 = arith.constant 0 : index
    %382 = vector.load %arg42[%c1_180, %c0_181, %c0_182] : memref<3x1x384xf32, #tpu.memory_space<vmem>>, vector<1x1x384xf32>
    %383 = vector.shape_cast %382 : vector<1x1x384xf32> to vector<1x384xf32>
    %384 = arith.truncf %366 : vector<16x384xf32> to vector<16x384xbf16>
    %cst_183 = arith.constant dense<0.000000e+00> : vector<16x384xf32>
    %385 = tpu.matmul %384, %381, %cst_183 {dimension_numbers = #tpu.dot_dimension_numbers<[1], [0], [0], [1], [0, 0, 1, 1], [], []>} : vector<16x384xbf16>, vector<384x384xbf16>, vector<16x384xf32> -> vector<16x384xf32>
    %386 = vector.broadcast %383 : vector<1x384xf32> to vector<16x384xf32>
    %387 = arith.addf %385, %386 : vector<16x384xf32>
    %cst_184 = arith.constant 0.000000e+00 : f32
    %388 = vector.broadcast %cst_184 : f32 to vector<16x384xf32>
    %389 = arith.maximumf %387, %388 : vector<16x384xf32>
    %c1_185 = arith.constant 1 : index
    %c0_186 = arith.constant 0 : index
    %c0_187 = arith.constant 0 : index
    %390 = vector.load %arg43[%c1_185, %c0_186, %c0_187] : memref<3x384x384xbf16, #tpu.memory_space<vmem>>, vector<1x384x384xbf16>
    %391 = vector.shape_cast %390 : vector<1x384x384xbf16> to vector<384x384xbf16>
    %c1_188 = arith.constant 1 : index
    %c0_189 = arith.constant 0 : index
    %c0_190 = arith.constant 0 : index
    %392 = vector.load %arg44[%c1_188, %c0_189, %c0_190] : memref<3x1x384xf32, #tpu.memory_space<vmem>>, vector<1x1x384xf32>
    %393 = vector.shape_cast %392 : vector<1x1x384xf32> to vector<1x384xf32>
    %394 = arith.truncf %389 : vector<16x384xf32> to vector<16x384xbf16>
    %cst_191 = arith.constant dense<0.000000e+00> : vector<16x384xf32>
    %395 = tpu.matmul %394, %391, %cst_191 {dimension_numbers = #tpu.dot_dimension_numbers<[1], [0], [0], [1], [0, 0, 1, 1], [], []>} : vector<16x384xbf16>, vector<384x384xbf16>, vector<16x384xf32> -> vector<16x384xf32>
    %396 = vector.broadcast %393 : vector<1x384xf32> to vector<16x384xf32>
    %397 = arith.addf %395, %396 : vector<16x384xf32>
    %398 = arith.mulf %379, %397 : vector<16x384xf32>
    %399 = arith.addf %366, %398 : vector<16x384xf32>
    %c2 = arith.constant 2 : index
    %c0_192 = arith.constant 0 : index
    %c0_193 = arith.constant 0 : index
    %400 = vector.load %arg37[%c2, %c0_192, %c0_193] : memref<3x1x384xf32, #tpu.memory_space<vmem>>, vector<1x1x384xf32>
    %401 = vector.shape_cast %400 : vector<1x1x384xf32> to vector<1x384xf32>
    %c2_194 = arith.constant 2 : index
    %c0_195 = arith.constant 0 : index
    %c0_196 = arith.constant 0 : index
    %402 = vector.load %arg38[%c2_194, %c0_195, %c0_196] : memref<3x1x384xf32, #tpu.memory_space<vmem>>, vector<1x1x384xf32>
    %403 = vector.shape_cast %402 : vector<1x1x384xf32> to vector<1x384xf32>
    %cst_197 = arith.constant dense<0.000000e+00> : vector<16xf32>
    %404 = vector.multi_reduction <add>, %399, %cst_197 [1] : vector<16x384xf32> to vector<16xf32>
    %405 = vector.shape_cast %404 : vector<16xf32> to vector<16x1xf32>
    %cst_198 = arith.constant 3.840000e+02 : f32
    %406 = vector.broadcast %cst_198 : f32 to vector<16x1xf32>
    %407 = arith.divf %405, %406 : vector<16x1xf32>
    %408 = vector.broadcast %407 : vector<16x1xf32> to vector<16x384xf32>
    %409 = arith.subf %399, %408 : vector<16x384xf32>
    %410 = arith.mulf %409, %409 : vector<16x384xf32>
    %cst_199 = arith.constant dense<0.000000e+00> : vector<16xf32>
    %411 = vector.multi_reduction <add>, %410, %cst_199 [1] : vector<16x384xf32> to vector<16xf32>
    %412 = vector.shape_cast %411 : vector<16xf32> to vector<16x1xf32>
    %cst_200 = arith.constant 3.840000e+02 : f32
    %413 = vector.broadcast %cst_200 : f32 to vector<16x1xf32>
    %414 = arith.divf %412, %413 : vector<16x1xf32>
    %cst_201 = arith.constant 1.000000e-03 : f32
    %415 = vector.broadcast %cst_201 : f32 to vector<16x1xf32>
    %416 = arith.addf %414, %415 : vector<16x1xf32>
    %417 = math.rsqrt %416 : vector<16x1xf32>
    %418 = vector.broadcast %417 : vector<16x1xf32> to vector<16x384xf32>
    %419 = arith.mulf %409, %418 : vector<16x384xf32>
    %420 = vector.broadcast %401 : vector<1x384xf32> to vector<16x384xf32>
    %421 = arith.mulf %419, %420 : vector<16x384xf32>
    %422 = vector.broadcast %403 : vector<1x384xf32> to vector<16x384xf32>
    %423 = arith.addf %421, %422 : vector<16x384xf32>
    %c2_202 = arith.constant 2 : index
    %c0_203 = arith.constant 0 : index
    %c0_204 = arith.constant 0 : index
    %424 = vector.load %arg39[%c2_202, %c0_203, %c0_204] : memref<3x384x384xbf16, #tpu.memory_space<vmem>>, vector<1x384x384xbf16>
    %425 = vector.shape_cast %424 : vector<1x384x384xbf16> to vector<384x384xbf16>
    %c2_205 = arith.constant 2 : index
    %c0_206 = arith.constant 0 : index
    %c0_207 = arith.constant 0 : index
    %426 = vector.load %arg40[%c2_205, %c0_206, %c0_207] : memref<3x1x384xf32, #tpu.memory_space<vmem>>, vector<1x1x384xf32>
    %427 = vector.shape_cast %426 : vector<1x1x384xf32> to vector<1x384xf32>
    %428 = arith.truncf %423 : vector<16x384xf32> to vector<16x384xbf16>
    %cst_208 = arith.constant dense<0.000000e+00> : vector<16x384xf32>
    %429 = tpu.matmul %428, %425, %cst_208 {dimension_numbers = #tpu.dot_dimension_numbers<[1], [0], [0], [1], [0, 0, 1, 1], [], []>} : vector<16x384xbf16>, vector<384x384xbf16>, vector<16x384xf32> -> vector<16x384xf32>
    %430 = vector.broadcast %427 : vector<1x384xf32> to vector<16x384xf32>
    %431 = arith.addf %429, %430 : vector<16x384xf32>
    %432 = arith.negf %431 : vector<16x384xf32>
    %433 = math.exp %432 : vector<16x384xf32>
    %cst_209 = arith.constant 1.000000e+00 : f32
    %434 = vector.broadcast %cst_209 : f32 to vector<16x384xf32>
    %435 = arith.addf %434, %433 : vector<16x384xf32>
    %436 = arith.divf %434, %435 : vector<16x384xf32>
    %c2_210 = arith.constant 2 : index
    %c0_211 = arith.constant 0 : index
    %c0_212 = arith.constant 0 : index
    %437 = vector.load %arg41[%c2_210, %c0_211, %c0_212] : memref<3x384x384xbf16, #tpu.memory_space<vmem>>, vector<1x384x384xbf16>
    %438 = vector.shape_cast %437 : vector<1x384x384xbf16> to vector<384x384xbf16>
    %c2_213 = arith.constant 2 : index
    %c0_214 = arith.constant 0 : index
    %c0_215 = arith.constant 0 : index
    %439 = vector.load %arg42[%c2_213, %c0_214, %c0_215] : memref<3x1x384xf32, #tpu.memory_space<vmem>>, vector<1x1x384xf32>
    %440 = vector.shape_cast %439 : vector<1x1x384xf32> to vector<1x384xf32>
    %441 = arith.truncf %423 : vector<16x384xf32> to vector<16x384xbf16>
    %cst_216 = arith.constant dense<0.000000e+00> : vector<16x384xf32>
    %442 = tpu.matmul %441, %438, %cst_216 {dimension_numbers = #tpu.dot_dimension_numbers<[1], [0], [0], [1], [0, 0, 1, 1], [], []>} : vector<16x384xbf16>, vector<384x384xbf16>, vector<16x384xf32> -> vector<16x384xf32>
    %443 = vector.broadcast %440 : vector<1x384xf32> to vector<16x384xf32>
    %444 = arith.addf %442, %443 : vector<16x384xf32>
    %cst_217 = arith.constant 0.000000e+00 : f32
    %445 = vector.broadcast %cst_217 : f32 to vector<16x384xf32>
    %446 = arith.maximumf %444, %445 : vector<16x384xf32>
    %c2_218 = arith.constant 2 : index
    %c0_219 = arith.constant 0 : index
    %c0_220 = arith.constant 0 : index
    %447 = vector.load %arg43[%c2_218, %c0_219, %c0_220] : memref<3x384x384xbf16, #tpu.memory_space<vmem>>, vector<1x384x384xbf16>
    %448 = vector.shape_cast %447 : vector<1x384x384xbf16> to vector<384x384xbf16>
    %c2_221 = arith.constant 2 : index
    %c0_222 = arith.constant 0 : index
    %c0_223 = arith.constant 0 : index
    %449 = vector.load %arg44[%c2_221, %c0_222, %c0_223] : memref<3x1x384xf32, #tpu.memory_space<vmem>>, vector<1x1x384xf32>
    %450 = vector.shape_cast %449 : vector<1x1x384xf32> to vector<1x384xf32>
    %451 = arith.truncf %446 : vector<16x384xf32> to vector<16x384xbf16>
    %cst_224 = arith.constant dense<0.000000e+00> : vector<16x384xf32>
    %452 = tpu.matmul %451, %448, %cst_224 {dimension_numbers = #tpu.dot_dimension_numbers<[1], [0], [0], [1], [0, 0, 1, 1], [], []>} : vector<16x384xbf16>, vector<384x384xbf16>, vector<16x384xf32> -> vector<16x384xf32>
    %453 = vector.broadcast %450 : vector<1x384xf32> to vector<16x384xf32>
    %454 = arith.addf %452, %453 : vector<16x384xf32>
    %455 = arith.mulf %436, %454 : vector<16x384xf32>
    %456 = arith.addf %423, %455 : vector<16x384xf32>
    %c0_225 = arith.constant 0 : index
    %c0_226 = arith.constant 0 : index
    %457 = vector.load %arg47[%c0_225, %c0_226] : memref<16x384xf32, #tpu.memory_space<vmem>>, vector<16x384xf32>
    tpu.vector_store %arg47[%c0_225, %c0_226], %456 {strides = array<i32>} : memref<16x384xf32, #tpu.memory_space<vmem>>, vector<16x384xf32>,
    %cst_227 = arith.constant 0.000000e+00 : f32
    %458 = vector.broadcast %cst_227 : f32 to vector<16x384xf32>
    %459 = arith.maximumf %456, %458 : vector<16x384xf32>
    %c0_228 = arith.constant 0 : index
    %c0_229 = arith.constant 0 : index
    %460 = vector.load %arg45[%c0_228, %c0_229] : memref<384x128xbf16, #tpu.memory_space<vmem>>, vector<384x128xbf16>
    %c0_230 = arith.constant 0 : index
    %c0_231 = arith.constant 0 : index
    %461 = vector.load %arg46[%c0_230, %c0_231] : memref<1x128xf32, #tpu.memory_space<vmem>>, vector<1x128xf32>
    %462 = arith.truncf %459 : vector<16x384xf32> to vector<16x384xbf16>
    %cst_232 = arith.constant dense<0.000000e+00> : vector<16x128xf32>
    %463 = tpu.matmul %462, %460, %cst_232 {dimension_numbers = #tpu.dot_dimension_numbers<[1], [0], [0], [1], [0, 0, 1, 1], [], []>} : vector<16x384xbf16>, vector<384x128xbf16>, vector<16x128xf32> -> vector<16x128xf32>
    %464 = vector.broadcast %461 : vector<1x128xf32> to vector<16x128xf32>
    %465 = arith.addf %463, %464 : vector<16x128xf32>
    %466 = tpu.iota {dimensions = array<i32: 1>} : vector<16x128xi32>
    %c2_i32 = arith.constant 2 : i32
    %467 = vector.broadcast %c2_i32 : i32 to vector<16x128xi32>
    %468 = arith.cmpi sge, %466, %467 : vector<16x128xi32>
    %c4_i32 = arith.constant 4 : i32
    %469 = vector.broadcast %c4_i32 : i32 to vector<16x128xi32>
    %470 = arith.cmpi slt, %466, %469 : vector<16x128xi32>
    %471 = arith.andi %468, %470 : vector<16x128xi1>
    %472 = arith.negf %465 : vector<16x128xf32>
    %473 = math.exp %472 : vector<16x128xf32>
    %cst_233 = arith.constant 1.000000e+00 : f32
    %474 = vector.broadcast %cst_233 : f32 to vector<16x128xf32>
    %475 = arith.addf %474, %473 : vector<16x128xf32>
    %476 = arith.divf %474, %475 : vector<16x128xf32>
    %477 = arith.select %471, %476, %465 : vector<16x128xi1>, vector<16x128xf32>
    %c0_234 = arith.constant 0 : index
    %c0_235 = arith.constant 0 : index
    %478 = vector.load %arg48[%c0_234, %c0_235] : memref<16x128xf32, #tpu.memory_space<vmem>>, vector<16x128xf32>
    tpu.vector_store %arg48[%c0_234, %c0_235], %477 {strides = array<i32>} : memref<16x128xf32, #tpu.memory_space<vmem>>, vector<16x128xf32>,
    return
  }
  func.func @transform_0(%arg0: i32) -> (i32, i32) {
    %c0_i32 = arith.constant 0 : i32
    %c0_i32_0 = arith.constant 0 : i32
    return %arg0, %c0_i32 : i32, i32
  }
  func.func @transform_1(%arg0: i32) -> (i32, i32) {
    %c0_i32 = arith.constant 0 : i32
    %c0_i32_0 = arith.constant 0 : i32
    return %arg0, %c0_i32 : i32, i32
  }
  func.func @transform_2(%arg0: i32) -> (i32, i32) {
    %c0_i32 = arith.constant 0 : i32
    %c0_i32_0 = arith.constant 0 : i32
    return %arg0, %c0_i32 : i32, i32
  }
  func.func @transform_3(%arg0: i32) -> (i32, i32) {
    %c0_i32 = arith.constant 0 : i32
    %c0_i32_0 = arith.constant 0 : i32
    return %arg0, %c0_i32 : i32, i32
  }
  func.func @transform_4(%arg0: i32) -> (i32, i32) {
    %c0_i32 = arith.constant 0 : i32
    %c0_i32_0 = arith.constant 0 : i32
    %c0_i32_1 = arith.constant 0 : i32
    return %c0_i32, %c0_i32_0 : i32, i32
  }
  func.func @transform_5(%arg0: i32) -> (i32, i32) {
    %c0_i32 = arith.constant 0 : i32
    %c0_i32_0 = arith.constant 0 : i32
    %c0_i32_1 = arith.constant 0 : i32
    return %c0_i32, %c0_i32_0 : i32, i32
  }
  func.func @transform_6(%arg0: i32) -> (i32, i32) {
    %c0_i32 = arith.constant 0 : i32
    %c0_i32_0 = arith.constant 0 : i32
    %c0_i32_1 = arith.constant 0 : i32
    return %c0_i32, %c0_i32_0 : i32, i32
  }
  func.func @transform_7(%arg0: i32) -> (i32, i32) {
    %c0_i32 = arith.constant 0 : i32
    %c0_i32_0 = arith.constant 0 : i32
    %c0_i32_1 = arith.constant 0 : i32
    return %c0_i32, %c0_i32_0 : i32, i32
  }
  func.func @transform_8(%arg0: i32) -> (i32, i32) {
    %c0_i32 = arith.constant 0 : i32
    %c0_i32_0 = arith.constant 0 : i32
    %c0_i32_1 = arith.constant 0 : i32
    return %c0_i32, %c0_i32_0 : i32, i32
  }
  func.func @transform_9(%arg0: i32) -> (i32, i32) {
    %c0_i32 = arith.constant 0 : i32
    %c0_i32_0 = arith.constant 0 : i32
    %c0_i32_1 = arith.constant 0 : i32
    return %c0_i32, %c0_i32_0 : i32, i32
  }
  func.func @transform_10(%arg0: i32) -> (i32, i32) {
    %c0_i32 = arith.constant 0 : i32
    %c0_i32_0 = arith.constant 0 : i32
    %c0_i32_1 = arith.constant 0 : i32
    return %c0_i32, %c0_i32_0 : i32, i32
  }
  func.func @transform_11(%arg0: i32) -> (i32, i32) {
    %c0_i32 = arith.constant 0 : i32
    %c0_i32_0 = arith.constant 0 : i32
    %c0_i32_1 = arith.constant 0 : i32
    return %c0_i32, %c0_i32_0 : i32, i32
  }
  func.func @transform_12(%arg0: i32) -> (i32, i32) {
    %c0_i32 = arith.constant 0 : i32
    %c0_i32_0 = arith.constant 0 : i32
    %c0_i32_1 = arith.constant 0 : i32
    return %c0_i32, %c0_i32_0 : i32, i32
  }
  func.func @transform_13(%arg0: i32) -> (i32, i32) {
    %c0_i32 = arith.constant 0 : i32
    %c0_i32_0 = arith.constant 0 : i32
    %c0_i32_1 = arith.constant 0 : i32
    return %c0_i32, %c0_i32_0 : i32, i32
  }
  func.func @transform_14(%arg0: i32) -> (i32, i32) {
    %c0_i32 = arith.constant 0 : i32
    %c0_i32_0 = arith.constant 0 : i32
    %c0_i32_1 = arith.constant 0 : i32
    return %c0_i32, %c0_i32_0 : i32, i32
  }
  func.func @transform_15(%arg0: i32) -> (i32, i32) {
    %c0_i32 = arith.constant 0 : i32
    %c0_i32_0 = arith.constant 0 : i32
    %c0_i32_1 = arith.constant 0 : i32
    return %c0_i32, %c0_i32_0 : i32, i32
  }
  func.func @transform_16(%arg0: i32) -> (i32, i32) {
    %c0_i32 = arith.constant 0 : i32
    %c0_i32_0 = arith.constant 0 : i32
    %c0_i32_1 = arith.constant 0 : i32
    return %c0_i32, %c0_i32_0 : i32, i32
  }
  func.func @transform_17(%arg0: i32) -> (i32, i32) {
    %c0_i32 = arith.constant 0 : i32
    %c0_i32_0 = arith.constant 0 : i32
    %c0_i32_1 = arith.constant 0 : i32
    return %c0_i32, %c0_i32_0 : i32, i32
  }
  func.func @transform_18(%arg0: i32) -> (i32, i32) {
    %c0_i32 = arith.constant 0 : i32
    %c0_i32_0 = arith.constant 0 : i32
    %c0_i32_1 = arith.constant 0 : i32
    return %c0_i32, %c0_i32_0 : i32, i32
  }
  func.func @transform_19(%arg0: i32) -> (i32, i32) {
    %c0_i32 = arith.constant 0 : i32
    %c0_i32_0 = arith.constant 0 : i32
    %c0_i32_1 = arith.constant 0 : i32
    return %c0_i32, %c0_i32_0 : i32, i32
  }
  func.func @transform_20(%arg0: i32) -> (i32, i32) {
    %c0_i32 = arith.constant 0 : i32
    %c0_i32_0 = arith.constant 0 : i32
    %c0_i32_1 = arith.constant 0 : i32
    return %c0_i32, %c0_i32_0 : i32, i32
  }
  func.func @transform_21(%arg0: i32) -> (i32, i32) {
    %c0_i32 = arith.constant 0 : i32
    %c0_i32_0 = arith.constant 0 : i32
    %c0_i32_1 = arith.constant 0 : i32
    return %c0_i32, %c0_i32_0 : i32, i32
  }
  func.func @transform_22(%arg0: i32) -> (i32, i32) {
    %c0_i32 = arith.constant 0 : i32
    %c0_i32_0 = arith.constant 0 : i32
    %c0_i32_1 = arith.constant 0 : i32
    return %c0_i32, %c0_i32_0 : i32, i32
  }
  func.func @transform_23(%arg0: i32) -> (i32, i32) {
    %c0_i32 = arith.constant 0 : i32
    %c0_i32_0 = arith.constant 0 : i32
    %c0_i32_1 = arith.constant 0 : i32
    return %c0_i32, %c0_i32_0 : i32, i32
  }
  func.func @transform_24(%arg0: i32) -> (i32, i32) {
    %c0_i32 = arith.constant 0 : i32
    %c0_i32_0 = arith.constant 0 : i32
    %c0_i32_1 = arith.constant 0 : i32
    return %c0_i32, %c0_i32_0 : i32, i32
  }
  func.func @transform_25(%arg0: i32) -> (i32, i32) {
    %c0_i32 = arith.constant 0 : i32
    %c0_i32_0 = arith.constant 0 : i32
    %c0_i32_1 = arith.constant 0 : i32
    return %c0_i32, %c0_i32_0 : i32, i32
  }
  func.func @transform_26(%arg0: i32) -> (i32, i32) {
    %c0_i32 = arith.constant 0 : i32
    %c0_i32_0 = arith.constant 0 : i32
    %c0_i32_1 = arith.constant 0 : i32
    return %c0_i32, %c0_i32_0 : i32, i32
  }
  func.func @transform_27(%arg0: i32) -> (i32, i32) {
    %c0_i32 = arith.constant 0 : i32
    %c0_i32_0 = arith.constant 0 : i32
    %c0_i32_1 = arith.constant 0 : i32
    return %c0_i32, %c0_i32_0 : i32, i32
  }
  func.func @transform_28(%arg0: i32) -> (i32, i32) {
    %c0_i32 = arith.constant 0 : i32
    %c0_i32_0 = arith.constant 0 : i32
    %c0_i32_1 = arith.constant 0 : i32
    return %c0_i32, %c0_i32_0 : i32, i32
  }
  func.func @transform_29(%arg0: i32) -> (i32, i32) {
    %c0_i32 = arith.constant 0 : i32
    %c0_i32_0 = arith.constant 0 : i32
    %c0_i32_1 = arith.constant 0 : i32
    return %c0_i32, %c0_i32_0 : i32, i32
  }
  func.func @transform_30(%arg0: i32) -> (i32, i32) {
    %c0_i32 = arith.constant 0 : i32
    %c0_i32_0 = arith.constant 0 : i32
    %c0_i32_1 = arith.constant 0 : i32
    return %c0_i32, %c0_i32_0 : i32, i32
  }
  func.func @transform_31(%arg0: i32) -> (i32, i32) {
    %c0_i32 = arith.constant 0 : i32
    %c0_i32_0 = arith.constant 0 : i32
    %c0_i32_1 = arith.constant 0 : i32
    return %c0_i32, %c0_i32_0 : i32, i32
  }
  func.func @transform_32(%arg0: i32) -> (i32, i32) {
    %c0_i32 = arith.constant 0 : i32
    %c0_i32_0 = arith.constant 0 : i32
    %c0_i32_1 = arith.constant 0 : i32
    return %c0_i32, %c0_i32_0 : i32, i32
  }
  func.func @transform_33(%arg0: i32) -> (i32, i32) {
    %c0_i32 = arith.constant 0 : i32
    %c0_i32_0 = arith.constant 0 : i32
    %c0_i32_1 = arith.constant 0 : i32
    return %c0_i32, %c0_i32_0 : i32, i32
  }
  func.func @transform_34(%arg0: i32) -> (i32, i32) {
    %c0_i32 = arith.constant 0 : i32
    %c0_i32_0 = arith.constant 0 : i32
    %c0_i32_1 = arith.constant 0 : i32
    return %c0_i32, %c0_i32_0 : i32, i32
  }
  func.func @transform_35(%arg0: i32) -> (i32, i32) {
    %c0_i32 = arith.constant 0 : i32
    %c0_i32_0 = arith.constant 0 : i32
    %c0_i32_1 = arith.constant 0 : i32
    return %c0_i32, %c0_i32_0 : i32, i32
  }
  func.func @transform_36(%arg0: i32) -> (i32, i32, i32) {
    %c0_i32 = arith.constant 0 : i32
    %c0_i32_0 = arith.constant 0 : i32
    %c0_i32_1 = arith.constant 0 : i32
    %c0_i32_2 = arith.constant 0 : i32
    return %c0_i32, %c0_i32_0, %c0_i32_1 : i32, i32, i32
  }
  func.func @transform_37(%arg0: i32) -> (i32, i32, i32) {
    %c0_i32 = arith.constant 0 : i32
    %c0_i32_0 = arith.constant 0 : i32
    %c0_i32_1 = arith.constant 0 : i32
    %c0_i32_2 = arith.constant 0 : i32
    return %c0_i32, %c0_i32_0, %c0_i32_1 : i32, i32, i32
  }
  func.func @transform_38(%arg0: i32) -> (i32, i32, i32) {
    %c0_i32 = arith.constant 0 : i32
    %c0_i32_0 = arith.constant 0 : i32
    %c0_i32_1 = arith.constant 0 : i32
    %c0_i32_2 = arith.constant 0 : i32
    return %c0_i32, %c0_i32_0, %c0_i32_1 : i32, i32, i32
  }
  func.func @transform_39(%arg0: i32) -> (i32, i32, i32) {
    %c0_i32 = arith.constant 0 : i32
    %c0_i32_0 = arith.constant 0 : i32
    %c0_i32_1 = arith.constant 0 : i32
    %c0_i32_2 = arith.constant 0 : i32
    return %c0_i32, %c0_i32_0, %c0_i32_1 : i32, i32, i32
  }
  func.func @transform_40(%arg0: i32) -> (i32, i32, i32) {
    %c0_i32 = arith.constant 0 : i32
    %c0_i32_0 = arith.constant 0 : i32
    %c0_i32_1 = arith.constant 0 : i32
    %c0_i32_2 = arith.constant 0 : i32
    return %c0_i32, %c0_i32_0, %c0_i32_1 : i32, i32, i32
  }
  func.func @transform_41(%arg0: i32) -> (i32, i32, i32) {
    %c0_i32 = arith.constant 0 : i32
    %c0_i32_0 = arith.constant 0 : i32
    %c0_i32_1 = arith.constant 0 : i32
    %c0_i32_2 = arith.constant 0 : i32
    return %c0_i32, %c0_i32_0, %c0_i32_1 : i32, i32, i32
  }
  func.func @transform_42(%arg0: i32) -> (i32, i32, i32) {
    %c0_i32 = arith.constant 0 : i32
    %c0_i32_0 = arith.constant 0 : i32
    %c0_i32_1 = arith.constant 0 : i32
    %c0_i32_2 = arith.constant 0 : i32
    return %c0_i32, %c0_i32_0, %c0_i32_1 : i32, i32, i32
  }
  func.func @transform_43(%arg0: i32) -> (i32, i32, i32) {
    %c0_i32 = arith.constant 0 : i32
    %c0_i32_0 = arith.constant 0 : i32
    %c0_i32_1 = arith.constant 0 : i32
    %c0_i32_2 = arith.constant 0 : i32
    return %c0_i32, %c0_i32_0, %c0_i32_1 : i32, i32, i32
  }
  func.func @transform_44(%arg0: i32) -> (i32, i32) {
    %c0_i32 = arith.constant 0 : i32
    %c0_i32_0 = arith.constant 0 : i32
    %c0_i32_1 = arith.constant 0 : i32
    return %c0_i32, %c0_i32_0 : i32, i32
  }
  func.func @transform_45(%arg0: i32) -> (i32, i32) {
    %c0_i32 = arith.constant 0 : i32
    %c0_i32_0 = arith.constant 0 : i32
    %c0_i32_1 = arith.constant 0 : i32
    return %c0_i32, %c0_i32_0 : i32, i32
  }
  func.func @transform_46(%arg0: i32) -> (i32, i32) {
    %c0_i32 = arith.constant 0 : i32
    %c0_i32_0 = arith.constant 0 : i32
    return %arg0, %c0_i32 : i32, i32
  }
  func.func @transform_47(%arg0: i32) -> (i32, i32) {
    %c0_i32 = arith.constant 0 : i32
    %c0_i32_0 = arith.constant 0 : i32
    return %arg0, %c0_i32 : i32, i32
  }
}

</mosaic_0001>

<bundles_post_ra>
// kernel: tpu_custom_call.1
= control target key start
LH: loop header
LB: loop body
LE: loop exit
PB: predicated region body
PF: predicated region fallthrough
CT: control target
= control target key end

     0   :  { %s19490_s6 = smov 1   ;;  %s19491_s10 = smov 2   ;;  %s21642_s0 = inlined_call_operand.smem [shape: u32[48], index: -1, kind: input, shape index: {}] }
   0x1   :  { %s19604_s5 = sld [smem:[%s21642_s0]]   ;;  %s19492_s14 = smov 3  }
   0x2   :  { %s19609_s9 = sld [smem:[%s21642_s0 + %s19490_s6]]   ;;  %s19493_s18 = smov 4  }
   0x3   :  { %s19614_s13 = sld [smem:[%s21642_s0 + %s19491_s10]]   ;;  %s19494_s22 = smov 5  }
   0x4   :  { %s19619_s17 = sld [smem:[%s21642_s0 + %s19492_s14]]   ;;  %s19495_s26 = smov 6  }
   0x5   :  { %s19624_s21 = sld [smem:[%s21642_s0 + %s19493_s18]]   ;;  %s19496_s30 = smov 7  }
   0x6   :  { %s19629_s25 = sld [smem:[%s21642_s0 + %s19494_s22]]   ;;  %s19497_s4 = smov 8  }
   0x7   :  { %21672 = sst [smem:[#allocation83_spill]] %s19604_s5  ;;  %s19498_s10 = smov 9  }
   0x8   :  { %s19634_s29 = sld [smem:[%s21642_s0 + %s19495_s26]]   ;;  %s19499_s15 = smov 10  }
   0x9   :  { %21673 = sst [smem:[#allocation84_spill]] %s19614_s13  ;;  %s19500_s20 = smov 11  }
   0xa   :  { %21674 = sst [smem:[#allocation85_spill]] %s19619_s17  ;;  %s19501_s26 = smov 12  }
   0xb   :  { %s19639_s3 = sld [smem:[%s21642_s0 + %s19496_s30]]   ;;  %s19502_s1 = smov 13  }
   0xc   :  { %21675 = sst [smem:[#allocation86_spill]] %s19629_s25  ;;  %s19503_s7 = smov 14  }
   0xd   :  { %s19644_s8 = sld [smem:[%s21642_s0 + %s19497_s4]]   ;;  %s19505_s22 = smov 16  }
   0xe   :  { %s19649_s14 = sld [smem:[%s21642_s0 + %s19498_s10]]   ;;  %s19506_s28 = smov 17  }
   0xf   :  { %s19654_s19 = sld [smem:[%s21642_s0 + %s19499_s15]]   ;;  %s19504_s15 = smov 15  }
  0x10   :  { %s19659_s24 = sld [smem:[%s21642_s0 + %s19500_s20]]  }
  0x11   :  { %21676 = sst [smem:[#allocation87_spill]] %s19639_s3 }
  0x12   :  { %s19664_s30 = sld [smem:[%s21642_s0 + %s19501_s26]]  }
  0x13   :  { %s19669_s6 = sld [smem:[%s21642_s0 + %s19502_s1]]  }
  0x14   :  { %21677 = sst [smem:[#allocation88_spill]] %s19649_s14 }
  0x15   :  { %s19674_s12 = sld [smem:[%s21642_s0 + %s19503_s7]]   ;;  %s19507_s7 = smov 18  }
  0x16   :  { %21678 = sst [smem:[#allocation89_spill]] %s19659_s24 }
  0x17   :  { %s19679_s20 = sld [smem:[%s21642_s0 + %s19504_s15]]   ;;  %s19508_s15 = smov 19  }
  0x18   :  { %s19684_s27 = sld [smem:[%s21642_s0 + %s19505_s22]]   ;;  %s19509_s22 = smov 20  }
  0x19   :  { %21679 = sst [smem:[#allocation90_spill]] %s19669_s6 }
  0x1a   :  { %s19689_s4 = sld [smem:[%s21642_s0 + %s19506_s28]]   ;;  %s19510_s28 = smov 21  }
  0x1b   :  { %s19694_s17 = sld [smem:[%s21642_s0 + %s19507_s7]]   ;;  %s19511_s7 = smov 22  }
  0x1c   :  { %s19704_s6 = sld [smem:[%s21642_s0 + %s19509_s22]]   ;;  %s19513_s22 = smov 24  }
  0x1d   :  { %21680 = sst [smem:[#allocation91_spill]] %s19679_s20 }
  0x1e   :  { %s19699_s20 = sld [smem:[%s21642_s0 + %s19508_s15]]   ;;  %s19512_s15 = smov 23  }
  0x1f   :  { %s19714_s24 = sld [smem:[%s21642_s0 + %s19511_s7]]   ;;  %s19515_s7 = smov 26  }
  0x20   :  { %21681 = sst [smem:[#allocation92_spill]] %s19689_s4 }
  0x21   :  { %s19709_s4 = sld [smem:[%s21642_s0 + %s19510_s28]]   ;;  %s19514_s28 = smov 25  }
  0x22   :  { %21683 = sst [smem:[#allocation94_spill]] %s19704_s6 }
  0x23   :  { %s19724_s6 = sld [smem:[%s21642_s0 + %s19513_s22]]   ;;  %s19517_s22 = smov 28  }
  0x24   :  { %21682 = sst [smem:[#allocation93_spill]] %s19699_s20 }
  0x25   :  { %21685 = sst [smem:[#allocation96_spill]] %s19714_s24 }
  0x26   :  { %s19719_s20 = sld [smem:[%s21642_s0 + %s19512_s15]]   ;;  %s19516_s15 = smov 27  }
  0x27   :  { %21684 = sst [smem:[#allocation95_spill]] %s19709_s4 }
  0x28   :  { %s19729_s4 = sld [smem:[%s21642_s0 + %s19514_s28]]   ;;  %s19518_s28 = smov 29  }
  0x29   :  { %21686 = sst [smem:[#allocation97_spill]] %s19724_s6 }
  0x2a   :  { %s19734_s24 = sld [smem:[%s21642_s0 + %s19515_s7]]   ;;  %s19519_s7 = smov 30  }
  0x2b   :  { %s19739_s14 = sld [smem:[%s21642_s0 + %s19516_s15]]   ;;  %s19520_s15 = smov 31  }
  0x2c   :  { %s19744_s6 = sld [smem:[%s21642_s0 + %s19517_s22]]   ;;  %s19521_s22 = smov 32  }
  0x2d   :  { %s19749_s3 = sld [smem:[%s21642_s0 + %s19518_s28]]   ;;  %s19522_s28 = smov 33  }
  0x2e   :  { %s19759_s25 = sld [smem:[%s21642_s0 + %s19520_s15]]   ;;  %s19524_s15 = smov 35  }
  0x2f   :  { %s19769_s13 = sld [smem:[%s21642_s0 + %s19522_s28]]   ;;  %s19526_s28 = smov 37  }
  0x30   :  { %21687 = sst [smem:[#allocation98_spill]] %s19734_s24 }
  0x31   :  { %s19754_s24 = sld [smem:[%s21642_s0 + %s19519_s7]]   ;;  %s19523_s7 = smov 34  }
  0x32   :  { %21688 = sst [smem:[#allocation99_spill]] %s19744_s6 }
  0x33   :  { %s19764_s6 = sld [smem:[%s21642_s0 + %s19521_s22]]   ;;  %s19525_s22 = smov 36  }
  0x34   :  { %21690 = sst [smem:[#allocation101_spill]] %s19759_s25 }
  0x35   :  { %21691 = sst [smem:[#allocation102_spill]] %s19769_s13 }
  0x36   :  { %s19779_s25 = sld [smem:[%s21642_s0 + %s19524_s15]]   ;;  %s19528_s15 = smov 39  }
  0x37   :  { %21689 = sst [smem:[#allocation100_spill]] %s19754_s24 }
  0x38   :  { %s19774_s24 = sld [smem:[%s21642_s0 + %s19523_s7]]   ;;  %s19527_s7 = smov 38  }
  0x39   :  { %s19784_s5 = sld [smem:[%s21642_s0 + %s19525_s22]]   ;;  %s19529_s22 = smov 40  }
  0x3a   :  { %s19789_s13 = sld [smem:[%s21642_s0 + %s19526_s28]]   ;;  %s19530_s28 = smov 41  }
  0x3c   :  { %21693 = sst [smem:[#allocation104_spill]] %s19779_s25 }
  0x3d   :  { %s19799_s25 = sld [smem:[%s21642_s0 + %s19528_s15]]   ;;  %s19532_s15 = smov 43  }
  0x3e   :  { %21692 = sst [smem:[#allocation103_spill]] %s19774_s24 }
  0x3f   :  { %21694 = sst [smem:[#allocation105_spill]] %s19784_s5 }
  0x40   :  { %21695 = sst [smem:[#allocation106_spill]] %s19789_s13 }
  0x41   :  { %s19794_s24 = sld [smem:[%s21642_s0 + %s19527_s7]]   ;;  %s19531_s7 = smov 42  }
  0x42   :  { %s19804_s5 = sld [smem:[%s21642_s0 + %s19529_s22]]   ;;  %s19533_s22 = smov 44  }
  0x43   :  { %21697 = sst [smem:[#allocation108_spill]] %s19799_s25 }
  0x44   :  { %s19809_s13 = sld [smem:[%s21642_s0 + %s19530_s28]]   ;;  %s19534_s28 = smov 45  }
  0x45   :  { %s19819_s25 = sld [smem:[%s21642_s0 + %s19532_s15]]   ;;  %s19536_s15 = smov 47  }
  0x47   :  { %21696 = sst [smem:[#allocation107_spill]] %s19794_s24 }
  0x48   :  { %21698 = sst [smem:[#allocation109_spill]] %s19804_s5 }
  0x49   :  { %s19814_s24 = sld [smem:[%s21642_s0 + %s19531_s7]]   ;;  %s19535_s7 = smov 46  }
  0x4a   :  { %21699 = sst [smem:[#allocation110_spill]] %s19809_s13 }
  0x4b   :  { %21701 = sst [smem:[#allocation112_spill]] %s19819_s25 }
  0x4c   :  { %s19824_s5 = sld [smem:[%s21642_s0 + %s19533_s22]]  }
  0x4d   :  { %s19829_s13 = sld [smem:[%s21642_s0 + %s19534_s28]]  }
  0x4e   :  { %s19839_s25 = sld [smem:[%s21642_s0 + %s19536_s15]]  }
  0x4f   :  { %21700 = sst [smem:[#allocation111_spill]] %s19814_s24 }
  0x50   :  { %s19834_s24 = sld [smem:[%s21642_s0 + %s19535_s7]]  }
  0x51   :  { %101 = vsyncpa [#allocation3], 0 }
  0x52   :  { %102 = vsyncpa [#allocation6], 0 }
  0x53   :  { %103 = vsyncpa [#allocation9], 0 }
  0x54   :  { %104 = vsyncpa [#allocation12], 0 }
  0x55   :  { %105 = vsyncpa [#allocation15], 0 }
  0x56   :  { %106 = vsyncpa [#allocation18], 0 }
  0x57   :  { %107 = vsyncpa [#allocation21], 0 }
  0x58   :  { %108 = vsyncpa [#allocation24], 0 }
  0x59   :  { %109 = vsyncpa [#allocation27], 0 }
  0x5a   :  { %110 = vsyncpa [#allocation30], 0 }
  0x5b   :  { %111 = vsyncpa [#allocation33], 0 }
  0x5c   :  { %112 = vsyncpa [#allocation36], 0 }
  0x5d   :  { %113 = vsyncpa [#allocation39], 0 }
  0x5e   :  { %114 = vsyncpa [#allocation42], 0 }
  0x5f   :  { %115 = vsyncpa [#allocation45], 0 }
  0x60   :  { %116 = vsyncpa [#allocation48], 0 }
  0x61   :  { %117 = vsyncpa [#allocation51], 0 }
  0x62   :  { %118 = vsyncpa [#allocation54], 0 }
  0x63   :  { %119 = vsyncpa [#allocation57], 0 }
  0x64   :  { %120 = vsyncpa [#allocation4], 0 }
  0x65   :  { %121 = vsyncpa [#allocation61], 0  ;;  %s19537_s0 = smov [#allocation5]   ;;  %s19538_s23 = smov [#allocation8]  }
  0x66   :  { %s139_s22 = sshll.u32 %s19537_s0, 4  ;;  %s165_s26 = sshll.u32 %s19538_s23, 4  ;;  %s140_s22 = int_to_ptr.vmem [resolvable:$true] %s139_s22  ;;  %s19841_s26 = int_to_ptr.vmem [resolvable:$true] %s165_s26 }
  0x67   :  { %s18590_s28 = scalar_lea.hbm %s19609_s9, 768 }
  0x68   :  { %p18591_p0 = scmp.ne.s32.totalorder %s19609_s9, %s18590_s28  ;;  %p18594_p1 = scmp.lt.u32.totalorder %s18590_s28, %s19609_s9 }
  0x6a   :  { %p18596_p2 = pnand %p18594_p1, %p18591_p0 }
  0x6c   :  { %18599 = shalt.err (!%p18596_p2)
}
  0x6d   :  { %s18600_s1 = scalar_lea.vmem %s140_s22, 768  ;;  %p18605_p4 = scmp.lt.s32.totalorder %s140_s22, %s140_s22 }
  0x6e   :  { %p18601_p3 = scmp.ne.s32.totalorder %s140_s22, %s18600_s1  ;;  %p18606_p5 = scmp.lt.s32.totalorder %s18600_s1, %s18600_s1 }
  0x70   :  { %p18607_p6 = por %p18606_p5, %p18605_p4 }
  0x72   :  { %p18608_p7 = pnand %p18607_p6, %p18601_p3 }
  0x74   :  { %18611 = shalt.err (!%p18608_p7)
}
  0x75   :  { %s19539_s2 = smov 384   ;;  %s19540_s7 = smov 24  }
  0x76   :  { %145 = dma.hbm_to_vmem [thread:$0]  %s19609_s9, 768, %s140_s22, [#allocation6], %s19539_s2, %s19539_s2, %s19540_s7  }
  0x77   :  { %s18612_s10 = scalar_lea.hbm %s19624_s21, 6144 }
  0x78   :  { %p18613_p8 = scmp.ne.s32.totalorder %s19624_s21, %s18612_s10  ;;  %p18616_p9 = scmp.lt.u32.totalorder %s18612_s10, %s19624_s21 }
  0x7a   :  { %p18618_p10 = pnand %p18616_p9, %p18613_p8 }
  0x7c   :  { %18621 = shalt.err (!%p18618_p10)
}
  0x7d   :  { %s18622_s11 = scalar_lea.vmem %s19841_s26, 6144  ;;  %p18627_p12 = scmp.lt.s32.totalorder %s19841_s26, %s19841_s26 }
  0x7e   :  { %p18623_p11 = scmp.ne.s32.totalorder %s19841_s26, %s18622_s11  ;;  %p18628_p13 = scmp.lt.s32.totalorder %s18622_s11, %s18622_s11 }
  0x80   :  { %p18629_p0 = por %p18628_p13, %p18627_p12 }
  0x82   :  { %p18630_p1 = pnand %p18629_p0, %p18623_p11 }
  0x84   :  { %18633 = shalt.err (!%p18630_p1)
}
  0x85   :  { %s19541_s15 = smov 192   ;;  %s19542_s9 = smov 12  }
  0x86   :  { %171 = dma.hbm_to_vmem [thread:$0]  %s19624_s21, 6144, %s19841_s26, [#allocation9], %s19541_s15, %s19541_s15, %s19542_s9  }
  0x87   :  { %s19543_s16 = smov [#allocation11]   ;;  %s19544_s0 = smov [#allocation14]  }
  0x88   :  { %s187_s18 = sshll.u32 %s19543_s16, 4  ;;  %s210_s22 = sshll.u32 %s19544_s0, 4  ;;  %s188_s18 = int_to_ptr.vmem [resolvable:$true] %s187_s18  ;;  %s211_s22 = int_to_ptr.vmem [resolvable:$true] %s210_s22 }
  0x89   :  { %s18634_s23 = scalar_lea.hbm %s19634_s29, 9216 }
  0x8a   :  { %p18635_p2 = scmp.ne.s32.totalorder %s19634_s29, %s18634_s23  ;;  %p18638_p3 = scmp.lt.u32.totalorder %s18634_s23, %s19634_s29 }
  0x8c   :  { %p18640_p4 = pnand %p18638_p3, %p18635_p2 }
  0x8e   :  { %18643 = shalt.err (!%p18640_p4)
}
  0x8f   :  { %s18644_s28 = scalar_lea.vmem %s188_s18, 9216  ;;  %p18649_p6 = scmp.lt.s32.totalorder %s188_s18, %s188_s18 }
  0x90   :  { %p18645_p5 = scmp.ne.s32.totalorder %s188_s18, %s18644_s28  ;;  %p18650_p7 = scmp.lt.s32.totalorder %s18644_s28, %s18644_s28 }
  0x92   :  { %p18651_p8 = por %p18650_p7, %p18649_p6 }
  0x94   :  { %p18652_p9 = pnand %p18651_p8, %p18645_p5 }
  0x96   :  { %18655 = shalt.err (!%p18652_p9)
}
  0x97   :  { %193 = dma.hbm_to_vmem [thread:$0]  %s19634_s29, 9216, %s188_s18, [#allocation12], %s19541_s15, %s19541_s15, %s19542_s9  }
  0x98   :  { %s18656_s21 = scalar_lea.hbm %s19644_s8, 48 }
  0x99   :  { %p18657_p10 = scmp.ne.s32.totalorder %s19644_s8, %s18656_s21  ;;  %p18660_p11 = scmp.lt.u32.totalorder %s18656_s21, %s19644_s8 }
  0x9b   :  { %p18662_p12 = pnand %p18660_p11, %p18657_p10 }
  0x9d   :  { %18665 = shalt.err (!%p18662_p12)
}
  0x9e   :  { %s18666_s26 = scalar_lea.vmem %s211_s22, 48  ;;  %s18670_s1 = scalar_lea.vmem %s211_s22, 64 }
  0x9f   :  { %p18667_p13 = scmp.ne.s32.totalorder %s211_s22, %s18666_s26  ;;  %p18671_p0 = scmp.lt.s32.totalorder %s211_s22, %s211_s22 }
  0xa0   :  { %p18672_p1 = scmp.lt.s32.totalorder %s18670_s1, %s18666_s26 }
  0xa2   :  { %p18673_p2 = por %p18672_p1, %p18671_p0 }
  0xa4   :  { %p18674_p3 = pnand %p18673_p2, %p18667_p13 }
  0xa6   :  { %18677 = shalt.err (!%p18674_p3)
}
  0xa7   :  { %213 = dma.hbm_to_vmem [thread:$0]  %s19644_s8, 48, %s211_s22, [#allocation15]  }
  0xa8   :  { %s19545_s10 = smov [#allocation17]   ;;  %s19546_s11 = smov [#allocation20]  }
  0xa9   :  { %s229_s29 = sshll.u32 %s19545_s10, 4  ;;  %s252_s16 = sshll.u32 %s19546_s11, 4  ;;  %s230_s29 = int_to_ptr.vmem [resolvable:$true] %s229_s29  ;;  %s253_s16 = int_to_ptr.vmem [resolvable:$true] %s252_s16 }
  0xaa   :  { %s18678_s18 = scalar_lea.hbm %s19654_s19, 9216 }
  0xab   :  { %p18679_p4 = scmp.ne.s32.totalorder %s19654_s19, %s18678_s18  ;;  %p18682_p5 = scmp.lt.u32.totalorder %s18678_s18, %s19654_s19 }
  0xad   :  { %p18684_p6 = pnand %p18682_p5, %p18679_p4 }
  0xaf   :  { %18687 = shalt.err (!%p18684_p6)
}
  0xb0   :  { %s18688_s0 = scalar_lea.vmem %s230_s29, 9216  ;;  %p18693_p8 = scmp.lt.s32.totalorder %s230_s29, %s230_s29 }
  0xb1   :  { %p18689_p7 = scmp.ne.s32.totalorder %s230_s29, %s18688_s0  ;;  %p18694_p9 = scmp.lt.s32.totalorder %s18688_s0, %s18688_s0 }
  0xb3   :  { %p18695_p10 = por %p18694_p9, %p18693_p8 }
  0xb5   :  { %p18696_p11 = pnand %p18695_p10, %p18689_p7 }
  0xb7   :  { %18699 = shalt.err (!%p18696_p11)
}
  0xb8   :  { %235 = dma.hbm_to_vmem [thread:$0]  %s19654_s19, 9216, %s230_s29, [#allocation18], %s19541_s15, %s19541_s15, %s19542_s9  }
  0xb9   :  { %s18700_s8 = scalar_lea.hbm %s19664_s30, 96 }
  0xba   :  { %p18701_p12 = scmp.ne.s32.totalorder %s19664_s30, %s18700_s8  ;;  %p18704_p13 = scmp.lt.u32.totalorder %s18700_s8, %s19664_s30 }
  0xbc   :  { %p18706_p0 = pnand %p18704_p13, %p18701_p12 }
  0xbe   :  { %18709 = shalt.err (!%p18706_p0)
}
  0xbf   :  { %s18710_s22 = scalar_lea.vmem %s253_s16, 96  ;;  %p18715_p2 = scmp.lt.s32.totalorder %s253_s16, %s253_s16 }
  0xc0   :  { %p18711_p1 = scmp.ne.s32.totalorder %s253_s16, %s18710_s22  ;;  %p18716_p3 = scmp.lt.s32.totalorder %s18710_s22, %s18710_s22 }
  0xc2   :  { %p18717_p4 = por %p18716_p3, %p18715_p2 }
  0xc4   :  { %p18718_p5 = pnand %p18717_p4, %p18711_p1 }
  0xc6   :  { %18721 = shalt.err (!%p18718_p5)
}
  0xc7   :  { %255 = dma.hbm_to_vmem [thread:$0]  %s19664_s30, 96, %s253_s16, [#allocation21]  }
  0xc8   :  { %s19547_s23 = smov [#allocation23]   ;;  %s19548_s19 = smov [#allocation26]  }
  0xc9   :  { %s272_s28 = sshll.u32 %s19547_s23, 4  ;;  %s291_s21 = sshll.u32 %s19548_s19, 4  ;;  %s273_s28 = int_to_ptr.vmem [resolvable:$true] %s272_s28  ;;  %s19884_s21 = int_to_ptr.vmem [resolvable:$true] %s291_s21 }
  0xca   :  { %s18722_s26 = scalar_lea.hbm %s19674_s12, 48 }
  0xcb   :  { %p18723_p6 = scmp.ne.s32.totalorder %s19674_s12, %s18722_s26  ;;  %p18726_p7 = scmp.lt.u32.totalorder %s18722_s26, %s19674_s12 }
  0xcd   :  { %p18728_p8 = pnand %p18726_p7, %p18723_p6 }
  0xcf   :  { %18731 = shalt.err (!%p18728_p8)
}
  0xd0   :  { %s18732_s1 = scalar_lea.vmem %s273_s28, 48  ;;  %s18736_s10 = scalar_lea.vmem %s273_s28, 64 }
  0xd1   :  { %p18733_p9 = scmp.ne.s32.totalorder %s273_s28, %s18732_s1  ;;  %p18737_p10 = scmp.lt.s32.totalorder %s273_s28, %s273_s28 }
  0xd2   :  { %p18738_p11 = scmp.lt.s32.totalorder %s18736_s10, %s18732_s1 }
  0xd4   :  { %p18739_p12 = por %p18738_p11, %p18737_p10 }
  0xd6   :  { %p18740_p13 = pnand %p18739_p12, %p18733_p9 }
  0xd8   :  { %18743 = shalt.err (!%p18740_p13)
}
  0xd9   :  { %275 = dma.hbm_to_vmem [thread:$0]  %s19674_s12, 48, %s273_s28, [#allocation24]  }
  0xda   :  { %s18744_s30 = scalar_lea.hbm %s19684_s27, 9216 }
  0xdb   :  { %p18745_p0 = scmp.ne.s32.totalorder %s19684_s27, %s18744_s30  ;;  %p18748_p1 = scmp.lt.u32.totalorder %s18744_s30, %s19684_s27 }
  0xdd   :  { %p18750_p2 = pnand %p18748_p1, %p18745_p0 }
  0xdf   :  { %18753 = shalt.err (!%p18750_p2)
}
  0xe0   :  { %s18754_s29 = scalar_lea.vmem %s19884_s21, 9216  ;;  %p18759_p4 = scmp.lt.s32.totalorder %s19884_s21, %s19884_s21 }
  0xe1   :  { %p18755_p3 = scmp.ne.s32.totalorder %s19884_s21, %s18754_s29  ;;  %p18760_p5 = scmp.lt.s32.totalorder %s18754_s29, %s18754_s29 }
  0xe3   :  { %p18761_p6 = por %p18760_p5, %p18759_p4 }
  0xe5   :  { %p18762_p7 = pnand %p18761_p6, %p18755_p3 }
  0xe7   :  { %18765 = shalt.err (!%p18762_p7)
}
  0xe8   :  { %297 = dma.hbm_to_vmem [thread:$0]  %s19684_s27, 9216, %s19884_s21, [#allocation27], %s19541_s15, %s19541_s15, %s19542_s9  }
  0xe9   :  { %s19549_s12 = smov [#allocation29]   ;;  %s19550_s16 = smov [#allocation32]  }
  0xea   :  { %s314_s11 = sshll.u32 %s19549_s12, 4  ;;  %s340_s18 = sshll.u32 %s19550_s16, 4  ;;  %s315_s11 = int_to_ptr.vmem [resolvable:$true] %s314_s11  ;;  %s341_s18 = int_to_ptr.vmem [resolvable:$true] %s340_s18 }
  0xeb   :  { %s18766_s0 = scalar_lea.hbm %s19694_s17, 48 }
  0xec   :  { %p18767_p8 = scmp.ne.s32.totalorder %s19694_s17, %s18766_s0  ;;  %p18770_p9 = scmp.lt.u32.totalorder %s18766_s0, %s19694_s17 }
  0xee   :  { %p18772_p10 = pnand %p18770_p9, %p18767_p8 }
  0xf0   :  { %18775 = shalt.err (!%p18772_p10)
}
  0xf1   :  { %s18776_s8 = scalar_lea.vmem %s315_s11, 48  ;;  %s18780_s22 = scalar_lea.vmem %s315_s11, 64 }
  0xf2   :  { %p18777_p11 = scmp.ne.s32.totalorder %s315_s11, %s18776_s8  ;;  %p18781_p12 = scmp.lt.s32.totalorder %s315_s11, %s315_s11 }
  0xf3   :  { %p18782_p13 = scmp.lt.s32.totalorder %s18780_s22, %s18776_s8 }
  0xf5   :  { %p18783_p0 = por %p18782_p13, %p18781_p12 }
  0xf7   :  { %p18784_p1 = pnand %p18783_p0, %p18777_p11 }
  0xf9   :  { %18787 = shalt.err (!%p18784_p1)
}
  0xfa   :  { %317 = dma.hbm_to_vmem [thread:$0]  %s19694_s17, 48, %s315_s11, [#allocation30]  }
  0xfb   :  { %s18788_s27 = scalar_lea.hbm %s19719_s20, 32 }
  0xfc   :  { %p18789_p2 = scmp.ne.s32.totalorder %s19719_s20, %s18788_s27  ;;  %p18792_p3 = scmp.lt.u32.totalorder %s18788_s27, %s19719_s20 }
  0xfe   :  { %p18794_p4 = pnand %p18792_p3, %p18789_p2 }
 0x100   :  { %18797 = shalt.err (!%p18794_p4)
}
 0x101   :  { %s18798_s23 = scalar_lea.vmem %s341_s18, 32  ;;  %p18803_p6 = scmp.lt.s32.totalorder %s341_s18, %s341_s18 }
 0x102   :  { %p18799_p5 = scmp.ne.s32.totalorder %s341_s18, %s18798_s23  ;;  %p18804_p7 = scmp.lt.s32.totalorder %s18798_s23, %s18798_s23 }
 0x104   :  { %p18805_p8 = por %p18804_p7, %p18803_p6 }
 0x106   :  { %p18806_p9 = pnand %p18805_p8, %p18799_p5 }
 0x108   :  { %18809 = shalt.err (!%p18806_p9)
}
 0x109   :  { %343 = dma.hbm_to_vmem [thread:$0]  %s19719_s20, 32, %s341_s18, [#allocation33]  }
 0x10a   :  { %s19551_s28 = smov [#allocation35]   ;;  %s19552_s17 = smov [#allocation38]  }
 0x10b   :  { %s362_s19 = sshll.u32 %s19551_s28, 4  ;;  %s382_s21 = sshll.u32 %s19552_s17, 4  ;;  %s363_s19 = int_to_ptr.vmem [resolvable:$true] %s362_s19  ;;  %s383_s21 = int_to_ptr.vmem [resolvable:$true] %s382_s21 }
 0x10c   :  { %s18810_s26 = scalar_lea.hbm %s19729_s4, 16 }
 0x10d   :  { %p18811_p10 = scmp.ne.s32.totalorder %s19729_s4, %s18810_s26  ;;  %p18814_p11 = scmp.lt.u32.totalorder %s18810_s26, %s19729_s4 }
 0x10f   :  { %p18816_p12 = pnand %p18814_p11, %p18811_p10 }
 0x111   :  { %18819 = shalt.err (!%p18816_p12)
}
 0x112   :  { %s18820_s1 = scalar_lea.vmem %s363_s19, 16  ;;  %s18824_s10 = scalar_lea.vmem %s363_s19, 32 }
 0x113   :  { %p18821_p13 = scmp.ne.s32.totalorder %s363_s19, %s18820_s1  ;;  %p18825_p0 = scmp.lt.s32.totalorder %s363_s19, %s363_s19 }
 0x114   :  { %p18826_p1 = scmp.lt.s32.totalorder %s18824_s10, %s18820_s1 }
 0x116   :  { %p18827_p2 = por %p18826_p1, %p18825_p0 }
 0x118   :  { %p18828_p3 = pnand %p18827_p2, %p18821_p13 }
 0x11a   :  { %18831 = shalt.err (!%p18828_p3)
}
 0x11b   :  { %365 = dma.hbm_to_vmem [thread:$0]  %s19729_s4, 16, %s363_s19, [#allocation36]  }
 0x11c   :  { %s18832_s20 = scalar_lea.hbm %s19739_s14, 16 }
 0x11d   :  { %p18833_p4 = scmp.ne.s32.totalorder %s19739_s14, %s18832_s20  ;;  %p18836_p5 = scmp.lt.u32.totalorder %s18832_s20, %s19739_s14 }
 0x11f   :  { %p18838_p6 = pnand %p18836_p5, %p18833_p4 }
 0x121   :  { %18841 = shalt.err (!%p18838_p6)
}
 0x122   :  { %s18842_s30 = scalar_lea.vmem %s383_s21, 16  ;;  %s18846_s29 = scalar_lea.vmem %s383_s21, 32 }
 0x123   :  { %p18843_p7 = scmp.ne.s32.totalorder %s383_s21, %s18842_s30  ;;  %p18847_p8 = scmp.lt.s32.totalorder %s383_s21, %s383_s21 }
 0x124   :  { %p18848_p9 = scmp.lt.s32.totalorder %s18846_s29, %s18842_s30 }
 0x126   :  { %p18849_p10 = por %p18848_p9, %p18847_p8 }
 0x128   :  { %p18850_p11 = pnand %p18849_p10, %p18843_p7 }
 0x12a   :  { %18853 = shalt.err (!%p18850_p11)
}
 0x12b   :  { %385 = dma.hbm_to_vmem [thread:$0]  %s19739_s14, 16, %s383_s21, [#allocation39]  }
 0x12c   :  { %s19553_s12 = smov [#allocation41]   ;;  %s19554_s11 = smov [#allocation44]  }
 0x12d   :  { %s404_s4 = sshll.u32 %s19553_s12, 4  ;;  %s426_s16 = sshll.u32 %s19554_s11, 4  ;;  %s405_s4 = int_to_ptr.vmem [resolvable:$true] %s404_s4  ;;  %s427_s16 = int_to_ptr.vmem [resolvable:$true] %s426_s16 }
 0x12e   :  { %s18854_s18 = scalar_lea.hbm %s19749_s3, 256 }
 0x12f   :  { %p18855_p12 = scmp.ne.s32.totalorder %s19749_s3, %s18854_s18  ;;  %p18858_p13 = scmp.lt.u32.totalorder %s18854_s18, %s19749_s3 }
 0x131   :  { %p18860_p0 = pnand %p18858_p13, %p18855_p12 }
 0x133   :  { %18863 = shalt.err (!%p18860_p0)
}
 0x134   :  { %s18864_s0 = scalar_lea.vmem %s405_s4, 256  ;;  %p18869_p2 = scmp.lt.s32.totalorder %s405_s4, %s405_s4 }
 0x135   :  { %p18865_p1 = scmp.ne.s32.totalorder %s405_s4, %s18864_s0  ;;  %p18870_p3 = scmp.lt.s32.totalorder %s18864_s0, %s18864_s0 }
 0x137   :  { %p18871_p4 = por %p18870_p3, %p18869_p2 }
 0x139   :  { %p18872_p5 = pnand %p18871_p4, %p18865_p1 }
 0x13b   :  { %18875 = shalt.err (!%p18872_p5)
}
 0x13c   :  { %407 = dma.hbm_to_vmem [thread:$0]  %s19749_s3, 256, %s405_s4, [#allocation42]  }
 0x13d   :  { %s18876_s14 = scalar_lea.hbm %s19764_s6, 16 }
 0x13e   :  { %p18877_p6 = scmp.ne.s32.totalorder %s19764_s6, %s18876_s14  ;;  %p18880_p7 = scmp.lt.u32.totalorder %s18876_s14, %s19764_s6 }
 0x140   :  { %p18882_p8 = pnand %p18880_p7, %p18877_p6 }
 0x142   :  { %18885 = shalt.err (!%p18882_p8)
}
 0x143   :  { %s18886_s8 = scalar_lea.vmem %s427_s16, 16  ;;  %s18890_s22 = scalar_lea.vmem %s427_s16, 32 }
 0x144   :  { %p18887_p9 = scmp.ne.s32.totalorder %s427_s16, %s18886_s8  ;;  %p18891_p10 = scmp.lt.s32.totalorder %s427_s16, %s427_s16 }
 0x145   :  { %p18892_p11 = scmp.lt.s32.totalorder %s18890_s22, %s18886_s8 }
 0x147   :  { %p18893_p12 = por %p18892_p11, %p18891_p10 }
 0x149   :  { %p18894_p13 = pnand %p18893_p12, %p18887_p9 }
 0x14b   :  { %18897 = shalt.err (!%p18894_p13)
}
 0x14c   :  { %s21702_s27 = sld [smem:[#allocation103_spill]]  ;;  %s19555_s23 = smov [#allocation47]  }
 0x14d   :  { %429 = dma.hbm_to_vmem [thread:$0]  %s19764_s6, 16, %s427_s16, [#allocation45]  }
 0x14e   :  { %s445_s3 = sshll.u32 %s19555_s23, 4  ;;  %s19556_s28 = smov [#allocation50]   ;;  %s446_s3 = int_to_ptr.vmem [resolvable:$true] %s445_s3 }
 0x14f   :  { %s467_s19 = sshll.u32 %s19556_s28, 4  ;;  %s19926_s19 = int_to_ptr.vmem [resolvable:$true] %s467_s19 }
 0x152   :  { %s18898_s17 = scalar_lea.hbm %s21702_s27, 1536 }
 0x153   :  { %p18899_p0 = scmp.ne.s32.totalorder %s21702_s27, %s18898_s17  ;;  %p18902_p1 = scmp.lt.u32.totalorder %s18898_s17, %s21702_s27 }
 0x155   :  { %p18904_p2 = pnand %p18902_p1, %p18899_p0 }
 0x157   :  { %18907 = shalt.err (!%p18904_p2)
}
 0x158   :  { %s18908_s21 = scalar_lea.vmem %s446_s3, 1536  ;;  %p18913_p4 = scmp.lt.s32.totalorder %s446_s3, %s446_s3 }
 0x159   :  { %p18909_p3 = scmp.ne.s32.totalorder %s446_s3, %s18908_s21  ;;  %p18914_p5 = scmp.lt.s32.totalorder %s18908_s21, %s18908_s21 }
 0x15b   :  { %p18915_p6 = por %p18914_p5, %p18913_p4 }
 0x15d   :  { %p18916_p7 = pnand %p18915_p6, %p18909_p3 }
 0x15f   :  { %18919 = shalt.err (!%p18916_p7)
}
 0x160   :  { %s21703_s6 = sld [smem:[#allocation105_spill]] }
 0x161   :  { %451 = dma.hbm_to_vmem [thread:$0]  %s21702_s27, 1536, %s446_s3, [#allocation48], %s19541_s15, %s19541_s15, %s19542_s9  }
 0x166   :  { %s18920_s26 = scalar_lea.hbm %s21703_s6, 144 }
 0x167   :  { %p18921_p8 = scmp.ne.s32.totalorder %s21703_s6, %s18920_s26  ;;  %p18924_p9 = scmp.lt.u32.totalorder %s18920_s26, %s21703_s6 }
 0x169   :  { %p18926_p10 = pnand %p18924_p9, %p18921_p8 }
 0x16b   :  { %18929 = shalt.err (!%p18926_p10)
}
 0x16c   :  { %s18930_s1 = scalar_lea.vmem %s19926_s19, 144  ;;  %s18934_s10 = scalar_lea.vmem %s19926_s19, 160 }
 0x16d   :  { %p18931_p11 = scmp.ne.s32.totalorder %s19926_s19, %s18930_s1  ;;  %p18935_p12 = scmp.lt.s32.totalorder %s19926_s19, %s19926_s19 }
 0x16e   :  { %p18936_p13 = scmp.lt.s32.totalorder %s18934_s10, %s18930_s1 }
 0x170   :  { %p18937_p0 = por %p18936_p13, %p18935_p12 }
 0x172   :  { %p18938_p1 = pnand %p18937_p0, %p18931_p11 }
 0x174   :  { %18941 = shalt.err (!%p18938_p1)
}
 0x175   :  { %s19557_s20 = smov 48   ;;  %s21704_s30 = sld [smem:[#allocation108_spill]] }
 0x176   :  { %s19558_s29 = smov 3   ;;  %s19559_s12 = smov [#allocation53]  }
 0x177   :  { %473 = dma.hbm_to_vmem [thread:$0]  %s21703_s6, 144, %s19926_s19, [#allocation51], %s19557_s20, %s19557_s20, %s19558_s29  }
 0x178   :  { %s493_s4 = sshll.u32 %s19559_s12, 4  ;;  %s19560_s11 = smov [#allocation56]   ;;  %s494_s4 = int_to_ptr.vmem [resolvable:$true] %s493_s4 }
 0x179   :  { %s517_s16 = sshll.u32 %s19560_s11, 4  ;;  %s19948_s16 = int_to_ptr.vmem [resolvable:$true] %s517_s16 }
 0x17b   :  { %s18942_s18 = scalar_lea.hbm %s21704_s30, 144 }
 0x17c   :  { %p18943_p2 = scmp.ne.s32.totalorder %s21704_s30, %s18942_s18  ;;  %p18946_p3 = scmp.lt.u32.totalorder %s18942_s18, %s21704_s30 }
 0x17e   :  { %p18948_p4 = pnand %p18946_p3, %p18943_p2 }
 0x180   :  { %18951 = shalt.err (!%p18948_p4)
}
 0x181   :  { %s18952_s0 = scalar_lea.vmem %s494_s4, 144  ;;  %s18956_s14 = scalar_lea.vmem %s494_s4, 160 }
 0x182   :  { %p18953_p5 = scmp.ne.s32.totalorder %s494_s4, %s18952_s0  ;;  %p18957_p6 = scmp.lt.s32.totalorder %s494_s4, %s494_s4 }
 0x183   :  { %p18958_p7 = scmp.lt.s32.totalorder %s18956_s14, %s18952_s0 }
 0x185   :  { %p18959_p8 = por %p18958_p7, %p18957_p6 }
 0x187   :  { %p18960_p9 = pnand %p18959_p8, %p18953_p5 }
 0x189   :  { %18963 = shalt.err (!%p18960_p9)
}
 0x18a   :  { %s21705_s8 = sld [smem:[#allocation110_spill]] }
 0x18b   :  { %499 = dma.hbm_to_vmem [thread:$0]  %s21704_s30, 144, %s494_s4, [#allocation54], %s19557_s20, %s19557_s20, %s19558_s29  }
 0x190   :  { %s18964_s22 = scalar_lea.hbm %s21705_s8, 144 }
 0x191   :  { %p18965_p10 = scmp.ne.s32.totalorder %s21705_s8, %s18964_s22  ;;  %p18968_p11 = scmp.lt.u32.totalorder %s18964_s22, %s21705_s8 }
 0x193   :  { %p18970_p12 = pnand %p18968_p11, %p18965_p10 }
 0x195   :  { %18973 = shalt.err (!%p18970_p12)
}
 0x196   :  { %s18974_s27 = scalar_lea.vmem %s19948_s16, 144  ;;  %s18978_s23 = scalar_lea.vmem %s19948_s16, 160 }
 0x197   :  { %p18975_p13 = scmp.ne.s32.totalorder %s19948_s16, %s18974_s27  ;;  %p18979_p0 = scmp.lt.s32.totalorder %s19948_s16, %s19948_s16 }
 0x198   :  { %p18980_p1 = scmp.lt.s32.totalorder %s18978_s23, %s18974_s27 }
 0x19a   :  { %p18981_p2 = por %p18980_p1, %p18979_p0 }
 0x19c   :  { %p18982_p3 = pnand %p18981_p2, %p18975_p13 }
 0x19e   :  { %18985 = shalt.err (!%p18982_p3)
}
 0x19f   :  { %s21706_s3 = sld [smem:[#allocation83_spill]]  ;;  %s19561_s28 = smov [#allocation2]  }
 0x1a0   :  { %523 = dma.hbm_to_vmem [thread:$0]  %s21705_s8, 144, %s19948_s16, [#allocation57], %s19557_s20, %s19557_s20, %s19558_s29  }
 0x1a1   :  { %s127_s19 = sshll.u32 %s19561_s28, 4  ;;  %s19562_s17 = smov [#allocation7]   ;;  %s128_s19 = int_to_ptr.vmem [resolvable:$true] %s127_s19 }
 0x1a2   :  { %s151_s21 = sshll.u32 %s19562_s17, 4  ;;  %s19970_s21 = int_to_ptr.vmem [resolvable:$true] %s151_s21 }
 0x1a5   :  { %s18986_s6 = scalar_lea.hbm %s21706_s3, 768 }
 0x1a6   :  { %p18987_p4 = scmp.ne.s32.totalorder %s21706_s3, %s18986_s6  ;;  %p18990_p5 = scmp.lt.u32.totalorder %s18986_s6, %s21706_s3 }
 0x1a8   :  { %p18992_p6 = pnand %p18990_p5, %p18987_p4 }
 0x1aa   :  { %18995 = shalt.err (!%p18992_p6)
}
 0x1ab   :  { %s18996_s26 = scalar_lea.vmem %s128_s19, 768  ;;  %p19001_p8 = scmp.lt.s32.totalorder %s128_s19, %s128_s19 }
 0x1ac   :  { %p18997_p7 = scmp.ne.s32.totalorder %s128_s19, %s18996_s26  ;;  %p19002_p9 = scmp.lt.s32.totalorder %s18996_s26, %s18996_s26 }
 0x1ae   :  { %p19003_p10 = por %p19002_p9, %p19001_p8 }
 0x1b0   :  { %p19004_p11 = pnand %p19003_p10, %p18997_p7 }
 0x1b2   :  { %19007 = shalt.err (!%p19004_p11)
}
 0x1b3   :  { %s21707_s1 = sld [smem:[#allocation84_spill]] }
 0x1b4   :  { %133 = dma.hbm_to_vmem [thread:$0]  %s21706_s3, 768, %s128_s19, [#allocation3], %s19539_s2, %s19539_s2, %s19540_s7  }
 0x1b9   :  { %s19008_s10 = scalar_lea.hbm %s21707_s1, 256 }
 0x1ba   :  { %p19009_p12 = scmp.ne.s32.totalorder %s21707_s1, %s19008_s10  ;;  %p19012_p13 = scmp.lt.u32.totalorder %s19008_s10, %s21707_s1 }
 0x1bc   :  { %p19014_p0 = pnand %p19012_p13, %p19009_p12 }
 0x1be   :  { %19017 = shalt.err (!%p19014_p0)
}
 0x1bf   :  { %s19018_s30 = scalar_lea.vmem %s19970_s21, 256  ;;  %p19023_p2 = scmp.lt.s32.totalorder %s19970_s21, %s19970_s21 }
 0x1c0   :  { %p19019_p1 = scmp.ne.s32.totalorder %s19970_s21, %s19018_s30  ;;  %p19024_p3 = scmp.lt.s32.totalorder %s19018_s30, %s19018_s30 }
 0x1c2   :  { %p19025_p4 = por %p19024_p3, %p19023_p2 }
 0x1c4   :  { %p19026_p5 = pnand %p19025_p4, %p19019_p1 }
 0x1c6   :  { %19029 = shalt.err (!%p19026_p5)
}
 0x1c7   :  { %s19563_s12 = smov 128   ;;  %s21708_s4 = sld [smem:[#allocation86_spill]] }
 0x1c8   :  { %s19564_s11 = smov 8   ;;  %s19565_s16 = smov [#allocation10]  }
 0x1c9   :  { %157 = dma.hbm_to_vmem [thread:$0]  %s21707_s1, 256, %s19970_s21, [#allocation6], %s19563_s12, %s19563_s12, %s19564_s11  }
 0x1ca   :  { %s178_s18 = sshll.u32 %s19565_s16, 4  ;;  %s19566_s0 = smov [#allocation13]   ;;  %s179_s18 = int_to_ptr.vmem [resolvable:$true] %s178_s18 }
 0x1cb   :  { %s200_s14 = sshll.u32 %s19566_s0, 4  ;;  %s201_s14 = int_to_ptr.vmem [resolvable:$true] %s200_s14 }
 0x1cd   :  { %s19030_s8 = scalar_lea.hbm %s21708_s4, 48 }
 0x1ce   :  { %p19031_p6 = scmp.ne.s32.totalorder %s21708_s4, %s19030_s8  ;;  %p19034_p7 = scmp.lt.u32.totalorder %s19030_s8, %s21708_s4 }
 0x1d0   :  { %p19036_p8 = pnand %p19034_p7, %p19031_p6 }
 0x1d2   :  { %19039 = shalt.err (!%p19036_p8)
}
 0x1d3   :  { %s19040_s22 = scalar_lea.vmem %s179_s18, 48  ;;  %s19044_s27 = scalar_lea.vmem %s179_s18, 64 }
 0x1d4   :  { %p19041_p9 = scmp.ne.s32.totalorder %s179_s18, %s19040_s22  ;;  %p19045_p10 = scmp.lt.s32.totalorder %s179_s18, %s179_s18 }
 0x1d5   :  { %p19046_p11 = scmp.lt.s32.totalorder %s19044_s27, %s19040_s22 }
 0x1d7   :  { %p19047_p12 = por %p19046_p11, %p19045_p10 }
 0x1d9   :  { %p19048_p13 = pnand %p19047_p12, %p19041_p9 }
 0x1db   :  { %19051 = shalt.err (!%p19048_p13)
}
 0x1dc   :  { %s21709_s23 = sld [smem:[#allocation87_spill]] }
 0x1dd   :  { %181 = dma.hbm_to_vmem [thread:$0]  %s21708_s4, 48, %s179_s18, [#allocation9]  }
 0x1e2   :  { %s19052_s3 = scalar_lea.hbm %s21709_s23, 48 }
 0x1e3   :  { %p19053_p0 = scmp.ne.s32.totalorder %s21709_s23, %s19052_s3  ;;  %p19056_p1 = scmp.lt.u32.totalorder %s19052_s3, %s21709_s23 }
 0x1e5   :  { %p19058_p2 = pnand %p19056_p1, %p19053_p0 }
 0x1e7   :  { %19061 = shalt.err (!%p19058_p2)
}
 0x1e8   :  { %s19062_s28 = scalar_lea.vmem %s201_s14, 48  ;;  %s19066_s19 = scalar_lea.vmem %s201_s14, 64 }
 0x1e9   :  { %p19063_p3 = scmp.ne.s32.totalorder %s201_s14, %s19062_s28  ;;  %p19067_p4 = scmp.lt.s32.totalorder %s201_s14, %s201_s14 }
 0x1ea   :  { %p19068_p5 = scmp.lt.s32.totalorder %s19066_s19, %s19062_s28 }
 0x1ec   :  { %p19069_p6 = por %p19068_p5, %p19067_p4 }
 0x1ee   :  { %p19070_p7 = pnand %p19069_p6, %p19063_p3 }
 0x1f0   :  { %19073 = shalt.err (!%p19070_p7)
}
 0x1f1   :  { %s21710_s17 = sld [smem:[#allocation88_spill]]  ;;  %s19567_s21 = smov [#allocation16]  }
 0x1f2   :  { %203 = dma.hbm_to_vmem [thread:$0]  %s21709_s23, 48, %s201_s14, [#allocation12]  }
 0x1f3   :  { %s220_s6 = sshll.u32 %s19567_s21, 4  ;;  %s19568_s26 = smov [#allocation19]   ;;  %s221_s6 = int_to_ptr.vmem [resolvable:$true] %s220_s6 }
 0x1f4   :  { %s242_s1 = sshll.u32 %s19568_s26, 4  ;;  %s243_s1 = int_to_ptr.vmem [resolvable:$true] %s242_s1 }
 0x1f7   :  { %s19074_s10 = scalar_lea.hbm %s21710_s17, 48 }
 0x1f8   :  { %p19075_p8 = scmp.ne.s32.totalorder %s21710_s17, %s19074_s10  ;;  %p19078_p9 = scmp.lt.u32.totalorder %s19074_s10, %s21710_s17 }
 0x1fa   :  { %p19080_p10 = pnand %p19078_p9, %p19075_p8 }
 0x1fc   :  { %19083 = shalt.err (!%p19080_p10)
}
 0x1fd   :  { %s19084_s30 = scalar_lea.vmem %s221_s6, 48  ;;  %s19088_s4 = scalar_lea.vmem %s221_s6, 64 }
 0x1fe   :  { %p19085_p11 = scmp.ne.s32.totalorder %s221_s6, %s19084_s30  ;;  %p19089_p12 = scmp.lt.s32.totalorder %s221_s6, %s221_s6 }
 0x1ff   :  { %p19090_p13 = scmp.lt.s32.totalorder %s19088_s4, %s19084_s30 }
 0x201   :  { %p19091_p0 = por %p19090_p13, %p19089_p12 }
 0x203   :  { %p19092_p1 = pnand %p19091_p0, %p19085_p11 }
 0x205   :  { %19095 = shalt.err (!%p19092_p1)
}
 0x206   :  { %s21711_s16 = sld [smem:[#allocation89_spill]] }
 0x207   :  { %223 = dma.hbm_to_vmem [thread:$0]  %s21710_s17, 48, %s221_s6, [#allocation15]  }
 0x20c   :  { %s19096_s18 = scalar_lea.hbm %s21711_s16, 48 }
 0x20d   :  { %p19097_p2 = scmp.ne.s32.totalorder %s21711_s16, %s19096_s18  ;;  %p19100_p3 = scmp.lt.u32.totalorder %s19096_s18, %s21711_s16 }
 0x20f   :  { %p19102_p4 = pnand %p19100_p3, %p19097_p2 }
 0x211   :  { %19105 = shalt.err (!%p19102_p4)
}
 0x212   :  { %s19106_s0 = scalar_lea.vmem %s243_s1, 48  ;;  %s19110_s14 = scalar_lea.vmem %s243_s1, 64 }
 0x213   :  { %p19107_p5 = scmp.ne.s32.totalorder %s243_s1, %s19106_s0  ;;  %p19111_p6 = scmp.lt.s32.totalorder %s243_s1, %s243_s1 }
 0x214   :  { %p19112_p7 = scmp.lt.s32.totalorder %s19110_s14, %s19106_s0 }
 0x216   :  { %p19113_p8 = por %p19112_p7, %p19111_p6 }
 0x218   :  { %p19114_p9 = pnand %p19113_p8, %p19107_p5 }
 0x21a   :  { %19117 = shalt.err (!%p19114_p9)
}
 0x21b   :  { %s21712_s8 = sld [smem:[#allocation90_spill]]  ;;  %s19569_s22 = smov [#allocation22]  }
 0x21c   :  { %245 = dma.hbm_to_vmem [thread:$0]  %s21711_s16, 48, %s243_s1, [#allocation18]  }
 0x21d   :  { %s262_s27 = sshll.u32 %s19569_s22, 4  ;;  %s19570_s23 = smov [#allocation25]   ;;  %s263_s27 = int_to_ptr.vmem [resolvable:$true] %s262_s27 }
 0x21e   :  { %s282_s3 = sshll.u32 %s19570_s23, 4  ;;  %s283_s3 = int_to_ptr.vmem [resolvable:$true] %s282_s3 }
 0x221   :  { %s19118_s28 = scalar_lea.hbm %s21712_s8, 48 }
 0x222   :  { %p19119_p10 = scmp.ne.s32.totalorder %s21712_s8, %s19118_s28  ;;  %p19122_p11 = scmp.lt.u32.totalorder %s19118_s28, %s21712_s8 }
 0x224   :  { %p19124_p12 = pnand %p19122_p11, %p19119_p10 }
 0x226   :  { %19127 = shalt.err (!%p19124_p12)
}
 0x227   :  { %s19128_s19 = scalar_lea.vmem %s263_s27, 48  ;;  %s19132_s17 = scalar_lea.vmem %s263_s27, 64 }
 0x228   :  { %p19129_p13 = scmp.ne.s32.totalorder %s263_s27, %s19128_s19  ;;  %p19133_p0 = scmp.lt.s32.totalorder %s263_s27, %s263_s27 }
 0x229   :  { %p19134_p1 = scmp.lt.s32.totalorder %s19132_s17, %s19128_s19 }
 0x22b   :  { %p19135_p2 = por %p19134_p1, %p19133_p0 }
 0x22d   :  { %p19136_p3 = pnand %p19135_p2, %p19129_p13 }
 0x22f   :  { %19139 = shalt.err (!%p19136_p3)
}
 0x230   :  { %s21713_s21 = sld [smem:[#allocation91_spill]] }
 0x231   :  { %265 = dma.hbm_to_vmem [thread:$0]  %s21712_s8, 48, %s263_s27, [#allocation21]  }
 0x236   :  { %s19140_s6 = scalar_lea.hbm %s21713_s21, 48 }
 0x237   :  { %p19141_p4 = scmp.ne.s32.totalorder %s21713_s21, %s19140_s6  ;;  %p19144_p5 = scmp.lt.u32.totalorder %s19140_s6, %s21713_s21 }
 0x239   :  { %p19146_p6 = pnand %p19144_p5, %p19141_p4 }
 0x23b   :  { %19149 = shalt.err (!%p19146_p6)
}
 0x23c   :  { %s19150_s26 = scalar_lea.vmem %s283_s3, 48  ;;  %s19154_s1 = scalar_lea.vmem %s283_s3, 64 }
 0x23d   :  { %p19151_p7 = scmp.ne.s32.totalorder %s283_s3, %s19150_s26  ;;  %p19155_p8 = scmp.lt.s32.totalorder %s283_s3, %s283_s3 }
 0x23e   :  { %p19156_p9 = scmp.lt.s32.totalorder %s19154_s1, %s19150_s26 }
 0x240   :  { %p19157_p10 = por %p19156_p9, %p19155_p8 }
 0x242   :  { %p19158_p11 = pnand %p19157_p10, %p19151_p7 }
 0x244   :  { %19161 = shalt.err (!%p19158_p11)
}
 0x245   :  { %s21714_s10 = sld [smem:[#allocation92_spill]]  ;;  %s19571_s30 = smov [#allocation28]  }
 0x246   :  { %285 = dma.hbm_to_vmem [thread:$0]  %s21713_s21, 48, %s283_s3, [#allocation24]  }
 0x247   :  { %s304_s4 = sshll.u32 %s19571_s30, 4  ;;  %s19572_s16 = smov [#allocation31]   ;;  %s305_s4 = int_to_ptr.vmem [resolvable:$true] %s304_s4 }
 0x248   :  { %s324_s18 = sshll.u32 %s19572_s16, 4  ;;  %s325_s18 = int_to_ptr.vmem [resolvable:$true] %s324_s18 }
 0x24b   :  { %s19162_s0 = scalar_lea.hbm %s21714_s10, 48 }
 0x24c   :  { %p19163_p12 = scmp.ne.s32.totalorder %s21714_s10, %s19162_s0  ;;  %p19166_p13 = scmp.lt.u32.totalorder %s19162_s0, %s21714_s10 }
 0x24e   :  { %p19168_p0 = pnand %p19166_p13, %p19163_p12 }
 0x250   :  { %19171 = shalt.err (!%p19168_p0)
}
 0x251   :  { %s19172_s14 = scalar_lea.vmem %s305_s4, 48  ;;  %s19176_s8 = scalar_lea.vmem %s305_s4, 64 }
 0x252   :  { %p19173_p1 = scmp.ne.s32.totalorder %s305_s4, %s19172_s14  ;;  %p19177_p2 = scmp.lt.s32.totalorder %s305_s4, %s305_s4 }
 0x253   :  { %p19178_p3 = scmp.lt.s32.totalorder %s19176_s8, %s19172_s14 }
 0x255   :  { %p19179_p4 = por %p19178_p3, %p19177_p2 }
 0x257   :  { %p19180_p5 = pnand %p19179_p4, %p19173_p1 }
 0x259   :  { %19183 = shalt.err (!%p19180_p5)
}
 0x25a   :  { %s21715_s22 = sld [smem:[#allocation93_spill]] }
 0x25b   :  { %307 = dma.hbm_to_vmem [thread:$0]  %s21714_s10, 48, %s305_s4, [#allocation27]  }
 0x260   :  { %s19184_s27 = scalar_lea.hbm %s21715_s22, 48 }
 0x261   :  { %p19185_p6 = scmp.ne.s32.totalorder %s21715_s22, %s19184_s27  ;;  %p19188_p7 = scmp.lt.u32.totalorder %s19184_s27, %s21715_s22 }
 0x263   :  { %p19190_p8 = pnand %p19188_p7, %p19185_p6 }
 0x265   :  { %19193 = shalt.err (!%p19190_p8)
}
 0x266   :  { %s19194_s23 = scalar_lea.vmem %s325_s18, 48  ;;  %s19198_s3 = scalar_lea.vmem %s325_s18, 64 }
 0x267   :  { %p19195_p9 = scmp.ne.s32.totalorder %s325_s18, %s19194_s23  ;;  %p19199_p10 = scmp.lt.s32.totalorder %s325_s18, %s325_s18 }
 0x268   :  { %p19200_p11 = scmp.lt.s32.totalorder %s19198_s3, %s19194_s23 }
 0x26a   :  { %p19201_p12 = por %p19200_p11, %p19199_p10 }
 0x26c   :  { %p19202_p13 = pnand %p19201_p12, %p19195_p9 }
 0x26e   :  { %19205 = shalt.err (!%p19202_p13)
}
 0x26f   :  { %s21716_s28 = sld [smem:[#allocation97_spill]]  ;;  %s19573_s19 = smov [#allocation34]  }
 0x270   :  { %327 = dma.hbm_to_vmem [thread:$0]  %s21715_s22, 48, %s325_s18, [#allocation30]  }
 0x271   :  { %s349_s17 = sshll.u32 %s19573_s19, 4  ;;  %s350_s17 = int_to_ptr.vmem [resolvable:$true] %s349_s17 }
 0x275   :  { %s19206_s21 = scalar_lea.hbm %s21716_s28, 512 }
 0x276   :  { %p19207_p0 = scmp.ne.s32.totalorder %s21716_s28, %s19206_s21  ;;  %p19210_p1 = scmp.lt.u32.totalorder %s19206_s21, %s21716_s28 }
 0x278   :  { %p19212_p2 = pnand %p19210_p1, %p19207_p0 }
 0x27a   :  { %19215 = shalt.err (!%p19212_p2)
}
 0x27b   :  { %s19216_s6 = scalar_lea.vmem %s350_s17, 512  ;;  %p19221_p4 = scmp.lt.s32.totalorder %s350_s17, %s350_s17 }
 0x27c   :  { %p19217_p3 = scmp.ne.s32.totalorder %s350_s17, %s19216_s6  ;;  %p19222_p5 = scmp.lt.s32.totalorder %s19216_s6, %s19216_s6 }
 0x27e   :  { %p19223_p6 = por %p19222_p5, %p19221_p4 }
 0x280   :  { %p19224_p7 = pnand %p19223_p6, %p19217_p3 }
 0x282   :  { %19227 = shalt.err (!%p19224_p7)
}
 0x283   :  { %s19574_s26 = smov 64   ;;  %s21717_s1 = sld [smem:[#allocation98_spill]] }
 0x284   :  { %s19575_s10 = smov 4   ;;  %s19576_s30 = smov [#allocation37]  }
 0x285   :  { %355 = dma.hbm_to_vmem [thread:$0]  %s21716_s28, 512, %s350_s17, [#allocation33], %s19574_s26, %s19574_s26, %s19575_s10  }
 0x286   :  { %s372_s4 = sshll.u32 %s19576_s30, 4  ;;  %s19577_s16 = smov [#allocation40]   ;;  %s373_s4 = int_to_ptr.vmem [resolvable:$true] %s372_s4 }
 0x287   :  { %s391_s18 = sshll.u32 %s19577_s16, 4  ;;  %s392_s18 = int_to_ptr.vmem [resolvable:$true] %s391_s18 }
 0x289   :  { %s19228_s0 = scalar_lea.hbm %s21717_s1, 16 }
 0x28a   :  { %p19229_p8 = scmp.ne.s32.totalorder %s21717_s1, %s19228_s0  ;;  %p19232_p9 = scmp.lt.u32.totalorder %s19228_s0, %s21717_s1 }
 0x28c   :  { %p19234_p10 = pnand %p19232_p9, %p19229_p8 }
 0x28e   :  { %19237 = shalt.err (!%p19234_p10)
}
 0x28f   :  { %s19238_s14 = scalar_lea.vmem %s373_s4, 16  ;;  %s19242_s8 = scalar_lea.vmem %s373_s4, 32 }
 0x290   :  { %p19239_p11 = scmp.ne.s32.totalorder %s373_s4, %s19238_s14  ;;  %p19243_p12 = scmp.lt.s32.totalorder %s373_s4, %s373_s4 }
 0x291   :  { %p19244_p13 = scmp.lt.s32.totalorder %s19242_s8, %s19238_s14 }
 0x293   :  { %p19245_p0 = por %p19244_p13, %p19243_p12 }
 0x295   :  { %p19246_p1 = pnand %p19245_p0, %p19239_p11 }
 0x297   :  { %19249 = shalt.err (!%p19246_p1)
}
 0x298   :  { %s21718_s22 = sld [smem:[#allocation99_spill]] }
 0x299   :  { %375 = dma.hbm_to_vmem [thread:$0]  %s21717_s1, 16, %s373_s4, [#allocation36]  }
 0x29e   :  { %s19250_s27 = scalar_lea.hbm %s21718_s22, 8192 }
 0x29f   :  { %p19251_p2 = scmp.ne.s32.totalorder %s21718_s22, %s19250_s27  ;;  %p19254_p3 = scmp.lt.u32.totalorder %s19250_s27, %s21718_s22 }
 0x2a1   :  { %p19256_p4 = pnand %p19254_p3, %p19251_p2 }
 0x2a3   :  { %19259 = shalt.err (!%p19256_p4)
}
 0x2a4   :  { %s19260_s23 = scalar_lea.vmem %s392_s18, 8192  ;;  %p19265_p6 = scmp.lt.s32.totalorder %s392_s18, %s392_s18 }
 0x2a5   :  { %p19261_p5 = scmp.ne.s32.totalorder %s392_s18, %s19260_s23  ;;  %p19266_p7 = scmp.lt.s32.totalorder %s19260_s23, %s19260_s23 }
 0x2a7   :  { %p19267_p8 = por %p19266_p7, %p19265_p6 }
 0x2a9   :  { %p19268_p9 = pnand %p19267_p8, %p19261_p5 }
 0x2ab   :  { %19271 = shalt.err (!%p19268_p9)
}
 0x2ac   :  { %s19578_s3 = smov 1024   ;;  %s21719_s28 = sld [smem:[#allocation101_spill]] }
 0x2ad   :  { %397 = dma.hbm_to_vmem [thread:$0]  %s21718_s22, 8192, %s392_s18, [#allocation39], %s19578_s3, %s19578_s3, %s19574_s26  }
 0x2ae   :  { %s19579_s19 = smov [#allocation43]   ;;  %s19580_s21 = smov [#allocation46]  }
 0x2af   :  { %s416_s17 = sshll.u32 %s19579_s19, 4  ;;  %s436_s6 = sshll.u32 %s19580_s21, 4  ;;  %s417_s17 = int_to_ptr.vmem [resolvable:$true] %s416_s17  ;;  %s437_s6 = int_to_ptr.vmem [resolvable:$true] %s436_s6 }
 0x2b2   :  { %s19272_s1 = scalar_lea.hbm %s21719_s28, 16 }
 0x2b3   :  { %p19273_p10 = scmp.ne.s32.totalorder %s21719_s28, %s19272_s1  ;;  %p19276_p11 = scmp.lt.u32.totalorder %s19272_s1, %s21719_s28 }
 0x2b5   :  { %p19278_p12 = pnand %p19276_p11, %p19273_p10 }
 0x2b7   :  { %19281 = shalt.err (!%p19278_p12)
}
 0x2b8   :  { %s19282_s10 = scalar_lea.vmem %s417_s17, 16  ;;  %s19286_s30 = scalar_lea.vmem %s417_s17, 32 }
 0x2b9   :  { %p19283_p13 = scmp.ne.s32.totalorder %s417_s17, %s19282_s10  ;;  %p19287_p0 = scmp.lt.s32.totalorder %s417_s17, %s417_s17 }
 0x2ba   :  { %p19288_p1 = scmp.lt.s32.totalorder %s19286_s30, %s19282_s10 }
 0x2bc   :  { %p19289_p2 = por %p19288_p1, %p19287_p0 }
 0x2be   :  { %p19290_p3 = pnand %p19289_p2, %p19283_p13 }
 0x2c0   :  { %19293 = shalt.err (!%p19290_p3)
}
 0x2c1   :  { %s21720_s4 = sld [smem:[#allocation102_spill]] }
 0x2c2   :  { %419 = dma.hbm_to_vmem [thread:$0]  %s21719_s28, 16, %s417_s17, [#allocation42]  }
 0x2c7   :  { %s19294_s16 = scalar_lea.hbm %s21720_s4, 16 }
 0x2c8   :  { %p19295_p4 = scmp.ne.s32.totalorder %s21720_s4, %s19294_s16  ;;  %p19298_p5 = scmp.lt.u32.totalorder %s19294_s16, %s21720_s4 }
 0x2ca   :  { %p19300_p6 = pnand %p19298_p5, %p19295_p4 }
 0x2cc   :  { %19303 = shalt.err (!%p19300_p6)
}
 0x2cd   :  { %s19304_s18 = scalar_lea.vmem %s437_s6, 16  ;;  %s19308_s0 = scalar_lea.vmem %s437_s6, 32 }
 0x2ce   :  { %p19305_p7 = scmp.ne.s32.totalorder %s437_s6, %s19304_s18  ;;  %p19309_p8 = scmp.lt.s32.totalorder %s437_s6, %s437_s6 }
 0x2cf   :  { %p19310_p9 = scmp.lt.s32.totalorder %s19308_s0, %s19304_s18 }
 0x2d1   :  { %p19311_p10 = por %p19310_p9, %p19309_p8 }
 0x2d3   :  { %p19312_p11 = pnand %p19311_p10, %p19305_p7 }
 0x2d5   :  { %19315 = shalt.err (!%p19312_p11)
}
 0x2d6   :  { %s21721_s14 = sld [smem:[#allocation104_spill]]  ;;  %s19581_s8 = smov [#allocation49]  }
 0x2d7   :  { %439 = dma.hbm_to_vmem [thread:$0]  %s21720_s4, 16, %s437_s6, [#allocation45]  }
 0x2d8   :  { %s458_s22 = sshll.u32 %s19581_s8, 4  ;;  %s19582_s27 = smov [#allocation52]   ;;  %s459_s22 = int_to_ptr.vmem [resolvable:$true] %s458_s22 }
 0x2d9   :  { %s479_s23 = sshll.u32 %s19582_s27, 4  ;;  %s20046_s23 = int_to_ptr.vmem [resolvable:$true] %s479_s23 }
 0x2dc   :  { %s19316_s3 = scalar_lea.hbm %s21721_s14, 48 }
 0x2dd   :  { %p19317_p12 = scmp.ne.s32.totalorder %s21721_s14, %s19316_s3  ;;  %p19320_p13 = scmp.lt.u32.totalorder %s19316_s3, %s21721_s14 }
 0x2df   :  { %p19322_p0 = pnand %p19320_p13, %p19317_p12 }
 0x2e1   :  { %19325 = shalt.err (!%p19322_p0)
}
 0x2e2   :  { %s19326_s28 = scalar_lea.vmem %s459_s22, 48  ;;  %s19330_s19 = scalar_lea.vmem %s459_s22, 64 }
 0x2e3   :  { %p19327_p1 = scmp.ne.s32.totalorder %s459_s22, %s19326_s28  ;;  %p19331_p2 = scmp.lt.s32.totalorder %s459_s22, %s459_s22 }
 0x2e4   :  { %p19332_p3 = scmp.lt.s32.totalorder %s19330_s19, %s19326_s28 }
 0x2e6   :  { %p19333_p4 = por %p19332_p3, %p19331_p2 }
 0x2e8   :  { %p19334_p5 = pnand %p19333_p4, %p19327_p1 }
 0x2ea   :  { %19337 = shalt.err (!%p19334_p5)
}
 0x2eb   :  { %s21722_s17 = sld [smem:[#allocation106_spill]] }
 0x2ec   :  { %461 = dma.hbm_to_vmem [thread:$0]  %s21721_s14, 48, %s459_s22, [#allocation48]  }
 0x2f1   :  { %s19338_s21 = scalar_lea.hbm %s21722_s17, 144 }
 0x2f2   :  { %p19339_p6 = scmp.ne.s32.totalorder %s21722_s17, %s19338_s21  ;;  %p19342_p7 = scmp.lt.u32.totalorder %s19338_s21, %s21722_s17 }
 0x2f4   :  { %p19344_p8 = pnand %p19342_p7, %p19339_p6 }
 0x2f6   :  { %19347 = shalt.err (!%p19344_p8)
}
 0x2f7   :  { %s19348_s6 = scalar_lea.vmem %s20046_s23, 144  ;;  %s19352_s1 = scalar_lea.vmem %s20046_s23, 160 }
 0x2f8   :  { %p19349_p9 = scmp.ne.s32.totalorder %s20046_s23, %s19348_s6  ;;  %p19353_p10 = scmp.lt.s32.totalorder %s20046_s23, %s20046_s23 }
 0x2f9   :  { %p19354_p11 = scmp.lt.s32.totalorder %s19352_s1, %s19348_s6 }
 0x2fb   :  { %p19355_p12 = por %p19354_p11, %p19353_p10 }
 0x2fd   :  { %p19356_p13 = pnand %p19355_p12, %p19349_p9 }
 0x2ff   :  { %19359 = shalt.err (!%p19356_p13)
}
 0x300   :  { %s21723_s10 = sld [smem:[#allocation109_spill]]  ;;  %s19583_s30 = smov [#allocation55]  }
 0x301   :  { %485 = dma.hbm_to_vmem [thread:$0]  %s21722_s17, 144, %s20046_s23, [#allocation51], %s19557_s20, %s19557_s20, %s19558_s29  }
 0x302   :  { %s505_s4 = sshll.u32 %s19583_s30, 4  ;;  %s19584_s16 = smov [#allocation58]   ;;  %s506_s4 = int_to_ptr.vmem [resolvable:$true] %s505_s4 }
 0x303   :  { %s529_s18 = sshll.u32 %s19584_s16, 4  ;;  %s20065_s18 = int_to_ptr.vmem [resolvable:$true] %s529_s18 }
 0x306   :  { %s19360_s0 = scalar_lea.hbm %s21723_s10, 27648 }
 0x307   :  { %p19361_p0 = scmp.ne.s32.totalorder %s21723_s10, %s19360_s0  ;;  %p19364_p1 = scmp.lt.u32.totalorder %s19360_s0, %s21723_s10 }
 0x309   :  { %p19366_p2 = pnand %p19364_p1, %p19361_p0 }
 0x30b   :  { %19369 = shalt.err (!%p19366_p2)
}
 0x30c   :  { %s19370_s14 = scalar_lea.vmem %s506_s4, 27648  ;;  %p19375_p4 = scmp.lt.s32.totalorder %s506_s4, %s506_s4 }
 0x30d   :  { %p19371_p3 = scmp.ne.s32.totalorder %s506_s4, %s19370_s14  ;;  %p19376_p5 = scmp.lt.s32.totalorder %s19370_s14, %s19370_s14 }
 0x30f   :  { %p19377_p6 = por %p19376_p5, %p19375_p4 }
 0x311   :  { %p19378_p7 = pnand %p19377_p6, %p19371_p3 }
 0x313   :  { %19381 = shalt.err (!%p19378_p7)
}
 0x314   :  { %s21724_s29 = sld [smem:[#allocation111_spill]] }
 0x315   :  { %511 = dma.hbm_to_vmem [thread:$0]  %s21723_s10, 27648, %s506_s4, [#allocation54], %s19541_s15, %s19541_s15, %s19542_s9  }
 0x31a   :  { %s19382_s8 = scalar_lea.hbm %s21724_s29, 27648 }
 0x31b   :  { %p19383_p8 = scmp.ne.s32.totalorder %s21724_s29, %s19382_s8  ;;  %p19386_p9 = scmp.lt.u32.totalorder %s19382_s8, %s21724_s29 }
 0x31d   :  { %p19388_p10 = pnand %p19386_p9, %p19383_p8 }
 0x31f   :  { %19391 = shalt.err (!%p19388_p10)
}
 0x320   :  { %s19392_s22 = scalar_lea.vmem %s20065_s18, 27648  ;;  %p19397_p12 = scmp.lt.s32.totalorder %s20065_s18, %s20065_s18 }
 0x321   :  { %p19393_p11 = scmp.ne.s32.totalorder %s20065_s18, %s19392_s22  ;;  %p19398_p13 = scmp.lt.s32.totalorder %s19392_s22, %s19392_s22 }
 0x323   :  { %p19399_p0 = por %p19398_p13, %p19397_p12 }
 0x325   :  { %p19400_p1 = pnand %p19399_p0, %p19393_p11 }
 0x327   :  { %19403 = shalt.err (!%p19400_p1)
}
 0x328   :  { %535 = dma.hbm_to_vmem [thread:$0]  %s21724_s29, 27648, %s20065_s18, [#allocation57], %s19541_s15, %s19541_s15, %s19542_s9  }
 0x329   :  { %19448 = dma.done.wait [#allocation3], 768  }
 0x32a   :  { %19449 = vsyncadd [#allocation3], 4294966528 }
 0x32b   :  { %19450 = dma.done.wait [#allocation6], 1024  }
 0x32c   :  { %19451 = vsyncadd [#allocation6], 4294966272 }
 0x32d   :  { %19452 = dma.done.wait [#allocation9], 6192  }
 0x32e   :  { %19453 = vsyncadd [#allocation9], 4294961104 }
 0x32f   :  { %19454 = dma.done.wait [#allocation12], 9264  }
 0x330   :  { %19455 = vsyncadd [#allocation12], 4294958032 }
 0x331   :  { %19456 = dma.done.wait [#allocation15], 96  }
 0x332   :  { %19457 = vsyncadd [#allocation15], 4294967200 }
 0x333   :  { %19458 = dma.done.wait [#allocation18], 9264  }
 0x334   :  { %19459 = vsyncadd [#allocation18], 4294958032 }
 0x335   :  { %19460 = dma.done.wait [#allocation21], 144  }
 0x336   :  { %19461 = vsyncadd [#allocation21], 4294967152 }
 0x337   :  { %19462 = dma.done.wait [#allocation24], 96  }
 0x338   :  { %19463 = vsyncadd [#allocation24], 4294967200 }
 0x339   :  { %19464 = dma.done.wait [#allocation27], 9264  }
 0x33a   :  { %19465 = vsyncadd [#allocation27], 4294958032 }
 0x33b   :  { %19466 = dma.done.wait [#allocation30], 96  }
 0x33c   :  { %19467 = vsyncadd [#allocation30], 4294967200 }
 0x33d   :  { %19468 = dma.done.wait [#allocation33], 544  }
 0x33e   :  { %19469 = vsyncadd [#allocation33], 4294966752 }
 0x33f   :  { %19470 = dma.done.wait [#allocation36], 32  }
 0x340   :  { %19471 = vsyncadd [#allocation36], 4294967264 }
 0x341   :  { %19472 = dma.done.wait [#allocation39], 8208  }
 0x342   :  { %19473 = vsyncadd [#allocation39], 4294959088 }
 0x343   :  { %19474 = dma.done.wait [#allocation42], 272  }
 0x344   :  { %19475 = vsyncadd [#allocation42], 4294967024 }
 0x345   :  { %19476 = dma.done.wait [#allocation45], 32  }
 0x346   :  { %19477 = vsyncadd [#allocation45], 4294967264 }
 0x347   :  { %19478 = dma.done.wait [#allocation48], 1584  }
 0x348   :  { %19479 = vsyncadd [#allocation48], 4294965712 }
 0x349   :  { %19480 = dma.done.wait [#allocation51], 288  }
 0x34a   :  { %19481 = vsyncadd [#allocation51], 4294967008 }
 0x34b   :  { %19482 = dma.done.wait [#allocation54], 27792  }
 0x34c   :  { %19483 = vsyncadd [#allocation54], 4294939504 }
 0x34d   :  { %19484 = dma.done.wait [#allocation57], 27792  }
 0x34e   :  { %19485 = vsyncadd [#allocation57], 4294939504  ;;  %v17019_v0 = vld [vmem:[#allocation8 + $0x4] ss:$12 sps:$4 sm:$0xff]   ;;  %v17021_v1 = vld [vmem:[#allocation8] ss:$12 sps:$4 sm:$0xff]  }
 0x34f   :  { %1003 = vmatprep.subr.bf16.mxu0 %v17019_v0  ;;  %v17022_v2 = vld [vmem:[#allocation8 + $0x1c] ss:$12 sps:$4 sm:$0xff]   ;;  %v17024_v3 = vld [vmem:[#allocation8 + $0x18] ss:$12 sps:$4 sm:$0xff]   ;;  %v17025_v4 = vld [vmem:[#allocation8 + $0x34] ss:$12 sps:$4 sm:$0xff]  }
 0x350   :  { %1004 = vmatpush1.bf16.msra.mxu0 %v17021_v1  ;;  %v17027_v5 = vld [vmem:[#allocation8 + $0x30] ss:$12 sps:$4 sm:$0xff]   ;;  %v17028_v6 = vld [vmem:[#allocation8 + $0x4c] ss:$12 sps:$4 sm:$0xff]   ;;  %v17030_v7 = vld [vmem:[#allocation8 + $0x48] ss:$12 sps:$4 sm:$0xff]  }
 0x351   :  { %1005 = vmatprep.subr.bf16.mxu0 %v17022_v2  ;;  %v17031_v8 = vld [vmem:[#allocation8 + $0x64] ss:$12 sps:$4 sm:$0xff]   ;;  %v17033_v9 = vld [vmem:[#allocation8 + $0x60] ss:$12 sps:$4 sm:$0xff]   ;;  %v17034_v10 = vld [vmem:[#allocation8 + $0x7c] ss:$12 sps:$4 sm:$0xff]  }
 0x352   :  { %v17036_v11 = vld [vmem:[#allocation8 + $0x78] ss:$12 sps:$4 sm:$0xff]   ;;  %v17037_v12 = vld [vmem:[#allocation8 + $0x94] ss:$12 sps:$4 sm:$0xff]   ;;  %v17039_v15 = vld [vmem:[#allocation8 + $0x90] ss:$12 sps:$4 sm:$0xff]  }
 0x353   :  { %v17064_v13 = vld [vmem:[#allocation8 + $0xc8] ss:$12 sps:$4 sm:$0xff]   ;;  %v17040_v16 = vld [vmem:[#allocation8 + $0xac] ss:$12 sps:$4 sm:$0xff]   ;;  %v17043_v20 = vld [vmem:[#allocation8 + $0xc4] ss:$12 sps:$4 sm:$0xff]  }
 0x354   :  { %1006 = vmatpush1.bf16.msra.mxu0 %v17024_v3  ;;  %15707 = vmatprep.subr.bf16.mxu1 %v17064_v13  ;;  %v17067_v14 = vld [vmem:[#allocation8 + $0x8] ss:$12 sps:$4 sm:$0xff]   ;;  %v17072_v19 = vld [vmem:[#allocation8 + $0xe0] ss:$12 sps:$4 sm:$0xff]   ;;  %v17074_v22 = vld [vmem:[#allocation8 + $0xf8] ss:$12 sps:$4 sm:$0xff]  }
 0x355   :  { %1007 = vmatprep.subr.bf16.mxu0 %v17025_v4  ;;  %15708 = vmatpush3.bf16.msra.mxu1 %v17067_v14  ;;  %v17071_v17 = vld [vmem:[#allocation7 + $0x4] ss:$8 sps:$4 sm:$0xff]   ;;  %v17073_v21 = vld [vmem:[#allocation8 + $0x20] ss:$12 sps:$4 sm:$0xff]   ;;  %v17075_v23 = vld [vmem:[#allocation8 + $0x38] ss:$12 sps:$4 sm:$0xff]  }
 0x356   :  { %v17042_v18 = vld [vmem:[#allocation8 + $0xa8] ss:$12 sps:$4 sm:$0xff]   ;;  %1035 = vmatprep.mubr.bf16.mxu0 %v17071_v17  ;;  %1078 = vmatprep.mubr.bf16.mxu1 %v17071_v17  ;;  %v17076_v24 = vld [vmem:[#allocation8 + $0x110] ss:$12 sps:$4 sm:$0xff]   ;;  %v17045_v25 = vld [vmem:[#allocation8 + $0xc0] ss:$12 sps:$4 sm:$0xff]  }
 0x357   :  { %15709 = vmatprep.subr.bf16.mxu1 %v17072_v19  ;;  %v17046_v26 = vld [vmem:[#allocation8 + $0xdc] ss:$12 sps:$4 sm:$0xff]   ;;  %v17048_v29 = vld [vmem:[#allocation8 + $0xd8] ss:$12 sps:$4 sm:$0xff]   ;;  %v17049_v30 = vld [vmem:[#allocation8 + $0xf4] ss:$12 sps:$4 sm:$0xff]  }
 0x358   :  { %1008 = vmatpush1.bf16.msra.mxu0 %v17027_v5  ;;  %v17077_v27 = vld [vmem:[#allocation8 + $0x50] ss:$12 sps:$4 sm:$0xff]   ;;  %v17078_v28 = vld [vmem:[#allocation8 + $0x128] ss:$12 sps:$4 sm:$0xff]   ;;  %v17080_v32 = vld [vmem:[#allocation8 + $0x140] ss:$12 sps:$4 sm:$0xff]  }
 0x359   :  { %1009 = vmatprep.subr.bf16.mxu0 %v17028_v6  ;;  %15710 = vmatpush3.bf16.msra.mxu1 %v17073_v21  ;;  %v17079_v31 = vld [vmem:[#allocation8 + $0x68] ss:$12 sps:$4 sm:$0xff]   ;;  %v17051_v33 = vld [vmem:[#allocation8 + $0xf0] ss:$12 sps:$4 sm:$0xff]   ;;  %v17052_v34 = vld [vmem:[#allocation8 + $0x10c] ss:$12 sps:$4 sm:$0xff]  }
 0x35a   :  { %15711 = vmatprep.subr.bf16.mxu1 %v17074_v22  ;;  %v17081_v35 = vld [vmem:[#allocation8 + $0x80] ss:$12 sps:$4 sm:$0xff]   ;;  %v17082_v36 = vld [vmem:[#allocation8 + $0x158] ss:$12 sps:$4 sm:$0xff]   ;;  %v17054_v37 = vld [vmem:[#allocation8 + $0x108] ss:$12 sps:$4 sm:$0xff]  }
 0x35b   :  { %v17055_v38 = vld [vmem:[#allocation8 + $0x124] ss:$12 sps:$4 sm:$0xff]   ;;  %v17057_v41 = vld [vmem:[#allocation8 + $0x120] ss:$12 sps:$4 sm:$0xff]   ;;  %v17058_v42 = vld [vmem:[#allocation8 + $0x13c] ss:$12 sps:$4 sm:$0xff]  }
 0x35c   :  { %1010 = vmatpush1.bf16.msra.mxu0 %v17030_v7  ;;  %v17083_v39 = vld [vmem:[#allocation8 + $0x98] ss:$12 sps:$4 sm:$0xff]   ;;  %v17084_v40 = vld [vmem:[#allocation8 + $0x170] ss:$12 sps:$4 sm:$0xff]   ;;  %v17088_v44 = vld [vmem:[#allocation11 + $0x4] ss:$12 sps:$4 sm:$0xff]  }
 0x35d   :  { %1011 = vmatprep.subr.bf16.mxu0 %v17031_v8  ;;  %15712 = vmatpush3.bf16.msra.mxu1 %v17075_v23  ;;  %v17085_v43 = vld [vmem:[#allocation8 + $0xb0] ss:$12 sps:$4 sm:$0xff]   ;;  %v17060_v45 = vld [vmem:[#allocation8 + $0x138] ss:$12 sps:$4 sm:$0xff]   ;;  %v17061_v46 = vld [vmem:[#allocation8 + $0x154] ss:$12 sps:$4 sm:$0xff]  }
 0x35e   :  { %15713 = vmatprep.subr.bf16.mxu1 %v17076_v24  ;;  %v17086_v47 = vld [vmem:[#allocation11] ss:$12 sps:$4 sm:$0xff]   ;;  %v17091_v49 = vld [vmem:[#allocation11 + $0x1c] ss:$12 sps:$4 sm:$0xff]   ;;  %v17089_v52 = vld [vmem:[#allocation11 + $0x18] ss:$12 sps:$4 sm:$0xff]  }
 0x35f   :  { %v17069_v48 = vld [vmem:[#allocation7] ss:$8 sps:$4 sm:$0xff]   ;;  %v17068_v54 = vld [vmem:[#allocation8 + $0x168] ss:$12 sps:$4 sm:$0xff]   ;;  %v17103_v1 = vld [vmem:[#allocation11 + $0x7c] ss:$12 sps:$4 sm:$0xff]  }
 0x360   :  { %1012 = vmatpush1.bf16.msra.mxu0 %v17033_v9  ;;  %v17063_v50 = vld [vmem:[#allocation8 + $0x150] ss:$12 sps:$4 sm:$0xff]   ;;  %v17065_v51 = vld [vmem:[#allocation8 + $0x16c] ss:$12 sps:$4 sm:$0xff]   ;;  %v17092_v55 = vld [vmem:[#allocation11 + $0x30] ss:$12 sps:$4 sm:$0xff]  }
 0x361   :  { %1013 = vmatprep.subr.bf16.mxu0 %v17034_v10  ;;  %15714 = vmatpush3.bf16.msra.mxu1 %v17077_v27  ;;  %v17094_v53 = vld [vmem:[#allocation11 + $0x34] ss:$12 sps:$4 sm:$0xff]   ;;  %v17097_v57 = vld [vmem:[#allocation11 + $0x4c] ss:$12 sps:$4 sm:$0xff]   ;;  %v17100_v61 = vld [vmem:[#allocation11 + $0x64] ss:$12 sps:$4 sm:$0xff]  }
 0x362   :  { %15715 = vmatprep.subr.bf16.mxu1 %v17078_v28  ;;  %v17113_v56 = vld [vmem:[#allocation11 + $0xc8] ss:$12 sps:$4 sm:$0xff]   ;;  %v17118_v60 = vld [vmem:[#allocation11 + $0xe0] ss:$12 sps:$4 sm:$0xff]   ;;  %v17123_v0 = vld [vmem:[#allocation11 + $0xf8] ss:$12 sps:$4 sm:$0xff]  }
 0x363   :  { %v17095_v58 = vld [vmem:[#allocation11 + $0x48] ss:$12 sps:$4 sm:$0xff]   ;;  %v17098_v62 = vld [vmem:[#allocation11 + $0x60] ss:$12 sps:$4 sm:$0xff]   ;;  %v17124_v2 = vld [vmem:[#allocation11 + $0x38] ss:$12 sps:$4 sm:$0xff]  }
 0x364   :  { %1014 = vmatpush1.bf16.msra.mxu0 %v17036_v11  ;;  %v17114_v59 = vld [vmem:[#allocation11 + $0x8] ss:$12 sps:$4 sm:$0xff]   ;;  %v17119_v63 = vld [vmem:[#allocation11 + $0x20] ss:$12 sps:$4 sm:$0xff]   ;;  %v17101_v3 = vld [vmem:[#allocation11 + $0x78] ss:$12 sps:$4 sm:$0xff]  }
 0x365   :  { %1015 = vmatprep.subr.bf16.mxu0 %v17037_v12  ;;  %15716 = vmatpush3.bf16.msra.mxu1 %v17079_v31  ;;  %v17128_v4 = vld [vmem:[#allocation11 + $0x110] ss:$12 sps:$4 sm:$0xff]   ;;  %v17106_v5 = vld [vmem:[#allocation11 + $0x94] ss:$12 sps:$4 sm:$0xff]   ;;  %v17109_v9 = vld [vmem:[#allocation11 + $0xac] ss:$12 sps:$4 sm:$0xff]  }
 0x366   :  { %15717 = vmatprep.subr.bf16.mxu1 %v17080_v32  ;;  %v17129_v6 = vld [vmem:[#allocation11 + $0x50] ss:$12 sps:$4 sm:$0xff]   ;;  %v17133_v8 = vld [vmem:[#allocation11 + $0x128] ss:$12 sps:$4 sm:$0xff]   ;;  %v17138_v12 = vld [vmem:[#allocation11 + $0x140] ss:$12 sps:$4 sm:$0xff]  }
 0x367   :  { %v17104_v7 = vld [vmem:[#allocation11 + $0x90] ss:$12 sps:$4 sm:$0xff]   ;;  %v17134_v10 = vld [vmem:[#allocation11 + $0x68] ss:$12 sps:$4 sm:$0xff]   ;;  %v17139_v14 = vld [vmem:[#allocation11 + $0x80] ss:$12 sps:$4 sm:$0xff]  }
 0x368   :  { %1016 = vmatpush1.bf16.msra.mxu0 %v17039_v15  ;;  %v17107_v11 = vld [vmem:[#allocation11 + $0xa8] ss:$12 sps:$4 sm:$0xff]   ;;  %v17112_v13 = vld [vmem:[#allocation11 + $0xc4] ss:$12 sps:$4 sm:$0xff]   ;;  %v17110_v15 = vld [vmem:[#allocation11 + $0xc0] ss:$12 sps:$4 sm:$0xff]  }
 0x369   :  { %1017 = vmatprep.subr.bf16.mxu0 %v17040_v16  ;;  %15718 = vmatpush3.bf16.msra.mxu1 %v17081_v35  ;;  %v17117_v16 = vld [vmem:[#allocation11 + $0xdc] ss:$12 sps:$4 sm:$0xff]   ;;  %v17115_v17 = vld [vmem:[#allocation11 + $0xd8] ss:$12 sps:$4 sm:$0xff]   ;;  %v17130_v23 = vld [vmem:[#allocation11 + $0x120] ss:$12 sps:$4 sm:$0xff]  }
 0x36a   :  { %15719 = vmatprep.subr.bf16.mxu1 %v17082_v36  ;;  %v17120_v19 = vld [vmem:[#allocation11 + $0xf0] ss:$12 sps:$4 sm:$0xff]   ;;  %v17125_v21 = vld [vmem:[#allocation11 + $0x108] ss:$12 sps:$4 sm:$0xff]   ;;  %v17143_v27 = vld [vmem:[#allocation11 + $0x158] ss:$12 sps:$4 sm:$0xff]   ;;  %v722_v36 = vlaneseq }
 0x36b   :  { %v17132_v22 = vld [vmem:[#allocation11 + $0x124] ss:$12 sps:$4 sm:$0xff]   ;;  %v17137_v24 = vld [vmem:[#allocation11 + $0x13c] ss:$12 sps:$4 sm:$0xff]   ;;  %v19585_v35 = vmov 0.0   ;;  %vm19587_vm0 = vmmov 0  }
 0x36c   :  { %1018 = vmatpush1.bf16.msra.mxu0 %v17042_v18  ;;  %v17122_v18 = vld [vmem:[#allocation11 + $0xf4] ss:$12 sps:$4 sm:$0xff]   ;;  %v17140_v28 = vld [vmem:[#allocation11 + $0x150] ss:$12 sps:$4 sm:$0xff]   ;;  %s21725_s15 = sld [smem:[#allocation85_spill]]  ;;  %s21726_s9 = sld [smem:[#allocation94_spill]] }
 0x36d   :  { %1019 = vmatprep.subr.bf16.mxu0 %v17043_v20  ;;  %15720 = vmatpush3.bf16.msra.mxu1 %v17083_v39  ;;  %v17127_v20 = vld [vmem:[#allocation11 + $0x10c] ss:$12 sps:$4 sm:$0xff]   ;;  %v17148_v31 = vld [vmem:[#allocation11 + $0x170] ss:$12 sps:$4 sm:$0xff]   ;;  %v17145_v32 = vld [vmem:[#allocation11 + $0x168] ss:$12 sps:$4 sm:$0xff]  }
 0x36e   :  { %15721 = vmatprep.subr.bf16.mxu1 %v17084_v40  ;;  %v19586_v39 = vmov 0   ;;  %v720_v40 = vld [vmem:[#allocation10] sm:$0x7]  ;;  %s21727_s27 = sld [smem:[#allocation96_spill]]  ;;  %s21728_s23 = sld [smem:[#allocation95_spill]]  ;;  %vm3866_vm1 = vcmask 523264  }
 0x36f   :  { %17001 = vset.pattern.permute.xlu1 %v19586_v39  ;;  %vm3920_vm2 = vcmask 130048   ;;  %vm4044_vm3 = vcmask 1043456   ;;  %vm4016_vm4 = vcmask 64512   ;;  %s19590_s3 = smov 32   ;;  %s19591_s28 = smov 96   ;;  %vm4822_vm5 = vcmask 261120  }
 0x370   :  { %1020 = vmatpush1.bf16.msra.mxu0 %v17045_v25  ;;  %v17135_v25 = vld [vmem:[#allocation11 + $0x138] ss:$12 sps:$4 sm:$0xff]   ;;  %s19592_s19 = smov 16   ;;  %s19593_s17 = smov 80   ;;  %vm4825_vm6 = vcmask 392192  }
 0x371   :  { %1021 = vmatprep.subr.bf16.mxu0 %v17046_v26  ;;  %15722 = vmatpush3.bf16.msra.mxu1 %v17085_v43  ;;  %v17142_v26 = vld [vmem:[#allocation11 + $0x154] ss:$12 sps:$4 sm:$0xff]   ;;  %s21730_s21 = sld [smem:[#allocation107_spill]]  ;;  %s21731_s6 = sld [smem:[#allocation112_spill]] }
 0x372   :  { %1593 = vmatprep.subr.bf16.mxu1 %v17088_v44 }
 0x374   :  { %1022 = vmatpush1.bf16.msra.mxu0 %v17048_v29  ;;  %1079 = vmatmul.mubr.bf16.vlgmr.msra.gmra.mrb[0].mxu1 %v17069_v48  ;;  %v17144_v29 = vld [vmem:[#allocation11 + $0x98] ss:$12 sps:$4 sm:$0xff]  }
 0x375   :  { %1023 = vmatprep.subr.bf16.mxu0 %v17049_v30  ;;  %1594 = vmatpush1.bf16.msra.mxu1 %v17086_v47  ;;  %v17147_v30 = vld [vmem:[#allocation11 + $0x16c] ss:$12 sps:$4 sm:$0xff]  }
 0x376   :  { %1595 = vmatprep.subr.bf16.mxu1 %v17091_v49 }
 0x378   :  { %1024 = vmatpush1.bf16.msra.mxu0 %v17051_v33  ;;  %v17149_v33 = vld [vmem:[#allocation11 + $0xb0] ss:$12 sps:$4 sm:$0xff]  }
 0x379   :  { %1025 = vmatprep.subr.bf16.mxu0 %v17052_v34  ;;  %1596 = vmatpush1.bf16.msra.mxu1 %v17089_v52  ;;  %v17152_v34 = vld [vmem:[#allocation11 + $0x184] ss:$12 sps:$4 sm:$0xff]  }
 0x37a   :  { %1597 = vmatprep.subr.bf16.mxu1 %v17094_v53 }
 0x37c   :  { %1026 = vmatpush1.bf16.msra.mxu0 %v17054_v37  ;;  %v20088_v37 = vshrl.u32 %v722_v36, 7 }
 0x37d   :  { %1027 = vmatprep.subr.bf16.mxu0 %v17055_v38  ;;  %1598 = vmatpush1.bf16.msra.mxu1 %v17092_v55 }
 0x37e   :  { %1599 = vmatprep.subr.bf16.mxu1 %v17097_v57  ;;  %v20091_v38 = vsub.s32 2, %v20088_v37  ;;  %v20096_v47 = vsub.s32 0, %v20088_v37 }
 0x380   :  { %1028 = vmatpush1.bf16.msra.mxu0 %v17057_v41  ;;  %v725_v53 = vrot.slane %v720_v40, %v20096_v47 }
 0x381   :  { %1029 = vmatprep.subr.bf16.mxu0 %v17058_v42  ;;  %1600 = vmatpush1.bf16.msra.mxu1 %v17095_v58  ;;  %v733_v42 = vrot.slane %v720_v40, %v20091_v38 }
 0x382   :  { %1601 = vmatprep.subr.bf16.mxu1 %v17100_v61 }
 0x384   :  { %1030 = vmatpush1.bf16.msra.mxu0 %v17060_v45 }
 0x385   :  { %1031 = vmatprep.subr.bf16.mxu0 %v17061_v46  ;;  %1602 = vmatpush1.bf16.msra.mxu1 %v17098_v62 }
 0x386   :  { %1603 = vmatprep.subr.bf16.mxu1 %v17103_v1 }
 0x388   :  { %1032 = vmatpush1.bf16.msra.mxu0 %v17063_v50  ;;  %v20099_v50 = vsub.s32 1, %v20088_v37 }
 0x389   :  { %1033 = vmatprep.subr.bf16.mxu0 %v17065_v51  ;;  %1604 = vmatpush1.bf16.msra.mxu1 %v17101_v3 }
 0x38a   :  { %1605 = vmatprep.subr.bf16.mxu1 %v17106_v5  ;;  %v729_v55 = vrot.slane %v720_v40, %v20099_v50  ;;  %v17150_v5 = vld [vmem:[#allocation11 + $0x180] ss:$12 sps:$4 sm:$0xff]  }
 0x38c   :  { %1034 = vmatpush1.bf16.msra.mxu0 %v17068_v54 }
 0x38d   :  { %15729 = vmatprep.subr.bf16.mxu0 %v17113_v56  ;;  %1606 = vmatpush1.bf16.msra.mxu1 %v17104_v7 }
 0x38e   :  { %1607 = vmatprep.subr.bf16.mxu1 %v17109_v9 }
 0x38f   :  { %1036 = vmatmul.mubr.bf16.vlgmr.msra.gmra.mrb[0].mxu0 %v17069_v48 }
 0x390   :  { %15730 = vmatpush3.bf16.msra.mxu0 %v17114_v59 }
 0x391   :  { %15731 = vmatprep.subr.bf16.mxu0 %v17118_v60  ;;  %1608 = vmatpush1.bf16.msra.mxu1 %v17107_v11  ;;  %v17157_v11 = vld [vmem:[#allocation11 + $0x1a0] ss:$12 sps:$4 sm:$0xff]  }
 0x392   :  { %1609 = vmatprep.subr.bf16.mxu1 %v17112_v13  ;;  %v17158_v13 = vld [vmem:[#allocation11 + $0x1b0] ss:$12 sps:$4 sm:$0xff]  }
 0x394   :  { %15732 = vmatpush3.bf16.msra.mxu0 %v17119_v63 }
 0x395   :  { %15733 = vmatprep.subr.bf16.mxu0 %v17123_v0  ;;  %1610 = vmatpush1.bf16.msra.mxu1 %v17110_v15  ;;  %v17164_v15 = vld [vmem:[#allocation11 + $0x1cc] ss:$12 sps:$4 sm:$0xff]  }
 0x396   :  { %1611 = vmatprep.subr.bf16.mxu1 %v17117_v16  ;;  %v17162_v16 = vld [vmem:[#allocation11 + $0x1c8] ss:$12 sps:$4 sm:$0xff]  }
 0x398   :  { %15734 = vmatpush3.bf16.msra.mxu0 %v17124_v2 }
 0x399   :  { %15735 = vmatprep.subr.bf16.mxu0 %v17128_v4  ;;  %1612 = vmatpush1.bf16.msra.mxu1 %v17115_v17  ;;  %v17165_v17 = vld [vmem:[#allocation11 + $0x1d0] ss:$12 sps:$4 sm:$0xff]  }
 0x39a   :  { %1613 = vmatprep.subr.bf16.mxu1 %v17122_v18  ;;  %v17168_v18 = vld [vmem:[#allocation11 + $0x1e4] ss:$12 sps:$4 sm:$0xff]  }
 0x39c   :  { %15736 = vmatpush3.bf16.msra.mxu0 %v17129_v6  ;;  %v17153_v6 = vld [vmem:[#allocation11 + $0x188] ss:$12 sps:$4 sm:$0xff]  }
 0x39d   :  { %15737 = vmatprep.subr.bf16.mxu0 %v17133_v8  ;;  %1614 = vmatpush1.bf16.msra.mxu1 %v17120_v19  ;;  %v17156_v8 = vld [vmem:[#allocation11 + $0x19c] ss:$12 sps:$4 sm:$0xff]   ;;  %v17166_v19 = vld [vmem:[#allocation11 + $0x1e0] ss:$12 sps:$4 sm:$0xff]  }
 0x39e   :  { %1615 = vmatprep.subr.bf16.mxu1 %v17127_v20  ;;  %v17169_v20 = vld [vmem:[#allocation11 + $0x1e8] ss:$12 sps:$4 sm:$0xff]  }
 0x3a0   :  { %15738 = vmatpush3.bf16.msra.mxu0 %v17134_v10  ;;  %v17154_v10 = vld [vmem:[#allocation11 + $0x198] ss:$12 sps:$4 sm:$0xff]  }
 0x3a1   :  { %15739 = vmatprep.subr.bf16.mxu0 %v17138_v12  ;;  %1616 = vmatpush1.bf16.msra.mxu1 %v17125_v21  ;;  %v17160_v12 = vld [vmem:[#allocation11 + $0x1b4] ss:$12 sps:$4 sm:$0xff]   ;;  %v17172_v21 = vld [vmem:[#allocation11 + $0x1fc] ss:$12 sps:$4 sm:$0xff]  }
 0x3a2   :  { %1617 = vmatprep.subr.bf16.mxu1 %v17132_v22  ;;  %v17170_v22 = vld [vmem:[#allocation11 + $0x1f8] ss:$12 sps:$4 sm:$0xff]  }
 0x3a4   :  { %15740 = vmatpush3.bf16.msra.mxu0 %v17139_v14  ;;  %v17161_v14 = vld [vmem:[#allocation11 + $0x1b8] ss:$12 sps:$4 sm:$0xff]  }
 0x3a5   :  { %1618 = vmatpush1.bf16.msra.mxu1 %v17130_v23  ;;  %15741 = vmatprep.subr.bf16.mxu0 %v17143_v27  ;;  %v17173_v23 = vld [vmem:[#allocation11 + $0x200] ss:$12 sps:$4 sm:$0xff]  }
 0x3a6   :  { %1619 = vmatprep.subr.bf16.mxu1 %v17137_v24  ;;  %v17176_v24 = vld [vmem:[#allocation11 + $0x214] ss:$12 sps:$4 sm:$0xff]   ;;  %v17180_v27 = vld [vmem:[#allocation11 + $0x22c] ss:$12 sps:$4 sm:$0xff]  }
 0x3a8   :  { %15742 = vmatpush3.bf16.msra.mxu0 %v17144_v29  ;;  %v17181_v29 = vld [vmem:[#allocation11 + $0x230] ss:$12 sps:$4 sm:$0xff]  }
 0x3a9   :  { %1620 = vmatpush1.bf16.msra.mxu1 %v17135_v25  ;;  %15743 = vmatprep.subr.bf16.mxu0 %v17148_v31  ;;  %v17174_v25 = vld [vmem:[#allocation11 + $0x210] ss:$12 sps:$4 sm:$0xff]   ;;  %v2526_v31 = vld [vmem:[%s21725_s15 + $0x8] sm:$0xff] }
 0x3aa   :  { %1621 = vmatprep.subr.bf16.mxu1 %v17142_v26  ;;  %v17177_v26 = vld [vmem:[#allocation11 + $0x218] ss:$12 sps:$4 sm:$0xff]  }
 0x3ac   :  { %15744 = vmatpush3.bf16.msra.mxu0 %v17149_v33 }
 0x3ad   :  { %1622 = vmatpush1.bf16.msra.mxu1 %v17140_v28  ;;  %16381 = vmatprep.subr.bf16.mxu0 %v19585_v35  ;;  %v17178_v28 = vld [vmem:[#allocation11 + $0x228] ss:$12 sps:$4 sm:$0xff]  }
 0x3ae   :  { %1623 = vmatprep.subr.bf16.mxu1 %v17147_v30  ;;  %v2525_v30 = vld [vmem:[%s21725_s15] sm:$0xff] }
 0x3af   :  { %2529 = vperm.xlu1 %17001, %v2525_v30  }
 0x3b1   :  { %1624 = vmatpush1.bf16.msra.mxu1 %v17145_v32  ;;  %v19588_v32 = vmov 1  }
 0x3b2   :  { %1636 = vmatprep.subr.bf16.mxu1 %v17152_v34  ;;  %17002 = vset.pattern.permute.xlu0 %v19588_v32 }
 0x3b3   :  { %2534 = vperm.xlu1 %17001, %v2526_v31  }
 0x3b7   :  { %17003 = vset.pattern.permute.xlu1 %v19588_v32 }
 0x3b8   :  { %2576 = vperm.xlu1 %17003, %v2526_v31   ;;  %v20147_v31 = vsub.s32 5, %v20088_v37 }
 0x447   :  { %v15723_v41 = vpop.f32.mrb[0].mxu1 }
 0x448   :  { %v15724_v43 = vpop.f32.mrb[1].mxu1 }
 0x449   :  { %v15725_v44 = vadd.f32 %v15724_v43, %v15723_v41  ;;  %v15726_v45 = vpop.f32.mrb[2].mxu1 }
 0x44a   :  { %v15727_v46 = vpop.f32.mrb[3].mxu1 }
 0x44b   :  { %v1081_v48 = vadd.f32 %v15725_v44, %v733_v42  ;;  %v15728_v49 = vadd.f32 %v15727_v46, %v15726_v45  ;;  %v1189_v44 = vld [vmem:[#allocation13] sm:$0x7] }
 0x44c   :  { %v1205_v45 = vrot.slane %v1189_v44, %v20091_v38  ;;  %v1197_v46 = vrot.slane %v1189_v44, %v20096_v47 }
 0x44d   :  { %v1089_v51 = vmax.f32 %v1081_v48, 0.0  ;;  %v1084_v52 = vadd.f32 %v15728_v49, %v733_v42  ;;  %v1201_v48 = vrot.slane %v1189_v44, %v20099_v50 }
 0x44f   :  { %v1092_v54 = vmax.f32 %v1084_v52, 0.0 }
 0x451   :  { %v20103_v56 = vpack.c.bf16 %v1092_v54, %v1089_v51 }
 0x462   :  { %v1037_v57 = vpop.f32.mrb[0].mxu0 }
 0x463   :  { %v1038_v58 = vadd.f32 %v1037_v57, %v725_v53  ;;  %v1039_v59 = vpop.f32.mrb[1].mxu0 }
 0x464   :  { %v1040_v60 = vadd.f32 %v1039_v59, %v729_v55  ;;  %v1041_v61 = vpop.f32.mrb[2].mxu0 }
 0x465   :  { %v1042_v62 = vadd.f32 %v1041_v61, %v725_v53  ;;  %v1043_v63 = vpop.f32.mrb[3].mxu0  ;;  %v1087_v0 = vmax.f32 %v1038_v58, 0.0 }
 0x466   :  { %v1088_v1 = vmax.f32 %v1040_v60, 0.0  ;;  %v1044_v2 = vadd.f32 %v1043_v63, %v729_v55 }
 0x467   :  { %v1090_v3 = vmax.f32 %v1042_v62, 0.0 }
 0x468   :  { %v1091_v4 = vmax.f32 %v1044_v2, 0.0 }
 0x469   :  { %v1190_v7 = vpack.c.bf16 %v1090_v3, %v1087_v0 }
 0x46a   :  { %v1191_v9 = vpack.c.bf16 %v1091_v4, %v1088_v1 }
 0x46c   :  { %1625 = vmatprep.mubr.bf16.mxu1 %v1191_v9  ;;  %1711 = vmatprep.mubr.bf16.mxu0 %v1191_v9  ;;  %v17185_v9 = vld [vmem:[#allocation17 + $0x18] ss:$12 sps:$4 sm:$0xff]  }
 0x46d   :  { %1626 = vmatmul.mubr.bf16.vlgmr.msra.gmra.mrb[4].mxu1 %v1190_v7  ;;  %1712 = vmatmul.mubr.bf16.vlgmr.msra.gmra.mrb[4].mxu0 %v1190_v7  ;;  %v17184_v7 = vld [vmem:[#allocation17 + $0x4] ss:$12 sps:$4 sm:$0xff]  }
 0x46e   :  { %1637 = vmatpush1.bf16.msra.mxu1 %v17150_v5  ;;  %16382 = vmatpush3.bf16.msra.mxu0 %v17153_v6  ;;  %v17182_v6 = vld [vmem:[#allocation17] ss:$12 sps:$4 sm:$0xff]  }
 0x46f   :  { %1638 = vmatprep.subr.bf16.mxu1 %v17156_v8  ;;  %16383 = vmatprep.subr.bf16.mxu0 %v19585_v35  ;;  %v17187_v8 = vld [vmem:[#allocation17 + $0x1c] ss:$12 sps:$4 sm:$0xff]  }
 0x470   :  { %1668 = vmatprep.mubr.bf16.mxu1 %v19586_v39  ;;  %16397 = vmatprep.mubr.msk.bf16.mxu0 %vm19587_vm0, %v19585_v35 }
 0x472   :  { %1639 = vmatpush1.bf16.msra.mxu1 %v17154_v10  ;;  %16384 = vmatpush3.bf16.msra.mxu0 %v17157_v11  ;;  %v17190_v10 = vld [vmem:[#allocation17 + $0x34] ss:$12 sps:$4 sm:$0xff]   ;;  %v17188_v11 = vld [vmem:[#allocation17 + $0x30] ss:$12 sps:$4 sm:$0xff]  }
 0x473   :  { %1640 = vmatprep.subr.bf16.mxu1 %v17160_v12  ;;  %16385 = vmatprep.subr.bf16.mxu0 %v19585_v35  ;;  %v17193_v12 = vld [vmem:[#allocation17 + $0x4c] ss:$12 sps:$4 sm:$0xff]  }
 0x476   :  { %1641 = vmatpush1.bf16.msra.mxu1 %v17158_v13  ;;  %16386 = vmatpush3.bf16.msra.mxu0 %v17161_v14  ;;  %v17209_v13 = vld [vmem:[#allocation17 + $0xc8] ss:$12 sps:$4 sm:$0xff]  }
 0x477   :  { %1642 = vmatprep.subr.bf16.mxu1 %v17164_v15  ;;  %16387 = vmatprep.subr.bf16.mxu0 %v19585_v35  ;;  %v17210_v14 = vld [vmem:[#allocation17 + $0x8] ss:$12 sps:$4 sm:$0xff]  }
 0x478   :  { %v17191_v15 = vld [vmem:[#allocation17 + $0x48] ss:$12 sps:$4 sm:$0xff]  }
 0x47a   :  { %1643 = vmatpush1.bf16.msra.mxu1 %v17162_v16  ;;  %16388 = vmatpush3.bf16.msra.mxu0 %v17165_v17  ;;  %v17196_v16 = vld [vmem:[#allocation17 + $0x64] ss:$12 sps:$4 sm:$0xff]   ;;  %v17194_v17 = vld [vmem:[#allocation17 + $0x60] ss:$12 sps:$4 sm:$0xff]  }
 0x47b   :  { %1644 = vmatprep.subr.bf16.mxu1 %v17168_v18  ;;  %16389 = vmatprep.subr.bf16.mxu0 %v19585_v35  ;;  %v17199_v18 = vld [vmem:[#allocation17 + $0x7c] ss:$12 sps:$4 sm:$0xff]  }
 0x47e   :  { %1645 = vmatpush1.bf16.msra.mxu1 %v17166_v19  ;;  %16390 = vmatpush3.bf16.msra.mxu0 %v17169_v20  ;;  %v17197_v19 = vld [vmem:[#allocation17 + $0x78] ss:$12 sps:$4 sm:$0xff]   ;;  %v17202_v20 = vld [vmem:[#allocation17 + $0x94] ss:$12 sps:$4 sm:$0xff]  }
 0x47f   :  { %1646 = vmatprep.subr.bf16.mxu1 %v17172_v21  ;;  %16391 = vmatprep.subr.bf16.mxu0 %v19585_v35  ;;  %v17200_v21 = vld [vmem:[#allocation17 + $0x90] ss:$12 sps:$4 sm:$0xff]  }
 0x482   :  { %1647 = vmatpush1.bf16.msra.mxu1 %v17170_v22  ;;  %16392 = vmatpush3.bf16.msra.mxu0 %v17173_v23  ;;  %v17205_v22 = vld [vmem:[#allocation17 + $0xac] ss:$12 sps:$4 sm:$0xff]   ;;  %v17203_v23 = vld [vmem:[#allocation17 + $0xa8] ss:$12 sps:$4 sm:$0xff]  }
 0x483   :  { %1648 = vmatprep.subr.bf16.mxu1 %v17176_v24  ;;  %16393 = vmatprep.subr.bf16.mxu0 %v19585_v35  ;;  %v17208_v24 = vld [vmem:[#allocation17 + $0xc4] ss:$12 sps:$4 sm:$0xff]  }
 0x486   :  { %1649 = vmatpush1.bf16.msra.mxu1 %v17174_v25  ;;  %16394 = vmatpush3.bf16.msra.mxu0 %v17177_v26  ;;  %v17206_v25 = vld [vmem:[#allocation17 + $0xc0] ss:$12 sps:$4 sm:$0xff]   ;;  %v2530_v26 = vpop.permute.xlu1 %2529 }
 0x487   :  { %1650 = vmatprep.subr.bf16.mxu1 %v17180_v27  ;;  %16395 = vmatprep.subr.bf16.mxu0 %v19585_v35  ;;  %v20141_v27 = vsub.s32 3, %v20088_v37 }
 0x48a   :  { %1651 = vmatpush1.bf16.msra.mxu1 %v17178_v28  ;;  %16396 = vmatpush3.bf16.msra.mxu0 %v17181_v29  ;;  %v2524_v28 = vld [vmem:[#allocation20] sm:$0x3f]  ;;  %v20144_v29 = vsub.s32 4, %v20088_v37 }
 0x48b   :  { %2356 = vmatprep.subr.bf16.mxu0 %v17184_v7  ;;  %15760 = vmatprep.subr.bf16.mxu1 %v17209_v13  ;;  %v2541_v32 = vrot.slane %v2524_v28, %v20096_v47 }
 0x48d   :  { %1669 = vmatmul.mubr.bf16.vlgmr.msra.gmra.mrb[4].mxu1 %v20103_v56  ;;  %16398 = vmatmul.mubr.bf16.vlgmr.msra.gmra.mrb[8].mxu0 %v20103_v56 }
 0x48e   :  { %2357 = vmatpush1.bf16.msra.mxu0 %v17182_v6  ;;  %15761 = vmatpush3.bf16.msra.mxu1 %v17210_v14 }
 0x48f   :  { %2358 = vmatprep.subr.bf16.mxu0 %v17187_v8 }
 0x492   :  { %2359 = vmatpush1.bf16.msra.mxu0 %v17185_v9 }
 0x493   :  { %2360 = vmatprep.subr.bf16.mxu0 %v17190_v10 }
 0x496   :  { %2361 = vmatpush1.bf16.msra.mxu0 %v17188_v11 }
 0x497   :  { %2362 = vmatprep.subr.bf16.mxu0 %v17193_v12 }
 0x49a   :  { %2363 = vmatpush1.bf16.msra.mxu0 %v17191_v15 }
 0x49b   :  { %2364 = vmatprep.subr.bf16.mxu0 %v17196_v16 }
 0x49e   :  { %2365 = vmatpush1.bf16.msra.mxu0 %v17194_v17 }
 0x49f   :  { %2366 = vmatprep.subr.bf16.mxu0 %v17199_v18 }
 0x4a2   :  { %2367 = vmatpush1.bf16.msra.mxu0 %v17197_v19 }
 0x4a3   :  { %2368 = vmatprep.subr.bf16.mxu0 %v17202_v20 }
 0x4a6   :  { %2369 = vmatpush1.bf16.msra.mxu0 %v17200_v21 }
 0x4a7   :  { %2370 = vmatprep.subr.bf16.mxu0 %v17205_v22 }
 0x4aa   :  { %2371 = vmatpush1.bf16.msra.mxu0 %v17203_v23 }
 0x4ab   :  { %2372 = vmatprep.subr.bf16.mxu0 %v17208_v24 }
 0x4ae   :  { %2373 = vmatpush1.bf16.msra.mxu0 %v17206_v25 }
 0x540   :  { %v15745_v33 = vpop.f32.mrb[4].mxu0 }
 0x541   :  { %v15746_v34 = vpop.f32.mrb[5].mxu0 }
 0x542   :  { %v15747_v40 = vadd.f32 %v15746_v34, %v15745_v33  ;;  %v15748_v41 = vpop.f32.mrb[6].mxu0  ;;  %v2545_v33 = vrot.slane %v2524_v28, %v20091_v38  ;;  %v2582_v34 = vrot.slane %v2524_v28, %v20099_v50 }
 0x543   :  { %v15749_v42 = vpop.f32.mrb[7].mxu0 }
 0x544   :  { %v15750_v43 = vadd.f32 %v15749_v42, %v15748_v41  ;;  %v1714_v49 = vadd.f32 %v15747_v40, %v1205_v45  ;;  %v2586_v40 = vrot.slane %v2524_v28, %v20141_v27  ;;  %v2549_v41 = vrot.slane %v2524_v28, %v20144_v29 }
 0x545   :  { %v2590_v42 = vrot.slane %v2524_v28, %v20147_v31  ;;  %v2560_v44 = vrot.slane %v2545_v33, %v20096_v47 }
 0x546   :  { %v1717_v57 = vadd.f32 %v15750_v43, %v1205_v45  ;;  %v2556_v43 = vrot.slane %v2541_v32, %v20096_v47  ;;  %v2597_v45 = vrot.slane %v2582_v34, %v20099_v50 }
 0x547   :  { %v2566_v23 = vmul.f32 %v2560_v44, %v2530_v26 }
 0x560   :  { %v1670_v51 = vpop.f32.mrb[4].mxu1  ;;  %v1754_v52 = vpop.f32.mrb[8].mxu0 }
 0x561   :  { %v20122_v53 = vadd.f32 %v1670_v51, %v1197_v46  ;;  %v20124_v54 = vadd.f32 %v1754_v52, %v1714_v49  ;;  %v1672_v55 = vpop.f32.mrb[5].mxu1  ;;  %v16399_v56 = vpop.f32.mrb[9].mxu0  ;;  %v2564_v49 = vrot.slane %v2549_v41, %v20096_v47  ;;  %v2605_v51 = vrot.slane %v2590_v42, %v20099_v50 }
 0x562   :  { %v20126_v58 = vadd.f32 %v1672_v55, %v1201_v48  ;;  %v1674_v59 = vpop.f32.mrb[6].mxu1  ;;  %v1757_v60 = vpop.f32.mrb[10].mxu0 }
 0x563   :  { %v20128_v61 = vadd.f32 %v1674_v59, %v1197_v46  ;;  %v20130_v62 = vadd.f32 %v1757_v60, %v1717_v57  ;;  %v1676_v63 = vpop.f32.mrb[7].mxu1  ;;  %v16400_v0 = vpop.f32.mrb[11].mxu0  ;;  %v2601_v46 = vrot.slane %v2586_v40, %v20099_v50  ;;  %v2567_v24 = vmul.f32 %v2564_v49, %v2530_v26 }
 0x564   :  { %v20132_v1 = vadd.f32 %v1676_v63, %v1201_v48  ;;  %v1763_v2 = vadd.f32 %v20126_v58, %v20122_v53  ;;  %v2618_v63 = vld [vmem:[#allocation22] sm:$0x7] }
 0x565   :  { %v2623_v9 = vrot.slane %v2618_v63, %v20096_v47  ;;  %v2627_v10 = vrot.slane %v2618_v63, %v20099_v50  ;;  %v2631_v17 = vrot.slane %v2618_v63, %v20091_v38  ;;  %v17220_v63 = vld [vmem:[#allocation17 + $0x38] ss:$12 sps:$4 sm:$0xff]  }
 0x566   :  { %v1767_v3 = vadd.f32 %v20132_v1, %v20128_v61  ;;  %v1764_v4 = vadd.f32 %v1763_v2, %v20124_v54 }
 0x568   :  { %1765 = vadd.xlane.f32.xlu0 %v1764_v4  ;;  %v1768_v5 = vadd.f32 %v1767_v3, %v20130_v62 }
 0x56c   :  { %1769 = vadd.xlane.f32.xlu0 %v1768_v5 }
 0x582   :  { %2572 = vperm.xlu0 %17002, %v2525_v30   ;;  %v2535_v30 = vpop.permute.xlu1 %2534 }
 0x583   :  { %v2568_v55 = vmul.f32 %v2556_v43, %v2535_v30  ;;  %v2569_v56 = vmul.f32 %v2560_v44, %v2535_v30  ;;  %v2570_v0 = vmul.f32 %v2564_v49, %v2535_v30 }
 0x586   :  { %v2577_v48 = vpop.permute.xlu1 %2576 }
 0x587   :  { %v2609_v57 = vmul.f32 %v2597_v45, %v2577_v48  ;;  %v2610_v59 = vmul.f32 %v2601_v46, %v2577_v48  ;;  %v2611_v5 = vmul.f32 %v2605_v51, %v2577_v48 }
 0x589   :  { %v2615_v7 = vadd.f32 %v2609_v57, %v2568_v55  ;;  %v2616_v8 = vadd.f32 %v2610_v59, %v2569_v56  ;;  %v2617_v16 = vadd.f32 %v2611_v5, %v2570_v0  ;;  %v17211_v55 = vld [vmem:[#allocation17 + $0xd8] ss:$12 sps:$4 sm:$0xff]   ;;  %v17215_v56 = vld [vmem:[#allocation17 + $0x20] ss:$12 sps:$4 sm:$0xff]   ;;  %v17224_v5 = vld [vmem:[#allocation17 + $0x110] ss:$12 sps:$4 sm:$0xff]  }
 0x58a   :  { %v17218_v57 = vld [vmem:[#allocation17 + $0xf4] ss:$12 sps:$4 sm:$0xff]   ;;  %v17219_v59 = vld [vmem:[#allocation17 + $0xf8] ss:$12 sps:$4 sm:$0xff]  }
 0x58b   :  { %v20188_v18 = vadd.f32 %v2623_v9, %v2615_v7  ;;  %v20190_v19 = vadd.f32 %v2627_v10, %v2616_v8  ;;  %v20198_v28 = vadd.f32 %v2631_v17, %v2617_v16  ;;  %v17223_v0 = vld [vmem:[#allocation17 + $0x10c] ss:$12 sps:$4 sm:$0xff]   ;;  %v17225_v7 = vld [vmem:[#allocation17 + $0x50] ss:$12 sps:$4 sm:$0xff]   ;;  %v17238_v16 = vld [vmem:[#allocation17 + $0x154] ss:$12 sps:$4 sm:$0xff]  }
 0x58c   :  { %v17228_v8 = vld [vmem:[#allocation17 + $0x124] ss:$12 sps:$4 sm:$0xff]  }
 0x58d   :  { %v2647_v30 = vadd.f32 %v20190_v19, %v20188_v18 }
 0x58f   :  { %v2648_v48 = vadd.f32 %v2647_v30, %v20198_v28 }
 0x5f5   :  { %v1766_v52 = vpop.xlane.xlu0 %1765 }
 0x5f6   :  { %v1772_v60 = vmul.f32 0.0026041667, %v1766_v52 }
 0x5f8   :  { %v20162_v2 = vsub.f32 %v20122_v53, %v1772_v60  ;;  %v20165_v3 = vsub.f32 %v20126_v58, %v1772_v60  ;;  %v20168_v4 = vsub.f32 %v20124_v54, %v1772_v60  ;;  %v17216_v60 = vld [vmem:[#allocation17 + $0xf0] ss:$12 sps:$4 sm:$0xff]  }
 0x5f9   :  { %v1770_v6 = vpop.xlane.xlu0 %1769 }
 0x5fa   :  { %v1773_v11 = vmul.f32 0.0026041667, %v1770_v6  ;;  %v1780_v12 = vmul.f32 %v20162_v2, %v20162_v2  ;;  %v1781_v53 = vmul.f32 %v20165_v3, %v20165_v3  ;;  %v1782_v58 = vmul.f32 %v20168_v4, %v20168_v4  ;;  %v17221_v6 = vld [vmem:[#allocation17 + $0x108] ss:$12 sps:$4 sm:$0xff]  }
 0x5fc   :  { %v20179_v54 = vsub.f32 %v20128_v61, %v1773_v11  ;;  %v20182_v13 = vsub.f32 %v20132_v1, %v1773_v11  ;;  %v20185_v14 = vsub.f32 %v20130_v62, %v1773_v11  ;;  %v1786_v15 = vadd.f32 %v1781_v53, %v1780_v12  ;;  %v17230_v11 = vld [vmem:[#allocation17 + $0x68] ss:$12 sps:$4 sm:$0xff]   ;;  %v17231_v12 = vld [vmem:[#allocation17 + $0x138] ss:$12 sps:$4 sm:$0xff]  }
 0x5fd   :  { %v2565_v1 = vmul.f32 %v2556_v43, %v2530_v26  ;;  %v17233_v53 = vld [vmem:[#allocation17 + $0x13c] ss:$12 sps:$4 sm:$0xff]  }
 0x5fe   :  { %v1787_v20 = vadd.f32 %v1786_v15, %v1782_v58  ;;  %v1783_v21 = vmul.f32 %v20179_v54, %v20179_v54  ;;  %v1784_v61 = vmul.f32 %v20182_v13, %v20182_v13  ;;  %v1785_v62 = vmul.f32 %v20185_v14, %v20185_v14  ;;  %v17234_v58 = vld [vmem:[#allocation17 + $0x140] ss:$12 sps:$4 sm:$0xff]  }
 0x5ff   :  { %v17235_v15 = vld [vmem:[#allocation17 + $0x80] ss:$12 sps:$4 sm:$0xff]  }
 0x600   :  { %1788 = vadd.xlane.f32.xlu1 %v1787_v20  ;;  %v1790_v22 = vadd.f32 %v1784_v61, %v1783_v21  ;;  %v17236_v20 = vld [vmem:[#allocation17 + $0x150] ss:$12 sps:$4 sm:$0xff]   ;;  %v17240_v21 = vld [vmem:[#allocation17 + $0x98] ss:$12 sps:$4 sm:$0xff]   ;;  %v17241_v61 = vld [vmem:[#allocation17 + $0x168] ss:$12 sps:$4 sm:$0xff]  }
 0x601   :  { %v2573_v25 = vpop.permute.xlu0 %2572 }
 0x602   :  { %v2606_v32 = vmul.f32 %v2597_v45, %v2573_v25  ;;  %v2607_v33 = vmul.f32 %v2601_v46, %v2573_v25  ;;  %v2608_v34 = vmul.f32 %v2605_v51, %v2573_v25  ;;  %v1791_v40 = vadd.f32 %v1790_v22, %v1785_v62  ;;  %v17213_v46 = vld [vmem:[#allocation17 + $0xdc] ss:$12 sps:$4 sm:$0xff]   ;;  %v17214_v51 = vld [vmem:[#allocation17 + $0xe0] ss:$12 sps:$4 sm:$0xff]  }
 0x603   :  { %2374 = vmatprep.subr.bf16.mxu0 %v17213_v46  ;;  %15762 = vmatprep.subr.bf16.mxu1 %v17214_v51  ;;  %v17244_v62 = vld [vmem:[#allocation17 + $0x170] ss:$12 sps:$4 sm:$0xff]  }
 0x604   :  { %v2612_v41 = vadd.f32 %v2606_v32, %v2565_v1  ;;  %v2613_v42 = vadd.f32 %v2607_v33, %v2566_v23  ;;  %1792 = vadd.xlane.f32.xlu1 %v1791_v40  ;;  %v2614_v43 = vadd.f32 %v2608_v34, %v2567_v24  ;;  %2375 = vmatpush1.bf16.msra.mxu0 %v17211_v55  ;;  %v17243_v1 = vld [vmem:[#allocation17 + $0x16c] ss:$12 sps:$4 sm:$0xff]   ;;  %v17245_v22 = vld [vmem:[#allocation17 + $0xb0] ss:$12 sps:$4 sm:$0xff]  }
 0x605   :  { %15763 = vmatpush3.bf16.msra.mxu1 %v17215_v56  ;;  %2376 = vmatprep.subr.bf16.mxu0 %v17218_v57  ;;  %v17248_v23 = vld [vmem:[#allocation17 + $0x184] ss:$12 sps:$4 sm:$0xff]  }
 0x606   :  { %v20203_v52 = vadd.f32 %v2623_v9, %v2612_v41  ;;  %v20205_v44 = vadd.f32 %v2627_v10, %v2613_v42  ;;  %v20207_v26 = vadd.f32 %v2631_v17, %v2614_v43  ;;  %15764 = vmatprep.subr.bf16.mxu1 %v17219_v59  ;;  %v17229_v9 = vld [vmem:[#allocation17 + $0x128] ss:$12 sps:$4 sm:$0xff]   ;;  %v17226_v10 = vld [vmem:[#allocation17 + $0x120] ss:$12 sps:$4 sm:$0xff]   ;;  %v17239_v17 = vld [vmem:[#allocation17 + $0x158] ss:$12 sps:$4 sm:$0xff]  }
 0x607   :  { %v20213_v42 = vld [vmem:[#allocation14] sm:$0x7] }
 0x608   :  { %2649 = vadd.xlane.f32.xlu1 %v2648_v48  ;;  %v2643_v49 = vadd.f32 %v20205_v44, %v20203_v52  ;;  %2377 = vmatpush1.bf16.msra.mxu0 %v17216_v60  ;;  %v1814_v46 = vrot.slane %v20213_v42, %v20099_v50  ;;  %v1810_v51 = vrot.slane %v20213_v42, %v20096_v47 }
 0x609   :  { %15765 = vmatpush3.bf16.msra.mxu1 %v17220_v63  ;;  %2378 = vmatprep.subr.bf16.mxu0 %v17223_v0 }
 0x60a   :  { %v2644_v45 = vadd.f32 %v2643_v49, %v20207_v26  ;;  %15766 = vmatprep.subr.bf16.mxu1 %v17224_v5 }
 0x60c   :  { %2645 = vadd.xlane.f32.xlu0 %v2644_v45  ;;  %2379 = vmatpush1.bf16.msra.mxu0 %v17221_v6 }
 0x60d   :  { %15767 = vmatpush3.bf16.msra.mxu1 %v17225_v7  ;;  %2380 = vmatprep.subr.bf16.mxu0 %v17228_v8 }
 0x60e   :  { %15768 = vmatprep.subr.bf16.mxu1 %v17229_v9 }
 0x610   :  { %2381 = vmatpush1.bf16.msra.mxu0 %v17226_v10 }
 0x611   :  { %15769 = vmatpush3.bf16.msra.mxu1 %v17230_v11  ;;  %2382 = vmatprep.subr.bf16.mxu0 %v17233_v53 }
 0x612   :  { %15770 = vmatprep.subr.bf16.mxu1 %v17234_v58 }
 0x614   :  { %2383 = vmatpush1.bf16.msra.mxu0 %v17231_v12 }
 0x615   :  { %15771 = vmatpush3.bf16.msra.mxu1 %v17235_v15  ;;  %2384 = vmatprep.subr.bf16.mxu0 %v17238_v16 }
 0x616   :  { %15772 = vmatprep.subr.bf16.mxu1 %v17239_v17 }
 0x618   :  { %2385 = vmatpush1.bf16.msra.mxu0 %v17236_v20 }
 0x619   :  { %15773 = vmatpush3.bf16.msra.mxu1 %v17240_v21  ;;  %2386 = vmatprep.subr.bf16.mxu0 %v17243_v1 }
 0x61a   :  { %15774 = vmatprep.subr.bf16.mxu1 %v17244_v62 }
 0x61c   :  { %2387 = vmatpush1.bf16.msra.mxu0 %v17241_v61 }
 0x61d   :  { %15775 = vmatpush3.bf16.msra.mxu1 %v17245_v22  ;;  %2399 = vmatprep.subr.bf16.mxu0 %v17248_v23 }
 0x61e   :  { %16401 = vmatprep.subr.bf16.mxu1 %v19585_v35 }
 0x68d   :  { %v1789_v24 = vpop.xlane.xlu1 %1788 }
 0x68e   :  { %v1794_v25 = vmul.f32 0.0026041667, %v1789_v24 }
 0x690   :  { %v1796_v30 = vadd.f32 0.001, %v1794_v25  ;;  %v17249_v25 = vld [vmem:[#allocation17 + $0x188] ss:$12 sps:$4 sm:$0xff]  }
 0x691   :  { %v1793_v32 = vpop.xlane.xlu1 %1792 }
 0x692   :  { %18446 = vrsqrt.f32 %v1796_v30  ;;  %v1795_v33 = vmul.f32 0.0026041667, %v1793_v32  ;;  %v17252_v30 = vld [vmem:[#allocation17 + $0x19c] ss:$12 sps:$4 sm:$0xff]   ;;  %v17250_v32 = vld [vmem:[#allocation17 + $0x198] ss:$12 sps:$4 sm:$0xff]  }
 0x694   :  { %v1797_v34 = vadd.f32 0.001, %v1795_v33  ;;  %v17253_v33 = vld [vmem:[#allocation17 + $0x1a0] ss:$12 sps:$4 sm:$0xff]  }
 0x695   :  { %v2650_v40 = vpop.xlane.xlu1 %2649 }
 0x696   :  { %18448 = vrsqrt.f32 %v1797_v34  ;;  %v2652_v41 = vmul.f32 0.0026041667, %v2650_v40  ;;  %v17256_v34 = vld [vmem:[#allocation17 + $0x1b4] ss:$12 sps:$4 sm:$0xff]   ;;  %v17254_v40 = vld [vmem:[#allocation17 + $0x1b0] ss:$12 sps:$4 sm:$0xff]  }
 0x698   :  { %v20216_v48 = vsub.f32 %v20188_v18, %v2652_v41  ;;  %v20219_v49 = vsub.f32 %v20190_v19, %v2652_v41  ;;  %v20236_v19 = vld [vmem:[#allocation16] sm:$0x7]  ;;  %v20255_v7 = vsub.f32 %v20198_v28, %v2652_v41  ;;  %v17257_v41 = vld [vmem:[#allocation17 + $0x1b8] ss:$12 sps:$4 sm:$0xff]  }
 0x699   :  { %v2646_v43 = vpop.xlane.xlu0 %2645  ;;  %v1836_v5 = vrot.slane %v20236_v19, %v20099_v50 }
 0x69a   :  { %v2651_v45 = vmul.f32 0.0026041667, %v2646_v43  ;;  %v2664_v20 = vmul.f32 %v20255_v7, %v20255_v7  ;;  %v17260_v43 = vld [vmem:[#allocation17 + $0x1cc] ss:$12 sps:$4 sm:$0xff]  }
 0x69c   :  { %v20225_v55 = vpop.eup %18446  ;;  %v20228_v56 = vsub.f32 %v20203_v52, %v2651_v45  ;;  %v20231_v57 = vsub.f32 %v20205_v44, %v2651_v45  ;;  %v20234_v18 = vsub.f32 %v20207_v26, %v2651_v45  ;;  %v2662_v44 = vmul.f32 %v20216_v48, %v20216_v48  ;;  %v17258_v45 = vld [vmem:[#allocation17 + $0x1c8] ss:$12 sps:$4 sm:$0xff]  }
 0x69d   :  { %v1801_v59 = vmul.f32 %v20225_v55, %v20165_v3  ;;  %v1800_v60 = vmul.f32 %v20225_v55, %v20162_v2  ;;  %v2663_v26 = vmul.f32 %v20219_v49, %v20219_v49  ;;  %v1832_v2 = vrot.slane %v20236_v19, %v20096_v47 }
 0x69e   :  { %v2659_v63 = vmul.f32 %v20228_v56, %v20228_v56  ;;  %v2660_v52 = vmul.f32 %v20231_v57, %v20231_v57  ;;  %v2661_v8 = vmul.f32 %v20234_v18, %v20234_v18 }
 0x69f   :  { %v1823_v0 = vmul.f32 %v1814_v46, %v1801_v59  ;;  %v1822_v3 = vmul.f32 %v1810_v51, %v1800_v60  ;;  %v2669_v53 = vadd.f32 %v2663_v26, %v2662_v44  ;;  %v17262_v59 = vld [vmem:[#allocation17 + $0x1e0] ss:$12 sps:$4 sm:$0xff]   ;;  %v17265_v60 = vld [vmem:[#allocation17 + $0x1e8] ss:$12 sps:$4 sm:$0xff]   ;;  %v1802_v44 = vmul.f32 %v20225_v55, %v20168_v4  ;;  %v17273_v4 = vld [vmem:[#allocation17 + $0x218] ss:$12 sps:$4 sm:$0xff]  }
 0x6a0   :  { %v18449_v6 = vpop.eup %18448  ;;  %v2665_v9 = vadd.f32 %v2660_v52, %v2659_v63  ;;  %v17268_v63 = vld [vmem:[#allocation17 + $0x1fc] ss:$12 sps:$4 sm:$0xff]   ;;  %v1818_v26 = vrot.slane %v20213_v42, %v20091_v38  ;;  %v17276_v42 = vld [vmem:[#allocation17 + $0x22c] ss:$12 sps:$4 sm:$0xff]  }
 0x6a1   :  { %v1804_v10 = vmul.f32 %v18449_v6, %v20182_v13  ;;  %v1803_v11 = vmul.f32 %v18449_v6, %v20179_v54  ;;  %v1845_v15 = vadd.f32 %v1836_v5, %v1823_v0  ;;  %v1844_v17 = vadd.f32 %v1832_v2, %v1822_v3  ;;  %v17246_v54 = vld [vmem:[#allocation17 + $0x180] ss:$12 sps:$4 sm:$0xff]   ;;  %v17266_v0 = vld [vmem:[#allocation17 + $0x1f8] ss:$12 sps:$4 sm:$0xff]  }
 0x6a2   :  { %v2666_v12 = vadd.f32 %v2665_v9, %v2661_v8  ;;  %v2670_v61 = vadd.f32 %v2669_v53, %v2664_v20  ;;  %v1805_v52 = vmul.f32 %v18449_v6, %v20185_v14  ;;  %v17272_v3 = vld [vmem:[#allocation17 + $0x214] ss:$12 sps:$4 sm:$0xff]   ;;  %v1824_v8 = vmul.f32 %v1818_v26, %v1802_v44  ;;  %v17270_v14 = vld [vmem:[#allocation17 + $0x210] ss:$12 sps:$4 sm:$0xff]  }
 0x6a3   :  { %v1826_v58 = vmul.f32 %v1814_v46, %v1804_v10  ;;  %v1825_v16 = vmul.f32 %v1810_v51, %v1803_v11  ;;  %v1851_v1 = vmax.f32 %v1845_v15, 0.0  ;;  %v1850_v22 = vmax.f32 %v1844_v17, 0.0  ;;  %v17261_v46 = vld [vmem:[#allocation17 + $0x1d0] ss:$12 sps:$4 sm:$0xff]   ;;  %v17274_v10 = vld [vmem:[#allocation17 + $0x228] ss:$12 sps:$4 sm:$0xff]  }
 0x6a4   :  { %2667 = vadd.xlane.f32.xlu1 %v2666_v12  ;;  %v17264_v51 = vld [vmem:[#allocation17 + $0x1e4] ss:$12 sps:$4 sm:$0xff]   ;;  %v1840_v9 = vrot.slane %v20236_v19, %v20091_v38  ;;  %v17305_v19 = vld [vmem:[#allocation26 + $0xc8] ss:$12 sps:$4 sm:$0xff]  }
 0x6a5   :  { %v1848_v28 = vadd.f32 %v1836_v5, %v1826_v58  ;;  %v1847_v21 = vadd.f32 %v1832_v2, %v1825_v16  ;;  %v17269_v5 = vld [vmem:[#allocation17 + $0x200] ss:$12 sps:$4 sm:$0xff]   ;;  %v1827_v2 = vmul.f32 %v1818_v26, %v1805_v52  ;;  %v17277_v11 = vld [vmem:[#allocation17 + $0x230] ss:$12 sps:$4 sm:$0xff]  }
 0x6a6   :  { %v1846_v6 = vadd.f32 %v1840_v9, %v1824_v8  ;;  %v17280_v53 = vld [vmem:[#allocation26 + $0x4] ss:$12 sps:$4 sm:$0xff]   ;;  %v17278_v15 = vld [vmem:[#allocation26] ss:$12 sps:$4 sm:$0xff]   ;;  %v17306_v16 = vld [vmem:[#allocation26 + $0x8] ss:$12 sps:$4 sm:$0xff]  }
 0x6a7   :  { %v1854_v62 = vmax.f32 %v1848_v28, 0.0  ;;  %v1853_v23 = vmax.f32 %v1847_v21, 0.0  ;;  %v1849_v55 = vadd.f32 %v1840_v9, %v1827_v2  ;;  %v17283_v20 = vld [vmem:[#allocation26 + $0x1c] ss:$12 sps:$4 sm:$0xff]   ;;  %v17310_v28 = vld [vmem:[#allocation26 + $0xe0] ss:$12 sps:$4 sm:$0xff]  }
 0x6a8   :  { %2671 = vadd.xlane.f32.xlu1 %v2670_v61  ;;  %v1852_v58 = vmax.f32 %v1846_v6, 0.0  ;;  %v17281_v21 = vld [vmem:[#allocation26 + $0x18] ss:$12 sps:$4 sm:$0xff]   ;;  %v17311_v61 = vld [vmem:[#allocation26 + $0x20] ss:$12 sps:$4 sm:$0xff]  }
 0x6a9   :  { %v1954_v13 = vpack.c.bf16 %v1854_v62, %v1851_v1  ;;  %v1953_v24 = vpack.c.bf16 %v1853_v23, %v1850_v22  ;;  %v1855_v12 = vmax.f32 %v1849_v55, 0.0  ;;  %v17286_v1 = vld [vmem:[#allocation26 + $0x34] ss:$12 sps:$4 sm:$0xff]   ;;  %v17315_v62 = vld [vmem:[#allocation26 + $0xf8] ss:$12 sps:$4 sm:$0xff]  }
 0x6aa   :  { %v17284_v22 = vld [vmem:[#allocation26 + $0x30] ss:$12 sps:$4 sm:$0xff]   ;;  %v17316_v23 = vld [vmem:[#allocation26 + $0x38] ss:$12 sps:$4 sm:$0xff]   ;;  %v17299_v44 = vld [vmem:[#allocation26 + $0xa8] ss:$12 sps:$4 sm:$0xff]  }
 0x6ab   :  { %2388 = vmatprep.mubr.bf16.mxu0 %v1954_v13  ;;  %2474 = vmatprep.mubr.bf16.mxu1 %v1954_v13  ;;  %v1955_v17 = vpack.c.bf16 %v1855_v12, %v1852_v58  ;;  %v17289_v13 = vld [vmem:[#allocation26 + $0x4c] ss:$12 sps:$4 sm:$0xff]   ;;  %v17340_v52 = vld [vmem:[#allocation26 + $0x170] ss:$12 sps:$4 sm:$0xff]   ;;  %v17314_v8 = vld [vmem:[#allocation26 + $0xf4] ss:$12 sps:$4 sm:$0xff]  }
 0x6ac   :  { %2389 = vmatmul.mubr.bf16.vlgmr.msra.gmra.mrb[12].mxu0 %v1953_v24  ;;  %2475 = vmatmul.mubr.bf16.vlgmr.msra.gmra.mrb[8].mxu1 %v1953_v24  ;;  %v17287_v24 = vld [vmem:[#allocation26 + $0x48] ss:$12 sps:$4 sm:$0xff]   ;;  %v17341_v26 = vld [vmem:[#allocation26 + $0xb0] ss:$12 sps:$4 sm:$0xff]   ;;  %v17307_v2 = vld [vmem:[#allocation26 + $0xd8] ss:$12 sps:$4 sm:$0xff]  }
 0x6ad   :  { %2400 = vmatpush1.bf16.msra.mxu0 %v17246_v54  ;;  %16402 = vmatpush3.bf16.msra.mxu1 %v17249_v25  ;;  %v17320_v54 = vld [vmem:[#allocation26 + $0x110] ss:$12 sps:$4 sm:$0xff]   ;;  %v17322_v55 = vld [vmem:[#allocation26 + $0x120] ss:$12 sps:$4 sm:$0xff]  }
 0x6ae   :  { %2401 = vmatprep.subr.bf16.mxu0 %v17252_v30  ;;  %16403 = vmatprep.subr.bf16.mxu1 %v19585_v35  ;;  %v17321_v25 = vld [vmem:[#allocation26 + $0x50] ss:$12 sps:$4 sm:$0xff]  }
 0x6af   :  { %2431 = vmatprep.mubr.bf16.mxu0 %v19586_v39  ;;  %16417 = vmatprep.mubr.msk.bf16.mxu1 %vm19587_vm0, %v19585_v35  ;;  %v17292_v30 = vld [vmem:[#allocation26 + $0x64] ss:$12 sps:$4 sm:$0xff]   ;;  %v17329_v6 = vld [vmem:[#allocation26 + $0x13c] ss:$12 sps:$4 sm:$0xff]  }
 0x6b0   :  { %v17312_v9 = vld [vmem:[#allocation26 + $0xf0] ss:$12 sps:$4 sm:$0xff]  }
 0x6b1   :  { %2402 = vmatpush1.bf16.msra.mxu0 %v17250_v32  ;;  %16404 = vmatpush3.bf16.msra.mxu1 %v17253_v33  ;;  %v17325_v32 = vld [vmem:[#allocation26 + $0x128] ss:$12 sps:$4 sm:$0xff]   ;;  %v17290_v33 = vld [vmem:[#allocation26 + $0x60] ss:$12 sps:$4 sm:$0xff]   ;;  %v17332_v12 = vld [vmem:[#allocation26 + $0x150] ss:$12 sps:$4 sm:$0xff]  }
 0x6b2   :  { %2403 = vmatprep.subr.bf16.mxu0 %v17256_v34  ;;  %16405 = vmatprep.subr.bf16.mxu1 %v19585_v35  ;;  %v17326_v34 = vld [vmem:[#allocation26 + $0x68] ss:$12 sps:$4 sm:$0xff]   ;;  %v17344_v58 = vld [vmem:[#allocation26 + $0x184] ss:$12 sps:$4 sm:$0xff]  }
 0x6b5   :  { %2404 = vmatpush1.bf16.msra.mxu0 %v17254_v40  ;;  %16406 = vmatpush3.bf16.msra.mxu1 %v17257_v41  ;;  %v17295_v40 = vld [vmem:[#allocation26 + $0x7c] ss:$12 sps:$4 sm:$0xff]   ;;  %v17330_v41 = vld [vmem:[#allocation26 + $0x140] ss:$12 sps:$4 sm:$0xff]  }
 0x6b6   :  { %2405 = vmatprep.subr.bf16.mxu0 %v17260_v43  ;;  %16407 = vmatprep.subr.bf16.mxu1 %v19585_v35  ;;  %v17293_v43 = vld [vmem:[#allocation26 + $0x78] ss:$12 sps:$4 sm:$0xff]  }
 0x6b9   :  { %2406 = vmatpush1.bf16.msra.mxu0 %v17258_v45  ;;  %16408 = vmatpush3.bf16.msra.mxu1 %v17261_v46  ;;  %v17331_v45 = vld [vmem:[#allocation26 + $0x80] ss:$12 sps:$4 sm:$0xff]  }
 0x6ba   :  { %2407 = vmatprep.subr.bf16.mxu0 %v17264_v51  ;;  %16409 = vmatprep.subr.bf16.mxu1 %v19585_v35  ;;  %v17298_v46 = vld [vmem:[#allocation26 + $0x94] ss:$12 sps:$4 sm:$0xff]   ;;  %v17335_v51 = vld [vmem:[#allocation26 + $0x158] ss:$12 sps:$4 sm:$0xff]  }
 0x6bd   :  { %2408 = vmatpush1.bf16.msra.mxu0 %v17262_v59  ;;  %16410 = vmatpush3.bf16.msra.mxu1 %v17265_v60  ;;  %v17296_v59 = vld [vmem:[#allocation26 + $0x90] ss:$12 sps:$4 sm:$0xff]   ;;  %v17336_v60 = vld [vmem:[#allocation26 + $0x98] ss:$12 sps:$4 sm:$0xff]  }
 0x6be   :  { %2409 = vmatprep.subr.bf16.mxu0 %v17268_v63  ;;  %16411 = vmatprep.subr.bf16.mxu1 %v19585_v35  ;;  %v17301_v63 = vld [vmem:[#allocation26 + $0xac] ss:$12 sps:$4 sm:$0xff]  }
 0x6c1   :  { %2410 = vmatpush1.bf16.msra.mxu0 %v17266_v0  ;;  %16412 = vmatpush3.bf16.msra.mxu1 %v17269_v5  ;;  %v17304_v0 = vld [vmem:[#allocation26 + $0xc4] ss:$12 sps:$4 sm:$0xff]   ;;  %v17302_v5 = vld [vmem:[#allocation26 + $0xc0] ss:$12 sps:$4 sm:$0xff]  }
 0x6c2   :  { %2411 = vmatprep.subr.bf16.mxu0 %v17272_v3  ;;  %16413 = vmatprep.subr.bf16.mxu1 %v19585_v35  ;;  %v17309_v3 = vld [vmem:[#allocation26 + $0xdc] ss:$12 sps:$4 sm:$0xff]  }
 0x6c5   :  { %2412 = vmatpush1.bf16.msra.mxu0 %v17270_v14  ;;  %16414 = vmatpush3.bf16.msra.mxu1 %v17273_v4  ;;  %v17319_v14 = vld [vmem:[#allocation26 + $0x10c] ss:$12 sps:$4 sm:$0xff]   ;;  %v17317_v4 = vld [vmem:[#allocation26 + $0x108] ss:$12 sps:$4 sm:$0xff]  }
 0x6c6   :  { %2413 = vmatprep.subr.bf16.mxu0 %v17276_v42  ;;  %16415 = vmatprep.subr.bf16.mxu1 %v19585_v35  ;;  %v17324_v42 = vld [vmem:[#allocation26 + $0x124] ss:$12 sps:$4 sm:$0xff]  }
 0x6c9   :  { %2414 = vmatpush1.bf16.msra.mxu0 %v17274_v10  ;;  %16416 = vmatpush3.bf16.msra.mxu1 %v17277_v11  ;;  %v17327_v10 = vld [vmem:[#allocation26 + $0x138] ss:$12 sps:$4 sm:$0xff]   ;;  %v17334_v11 = vld [vmem:[#allocation26 + $0x154] ss:$12 sps:$4 sm:$0xff]  }
 0x6ca   :  { %3235 = vmatprep.subr.bf16.mxu0 %v17280_v53  ;;  %15791 = vmatprep.subr.bf16.mxu1 %v17305_v19  ;;  %v17339_v53 = vld [vmem:[#allocation26 + $0x16c] ss:$12 sps:$4 sm:$0xff]   ;;  %v17337_v19 = vld [vmem:[#allocation26 + $0x168] ss:$12 sps:$4 sm:$0xff]  }
 0x6cc   :  { %2432 = vmatmul.mubr.bf16.vlgmr.msra.gmra.mrb[12].mxu0 %v1955_v17  ;;  %16418 = vmatmul.mubr.bf16.vlgmr.msra.gmra.mrb[12].mxu1 %v1955_v17 }
 0x6cd   :  { %3236 = vmatpush1.bf16.msra.mxu0 %v17278_v15  ;;  %15792 = vmatpush3.bf16.msra.mxu1 %v17306_v16 }
 0x6ce   :  { %3237 = vmatprep.subr.bf16.mxu0 %v17283_v20  ;;  %15793 = vmatprep.subr.bf16.mxu1 %v17310_v28 }
 0x6d1   :  { %3238 = vmatpush1.bf16.msra.mxu0 %v17281_v21  ;;  %15794 = vmatpush3.bf16.msra.mxu1 %v17311_v61  ;;  %v20281_v61 = vld [vmem:[#allocation23] sm:$0x7] }
 0x6d2   :  { %3239 = vmatprep.subr.bf16.mxu0 %v17286_v1  ;;  %15795 = vmatprep.subr.bf16.mxu1 %v17315_v62  ;;  %v2693_v1 = vrot.slane %v20281_v61, %v20099_v50  ;;  %v2689_v62 = vrot.slane %v20281_v61, %v20096_v47 }
 0x6d5   :  { %3240 = vmatpush1.bf16.msra.mxu0 %v17284_v22  ;;  %15796 = vmatpush3.bf16.msra.mxu1 %v17316_v23  ;;  %v20287_v23 = vld [vmem:[#allocation25] sm:$0x7] }
 0x6d6   :  { %3241 = vmatprep.subr.bf16.mxu0 %v17289_v13  ;;  %15797 = vmatprep.subr.bf16.mxu1 %v17320_v54 }
 0x6d9   :  { %3242 = vmatpush1.bf16.msra.mxu0 %v17287_v24  ;;  %15798 = vmatpush3.bf16.msra.mxu1 %v17321_v25  ;;  %v2715_v25 = vrot.slane %v20287_v23, %v20099_v50 }
 0x6da   :  { %3243 = vmatprep.subr.bf16.mxu0 %v17292_v30  ;;  %15799 = vmatprep.subr.bf16.mxu1 %v17325_v32  ;;  %v2711_v32 = vrot.slane %v20287_v23, %v20096_v47 }
 0x6dd   :  { %3244 = vmatpush1.bf16.msra.mxu0 %v17290_v33  ;;  %15800 = vmatpush3.bf16.msra.mxu1 %v17326_v34 }
 0x6de   :  { %3245 = vmatprep.subr.bf16.mxu0 %v17295_v40  ;;  %15801 = vmatprep.subr.bf16.mxu1 %v17330_v41 }
 0x6e1   :  { %3246 = vmatpush1.bf16.msra.mxu0 %v17293_v43  ;;  %15802 = vmatpush3.bf16.msra.mxu1 %v17331_v45 }
 0x6e2   :  { %3247 = vmatprep.subr.bf16.mxu0 %v17298_v46  ;;  %15803 = vmatprep.subr.bf16.mxu1 %v17335_v51 }
 0x6e5   :  { %3248 = vmatpush1.bf16.msra.mxu0 %v17296_v59  ;;  %15804 = vmatpush3.bf16.msra.mxu1 %v17336_v60 }
 0x6e6   :  { %3249 = vmatprep.subr.bf16.mxu0 %v17301_v63  ;;  %15805 = vmatprep.subr.bf16.mxu1 %v17340_v52 }
 0x6e9   :  { %3250 = vmatpush1.bf16.msra.mxu0 %v17299_v44  ;;  %15806 = vmatpush3.bf16.msra.mxu1 %v17341_v26  ;;  %v17342_v44 = vld [vmem:[#allocation26 + $0x180] ss:$12 sps:$4 sm:$0xff]  }
 0x6ea   :  { %3251 = vmatprep.subr.bf16.mxu0 %v17304_v0  ;;  %16421 = vmatprep.subr.bf16.mxu1 %v19585_v35  ;;  %v17345_v0 = vld [vmem:[#allocation26 + $0x188] ss:$12 sps:$4 sm:$0xff]  }
 0x6ed   :  { %3252 = vmatpush1.bf16.msra.mxu0 %v17302_v5  ;;  %v17348_v5 = vld [vmem:[#allocation26 + $0x19c] ss:$12 sps:$4 sm:$0xff]  }
 0x6ee   :  { %3253 = vmatprep.subr.bf16.mxu0 %v17309_v3  ;;  %v17352_v3 = vld [vmem:[#allocation26 + $0x1b4] ss:$12 sps:$4 sm:$0xff]  }
 0x6f1   :  { %3254 = vmatpush1.bf16.msra.mxu0 %v17307_v2  ;;  %v17350_v2 = vld [vmem:[#allocation26 + $0x1b0] ss:$12 sps:$4 sm:$0xff]  }
 0x6f2   :  { %3255 = vmatprep.subr.bf16.mxu0 %v17314_v8  ;;  %v17353_v8 = vld [vmem:[#allocation26 + $0x1b8] ss:$12 sps:$4 sm:$0xff]  }
 0x6f5   :  { %3256 = vmatpush1.bf16.msra.mxu0 %v17312_v9  ;;  %v17356_v9 = vld [vmem:[#allocation26 + $0x1cc] ss:$12 sps:$4 sm:$0xff]  }
 0x6f6   :  { %3257 = vmatprep.subr.bf16.mxu0 %v17319_v14  ;;  %v17354_v14 = vld [vmem:[#allocation26 + $0x1c8] ss:$12 sps:$4 sm:$0xff]  }
 0x6f9   :  { %3258 = vmatpush1.bf16.msra.mxu0 %v17317_v4  ;;  %v17357_v4 = vld [vmem:[#allocation26 + $0x1d0] ss:$12 sps:$4 sm:$0xff]  }
 0x6fa   :  { %3259 = vmatprep.subr.bf16.mxu0 %v17324_v42  ;;  %v17360_v42 = vld [vmem:[#allocation26 + $0x1e4] ss:$12 sps:$4 sm:$0xff]  }
 0x6fd   :  { %3260 = vmatpush1.bf16.msra.mxu0 %v17322_v55  ;;  %v17358_v55 = vld [vmem:[#allocation26 + $0x1e0] ss:$12 sps:$4 sm:$0xff]  }
 0x6fe   :  { %3261 = vmatprep.subr.bf16.mxu0 %v17329_v6  ;;  %v17361_v6 = vld [vmem:[#allocation26 + $0x1e8] ss:$12 sps:$4 sm:$0xff]  }
 0x701   :  { %3262 = vmatpush1.bf16.msra.mxu0 %v17327_v10  ;;  %v17364_v10 = vld [vmem:[#allocation26 + $0x1fc] ss:$12 sps:$4 sm:$0xff]  }
 0x702   :  { %3263 = vmatprep.subr.bf16.mxu0 %v17334_v11 }
 0x705   :  { %3264 = vmatpush1.bf16.msra.mxu0 %v17332_v12 }
 0x706   :  { %3265 = vmatprep.subr.bf16.mxu0 %v17339_v53  ;;  %v2697_v53 = vrot.slane %v20281_v61, %v20091_v38 }
 0x709   :  { %3266 = vmatpush1.bf16.msra.mxu0 %v17337_v19  ;;  %v17362_v19 = vld [vmem:[#allocation26 + $0x1f8] ss:$12 sps:$4 sm:$0xff]  }
 0x70a   :  { %3278 = vmatprep.subr.bf16.mxu0 %v17344_v58  ;;  %v17365_v58 = vld [vmem:[#allocation26 + $0x200] ss:$12 sps:$4 sm:$0xff]  }
 0x731   :  { %v2668_v15 = vpop.xlane.xlu1 %2667 }
 0x732   :  { %v2673_v16 = vmul.f32 0.0026041667, %v2668_v15  ;;  %v17368_v15 = vld [vmem:[#allocation26 + $0x214] ss:$12 sps:$4 sm:$0xff]  }
 0x734   :  { %v2675_v17 = vadd.f32 0.001, %v2673_v16 }
 0x735   :  { %v2672_v20 = vpop.xlane.xlu1 %2671 }
 0x736   :  { %18450 = vrsqrt.f32 %v2675_v17  ;;  %v2674_v28 = vmul.f32 0.0026041667, %v2672_v20  ;;  %v2719_v20 = vrot.slane %v20287_v23, %v20091_v38 }
 0x738   :  { %v2676_v21 = vadd.f32 0.001, %v2674_v28  ;;  %v17372_v28 = vld [vmem:[#allocation26 + $0x22c] ss:$12 sps:$4 sm:$0xff]  }
 0x73a   :  { %18452 = vrsqrt.f32 %v2676_v21 }
 0x740   :  { %v18451_v22 = vpop.eup %18450 }
 0x741   :  { %v2680_v13 = vmul.f32 %v18451_v22, %v20231_v57  ;;  %v2679_v54 = vmul.f32 %v18451_v22, %v20228_v56  ;;  %v2681_v12 = vmul.f32 %v18451_v22, %v20234_v18  ;;  %v17369_v18 = vld [vmem:[#allocation26 + $0x218] ss:$12 sps:$4 sm:$0xff]  }
 0x743   :  { %v2702_v24 = vmul.f32 %v2693_v1, %v2680_v13  ;;  %v2701_v30 = vmul.f32 %v2689_v62, %v2679_v54  ;;  %v2703_v17 = vmul.f32 %v2697_v53, %v2681_v12  ;;  %v3411_v12 = vld [vmem:[#allocation5 + $0x10] sm:$0xff] }
 0x744   :  { %v18453_v33 = vpop.eup %18452 }
 0x745   :  { %v2683_v34 = vmul.f32 %v18453_v33, %v20219_v49  ;;  %v2682_v40 = vmul.f32 %v18453_v33, %v20216_v48  ;;  %v2724_v43 = vadd.f32 %v2715_v25, %v2702_v24  ;;  %v2723_v46 = vadd.f32 %v2711_v32, %v2701_v30  ;;  %v17346_v48 = vld [vmem:[#allocation26 + $0x198] ss:$12 sps:$4 sm:$0xff]   ;;  %v17349_v49 = vld [vmem:[#allocation26 + $0x1a0] ss:$12 sps:$4 sm:$0xff]  }
 0x746   :  { %v2684_v11 = vmul.f32 %v18453_v33, %v20255_v7  ;;  %v17366_v7 = vld [vmem:[#allocation26 + $0x210] ss:$12 sps:$4 sm:$0xff]   ;;  %v2725_v61 = vadd.f32 %v2719_v20, %v2703_v17 }
 0x747   :  { %v2705_v41 = vmul.f32 %v2693_v1, %v2683_v34  ;;  %v2704_v45 = vmul.f32 %v2689_v62, %v2682_v40  ;;  %v2730_v56 = vmax.f32 %v2724_v43, 0.0  ;;  %v2729_v60 = vmax.f32 %v2723_v46, 0.0  ;;  %v17370_v1 = vld [vmem:[#allocation26 + $0x228] ss:$12 sps:$4 sm:$0xff]   ;;  %v17373_v62 = vld [vmem:[#allocation26 + $0x230] ss:$12 sps:$4 sm:$0xff]  }
 0x748   :  { %v2706_v16 = vmul.f32 %v2697_v53, %v2684_v11  ;;  %v2731_v13 = vmax.f32 %v2725_v61, 0.0  ;;  %v1952_v34 = vld [vmem:[#allocation19] sm:$0x7]  ;;  %v2831_v40 = vld [vmem:[#allocation28] sm:$0x7] }
 0x749   :  { %v2727_v57 = vadd.f32 %v2715_v25, %v2705_v41  ;;  %v2726_v51 = vadd.f32 %v2711_v32, %v2704_v45  ;;  %v1968_v41 = vrot.slane %v1952_v34, %v20091_v38  ;;  %v2847_v45 = vrot.slane %v2831_v40, %v20091_v38  ;;  %v3407_v53 = vld [vmem:[#allocation2 + $0x20] sm:$0xff] }
 0x74a   :  { %v2728_v21 = vadd.f32 %v2719_v20, %v2706_v16 }
 0x74b   :  { %v2733_v59 = vmax.f32 %v2727_v57, 0.0  ;;  %v2732_v63 = vmax.f32 %v2726_v51, 0.0 }
 0x74c   :  { %v2734_v22 = vmax.f32 %v2728_v21, 0.0 }
 0x74d   :  { %v2833_v52 = vpack.c.bf16 %v2733_v59, %v2730_v56  ;;  %v2832_v26 = vpack.c.bf16 %v2732_v63, %v2729_v60 }
 0x74e   :  { %v2834_v23 = vpack.c.bf16 %v2734_v22, %v2731_v13 }
 0x74f   :  { %3267 = vmatprep.mubr.bf16.mxu0 %v2833_v52  ;;  %3353 = vmatprep.mubr.bf16.mxu1 %v2833_v52 }
 0x750   :  { %3268 = vmatmul.mubr.bf16.vlgmr.msra.gmra.mrb[12].mxu0 %v2832_v26  ;;  %3354 = vmatmul.mubr.bf16.vlgmr.msra.gmra.mrb[16].mxu1 %v2832_v26 }
 0x751   :  { %3279 = vmatpush1.bf16.msra.mxu0 %v17342_v44  ;;  %16422 = vmatpush3.bf16.msra.mxu1 %v17345_v0 }
 0x752   :  { %3280 = vmatprep.subr.bf16.mxu0 %v17348_v5  ;;  %16423 = vmatprep.subr.bf16.mxu1 %v19585_v35  ;;  %v1960_v5 = vrot.slane %v1952_v34, %v20096_v47 }
 0x753   :  { %3310 = vmatprep.mubr.bf16.mxu0 %v19586_v39  ;;  %16437 = vmatprep.mubr.msk.bf16.mxu1 %vm19587_vm0, %v19585_v35 }
 0x755   :  { %3281 = vmatpush1.bf16.msra.mxu0 %v17346_v48  ;;  %16424 = vmatpush3.bf16.msra.mxu1 %v17349_v49  ;;  %v2839_v48 = vrot.slane %v2831_v40, %v20096_v47  ;;  %v1964_v49 = vrot.slane %v1952_v34, %v20099_v50 }
 0x756   :  { %3282 = vmatprep.subr.bf16.mxu0 %v17352_v3  ;;  %16425 = vmatprep.subr.bf16.mxu1 %v19585_v35  ;;  %v2843_v3 = vrot.slane %v2831_v40, %v20099_v50 }
 0x759   :  { %3283 = vmatpush1.bf16.msra.mxu0 %v17350_v2  ;;  %16426 = vmatpush3.bf16.msra.mxu1 %v17353_v8  ;;  %v3403_v2 = vld [vmem:[#allocation2] sm:$0xff]  ;;  %v3409_v8 = vld [vmem:[#allocation5] sm:$0xff] }
 0x75a   :  { %3284 = vmatprep.subr.bf16.mxu0 %v17356_v9  ;;  %16427 = vmatprep.subr.bf16.mxu1 %v19585_v35  ;;  %v16785_v9 = vadd.f32 %v2839_v48, %v1960_v5  ;;  %v3415_v11 = vadd.f32 %v3409_v8, %v3403_v2 }
 0x75d   :  { %3285 = vmatpush1.bf16.msra.mxu0 %v17354_v14  ;;  %16428 = vmatpush3.bf16.msra.mxu1 %v17357_v4  ;;  %v3404_v14 = vld [vmem:[#allocation2 + $0x8] sm:$0xff]  ;;  %v3410_v4 = vld [vmem:[#allocation5 + $0x8] sm:$0xff] }
 0x75e   :  { %3286 = vmatprep.subr.bf16.mxu0 %v17360_v42  ;;  %16429 = vmatprep.subr.bf16.mxu1 %v19585_v35  ;;  %v3405_v42 = vld [vmem:[#allocation2 + $0x10] sm:$0xff]  ;;  %v3416_v16 = vadd.f32 %v3410_v4, %v3404_v14 }
 0x75f   :  { %v3417_v21 = vadd.f32 %v3411_v12, %v3405_v42 }
 0x761   :  { %3287 = vmatpush1.bf16.msra.mxu0 %v17358_v55  ;;  %16430 = vmatpush3.bf16.msra.mxu1 %v17361_v6  ;;  %v16788_v55 = vadd.f32 %v2843_v3, %v1964_v49  ;;  %v3406_v6 = vld [vmem:[#allocation2 + $0x18] sm:$0xff] }
 0x762   :  { %3288 = vmatprep.subr.bf16.mxu0 %v17364_v10  ;;  %16431 = vmatprep.subr.bf16.mxu1 %v19585_v35  ;;  %v3412_v10 = vld [vmem:[#allocation5 + $0x18] sm:$0xff] }
 0x765   :  { %3289 = vmatpush1.bf16.msra.mxu0 %v17362_v19  ;;  %16432 = vmatpush3.bf16.msra.mxu1 %v17365_v58  ;;  %v3413_v19 = vld [vmem:[#allocation5 + $0x20] sm:$0xff] }
 0x766   :  { %3290 = vmatprep.subr.bf16.mxu0 %v17368_v15  ;;  %16433 = vmatprep.subr.bf16.mxu1 %v19585_v35  ;;  %v3419_v22 = vadd.f32 %v3413_v19, %v3407_v53 }
 0x769   :  { %3291 = vmatpush1.bf16.msra.mxu0 %v17366_v7  ;;  %16434 = vmatpush3.bf16.msra.mxu1 %v17369_v18 }
 0x76a   :  { %3292 = vmatprep.subr.bf16.mxu0 %v17372_v28  ;;  %16435 = vmatprep.subr.bf16.mxu1 %v19585_v35  ;;  %v3418_v28 = vadd.f32 %v3412_v10, %v3406_v6 }
 0x76d   :  { %3293 = vmatpush1.bf16.msra.mxu0 %v17370_v1  ;;  %16436 = vmatpush3.bf16.msra.mxu1 %v17373_v62 }
 0x770   :  { %3311 = vmatmul.mubr.bf16.vlgmr.msra.gmra.mrb[12].mxu0 %v2834_v23  ;;  %16438 = vmatmul.mubr.bf16.vlgmr.msra.gmra.mrb[12].mxu1 %v2834_v23 }
 0x771   :  { %3902 = vmatprep.mubr.bf16.mxu0 %v19586_v39 }
 0x77f   :  { %v15776_v54 = vpop.f32.mrb[8].mxu1 }
 0x780   :  { %v15777_v24 = vpop.f32.mrb[9].mxu1 }
 0x781   :  { %v15778_v25 = vadd.f32 %v15777_v24, %v15776_v54  ;;  %v15779_v30 = vpop.f32.mrb[10].mxu1  ;;  %v3408_v54 = vld [vmem:[#allocation2 + $0x28] sm:$0xff]  ;;  %v3414_v24 = vld [vmem:[#allocation5 + $0x28] sm:$0xff] }
 0x782   :  { %v15780_v32 = vpop.f32.mrb[11].mxu1 }
 0x783   :  { %v15781_v33 = vadd.f32 %v15780_v32, %v15779_v30  ;;  %v2477_v59 = vadd.f32 %v15778_v25, %v1968_v41 }
 0x785   :  { %v2480_v52 = vadd.f32 %v15781_v33, %v1968_v41 }
 0x823   :  { %v15807_v43 = vpop.f32.mrb[16].mxu1 }
 0x824   :  { %v15808_v46 = vpop.f32.mrb[17].mxu1 }
 0x825   :  { %v15809_v57 = vadd.f32 %v15808_v46, %v15807_v43  ;;  %v15810_v51 = vpop.f32.mrb[18].mxu1  ;;  %v3420_v43 = vadd.f32 %v3414_v24, %v3408_v54 }
 0x826   :  { %v15811_v56 = vpop.f32.mrb[19].mxu1 }
 0x827   :  { %v3356_v60 = vadd.f32 %v15809_v57, %v2847_v45  ;;  %v15812_v63 = vadd.f32 %v15811_v56, %v15810_v51 }
 0x829   :  { %v3359_v44 = vadd.f32 %v15812_v63, %v2847_v45  ;;  %v16797_v26 = vadd.f32 %v3356_v60, %v2477_v59  ;;  %v17374_v60 = vld [vmem:[%s21726_s9 + $0x40] sm:$0xff]  }
 0x82a   :  { %v17375_v63 = vld [vmem:[%s21726_s9] sm:$0xff]   ;;  %15822 = vmatprep.subr.bf16.mxu1 %v17374_v60 }
 0x82b   :  { %v16800_v0 = vadd.f32 %v3359_v44, %v2480_v52  ;;  %v17376_v52 = vld [vmem:[%s21726_s9 + $0x48] sm:$0xff]   ;;  %15823 = vmatpush3.bf16.msra.mxu1 %v17375_v63 }
 0x82c   :  { %15824 = vmatprep.subr.bf16.mxu1 %v17376_v52 }
 0x843   :  { %v3312_v58 = vpop.f32.mrb[12].mxu0  ;;  %v3396_v15 = vpop.f32.mrb[12].mxu1 }
 0x844   :  { %v16786_v17 = vadd.f32 %v16785_v9, %v3312_v58  ;;  %v16798_v20 = vadd.f32 %v16797_v26, %v3396_v15  ;;  %v3314_v7 = vpop.f32.mrb[13].mxu0  ;;  %v16439_v18 = vpop.f32.mrb[13].mxu1  ;;  %v17377_v58 = vld [vmem:[%s21726_s9 + $0x8] sm:$0xff]   ;;  %v17378_v15 = vld [vmem:[%s21726_s9 + $0x50] sm:$0xff]  }
 0x845   :  { %v16789_v61 = vadd.f32 %v16788_v55, %v3314_v7  ;;  %v3316_v1 = vpop.f32.mrb[14].mxu0  ;;  %v3399_v62 = vpop.f32.mrb[14].mxu1  ;;  %15825 = vmatpush3.bf16.msra.mxu1 %v17377_v58  ;;  %v17382_v7 = vld [vmem:[%s21726_s9 + $0x60] sm:$0xff]  }
 0x846   :  { %v16787_v13 = vadd.f32 %v16786_v17, %v3415_v11  ;;  %v16792_v23 = vadd.f32 %v16785_v9, %v3316_v1  ;;  %v16801_v25 = vadd.f32 %v16800_v0, %v3399_v62  ;;  %v3318_v30 = vpop.f32.mrb[15].mxu0  ;;  %v16440_v32 = vpop.f32.mrb[15].mxu1  ;;  %v16799_v41 = vadd.f32 %v16798_v20, %v3417_v21  ;;  %15826 = vmatprep.subr.bf16.mxu1 %v17378_v15  ;;  %v17380_v17 = vld [vmem:[%s21726_s9 + $0x58] sm:$0xff]   ;;  %v17383_v18 = vld [vmem:[%s21726_s9 + $0x20] sm:$0xff]   ;;  %v17385_v21 = vld [vmem:[%s21726_s9 + $0x28] sm:$0xff]  }
 0x847   :  { %v16790_v33 = vadd.f32 %v16789_v61, %v3416_v16  ;;  %v16795_v34 = vadd.f32 %v16788_v55, %v3318_v30  ;;  %v17379_v16 = vld [vmem:[%s21726_s9 + $0x10] sm:$0xff]   ;;  %v17381_v20 = vld [vmem:[%s21726_s9 + $0x18] sm:$0xff]  }
 0x848   :  { %v16793_v40 = vadd.f32 %v16792_v23, %v3418_v28  ;;  %v16802_v56 = vadd.f32 %v16801_v25, %v3420_v43  ;;  %v17384_v28 = vld [vmem:[%s21726_s9 + $0x68] sm:$0xff]   ;;  %v17386_v61 = vld [vmem:[%s21726_s9 + $0x70] sm:$0xff]   ;;  %v17388_v62 = vld [vmem:[%s21726_s9 + $0x78] sm:$0xff]  }
 0x849   :  { %v16796_v45 = vadd.f32 %v16795_v34, %v3419_v22  ;;  %v3435_v46 = vadd.f32 %v16790_v33, %v16787_v13  ;;  %15827 = vmatpush3.bf16.msra.mxu1 %v17379_v16  ;;  %v17387_v1 = vld [vmem:[%s21726_s9 + $0x30] sm:$0xff]   ;;  %v17389_v22 = vld [vmem:[%s21726_s9 + $0x38] sm:$0xff]  }
 0x84a   :  { %15828 = vmatprep.subr.bf16.mxu1 %v17380_v17  ;;  %v3433_v32 = vld [vmem:[#allocation29] sm:$0x7]  ;;  %v3434_v34 = vld [vmem:[#allocation31] sm:$0x7] }
 0x84b   :  { %v3436_v57 = vadd.f32 %v16799_v41, %v3435_v46  ;;  %v3439_v51 = vadd.f32 %v16796_v45, %v16793_v40  ;;  %v3511_v15 = vrot.slane %v3434_v34, %v20091_v38  ;;  %v17397_v16 = vld [vmem:[%s21726_s9 + $0xb8] sm:$0xff]  }
 0x84d   :  { %3437 = vadd.xlane.f32.xlu1 %v3436_v57  ;;  %v3440_v59 = vadd.f32 %v16802_v56, %v3439_v51  ;;  %15829 = vmatpush3.bf16.msra.mxu1 %v17381_v20  ;;  %v3507_v57 = vrot.slane %v3434_v34, %v20099_v50  ;;  %v3503_v51 = vrot.slane %v3434_v34, %v20096_v47  ;;  %v17398_v20 = vld [vmem:[%s21727_s27] ss:$8 sps:$4 sm:$0xff]  }
 0x84e   :  { %15830 = vmatprep.subr.bf16.mxu1 %v17382_v7  ;;  %v17400_v7 = vld [vmem:[%s21727_s27 + $0x4] ss:$8 sps:$4 sm:$0xff]  }
 0x84f   :  { %3870 = vmatprep.subr.bf16.mxu0 %v17400_v7 }
 0x850   :  { %3871 = vmatpush1.bf16.msra.mxu0 %v17398_v20 }
 0x851   :  { %3441 = vadd.xlane.f32.xlu1 %v3440_v59  ;;  %15831 = vmatpush3.bf16.msra.mxu1 %v17383_v18  ;;  %v17403_v18 = vld [vmem:[%s21727_s27 + $0x14] ss:$8 sps:$4 sm:$0xff]  }
 0x852   :  { %15832 = vmatprep.subr.bf16.mxu1 %v17384_v28  ;;  %v17401_v28 = vld [vmem:[%s21727_s27 + $0x10] ss:$8 sps:$4 sm:$0xff]   ;;  %3872 = vmatprep.subr.bf16.mxu0 %v17403_v18 }
 0x854   :  { %3873 = vmatpush1.bf16.msra.mxu0 %v17401_v28 }
 0x855   :  { %15833 = vmatpush3.bf16.msra.mxu1 %v17385_v21  ;;  %v17406_v21 = vld [vmem:[%s21727_s27 + $0x24] ss:$8 sps:$4 sm:$0xff]  }
 0x856   :  { %15834 = vmatprep.subr.bf16.mxu1 %v17386_v61  ;;  %v17404_v61 = vld [vmem:[%s21727_s27 + $0x20] ss:$8 sps:$4 sm:$0xff]   ;;  %3874 = vmatprep.subr.bf16.mxu0 %v17406_v21 }
 0x858   :  { %3875 = vmatpush1.bf16.msra.mxu0 %v17404_v61 }
 0x859   :  { %15835 = vmatpush3.bf16.msra.mxu1 %v17387_v1  ;;  %v17409_v1 = vld [vmem:[%s21727_s27 + $0x34] ss:$8 sps:$4 sm:$0xff]  }
 0x85a   :  { %15836 = vmatprep.subr.bf16.mxu1 %v17388_v62  ;;  %v17407_v62 = vld [vmem:[%s21727_s27 + $0x30] ss:$8 sps:$4 sm:$0xff]   ;;  %3876 = vmatprep.subr.bf16.mxu0 %v17409_v1 }
 0x85c   :  { %3877 = vmatpush1.bf16.msra.mxu0 %v17407_v62 }
 0x85d   :  { %15837 = vmatpush3.bf16.msra.mxu1 %v17389_v22  ;;  %16461 = vmatprep.subr.bf16.mxu0 %v19585_v35 }
 0x85e   :  { %16441 = vmatprep.subr.bf16.mxu1 %v19585_v35 }
 0x8da   :  { %v3438_v44 = vpop.xlane.xlu1 %3437 }
 0x8db   :  { %v3443_v26 = vmul.f32 0.0026041667, %v3438_v44 }
 0x8dd   :  { %v3445_v0 = vsub.f32 %v16787_v13, %v3443_v26  ;;  %v3446_v5 = vsub.f32 %v16790_v33, %v3443_v26  ;;  %v20323_v48 = vsub.f32 %v16799_v41, %v3443_v26  ;;  %v3485_v41 = vrot.slane %v3433_v32, %v20099_v50 }
 0x8de   :  { %v3442_v49 = vpop.xlane.xlu1 %3441 }
 0x8df   :  { %v3444_v3 = vmul.f32 0.0026041667, %v3442_v49  ;;  %v3451_v2 = vmul.f32 %v3445_v0, %v3445_v0  ;;  %v3452_v8 = vmul.f32 %v3446_v5, %v3446_v5  ;;  %v3453_v9 = vmul.f32 %v20323_v48, %v20323_v48 }
 0x8e1   :  { %v3448_v14 = vsub.f32 %v16793_v40, %v3444_v3  ;;  %v3449_v4 = vsub.f32 %v16796_v45, %v3444_v3  ;;  %v20327_v42 = vsub.f32 %v16802_v56, %v3444_v3  ;;  %v3457_v55 = vadd.f32 %v3452_v8, %v3451_v2  ;;  %v17390_v8 = vld [vmem:[%s21726_s9 + $0x80] sm:$0xff]  }
 0x8e2   :  { %v3481_v45 = vrot.slane %v3433_v32, %v20096_v47 }
 0x8e3   :  { %v3458_v6 = vadd.f32 %v3457_v55, %v3453_v9  ;;  %v3454_v10 = vmul.f32 %v3448_v14, %v3448_v14  ;;  %v3455_v11 = vmul.f32 %v3449_v4, %v3449_v4  ;;  %v3456_v12 = vmul.f32 %v20327_v42, %v20327_v42  ;;  %v17391_v9 = vld [vmem:[%s21726_s9 + $0x88] sm:$0xff]   ;;  %v17394_v55 = vld [vmem:[%s21726_s9 + $0xa0] sm:$0xff]  }
 0x8e5   :  { %3459 = vadd.xlane.f32.xlu1 %v3458_v6  ;;  %v3461_v53 = vadd.f32 %v3455_v11, %v3454_v10  ;;  %v17395_v6 = vld [vmem:[%s21726_s9 + $0xa8] sm:$0xff]  }
 0x8e7   :  { %v3462_v19 = vadd.f32 %v3461_v53, %v3456_v12  ;;  %v3489_v12 = vrot.slane %v3433_v32, %v20091_v38  ;;  %v17396_v53 = vld [vmem:[%s21726_s9 + $0xb0] sm:$0xff]  }
 0x8e9   :  { %3463 = vadd.xlane.f32.xlu1 %v3462_v19 }
 0x972   :  { %v3460_v13 = vpop.xlane.xlu1 %3459 }
 0x973   :  { %v3465_v23 = vmul.f32 0.0026041667, %v3460_v13 }
 0x975   :  { %v3467_v54 = vadd.f32 0.001, %v3465_v23 }
 0x976   :  { %v3464_v24 = vpop.xlane.xlu1 %3463 }
 0x977   :  { %18454 = vrsqrt.f32 %v3467_v54  ;;  %v3466_v25 = vmul.f32 0.0026041667, %v3464_v24 }
 0x979   :  { %v3468_v30 = vadd.f32 0.001, %v3466_v25 }
 0x97b   :  { %18456 = vrsqrt.f32 %v3468_v30  ;;  %v14545_v30 = vld [vmem:[%s21728_s23] ss:$0 sm:$0xff] }
 0x981   :  { %v18455_v33 = vpop.eup %18454 }
 0x982   :  { %v3472_v40 = vmul.f32 %v18455_v33, %v3446_v5  ;;  %v3471_v43 = vmul.f32 %v18455_v33, %v3445_v0  ;;  %v3473_v11 = vmul.f32 %v18455_v33, %v20323_v48 }
 0x984   :  { %v3494_v59 = vmul.f32 %v3485_v41, %v3472_v40  ;;  %v3493_v63 = vmul.f32 %v3481_v45, %v3471_v43  ;;  %v3495_v58 = vmul.f32 %v3489_v12, %v3473_v11 }
 0x985   :  { %v18457_v46 = vpop.eup %18456 }
 0x986   :  { %v3475_v56 = vmul.f32 %v18457_v46, %v3449_v4  ;;  %v3474_v60 = vmul.f32 %v18457_v46, %v3448_v14  ;;  %v20349_v26 = vadd.f32 %v3507_v57, %v3494_v59  ;;  %v20353_v0 = vadd.f32 %v3503_v51, %v3493_v63  ;;  %v17392_v14 = vld [vmem:[%s21726_s9 + $0x90] sm:$0xff]   ;;  %v17393_v4 = vld [vmem:[%s21726_s9 + $0x98] sm:$0xff]  }
 0x987   :  { %v3476_v10 = vmul.f32 %v18457_v46, %v20327_v42  ;;  %v20384_v42 = vadd.f32 %v3511_v15, %v3495_v58 }
 0x988   :  { %v3497_v52 = vmul.f32 %v3485_v41, %v3475_v56  ;;  %v3496_v44 = vmul.f32 %v3481_v45, %v3474_v60 }
 0x989   :  { %v3498_v19 = vmul.f32 %v3489_v12, %v3476_v10 }
 0x98a   :  { %v20351_v5 = vadd.f32 %v3507_v57, %v3497_v52  ;;  %v20355_v49 = vadd.f32 %v3503_v51, %v3496_v44  ;;  %v3814_v51 = vld [vmem:[#allocation32] sm:$0x3] }
 0x98b   :  { %v20382_v48 = vadd.f32 %v3511_v15, %v3498_v19  ;;  %v3819_v56 = vrot.slane %v3814_v51, %v20096_v47 }
 0x98c   :  { %v3571_v3 = vpack.c.bf16 %v20351_v5, %v20349_v26  ;;  %v3570_v2 = vpack.c.bf16 %v20355_v49, %v20353_v0 }
 0x98d   :  { %v3572_v17 = vpack.c.bf16 %v20382_v48, %v20384_v42 }
 0x98e   :  { %3755 = vmatprep.mubr.bf16.mxu1 %v3571_v3 }
 0x98f   :  { %3756 = vmatmul.mubr.bf16.vlgmr.msra.gmra.mrb[20].mxu1 %v3570_v2 }
 0x990   :  { %16442 = vmatpush3.bf16.msra.mxu1 %v17390_v8  ;;  %16457 = vmatprep.mubr.msk.bf16.mxu1 %vm19587_vm0, %v19585_v35 }
 0x991   :  { %16443 = vmatprep.subr.bf16.mxu1 %v19585_v35 }
 0x994   :  { %16444 = vmatpush3.bf16.msra.mxu1 %v17391_v9  ;;  %v3823_v9 = vrot.slane %v3814_v51, %v20099_v50 }
 0x995   :  { %16445 = vmatprep.subr.bf16.mxu1 %v19585_v35 }
 0x998   :  { %16446 = vmatpush3.bf16.msra.mxu1 %v17392_v14 }
 0x999   :  { %16447 = vmatprep.subr.bf16.mxu1 %v19585_v35 }
 0x99c   :  { %16448 = vmatpush3.bf16.msra.mxu1 %v17393_v4 }
 0x99d   :  { %16449 = vmatprep.subr.bf16.mxu1 %v19585_v35 }
 0x9a0   :  { %16450 = vmatpush3.bf16.msra.mxu1 %v17394_v55 }
 0x9a1   :  { %16451 = vmatprep.subr.bf16.mxu1 %v19585_v35 }
 0x9a4   :  { %16452 = vmatpush3.bf16.msra.mxu1 %v17395_v6 }
 0x9a5   :  { %16453 = vmatprep.subr.bf16.mxu1 %v19585_v35 }
 0x9a8   :  { %16454 = vmatpush3.bf16.msra.mxu1 %v17396_v53 }
 0x9a9   :  { %16455 = vmatprep.subr.bf16.mxu1 %v19585_v35 }
 0x9ac   :  { %16456 = vmatpush3.bf16.msra.mxu1 %v17397_v16 }
 0x9ad   :  { %16467 = vmatprep.subr.bf16.mxu1 %v19585_v35 }
 0x9af   :  { %16458 = vmatmul.mubr.bf16.vlgmr.msra.gmra.mrb[24].mxu1 %v3572_v17 }
 0x9b0   :  { %16469 = vmatprep.mubr.msk.bf16.mxu1 %vm19587_vm0, %v19585_v35 }
 0xa62   :  { %v15838_v22 = vpop.f32.mrb[20].mxu1 }
 0xa63   :  { %v15839_v13 = vpop.f32.mrb[21].mxu1 }
 0xa64   :  { %v15840_v23 = vadd.f32 %v15839_v13, %v15838_v22  ;;  %v15841_v54 = vpop.f32.mrb[22].mxu1 }
 0xa65   :  { %v15842_v24 = vpop.f32.mrb[23].mxu1 }
 0xa66   :  { %v15843_v25 = vadd.f32 %v15842_v24, %v15841_v54  ;;  %v3758_v32 = vadd.f32 %v15840_v23, %v14545_v30 }
 0xa68   :  { %v3761_v41 = vadd.f32 %v15843_v25, %v14545_v30 }
 0xa82   :  { %v3798_v33 = vpop.f32.mrb[24].mxu1 }
 0xa83   :  { %v20401_v34 = vadd.f32 %v3798_v33, %v3758_v32  ;;  %v16459_v40 = vpop.f32.mrb[25].mxu1 }
 0xa84   :  { %v3801_v43 = vpop.f32.mrb[26].mxu1 }
 0xa85   :  { %v20403_v45 = vadd.f32 %v3801_v43, %v3761_v41  ;;  %v16460_v46 = vpop.f32.mrb[27].mxu1 }
 0xa87   :  { %v3805_v57 = vpack.c.bf16 %v20403_v45, %v20401_v34 }
 0xa89   :  { %14578 = vmatmul.mubr.msk.bf16.vlgmr.msra.gmra.mrb[16].mxu0 %vm3866_vm1, %v3805_v57 }
 0xa8a   :  { %16463 = vmatprep.mubr.msk.bf16.mxu0 %vm19587_vm0, %v19585_v35 }
 0xb5c   :  { %v3904_v59 = vpop.f32.mrb[16].mxu0 }
 0xb5d   :  { %v3905_v60 = vadd.f32 %v3904_v59, %v3819_v56  ;;  %v3906_v63 = vpop.f32.mrb[17].mxu0 }
 0xb5e   :  { %v3908_v52 = vpop.f32.mrb[18].mxu0  ;;  %v3907_v4 = vadd.f32 %v3906_v63, %v3823_v9 }
 0xb5f   :  { %v20411_v44 = vpack.c.bf16 %v3905_v60, %v3905_v60  ;;  %v3909_v3 = vadd.f32 %v3908_v52, %v3819_v56  ;;  %v3910_v2 = vpop.f32.mrb[19].mxu0 }
 0xb60   :  { %v3911_v10 = vadd.f32 %v3910_v2, %v3823_v9  ;;  %v20423_v12 = vpack.c.bf16 %v3907_v4, %v3907_v4 }
 0xb61   :  { %v20413_v8 = vpack.c.bf16 %v3909_v3, %v3909_v3  ;;  %3918 = vrot.lane.b32.xlu1 %v20411_v44, %s19574_s26 }
 0xb62   :  { %v20426_v53 = vpack.c.bf16 %v3911_v10, %v3911_v10  ;;  %v4046_v19 = vsel %vm4044_vm3, %v20423_v12, 0 }
 0xb63   :  { %3968 = vrot.lane.b32.xlu0 %v20413_v8, %s19574_s26  ;;  %s19589_s26 = smov 112  }
 0xb64   :  { %v4092_v58 = vsel %vm4044_vm3, %v20426_v53, 0 }
 0xbd3   :  { %v3919_v14 = vpop.permute.xlu1 %3918 }
 0xbd4   :  { %v3925_v55 = vsel %vm3920_vm2, %v3919_v14, 0 }
 0xbd5   :  { %v3969_v6 = vpop.permute.xlu0 %3968  ;;  %16462 = vmatpush3.bf16.xpose.msra.mxu0 %v3925_v55 }
 0xbd6   :  { %v3974_v11 = vsel %vm3920_vm2, %v3969_v6, 0  ;;  %16473 = vmatprep.subr.bf16.mxu0 %v19585_v35 }
 0xbd7   :  { %16468 = vmatpush3.bf16.xpose.msra.mxu1 %v3974_v11 }
 0xbd8   :  { %16479 = vmatprep.subr.bf16.mxu1 %v19585_v35 }
 0xbdc   :  { %16464 = vmatmul.mubr.msk.bf16.vlgmr.msra.gmra.mrb[20].mxu0 %vm3920_vm2, %v20411_v44 }
 0xbdd   :  { %16474 = vmatpush3.bf16.msra.mxu0 %v4046_v19  ;;  %16475 = vmatprep.mubr.msk.bf16.mxu0 %vm19587_vm0, %v19585_v35 }
 0xbde   :  { %16470 = vmatmul.mubr.msk.bf16.vlgmr.msra.gmra.mrb[28].mxu1 %vm3920_vm2, %v20413_v8  ;;  %16485 = vmatprep.subr.bf16.mxu0 %v19585_v35 }
 0xbdf   :  { %16480 = vmatpush3.bf16.msra.mxu1 %v4092_v58  ;;  %16481 = vmatprep.mubr.msk.bf16.mxu1 %vm19587_vm0, %v19585_v35 }
 0xbe0   :  { %16491 = vmatprep.subr.bf16.mxu1 %v19585_v35 }
 0xcaf   :  { %v3961_v15 = vpop.f32.mrb[20].mxu0 }
 0xcb0   :  { %v16465_v16 = vpop.f32.mrb[21].mxu0  ;;  %v4017_v17 = vsel %vm4016_vm4, %v3961_v15, -inf }
 0xcb1   :  { %v4010_v20 = vpop.f32.mrb[28].mxu1  ;;  %4018 = vmax.xlane.f32.xlu1 %v4017_v17  ;;  %v3964_v7 = vpop.f32.mrb[22].mxu0 }
 0xcb2   :  { %v16466_v18 = vpop.f32.mrb[23].mxu0  ;;  %v16471_v28 = vpop.f32.mrb[29].mxu1  ;;  %v4020_v21 = vsel %vm4016_vm4, %v4010_v20, -inf }
 0xcb3   :  { %4021 = vmax.xlane.f32.xlu0 %v4020_v21  ;;  %v4013_v61 = vpop.f32.mrb[30].mxu1 }
 0xcb4   :  { %v16472_v1 = vpop.f32.mrb[31].mxu1 }
 0xcc2   :  { %4136 = vrot.lane.b32.xlu1 %v20411_v44, %s19557_s20 }
 0xd3e   :  { %v4019_v62 = vpop.xlane.xlu1 %4018 }
 0xd3f   :  { %v4023_v22 = vsub.f32 %v3961_v15, %v4019_v62 }
 0xd40   :  { %v4022_v13 = vpop.xlane.xlu0 %4021 }
 0xd41   :  { %v4025_v23 = vmul.f32 1.442695, %v4023_v22  ;;  %v4024_v54 = vsub.f32 %v4010_v20, %v4022_v13 }
 0xd42   :  { %v4137_v40 = vpop.permute.xlu1 %4136 }
 0xd43   :  { %18458 = vpow2.f32 %v4025_v23  ;;  %v4027_v24 = vmul.f32 1.442695, %v4024_v54  ;;  %v4142_v63 = vsel %vm3920_vm2, %v4137_v40, 0 }
 0xd45   :  { %18460 = vpow2.f32 %v4027_v24 }
 0xd4d   :  { %v18459_v25 = vpop.eup %18458 }
 0xd4e   :  { %v4029_v30 = vsel %vm4016_vm4, %v18459_v25, 0.0 }
 0xd4f   :  { %v18461_v32 = vpop.eup %18460  ;;  %4030 = vadd.xlane.f32.xlu1 %v4029_v30 }
 0xd50   :  { %v4032_v33 = vsel %vm4016_vm4, %v18461_v32, 0.0 }
 0xd51   :  { %4033 = vadd.xlane.f32.xlu0 %v4032_v33 }
 0xd60   :  { %4134 = vrot.lane.b32.xlu1 %v20411_v44, %s19589_s26 }
 0xd64   :  { %4184 = vrot.lane.b32.xlu1 %v20413_v8, %s19589_s26 }
 0xd67   :  { %4186 = vrot.lane.b32.xlu0 %v20413_v8, %s19557_s20 }
 0xddc   :  { %v4031_v41 = vpop.xlane.xlu1 %4030 }
 0xddd   :  { %18462 = vrcp.f32 %v4031_v41 }
 0xdde   :  { %v4034_v43 = vpop.xlane.xlu0 %4033 }
 0xddf   :  { %18464 = vrcp.f32 %v4034_v43 }
 0xde0   :  { %v4135_v2 = vpop.permute.xlu1 %4134 }
 0xde2   :  { %v4187_v60 = vpop.permute.xlu0 %4186 }
 0xde3   :  { %v4192_v3 = vsel %vm3920_vm2, %v4187_v60, 0 }
 0xde4   :  { %v4185_v9 = vpop.permute.xlu1 %4184 }
 0xde7   :  { %v18463_v46 = vpop.eup %18462 }
 0xde8   :  { %v4037_v57 = vmul.f32 %v18463_v46, %v18459_v25 }
 0xde9   :  { %v18465_v51 = vpop.eup %18464 }
 0xdea   :  { %v4038_v56 = vmul.f32 %v18465_v51, %v18461_v32  ;;  %v4039_v59 = vpack.c.bf16 %v4037_v57, %v4037_v57 }
 0xdec   :  { %16476 = vmatmul.mubr.msk.bf16.vlgmr.msra.gmra.mrb[24].mxu0 %vm4016_vm4, %v4039_v59  ;;  %v4040_v52 = vpack.c.bf16 %v4038_v56, %v4038_v56 }
 0xded   :  { %16486 = vmatpush3.bf16.xpose.msra.mxu0 %v4142_v63  ;;  %16487 = vmatprep.mubr.msk.bf16.mxu0 %vm19587_vm0, %v19585_v35 }
 0xdee   :  { %16482 = vmatmul.mubr.msk.bf16.vlgmr.msra.gmra.mrb[32].mxu1 %vm4016_vm4, %v4040_v52  ;;  %16497 = vmatprep.subr.bf16.mxu0 %v19585_v35 }
 0xdef   :  { %16492 = vmatpush3.bf16.xpose.msra.mxu1 %v4192_v3  ;;  %16493 = vmatprep.mubr.msk.bf16.mxu1 %vm19587_vm0, %v19585_v35 }
 0xdf0   :  { %16503 = vmatprep.subr.bf16.mxu1 %v19585_v35 }
 0xdf4   :  { %16488 = vmatmul.mubr.msk.bf16.vlgmr.msra.gmra.mrb[28].mxu0 %vm3920_vm2, %v4135_v2 }
 0xdf5   :  { %16499 = vmatprep.mubr.msk.bf16.mxu0 %vm19587_vm0, %v19585_v35 }
 0xdf6   :  { %16494 = vmatmul.mubr.msk.bf16.vlgmr.msra.gmra.mrb[36].mxu1 %vm3920_vm2, %v4185_v9 }
 0xdf7   :  { %16505 = vmatprep.mubr.msk.bf16.mxu1 %vm19587_vm0, %v19585_v35 }
 0xebf   :  { %v20470_v14 = vpop.f32.mrb[24].mxu0 }
 0xec0   :  { %v16477_v4 = vpop.f32.mrb[25].mxu0 }
 0xec1   :  { %v4085_v55 = vpop.f32.mrb[26].mxu0  ;;  %v20472_v6 = vpop.f32.mrb[32].mxu1 }
 0xec2   :  { %v16478_v10 = vpop.f32.mrb[27].mxu0  ;;  %v16483_v11 = vpop.f32.mrb[33].mxu1 }
 0xec3   :  { %v4131_v19 = vpop.f32.mrb[34].mxu1 }
 0xec4   :  { %v16484_v58 = vpop.f32.mrb[35].mxu1 }
 0xec7   :  { %v4178_v15 = vpop.f32.mrb[28].mxu0 }
 0xec8   :  { %v16489_v16 = vpop.f32.mrb[29].mxu0  ;;  %v4234_v17 = vsel %vm4016_vm4, %v4178_v15, -inf }
 0xec9   :  { %v4228_v20 = vpop.f32.mrb[36].mxu1  ;;  %4235 = vmax.xlane.f32.xlu0 %v4234_v17  ;;  %v4181_v7 = vpop.f32.mrb[30].mxu0 }
 0xeca   :  { %v16490_v18 = vpop.f32.mrb[31].mxu0  ;;  %v16495_v28 = vpop.f32.mrb[37].mxu1  ;;  %v4237_v21 = vsel %vm4016_vm4, %v4228_v20, -inf }
 0xecb   :  { %4238 = vmax.xlane.f32.xlu1 %v4237_v21  ;;  %v4231_v61 = vpop.f32.mrb[38].mxu1 }
 0xecc   :  { %v16496_v1 = vpop.f32.mrb[39].mxu1 }
 0xedc   :  { %4259 = vrot.lane.b32.xlu1 %v20423_v12, %s19589_s26 }
 0xee0   :  { %4358 = vrot.lane.b32.xlu1 %v20411_v44, %s19590_s3 }
 0xee4   :  { %4408 = vrot.lane.b32.xlu1 %v20413_v8, %s19590_s3 }
 0xee8   :  { %4406 = vrot.lane.b32.xlu1 %v20413_v8, %s19591_s28 }
 0xf56   :  { %v4236_v62 = vpop.xlane.xlu0 %4235 }
 0xf57   :  { %v4240_v22 = vsub.f32 %v4178_v15, %v4236_v62 }
 0xf58   :  { %v4239_v13 = vpop.xlane.xlu1 %4238 }
 0xf59   :  { %v4242_v23 = vmul.f32 1.442695, %v4240_v22  ;;  %v4241_v54 = vsub.f32 %v4228_v20, %v4239_v13 }
 0xf5b   :  { %18466 = vpow2.f32 %v4242_v23  ;;  %v4244_v24 = vmul.f32 1.442695, %v4241_v54 }
 0xf5c   :  { %v4260_v25 = vpop.permute.xlu1 %4259 }
 0xf5d   :  { %18468 = vpow2.f32 %v4244_v24  ;;  %v4265_v30 = vsel %vm4044_vm3, %v4260_v25, 0 }
 0xf5e   :  { %16498 = vmatpush3.bf16.msra.mxu0 %v4265_v30 }
 0xf5f   :  { %16509 = vmatprep.subr.bf16.mxu0 %v19585_v35 }
 0xf60   :  { %v4359_v59 = vpop.permute.xlu1 %4358 }
 0xf61   :  { %v4364_v3 = vsel %vm3920_vm2, %v4359_v59, 0 }
 0xf64   :  { %v4409_v9 = vpop.permute.xlu1 %4408 }
 0xf65   :  { %v18467_v32 = vpop.eup %18466  ;;  %v4414_v55 = vsel %vm3920_vm2, %v4409_v9, 0 }
 0xf66   :  { %v4246_v33 = vsel %vm4016_vm4, %v18467_v32, 0.0 }
 0xf67   :  { %v18469_v40 = vpop.eup %18468  ;;  %4247 = vadd.xlane.f32.xlu0 %v4246_v33 }
 0xf68   :  { %v4249_v41 = vsel %vm4016_vm4, %v18469_v40, 0.0  ;;  %v4407_v11 = vpop.permute.xlu1 %4406 }
 0xf6b   :  { %4250 = vadd.xlane.f32.xlu0 %v4249_v41 }
 0xf81   :  { %4308 = vrot.lane.b32.xlu0 %v20426_v53, %s19589_s26 }
 0xf85   :  { %4356 = vrot.lane.b32.xlu0 %v20411_v44, %s19591_s28 }
 0xff4   :  { %v4248_v43 = vpop.xlane.xlu0 %4247 }
 0xff5   :  { %18470 = vrcp.f32 %v4248_v43 }
 0xff8   :  { %v4251_v46 = vpop.xlane.xlu0 %4250 }
 0xff9   :  { %18472 = vrcp.f32 %v4251_v46 }
 0xffc   :  { %v4309_v57 = vpop.permute.xlu0 %4308 }
 0xffd   :  { %v4314_v51 = vsel %vm4044_vm3, %v4309_v57, 0 }
 0xffe   :  { %16504 = vmatpush3.bf16.msra.mxu1 %v4314_v51 }
 0xfff   :  { %v18471_v56 = vpop.eup %18470  ;;  %16515 = vmatprep.subr.bf16.mxu1 %v19585_v35 }
0x1000   :  { %v4254_v60 = vmul.f32 %v18471_v56, %v18467_v32  ;;  %v4357_v10 = vpop.permute.xlu0 %4356 }
0x1002   :  { %v4256_v63 = vpack.c.bf16 %v4254_v60, %v4254_v60 }
0x1003   :  { %v18473_v52 = vpop.eup %18472 }
0x1004   :  { %v4255_v2 = vmul.f32 %v18473_v52, %v18469_v40  ;;  %16500 = vmatmul.mubr.msk.bf16.vlgmr.msra.gmra.mrb[32].mxu0 %vm4016_vm4, %v4256_v63 }
0x1005   :  { %16510 = vmatpush3.bf16.xpose.msra.mxu0 %v4364_v3  ;;  %16511 = vmatprep.mubr.msk.bf16.mxu0 %vm19587_vm0, %v19585_v35 }
0x1006   :  { %v4257_v4 = vpack.c.bf16 %v4255_v2, %v4255_v2  ;;  %16521 = vmatprep.subr.bf16.mxu0 %v19585_v35 }
0x1008   :  { %16506 = vmatmul.mubr.msk.bf16.vlgmr.msra.gmra.mrb[40].mxu1 %vm4016_vm4, %v4257_v4 }
0x1009   :  { %16516 = vmatpush3.bf16.xpose.msra.mxu1 %v4414_v55  ;;  %16517 = vmatprep.mubr.msk.bf16.mxu1 %vm19587_vm0, %v19585_v35 }
0x100a   :  { %16527 = vmatprep.subr.bf16.mxu1 %v19585_v35 }
0x100c   :  { %16512 = vmatmul.mubr.msk.bf16.vlgmr.msra.gmra.mrb[36].mxu0 %vm3920_vm2, %v4357_v10 }
0x100d   :  { %16523 = vmatprep.mubr.msk.bf16.mxu0 %vm19587_vm0, %v19585_v35 }
0x1010   :  { %16518 = vmatmul.mubr.msk.bf16.vlgmr.msra.gmra.mrb[44].mxu1 %vm3920_vm2, %v4407_v11 }
0x1011   :  { %16529 = vmatprep.mubr.msk.bf16.mxu1 %vm19587_vm0, %v19585_v35 }
0x10d7   :  { %v20510_v19 = vpop.f32.mrb[32].mxu0 }
0x10d8   :  { %v16501_v58 = vpop.f32.mrb[33].mxu0 }
0x10d9   :  { %v4304_v15 = vpop.f32.mrb[34].mxu0 }
0x10da   :  { %v16502_v16 = vpop.f32.mrb[35].mxu0 }
0x10db   :  { %v20512_v17 = vpop.f32.mrb[40].mxu1 }
0x10dc   :  { %v17004_v20 = vpack.i.bf16 %v20512_v17, %v20510_v19  ;;  %v16507_v7 = vpop.f32.mrb[41].mxu1 }
0x10dd   :  { %v4353_v18 = vpop.f32.mrb[42].mxu1 }
0x10de   :  { %v16508_v28 = vpop.f32.mrb[43].mxu1 }
0x10df   :  { %v4400_v21 = vpop.f32.mrb[36].mxu0 }
0x10e0   :  { %v16513_v61 = vpop.f32.mrb[37].mxu0  ;;  %v4456_v1 = vsel %vm4016_vm4, %v4400_v21, -inf }
0x10e1   :  { %4457 = vmax.xlane.f32.xlu0 %v4456_v1  ;;  %v4403_v62 = vpop.f32.mrb[38].mxu0 }
0x10e2   :  { %v16514_v22 = vpop.f32.mrb[39].mxu0 }
0x10e3   :  { %v4450_v13 = vpop.f32.mrb[44].mxu1 }
0x10e4   :  { %v16519_v23 = vpop.f32.mrb[45].mxu1  ;;  %v4459_v54 = vsel %vm4016_vm4, %v4450_v13, -inf }
0x10e5   :  { %4460 = vmax.xlane.f32.xlu1 %v4459_v54  ;;  %v4453_v24 = vpop.f32.mrb[46].mxu1 }
0x10e6   :  { %v16520_v25 = vpop.f32.mrb[47].mxu1 }
0x10f6   :  { %4480 = vrot.lane.b32.xlu1 %v20423_v12, %s19591_s28 }
0x10fa   :  { %4578 = vrot.lane.b32.xlu1 %v20411_v44, %s19592_s19 }
0x10fe   :  { %4628 = vrot.lane.b32.xlu1 %v20413_v8, %s19592_s19 }
0x1102   :  { %4626 = vrot.lane.b32.xlu1 %v20413_v8, %s19593_s17 }
0x116e   :  { %v4458_v30 = vpop.xlane.xlu0 %4457 }
0x116f   :  { %v4462_v32 = vsub.f32 %v4400_v21, %v4458_v30 }
0x1171   :  { %v4464_v33 = vmul.f32 1.442695, %v4462_v32 }
0x1172   :  { %v4461_v40 = vpop.xlane.xlu1 %4460 }
0x1173   :  { %18474 = vpow2.f32 %v4464_v33  ;;  %v4463_v41 = vsub.f32 %v4450_v13, %v4461_v40 }
0x1175   :  { %v4466_v43 = vmul.f32 1.442695, %v4463_v41 }
0x1176   :  { %v4481_v46 = vpop.permute.xlu1 %4480 }
0x1177   :  { %18476 = vpow2.f32 %v4466_v43  ;;  %v4486_v57 = vsel %vm4044_vm3, %v4481_v46, 0 }
0x1178   :  { %16522 = vmatpush3.bf16.msra.mxu0 %v4486_v57 }
0x1179   :  { %16533 = vmatprep.subr.bf16.mxu0 %v19585_v35 }
0x117a   :  { %v4579_v9 = vpop.permute.xlu1 %4578 }
0x117b   :  { %v4584_v11 = vsel %vm3920_vm2, %v4579_v9, 0 }
0x117d   :  { %v18475_v51 = vpop.eup %18474 }
0x117e   :  { %v4468_v56 = vsel %vm4016_vm4, %v18475_v51, 0.0 }
0x117f   :  { %4469 = vadd.xlane.f32.xlu0 %v4468_v56 }
0x1181   :  { %v18477_v59 = vpop.eup %18476 }
0x1182   :  { %v4471_v8 = vsel %vm4016_vm4, %v18477_v59, 0.0 }
0x1183   :  { %4472 = vadd.xlane.f32.xlu0 %v4471_v8 }
0x1199   :  { %4528 = vrot.lane.b32.xlu0 %v20426_v53, %s19591_s28 }
0x119d   :  { %4576 = vrot.lane.b32.xlu0 %v20411_v44, %s19593_s17  ;;  %v4629_v44 = vpop.permute.xlu1 %4628 }
0x119e   :  { %v4634_v16 = vsel %vm3920_vm2, %v4629_v44, 0 }
0x11a1   :  { %v4627_v18 = vpop.permute.xlu1 %4626 }
0x120c   :  { %v4470_v60 = vpop.xlane.xlu0 %4469 }
0x120d   :  { %18478 = vrcp.f32 %v4470_v60 }
0x1210   :  { %v4473_v63 = vpop.xlane.xlu0 %4472 }
0x1211   :  { %18480 = vrcp.f32 %v4473_v63 }
0x1214   :  { %v4529_v52 = vpop.permute.xlu0 %4528 }
0x1215   :  { %v4534_v3 = vsel %vm4044_vm3, %v4529_v52, 0 }
0x1216   :  { %16528 = vmatpush3.bf16.msra.mxu1 %v4534_v3 }
0x1217   :  { %v18479_v2 = vpop.eup %18478  ;;  %16539 = vmatprep.subr.bf16.mxu1 %v19585_v35 }
0x1218   :  { %v4476_v4 = vmul.f32 %v18479_v2, %v18475_v51  ;;  %v4577_v7 = vpop.permute.xlu0 %4576 }
0x121a   :  { %v4478_v55 = vpack.c.bf16 %v4476_v4, %v4476_v4 }
0x121b   :  { %v18481_v10 = vpop.eup %18480 }
0x121c   :  { %v4477_v58 = vmul.f32 %v18481_v10, %v18477_v59  ;;  %16524 = vmatmul.mubr.msk.bf16.vlgmr.msra.gmra.mrb[40].mxu0 %vm4016_vm4, %v4478_v55 }
0x121d   :  { %16534 = vmatpush3.bf16.xpose.msra.mxu0 %v4584_v11  ;;  %16535 = vmatprep.mubr.msk.bf16.mxu0 %vm19587_vm0, %v19585_v35 }
0x121e   :  { %v4479_v15 = vpack.c.bf16 %v4477_v58, %v4477_v58  ;;  %16545 = vmatprep.subr.bf16.mxu0 %v19585_v35 }
0x1220   :  { %16530 = vmatmul.mubr.msk.bf16.vlgmr.msra.gmra.mrb[48].mxu1 %vm4016_vm4, %v4479_v15 }
0x1221   :  { %16540 = vmatpush3.bf16.xpose.msra.mxu1 %v4634_v16  ;;  %16541 = vmatprep.mubr.msk.bf16.mxu1 %vm19587_vm0, %v19585_v35 }
0x1222   :  { %16551 = vmatprep.subr.bf16.mxu1 %v19585_v35 }
0x1224   :  { %16536 = vmatmul.mubr.msk.bf16.vlgmr.msra.gmra.mrb[44].mxu0 %vm3920_vm2, %v4577_v7  ;;  %v17411_v7 = vld [vmem:[#allocation34 + $0x8] sm:$0xff]  }
0x1225   :  { %16547 = vmatprep.mubr.msk.bf16.mxu0 %vm19587_vm0, %v19585_v35 }
0x1228   :  { %16542 = vmatmul.mubr.msk.bf16.vlgmr.msra.gmra.mrb[52].mxu1 %vm3920_vm2, %v4627_v18  ;;  %v17412_v18 = vld [vmem:[#allocation34 + $0x10] sm:$0xff]  }
0x1229   :  { %16553 = vmatprep.mubr.msk.bf16.mxu1 %vm19587_vm0, %v19585_v35 }
0x12ef   :  { %v4522_v28 = vpop.f32.mrb[40].mxu0 }
0x12f0   :  { %v16525_v21 = vpop.f32.mrb[41].mxu0 }
0x12f1   :  { %v4525_v61 = vpop.f32.mrb[42].mxu0 }
0x12f2   :  { %v16526_v1 = vpop.f32.mrb[43].mxu0 }
0x12f3   :  { %v4570_v62 = vpop.f32.mrb[48].mxu1 }
0x12f4   :  { %v17009_v22 = vpack.i.bf16 %v4570_v62, %v4522_v28  ;;  %v16531_v13 = vpop.f32.mrb[49].mxu1  ;;  %v17413_v28 = vld [vmem:[#allocation34 + $0x18] sm:$0xff]  }
0x12f5   :  { %v4573_v23 = vpop.f32.mrb[50].mxu1 }
0x12f6   :  { %v16532_v54 = vpop.f32.mrb[51].mxu1 }
0x12f7   :  { %v4620_v24 = vpop.f32.mrb[44].mxu0 }
0x12f8   :  { %v16537_v25 = vpop.f32.mrb[45].mxu0  ;;  %v4676_v30 = vsel %vm4016_vm4, %v4620_v24, -inf }
0x12f9   :  { %4677 = vmax.xlane.f32.xlu0 %v4676_v30  ;;  %v4623_v32 = vpop.f32.mrb[46].mxu0 }
0x12fa   :  { %v16538_v33 = vpop.f32.mrb[47].mxu0 }
0x12fb   :  { %v4670_v40 = vpop.f32.mrb[52].mxu1 }
0x12fc   :  { %v16543_v41 = vpop.f32.mrb[53].mxu1  ;;  %v4679_v43 = vsel %vm4016_vm4, %v4670_v40, -inf }
0x12fd   :  { %4680 = vmax.xlane.f32.xlu1 %v4679_v43  ;;  %v4673_v46 = vpop.f32.mrb[54].mxu1 }
0x12fe   :  { %v16544_v57 = vpop.f32.mrb[55].mxu1 }
0x130e   :  { %4700 = vrot.lane.b32.xlu1 %v20423_v12, %s19593_s17 }
0x1312   :  { %17005 = vrot.lane.b32.xlu1 %v17004_v20, %s19592_s19 }
0x1316   :  { %17010 = vrot.lane.b32.xlu1 %v17009_v22, %s19590_s3 }
0x1386   :  { %v4678_v51 = vpop.xlane.xlu0 %4677 }
0x1387   :  { %v4682_v56 = vsub.f32 %v4620_v24, %v4678_v51 }
0x1389   :  { %v4684_v59 = vmul.f32 1.442695, %v4682_v56 }
0x138a   :  { %v4681_v8 = vpop.xlane.xlu1 %4680 }
0x138b   :  { %18482 = vpow2.f32 %v4684_v59  ;;  %v4683_v60 = vsub.f32 %v4670_v40, %v4681_v8 }
0x138d   :  { %v4686_v63 = vmul.f32 1.442695, %v4683_v60 }
0x138e   :  { %v4701_v52 = vpop.permute.xlu1 %4700 }
0x138f   :  { %18484 = vpow2.f32 %v4686_v63  ;;  %v4706_v3 = vsel %vm4044_vm3, %v4701_v52, 0 }
0x1390   :  { %16546 = vmatpush3.bf16.msra.mxu0 %v4706_v3  ;;  %v14595_v3 = vld [vmem:[#allocation35] ss:$0 sm:$0xff] }
0x1391   :  { %16557 = vmatprep.subr.bf16.mxu0 %v19585_v35 }
0x1392   :  { %v17006_v25 = vpop.permute.xlu1 %17005 }
0x1393   :  { %v17008_v32 = vunpack.i.h.bf16 %v17006_v25  ;;  %v17007_v33 = vunpack.i.l.bf16 %v17006_v25 }
0x1395   :  { %v18483_v12 = vpop.eup %18482  ;;  %v4821_v46 = vsel %vm3920_vm2, %v20472_v6, %v17008_v32  ;;  %v4820_v57 = vsel %vm3920_vm2, %v20470_v14, %v17007_v33 }
0x1396   :  { %v4688_v19 = vsel %vm4016_vm4, %v18483_v12, 0.0  ;;  %v17011_v30 = vpop.permute.xlu1 %17010 }
0x1397   :  { %4689 = vadd.xlane.f32.xlu0 %v4688_v19  ;;  %v17013_v40 = vunpack.i.h.bf16 %v17011_v30  ;;  %v17012_v41 = vunpack.i.l.bf16 %v17011_v30  ;;  %v4984_v30 = vld [vmem:[#allocation40 + $0xc8] sm:$0xff] }
0x1399   :  { %v18485_v17 = vpop.eup %18484  ;;  %v4824_v59 = vsel %vm4822_vm5, %v4821_v46, %v17013_v40  ;;  %v4823_v8 = vsel %vm4822_vm5, %v4820_v57, %v17012_v41  ;;  %v4991_v41 = vld [vmem:[#allocation40 + $0x100] sm:$0xff]  ;;  %v4992_v46 = vld [vmem:[#allocation40 + $0x108] sm:$0xff] }
0x139a   :  { %v4691_v20 = vsel %vm4016_vm4, %v18485_v17, 0.0 }
0x139b   :  { %4692 = vadd.xlane.f32.xlu0 %v4691_v20 }
0x13b1   :  { %4748 = vrot.lane.b32.xlu0 %v20426_v53, %s19593_s17  ;;  %v17410_v53 = vld [vmem:[#allocation34] sm:$0xff]  }
0x1424   :  { %v4690_v2 = vpop.xlane.xlu0 %4689 }
0x1425   :  { %18486 = vrcp.f32 %v4690_v2 }
0x1428   :  { %v4693_v9 = vpop.xlane.xlu0 %4692 }
0x1429   :  { %18488 = vrcp.f32 %v4693_v9 }
0x142c   :  { %v4749_v4 = vpop.permute.xlu0 %4748 }
0x142d   :  { %v4754_v55 = vsel %vm4044_vm3, %v4749_v4, 0 }
0x142e   :  { %16552 = vmatpush3.bf16.msra.mxu1 %v4754_v55 }
0x142f   :  { %v18487_v10 = vpop.eup %18486 }
0x1430   :  { %v4696_v11 = vmul.f32 %v18487_v10, %v18483_v12 }
0x1432   :  { %v4698_v58 = vpack.c.bf16 %v4696_v11, %v4696_v11 }
0x1433   :  { %v18489_v44 = vpop.eup %18488 }
0x1434   :  { %v4697_v15 = vmul.f32 %v18489_v44, %v18485_v17  ;;  %16548 = vmatmul.mubr.msk.bf16.vlgmr.msra.gmra.mrb[48].mxu0 %vm4016_vm4, %v4698_v58 }
0x1435   :  { %16565 = vmatprep.mubr.msk.bf16.mxu0 %vm19587_vm0, %v19585_v35  ;;  %16558 = vmatpush3.bf16.msra.mxu0 %v17410_v53 }
0x1436   :  { %v4699_v16 = vpack.c.bf16 %v4697_v15, %v4697_v15  ;;  %16559 = vmatprep.subr.bf16.mxu0 %v19585_v35 }
0x1438   :  { %16554 = vmatmul.mubr.msk.bf16.vlgmr.msra.gmra.mrb[56].mxu1 %vm4016_vm4, %v4699_v16 }
0x1439   :  { %5463 = vmatprep.mubr.bf16.mxu1 %v19586_v39  ;;  %16560 = vmatpush3.bf16.msra.mxu0 %v17411_v7 }
0x143a   :  { %16561 = vmatprep.subr.bf16.mxu0 %v19585_v35 }
0x143d   :  { %16562 = vmatpush3.bf16.msra.mxu0 %v17412_v18  ;;  %v4959_v18 = vld [vmem:[#allocation40] sm:$0xff] }
0x143e   :  { %16563 = vmatprep.subr.bf16.mxu0 %v19585_v35 }
0x1441   :  { %16564 = vmatpush3.bf16.msra.mxu0 %v17413_v28  ;;  %v4967_v28 = vld [vmem:[#allocation40 + $0x40] sm:$0xff] }
0x1507   :  { %v4742_v21 = vpop.f32.mrb[48].mxu0 }
0x1508   :  { %v16549_v61 = vpop.f32.mrb[49].mxu0 }
0x1509   :  { %v4745_v1 = vpop.f32.mrb[50].mxu0  ;;  %v14604_v61 = vcombine.high %v4959_v18, %v4967_v28 }
0x150a   :  { %v16550_v62 = vpop.f32.mrb[51].mxu0  ;;  %v4968_v1 = vld [vmem:[#allocation40 + $0x48] sm:$0xff] }
0x150b   :  { %v4790_v22 = vpop.f32.mrb[56].mxu1  ;;  %v14603_v62 = vcombine.low %v4959_v18, %v4967_v28  ;;  %5431 = vmatprep.subr.bf16.mxu1 %v14604_v61  ;;  %v14601_v28 = vld [vmem:[#allocation37] ss:$0 sm:$0xff] }
0x150c   :  { %v17014_v13 = vpack.i.bf16 %v4790_v22, %v4742_v21  ;;  %v16555_v23 = vpop.f32.mrb[57].mxu1  ;;  %v4960_v21 = vld [vmem:[#allocation40 + $0x8] sm:$0xff] }
0x150d   :  { %v4793_v54 = vpop.f32.mrb[58].mxu1  ;;  %v14605_v22 = vcombine.low %v4960_v21, %v4968_v1  ;;  %5432 = vmatpush1.bf16.msra.mxu1 %v14603_v62  ;;  %v4975_v23 = vld [vmem:[#allocation40 + $0x80] sm:$0xff] }
0x150e   :  { %v16556_v24 = vpop.f32.mrb[59].mxu1  ;;  %17015 = vrot.lane.b32.xlu0 %v17014_v13, %s19557_s20  ;;  %v14606_v13 = vcombine.high %v4960_v21, %v4968_v1  ;;  %v4983_v54 = vld [vmem:[#allocation40 + $0xc0] sm:$0xff]  ;;  %s21729_s20 = sld [smem:[#allocation100_spill]] }
0x150f   :  { %v4976_v24 = vld [vmem:[#allocation40 + $0x88] sm:$0xff]  ;;  %v14620_v25 = vcombine.high %v4975_v23, %v4983_v54  ;;  %v14619_v32 = vcombine.low %v4975_v23, %v4983_v54  ;;  %v4977_v23 = vld [vmem:[#allocation40 + $0x90] sm:$0xff] }
0x1510   :  { %5474 = vmatprep.subr.bf16.mxu0 %v14606_v13  ;;  %v14621_v33 = vcombine.low %v4976_v24, %v4984_v30  ;;  %v14622_v40 = vcombine.high %v4976_v24, %v4984_v30  ;;  %v4985_v54 = vld [vmem:[#allocation40 + $0xd0] sm:$0xff]  ;;  %v4978_v24 = vld [vmem:[#allocation40 + $0x98] sm:$0xff] }
0x1511   :  { %5433 = vmatprep.subr.bf16.mxu1 %v14620_v25  ;;  %v4986_v25 = vld [vmem:[#allocation40 + $0xd8] sm:$0xff] }
0x1512   :  { %5434 = vmatpush1.bf16.msra.mxu1 %v14619_v32 }
0x1580   :  { %v17016_v43 = vpop.permute.xlu0 %17015 }
0x1581   :  { %v17018_v51 = vunpack.i.h.bf16 %v17016_v43  ;;  %v17017_v56 = vunpack.i.l.bf16 %v17016_v43  ;;  %v4999_v43 = vld [vmem:[#allocation40 + $0x140] sm:$0xff] }
0x1582   :  { %v14636_v57 = vcombine.high %v4991_v41, %v4999_v43 }
0x1583   :  { %v4827_v60 = vsel %vm4825_vm6, %v4824_v59, %v17018_v51  ;;  %v4826_v63 = vsel %vm4825_vm6, %v4823_v8, %v17017_v56  ;;  %v5000_v51 = vld [vmem:[#allocation40 + $0x148] sm:$0xff]  ;;  %v14635_v56 = vcombine.low %v4991_v41, %v4999_v43  ;;  %v4993_v41 = vld [vmem:[#allocation40 + $0x110] sm:$0xff] }
0x1584   :  { %v4837_v52 = vpack.c.bf16 %v4827_v60, %v4826_v63  ;;  %v14637_v59 = vcombine.low %v4992_v46, %v5000_v51  ;;  %v14638_v8 = vcombine.high %v4992_v46, %v5000_v51  ;;  %5435 = vmatprep.subr.bf16.mxu1 %v14636_v57  ;;  %v5007_v60 = vld [vmem:[#allocation40 + $0x180] sm:$0xff]  ;;  %v5001_v43 = vld [vmem:[#allocation40 + $0x150] sm:$0xff]  ;;  %v4994_v46 = vld [vmem:[#allocation40 + $0x118] sm:$0xff]  ;;  %v14623_v57 = vcombine.low %v4977_v23, %v4985_v54 }
0x1585   :  { %5436 = vmatpush1.bf16.msra.mxu1 %v14635_v56  ;;  %v5015_v63 = vld [vmem:[#allocation40 + $0x1c0] sm:$0xff]  ;;  %v14625_v51 = vcombine.low %v4978_v24, %v4986_v25  ;;  %v14640_v56 = vcombine.high %v4993_v41, %v5001_v43 }
0x1586   :  { %16566 = vmatmul.mubr.msk.bf16.vlgmr.msra.gmra.mrb[52].mxu0 %vm3866_vm1, %v4837_v52  ;;  %v5008_v52 = vld [vmem:[#allocation40 + $0x188] sm:$0xff] }
0x1587   :  { %5506 = vmatprep.mubr.bf16.mxu0 %v19586_v39  ;;  %5475 = vmatpush1.bf16.msra.mxu0 %v14605_v22  ;;  %v14602_v22 = vld [vmem:[#allocation38] ss:$0 sm:$0xff] }
0x1588   :  { %5476 = vmatprep.subr.bf16.mxu0 %v14622_v40  ;;  %v14624_v40 = vcombine.high %v4977_v23, %v4985_v54  ;;  %v5011_v54 = vld [vmem:[#allocation40 + $0x1a0] sm:$0xff] }
0x158b   :  { %5477 = vmatpush1.bf16.msra.mxu0 %v14621_v33 }
0x158c   :  { %5478 = vmatprep.subr.bf16.mxu0 %v14638_v8  ;;  %v5009_v8 = vld [vmem:[#allocation40 + $0x190] sm:$0xff] }
0x158f   :  { %5479 = vmatpush1.bf16.msra.mxu0 %v14637_v59 }
0x1659   :  { %v4905_v12 = vpop.f32.mrb[52].mxu0 }
0x165a   :  { %v4906_v19 = vadd.f32 %v14595_v3, %v4905_v12  ;;  %v16567_v17 = vpop.f32.mrb[53].mxu0  ;;  %v5016_v12 = vld [vmem:[#allocation40 + $0x1c8] sm:$0xff] }
0x165b   :  { %v4908_v20 = vpop.f32.mrb[54].mxu0  ;;  %v14653_v17 = vcombine.low %v5008_v52, %v5016_v12 }
0x165c   :  { %v4909_v6 = vadd.f32 %v14595_v3, %v4908_v20  ;;  %v16568_v2 = vpop.f32.mrb[55].mxu0  ;;  %v4912_v14 = vadd.f32 %v4906_v19, %v20401_v34  ;;  %v14652_v3 = vcombine.high %v5007_v60, %v5015_v63  ;;  %v14651_v19 = vcombine.low %v5007_v60, %v5015_v63  ;;  %v5017_v60 = vld [vmem:[#allocation40 + $0x1d0] sm:$0xff]  ;;  %v5010_v63 = vld [vmem:[#allocation40 + $0x198] sm:$0xff] }
0x165d   :  { %v14654_v20 = vcombine.high %v5008_v52, %v5016_v12  ;;  %v4969_v2 = vld [vmem:[#allocation40 + $0x50] sm:$0xff]  ;;  %v5018_v52 = vld [vmem:[#allocation40 + $0x1d8] sm:$0xff] }
0x165e   :  { %v4916_v9 = vsel %vm3866_vm1, %v4912_v14, 0.0  ;;  %v4913_v4 = vadd.f32 %v4909_v6, %v20403_v45  ;;  %5437 = vmatprep.subr.bf16.mxu1 %v14652_v3  ;;  %v4961_v6 = vld [vmem:[#allocation40 + $0x10] sm:$0xff]  ;;  %v14639_v3 = vcombine.low %v4993_v41, %v5001_v43 }
0x165f   :  { %4917 = vadd.xlane.f32.xlu1 %v4916_v9  ;;  %5480 = vmatprep.subr.bf16.mxu0 %v14654_v20  ;;  %v14607_v9 = vcombine.low %v4961_v6, %v4969_v2  ;;  %v4963_v20 = vld [vmem:[#allocation40 + $0x20] sm:$0xff] }
0x1660   :  { %v4919_v55 = vsel %vm3866_vm1, %v4913_v4, 0.0  ;;  %5438 = vmatpush1.bf16.msra.mxu1 %v14651_v19  ;;  %5481 = vmatpush1.bf16.msra.mxu0 %v14653_v17  ;;  %v14656_v19 = vcombine.high %v5009_v8, %v5017_v60  ;;  %v14658_v17 = vcombine.high %v5010_v63, %v5018_v52 }
0x1661   :  { %4920 = vadd.xlane.f32.xlu0 %v4919_v55  ;;  %v4970_v55 = vld [vmem:[#allocation40 + $0x58] sm:$0xff] }
0x16ec   :  { %v4918_v10 = vpop.xlane.xlu1 %4917 }
0x16ed   :  { %v4923_v11 = vmul.f32 0.015625, %v4918_v10 }
0x16ee   :  { %v4921_v58 = vpop.xlane.xlu0 %4920 }
0x16ef   :  { %v20587_v44 = vsub.f32 %v4912_v14, %v4923_v11  ;;  %v4924_v15 = vmul.f32 0.015625, %v4921_v58  ;;  %v4962_v14 = vld [vmem:[#allocation40 + $0x18] sm:$0xff] }
0x16f0   :  { %v14609_v10 = vcombine.low %v4962_v14, %v4970_v55  ;;  %v14610_v11 = vcombine.high %v4962_v14, %v4970_v55  ;;  %v4972_v14 = vld [vmem:[#allocation40 + $0x68] sm:$0xff] }
0x16f1   :  { %v20589_v16 = vsub.f32 %v4913_v4, %v4924_v15  ;;  %v4927_v53 = vmul.f32 %v20587_v44, %v20587_v44  ;;  %v14608_v4 = vcombine.high %v4961_v6, %v4969_v2  ;;  %v4971_v6 = vld [vmem:[#allocation40 + $0x60] sm:$0xff]  ;;  %v4964_v2 = vld [vmem:[#allocation40 + $0x28] sm:$0xff] }
0x16f2   :  { %5560 = vmatprep.subr.bf16.mxu0 %v14610_v11  ;;  %v14612_v55 = vcombine.high %v4963_v20, %v4971_v6  ;;  %v4979_v11 = vld [vmem:[#allocation40 + $0xa0] sm:$0xff] }
0x16f3   :  { %v4929_v34 = vsel %vm3866_vm1, %v4927_v53, 0.0  ;;  %v4928_v45 = vmul.f32 %v20589_v16, %v20589_v16  ;;  %5517 = vmatprep.subr.bf16.mxu1 %v14608_v4  ;;  %v14657_v4 = vcombine.low %v5010_v63, %v5018_v52  ;;  %v4981_v52 = vld [vmem:[#allocation40 + $0xb0] sm:$0xff] }
0x16f4   :  { %4930 = vadd.xlane.f32.xlu0 %v4929_v34 }
0x16f5   :  { %v4932_v7 = vsel %vm3866_vm1, %v4928_v45, 0.0 }
0x16f6   :  { %4933 = vadd.xlane.f32.xlu1 %v4932_v7 }
0x1781   :  { %v4931_v58 = vpop.xlane.xlu0 %4930 }
0x1782   :  { %v4935_v15 = vmul.f32 0.015625, %v4931_v58  ;;  %v4987_v58 = vld [vmem:[#allocation40 + $0xe0] sm:$0xff] }
0x1783   :  { %v4934_v53 = vpop.xlane.xlu1 %4933 }
0x1784   :  { %v4937_v34 = vadd.f32 1e-05, %v4935_v15  ;;  %v4936_v45 = vmul.f32 0.015625, %v4934_v53  ;;  %v4980_v15 = vld [vmem:[#allocation40 + $0xa8] sm:$0xff] }
0x1785   :  { %v4988_v53 = vld [vmem:[#allocation40 + $0xe8] sm:$0xff] }
0x1786   :  { %18490 = vrsqrt.f32 %v4937_v34  ;;  %v4938_v7 = vadd.f32 1e-05, %v4936_v45  ;;  %v14611_v34 = vcombine.low %v4963_v20, %v4971_v6  ;;  %v14613_v45 = vcombine.low %v4964_v2, %v4972_v14 }
0x1788   :  { %18492 = vrsqrt.f32 %v4938_v7  ;;  %v14628_v7 = vcombine.high %v4979_v11, %v4987_v58 }
0x1790   :  { %v18491_v18 = vpop.eup %18490 }
0x1791   :  { %v4941_v21 = vmul.f32 %v18491_v18, %v20587_v44  ;;  %v14626_v44 = vcombine.high %v4978_v24, %v4986_v25  ;;  %v14630_v18 = vcombine.high %v4980_v15, %v4988_v53  ;;  %v5019_v24 = vld [vmem:[#allocation40 + $0x1e0] sm:$0xff]  ;;  %v5012_v25 = vld [vmem:[#allocation40 + $0x1a8] sm:$0xff] }
0x1792   :  { %v18493_v61 = vpop.eup %18492  ;;  %v14660_v43 = vcombine.high %v5011_v54, %v5019_v24 }
0x1793   :  { %v4949_v1 = vmul.f32 %v14601_v28, %v4941_v21  ;;  %v4942_v62 = vmul.f32 %v18493_v61, %v20589_v16  ;;  %v5002_v16 = vld [vmem:[#allocation40 + $0x158] sm:$0xff]  ;;  %v5003_v21 = vld [vmem:[#allocation40 + $0x160] sm:$0xff]  ;;  %v4996_v61 = vld [vmem:[#allocation40 + $0x128] sm:$0xff] }
0x1794   :  { %v14642_v59 = vcombine.high %v4994_v46, %v5002_v16  ;;  %v14641_v12 = vcombine.low %v4994_v46, %v5002_v16  ;;  %v4965_v16 = vld [vmem:[#allocation40 + $0x30] sm:$0xff] }
0x1795   :  { %v4950_v13 = vmul.f32 %v14601_v28, %v4942_v62  ;;  %v20599_v30 = vadd.f32 %v14602_v22, %v4949_v1  ;;  %v4995_v28 = vld [vmem:[#allocation40 + $0x120] sm:$0xff]  ;;  %v5004_v1 = vld [vmem:[#allocation40 + $0x168] sm:$0xff]  ;;  %v14627_v62 = vcombine.low %v4979_v11, %v4987_v58 }
0x1796   :  { %v14646_v23 = vcombine.high %v4996_v61, %v5004_v1  ;;  %v14645_v41 = vcombine.low %v4996_v61, %v5004_v1 }
0x1797   :  { %v20601_v32 = vadd.f32 %v14602_v22, %v4950_v13  ;;  %v14629_v22 = vcombine.low %v4980_v15, %v4988_v53  ;;  %v14644_v13 = vcombine.high %v4995_v28, %v5003_v21  ;;  %v5013_v53 = vld [vmem:[#allocation40 + $0x1b0] sm:$0xff] }
0x1799   :  { %v20605_v33 = vpack.c.bf16 %v20601_v32, %v20599_v30 }
0x179b   :  { %14667 = vmatmul.mubr.msk.bf16.vlgmr.msra.gmra.mrb[60].mxu1 %vm3866_vm1, %v20605_v33  ;;  %14668 = vmatmul.mubr.msk.bf16.vlgmr.msra.gmra.mrb[56].mxu0 %vm3866_vm1, %v20605_v33 }
0x179c   :  { %5518 = vmatpush1.bf16.msra.mxu1 %v14607_v9  ;;  %5561 = vmatpush1.bf16.msra.mxu0 %v14609_v10  ;;  %v14655_v9 = vcombine.low %v5009_v8, %v5017_v60  ;;  %v14614_v10 = vcombine.high %v4964_v2, %v4972_v14  ;;  %v4997_v14 = vld [vmem:[#allocation40 + $0x130] sm:$0xff] }
0x179d   :  { %5519 = vmatprep.subr.bf16.mxu1 %v14624_v40  ;;  %5562 = vmatprep.subr.bf16.mxu0 %v14626_v44  ;;  %v5020_v40 = vld [vmem:[#allocation40 + $0x1e8] sm:$0xff]  ;;  %v14643_v44 = vcombine.low %v4995_v28, %v5003_v21 }
0x179e   :  { %5549 = vmatprep.mubr.bf16.mxu1 %v19586_v39  ;;  %5592 = vmatprep.mubr.bf16.mxu0 %v19586_v39  ;;  %v14662_v46 = vcombine.high %v5012_v25, %v5020_v40  ;;  %v14661_v8 = vcombine.low %v5012_v25, %v5020_v40  ;;  %v17419_v25 = vld [vmem:[%s21729_s20 + $0xc8] sm:$0xff]  }
0x179f   :  { %v17420_v40 = vld [vmem:[%s21729_s20 + $0x8] sm:$0xff]  }
0x17a0   :  { %5520 = vmatpush1.bf16.msra.mxu1 %v14623_v57  ;;  %5563 = vmatpush1.bf16.msra.mxu0 %v14625_v51  ;;  %v4973_v57 = vld [vmem:[#allocation40 + $0x70] sm:$0xff]  ;;  %v4966_v51 = vld [vmem:[#allocation40 + $0x38] sm:$0xff] }
0x17a1   :  { %5521 = vmatprep.subr.bf16.mxu1 %v14640_v56  ;;  %5564 = vmatprep.subr.bf16.mxu0 %v14642_v59  ;;  %v4974_v56 = vld [vmem:[#allocation40 + $0x78] sm:$0xff]  ;;  %v14659_v59 = vcombine.low %v5011_v54, %v5019_v24  ;;  %v14616_v60 = vcombine.high %v4965_v16, %v4973_v57 }
0x17a2   :  { %v14618_v63 = vcombine.high %v4966_v51, %v4974_v56  ;;  %v14617_v20 = vcombine.low %v4966_v51, %v4974_v56  ;;  %v17417_v54 = vld [vmem:[%s21729_s20 + $0x80] sm:$0xff]   ;;  %v17418_v24 = vld [vmem:[%s21729_s20 + $0x48] sm:$0xff]   ;;  %v17428_v51 = vld [vmem:[%s21729_s20 + $0x18] sm:$0xff]  }
0x17a3   :  { %v17429_v56 = vld [vmem:[%s21729_s20 + $0x98] sm:$0xff]  }
0x17a4   :  { %5522 = vmatpush1.bf16.msra.mxu1 %v14639_v3  ;;  %5565 = vmatpush1.bf16.msra.mxu0 %v14641_v12  ;;  %v4989_v3 = vld [vmem:[#allocation40 + $0xf0] sm:$0xff]  ;;  %v4982_v12 = vld [vmem:[#allocation40 + $0xb8] sm:$0xff] }
0x17a5   :  { %5523 = vmatprep.subr.bf16.mxu1 %v14656_v19  ;;  %5566 = vmatprep.subr.bf16.mxu0 %v14658_v17  ;;  %v4990_v19 = vld [vmem:[#allocation40 + $0xf8] sm:$0xff]  ;;  %v14615_v17 = vcombine.low %v4965_v16, %v4973_v57  ;;  %v14632_v6 = vcombine.high %v4981_v52, %v4989_v3  ;;  %v17425_v16 = vld [vmem:[%s21729_s20 + $0x90] sm:$0xff]   ;;  %v17427_v57 = vld [vmem:[%s21729_s20 + $0xd8] sm:$0xff]  }
0x17a6   :  { %v14634_v2 = vcombine.high %v4982_v12, %v4990_v19  ;;  %v14633_v11 = vcombine.low %v4982_v12, %v4990_v19  ;;  %v17436_v12 = vld [vmem:[%s21729_s20 + $0x28] sm:$0xff]  }
0x17a7   :  { %v17437_v19 = vld [vmem:[%s21729_s20 + $0xa8] sm:$0xff]  }
0x17a8   :  { %5524 = vmatpush1.bf16.msra.mxu1 %v14655_v9  ;;  %5567 = vmatpush1.bf16.msra.mxu0 %v14657_v4  ;;  %v5005_v9 = vld [vmem:[#allocation40 + $0x170] sm:$0xff]  ;;  %v4998_v4 = vld [vmem:[#allocation40 + $0x138] sm:$0xff] }
0x17a9   :  { %5603 = vmatprep.subr.bf16.mxu1 %v14612_v55  ;;  %5646 = vmatprep.subr.bf16.mxu0 %v14614_v10  ;;  %v5006_v55 = vld [vmem:[#allocation40 + $0x178] sm:$0xff]  ;;  %v14631_v10 = vcombine.low %v4981_v52, %v4989_v3  ;;  %v14648_v58 = vcombine.high %v4997_v14, %v5005_v9 }
0x17aa   :  { %v14650_v15 = vcombine.high %v4998_v4, %v5006_v55  ;;  %v14649_v28 = vcombine.low %v4998_v4, %v5006_v55  ;;  %v17434_v52 = vld [vmem:[%s21729_s20 + $0x68] sm:$0xff]   ;;  %v17444_v4 = vld [vmem:[%s21729_s20 + $0x38] sm:$0xff]  }
0x17ab   :  { %14669 = vmatmul.mubr.msk.bf16.vlgmr.msra.gmra.mrb[64].mxu1 %vm3866_vm1, %v20605_v33  ;;  %14670 = vmatmul.mubr.msk.bf16.vlgmr.msra.gmra.mrb[60].mxu0 %vm3866_vm1, %v20605_v33  ;;  %v17435_v3 = vld [vmem:[%s21729_s20 + $0xe8] sm:$0xff]   ;;  %v17445_v55 = vld [vmem:[%s21729_s20 + $0xb8] sm:$0xff]  }
0x17ac   :  { %5604 = vmatpush1.bf16.msra.mxu1 %v14611_v34  ;;  %5647 = vmatpush1.bf16.msra.mxu0 %v14613_v45  ;;  %v5021_v34 = vld [vmem:[#allocation40 + $0x1f0] sm:$0xff]  ;;  %v5014_v45 = vld [vmem:[#allocation40 + $0x1b8] sm:$0xff] }
0x17ad   :  { %5605 = vmatprep.subr.bf16.mxu1 %v14628_v7  ;;  %5648 = vmatprep.subr.bf16.mxu0 %v14630_v18  ;;  %v5022_v7 = vld [vmem:[#allocation40 + $0x1f8] sm:$0xff]  ;;  %v14647_v18 = vcombine.low %v4997_v14, %v5005_v9  ;;  %v14664_v21 = vcombine.high %v5013_v53, %v5021_v34  ;;  %v14663_v1 = vcombine.low %v5013_v53, %v5021_v34  ;;  %v17442_v14 = vld [vmem:[%s21729_s20 + $0x78] sm:$0xff]   ;;  %v5023_v34 = vld [vmem:[#allocation41] sm:$0xff] }
0x17ae   :  { %5635 = vmatprep.mubr.bf16.mxu1 %v19586_v39  ;;  %5678 = vmatprep.mubr.bf16.mxu0 %v19586_v39  ;;  %v14666_v61 = vcombine.high %v5014_v45, %v5022_v7  ;;  %v17443_v9 = vld [vmem:[%s21729_s20 + $0xf8] sm:$0xff]  }
0x17b0   :  { %5606 = vmatpush1.bf16.msra.mxu1 %v14627_v62  ;;  %5649 = vmatpush1.bf16.msra.mxu0 %v14629_v22  ;;  %v14665_v62 = vcombine.low %v5014_v45, %v5022_v7  ;;  %v17414_v22 = vld [vmem:[%s21729_s20 + $0x40] sm:$0xff]   ;;  %v5031_v45 = vrot.slane %v5023_v34, %v20096_v47  ;;  %v5039_v7 = vrot.slane %v5023_v34, %v20091_v38 }
0x17b1   :  { %5607 = vmatprep.subr.bf16.mxu1 %v14644_v13  ;;  %5650 = vmatprep.subr.bf16.mxu0 %v14646_v23  ;;  %v17415_v13 = vld [vmem:[%s21729_s20 + $0xc0] sm:$0xff]  }
0x17b2   :  { %v17416_v23 = vld [vmem:[%s21729_s20] sm:$0xff]  }
0x17b4   :  { %5608 = vmatpush1.bf16.msra.mxu1 %v14643_v44  ;;  %5651 = vmatpush1.bf16.msra.mxu0 %v14645_v41  ;;  %v17421_v44 = vld [vmem:[%s21729_s20 + $0x88] sm:$0xff]   ;;  %v17422_v41 = vld [vmem:[%s21729_s20 + $0x50] sm:$0xff]  }
0x17b5   :  { %5609 = vmatprep.subr.bf16.mxu1 %v14660_v43  ;;  %5652 = vmatprep.subr.bf16.mxu0 %v14662_v46  ;;  %v17423_v43 = vld [vmem:[%s21729_s20 + $0xd0] sm:$0xff]  }
0x17b6   :  { %v17424_v46 = vld [vmem:[%s21729_s20 + $0x10] sm:$0xff]  }
0x17b8   :  { %5610 = vmatpush1.bf16.msra.mxu1 %v14659_v59  ;;  %5653 = vmatpush1.bf16.msra.mxu0 %v14661_v8  ;;  %v17430_v59 = vld [vmem:[%s21729_s20 + $0x60] sm:$0xff]  }
0x17b9   :  { %5689 = vmatprep.subr.bf16.mxu1 %v14616_v60  ;;  %5732 = vmatprep.subr.bf16.mxu0 %v14618_v63  ;;  %v17431_v8 = vld [vmem:[%s21729_s20 + $0xe0] sm:$0xff]  }
0x17ba   :  { %v17432_v60 = vld [vmem:[%s21729_s20 + $0x20] sm:$0xff]  }
0x17bb   :  { %14671 = vmatmul.mubr.msk.bf16.vlgmr.msra.gmra.mrb[68].mxu1 %vm3866_vm1, %v20605_v33  ;;  %14672 = vmatmul.mubr.msk.bf16.vlgmr.msra.gmra.mrb[64].mxu0 %vm3866_vm1, %v20605_v33  ;;  %v17433_v63 = vld [vmem:[%s21729_s20 + $0xa0] sm:$0xff]  }
0x17bc   :  { %5690 = vmatpush1.bf16.msra.mxu1 %v14615_v17  ;;  %5733 = vmatpush1.bf16.msra.mxu0 %v14617_v20  ;;  %v17438_v17 = vld [vmem:[%s21729_s20 + $0x70] sm:$0xff]  }
0x17bd   :  { %5691 = vmatprep.subr.bf16.mxu1 %v14632_v6  ;;  %5734 = vmatprep.subr.bf16.mxu0 %v14634_v2  ;;  %v17439_v20 = vld [vmem:[%s21729_s20 + $0xf0] sm:$0xff]  }
0x17be   :  { %5721 = vmatprep.mubr.bf16.mxu1 %v19586_v39  ;;  %5764 = vmatprep.mubr.bf16.mxu0 %v19586_v39  ;;  %v17440_v6 = vld [vmem:[%s21729_s20 + $0x30] sm:$0xff]  }
0x17bf   :  { %v17441_v2 = vld [vmem:[%s21729_s20 + $0xb0] sm:$0xff]  }
0x17c0   :  { %5692 = vmatpush1.bf16.msra.mxu1 %v14631_v10  ;;  %5735 = vmatpush1.bf16.msra.mxu0 %v14633_v11  ;;  %v17446_v10 = vld [vmem:[%s21729_s20 + $0x140] sm:$0xff]  }
0x17c1   :  { %5693 = vmatprep.subr.bf16.mxu1 %v14648_v58  ;;  %5736 = vmatprep.subr.bf16.mxu0 %v14650_v15  ;;  %v17447_v11 = vld [vmem:[%s21729_s20 + $0x1c0] sm:$0xff]   ;;  %v5054_v58 = vsub.s32 6, %v20088_v37  ;;  %v20664_v15 = vld [vmem:[#allocation41 + $0x8] sm:$0xff] }
0x17c3   :  { %v20667_v53 = vrot.slane %v20664_v15, %v5054_v58 }
0x17c4   :  { %5694 = vmatpush1.bf16.msra.mxu1 %v14647_v18  ;;  %5737 = vmatpush1.bf16.msra.mxu0 %v14649_v28  ;;  %v5035_v18 = vrot.slane %v5023_v34, %v20099_v50  ;;  %v5043_v28 = vrot.slane %v5023_v34, %v20141_v27 }
0x17c5   :  { %5695 = vmatprep.subr.bf16.mxu1 %v14664_v21  ;;  %5738 = vmatprep.subr.bf16.mxu0 %v14666_v61 }
0x17c8   :  { %5696 = vmatpush1.bf16.msra.mxu1 %v14663_v1  ;;  %5739 = vmatpush1.bf16.msra.mxu0 %v14665_v62 }
0x17c9   :  { %15890 = vmatprep.subr.bf16.mxu1 %v17414_v22  ;;  %15912 = vmatprep.subr.bf16.mxu0 %v17415_v13 }
0x17cb   :  { %14673 = vmatmul.mubr.msk.bf16.vlgmr.msra.gmra.mrb[72].mxu1 %vm3866_vm1, %v20605_v33  ;;  %14674 = vmatmul.mubr.msk.bf16.vlgmr.msra.gmra.mrb[68].mxu0 %vm3866_vm1, %v20605_v33  ;;  %v17426_v33 = vld [vmem:[%s21729_s20 + $0x58] sm:$0xff]  }
0x17cc   :  { %15891 = vmatpush3.bf16.msra.mxu1 %v17416_v23  ;;  %15913 = vmatpush3.bf16.msra.mxu0 %v17417_v54 }
0x17cd   :  { %15892 = vmatprep.subr.bf16.mxu1 %v17418_v24  ;;  %15914 = vmatprep.subr.bf16.mxu0 %v17419_v25 }
0x17d0   :  { %15893 = vmatpush3.bf16.msra.mxu1 %v17420_v40  ;;  %15915 = vmatpush3.bf16.msra.mxu0 %v17421_v44 }
0x17d1   :  { %15894 = vmatprep.subr.bf16.mxu1 %v17422_v41  ;;  %15916 = vmatprep.subr.bf16.mxu0 %v17423_v43 }
0x17d4   :  { %15895 = vmatpush3.bf16.msra.mxu1 %v17424_v46  ;;  %15917 = vmatpush3.bf16.msra.mxu0 %v17425_v16 }
0x17d5   :  { %15896 = vmatprep.subr.bf16.mxu1 %v17426_v33  ;;  %15918 = vmatprep.subr.bf16.mxu0 %v17427_v57 }
0x17d8   :  { %15897 = vmatpush3.bf16.msra.mxu1 %v17428_v51  ;;  %15919 = vmatpush3.bf16.msra.mxu0 %v17429_v56 }
0x17d9   :  { %15898 = vmatprep.subr.bf16.mxu1 %v17430_v59  ;;  %15920 = vmatprep.subr.bf16.mxu0 %v17431_v8 }
0x17dc   :  { %15899 = vmatpush3.bf16.msra.mxu1 %v17432_v60  ;;  %15921 = vmatpush3.bf16.msra.mxu0 %v17433_v63 }
0x17dd   :  { %15900 = vmatprep.subr.bf16.mxu1 %v17434_v52  ;;  %15922 = vmatprep.subr.bf16.mxu0 %v17435_v3 }
0x17e0   :  { %15901 = vmatpush3.bf16.msra.mxu1 %v17436_v12  ;;  %15923 = vmatpush3.bf16.msra.mxu0 %v17437_v19 }
0x17e1   :  { %15902 = vmatprep.subr.bf16.mxu1 %v17438_v17  ;;  %15924 = vmatprep.subr.bf16.mxu0 %v17439_v20  ;;  %v17448_v17 = vld [vmem:[%s21729_s20 + $0x100] sm:$0xff]  }
0x17e2   :  { %v17449_v20 = vld [vmem:[%s21729_s20 + $0x180] sm:$0xff]  }
0x17e4   :  { %15903 = vmatpush3.bf16.msra.mxu1 %v17440_v6  ;;  %15925 = vmatpush3.bf16.msra.mxu0 %v17441_v2  ;;  %v17450_v6 = vld [vmem:[%s21729_s20 + $0x148] sm:$0xff]  }
0x17e5   :  { %15904 = vmatprep.subr.bf16.mxu1 %v17442_v14  ;;  %15926 = vmatprep.subr.bf16.mxu0 %v17443_v9  ;;  %v17451_v2 = vld [vmem:[%s21729_s20 + $0x1c8] sm:$0xff]   ;;  %v5058_v14 = vsub.s32 7, %v20088_v37 }
0x17e6   :  { %v17452_v9 = vld [vmem:[%s21729_s20 + $0x108] sm:$0xff]  }
0x17e8   :  { %15905 = vmatpush3.bf16.msra.mxu1 %v17444_v4  ;;  %15927 = vmatpush3.bf16.msra.mxu0 %v17445_v55  ;;  %v17453_v4 = vld [vmem:[%s21729_s20 + $0x188] sm:$0xff]   ;;  %v5047_v55 = vrot.slane %v5023_v34, %v20144_v29 }
0x17e9   :  { %15934 = vmatprep.subr.bf16.mxu1 %v17446_v10  ;;  %15956 = vmatprep.subr.bf16.mxu0 %v17447_v11  ;;  %v5055_v10 = vrot.slane %v5023_v34, %v5054_v58  ;;  %v17454_v11 = vld [vmem:[%s21729_s20 + $0x150] sm:$0xff]   ;;  %v17458_v58 = vld [vmem:[%s21729_s20 + $0x158] sm:$0xff]  }
0x186e   :  { %v5465_v21 = vpop.f32.mrb[60].mxu1  ;;  %v5508_v61 = vpop.f32.mrb[56].mxu0 }
0x186f   :  { %v5466_v1 = vadd.f32 %v5465_v21, %v5031_v45  ;;  %v5509_v62 = vadd.f32 %v5508_v61, %v5039_v7  ;;  %v5467_v22 = vpop.f32.mrb[61].mxu1  ;;  %v5510_v13 = vpop.f32.mrb[57].mxu0  ;;  %v17456_v61 = vld [vmem:[%s21729_s20 + $0x110] sm:$0xff]  }
0x1870   :  { %v5468_v23 = vadd.f32 %v5467_v22, %v5035_v18  ;;  %v5511_v54 = vadd.f32 %v5510_v13, %v5043_v28  ;;  %v5469_v24 = vpop.f32.mrb[62].mxu1  ;;  %v5512_v25 = vpop.f32.mrb[58].mxu0 }
0x1871   :  { %v5470_v40 = vadd.f32 %v5469_v24, %v5031_v45  ;;  %v5513_v44 = vadd.f32 %v5512_v25, %v5039_v7  ;;  %v5471_v41 = vpop.f32.mrb[63].mxu1  ;;  %v5514_v43 = vpop.f32.mrb[59].mxu0  ;;  %v5775_v33 = vmax.f32 %v5466_v1, 0.0  ;;  %v5777_v57 = vmax.f32 %v5509_v62, 0.0  ;;  %v17455_v45 = vld [vmem:[%s21729_s20 + $0x1d0] sm:$0xff]  }
0x1872   :  { %v5472_v46 = vadd.f32 %v5471_v41, %v5035_v18  ;;  %v5515_v16 = vadd.f32 %v5514_v43, %v5043_v28  ;;  %v5776_v59 = vmax.f32 %v5468_v23, 0.0  ;;  %v5778_v8 = vmax.f32 %v5511_v54, 0.0  ;;  %v17457_v1 = vld [vmem:[%s21729_s20 + $0x190] sm:$0xff]   ;;  %v17459_v54 = vld [vmem:[%s21729_s20 + $0x1d8] sm:$0xff]  }
0x1873   :  { %v5791_v51 = vmax.f32 %v5470_v40, 0.0  ;;  %v5793_v56 = vmax.f32 %v5513_v44, 0.0  ;;  %v5051_v7 = vrot.slane %v5023_v34, %v20147_v31  ;;  %v5059_v18 = vrot.slane %v5023_v34, %v5058_v14 }
0x1874   :  { %v5792_v60 = vmax.f32 %v5472_v46, 0.0  ;;  %v5794_v63 = vmax.f32 %v5515_v16, 0.0 }
0x1875   :  { %v5807_v52 = vpack.c.bf16 %v5791_v51, %v5775_v33  ;;  %v5809_v3 = vpack.c.bf16 %v5793_v56, %v5777_v57  ;;  %v17460_v57 = vld [vmem:[%s21729_s20 + $0x118] sm:$0xff]  }
0x1876   :  { %v5808_v12 = vpack.c.bf16 %v5792_v60, %v5776_v59  ;;  %v5810_v19 = vpack.c.bf16 %v5794_v63, %v5778_v8  ;;  %v17461_v51 = vld [vmem:[%s21729_s20 + $0x198] sm:$0xff]   ;;  %v17462_v63 = vld [vmem:[%s21729_s20 + $0x160] sm:$0xff]  }
0x1878   :  { %6886 = vmatprep.mubr.bf16.mxu1 %v5808_v12  ;;  %6927 = vmatprep.mubr.bf16.mxu0 %v5810_v19 }
0x1879   :  { %6887 = vmatmul.mubr.bf16.vlgmr.msra.gmra.mrb[76].mxu1 %v5807_v52  ;;  %6928 = vmatmul.mubr.bf16.vlgmr.msra.gmra.mrb[72].mxu0 %v5809_v3  ;;  %v17463_v52 = vld [vmem:[%s21729_s20 + $0x1e0] sm:$0xff]  }
0x187a   :  { %15935 = vmatpush3.bf16.msra.mxu1 %v17448_v17  ;;  %15957 = vmatpush3.bf16.msra.mxu0 %v17449_v20 }
0x187b   :  { %15936 = vmatprep.subr.bf16.mxu1 %v17450_v6  ;;  %15958 = vmatprep.subr.bf16.mxu0 %v17451_v2 }
0x187e   :  { %v5551_v28 = vpop.f32.mrb[64].mxu1  ;;  %v5594_v21 = vpop.f32.mrb[60].mxu0  ;;  %15937 = vmatpush3.bf16.msra.mxu1 %v17452_v9  ;;  %15959 = vmatpush3.bf16.msra.mxu0 %v17453_v4  ;;  %v17464_v4 = vld [vmem:[%s21729_s20 + $0x120] sm:$0xff]  }
0x187f   :  { %v5552_v62 = vadd.f32 %v5551_v28, %v5047_v55  ;;  %v5595_v22 = vadd.f32 %v5594_v21, %v5055_v10  ;;  %v5553_v13 = vpop.f32.mrb[65].mxu1  ;;  %v5596_v23 = vpop.f32.mrb[61].mxu0  ;;  %15938 = vmatprep.subr.bf16.mxu1 %v17454_v11  ;;  %15960 = vmatprep.subr.bf16.mxu0 %v17455_v45  ;;  %v17467_v11 = vld [vmem:[%s21729_s20 + $0x1e8] sm:$0xff]   ;;  %v5071_v28 = vrot.slane %v20664_v15, %v20091_v38  ;;  %v17470_v21 = vld [vmem:[%s21729_s20 + $0x170] sm:$0xff]  }
0x1880   :  { %v5554_v24 = vadd.f32 %v5553_v13, %v5051_v7  ;;  %v5597_v25 = vadd.f32 %v5596_v23, %v5059_v18  ;;  %v5555_v40 = vpop.f32.mrb[66].mxu1  ;;  %v5598_v34 = vpop.f32.mrb[62].mxu0  ;;  %v17468_v45 = vld [vmem:[%s21729_s20 + $0x128] sm:$0xff]   ;;  %v17472_v23 = vld [vmem:[%s21729_s20 + $0x130] sm:$0xff]  }
0x1881   :  { %v5556_v44 = vadd.f32 %v5555_v40, %v5047_v55  ;;  %v5599_v41 = vadd.f32 %v5598_v34, %v5055_v10  ;;  %v5557_v43 = vpop.f32.mrb[67].mxu1  ;;  %v5600_v46 = vpop.f32.mrb[63].mxu0  ;;  %v5779_v56 = vmax.f32 %v5552_v62, 0.0  ;;  %v5781_v59 = vmax.f32 %v5595_v22, 0.0  ;;  %v17465_v55 = vld [vmem:[%s21729_s20 + $0x1a0] sm:$0xff]   ;;  %v17466_v10 = vld [vmem:[%s21729_s20 + $0x168] sm:$0xff]  }
0x1882   :  { %v5558_v16 = vadd.f32 %v5557_v43, %v5051_v7  ;;  %v5601_v33 = vadd.f32 %v5600_v46, %v5059_v18  ;;  %15939 = vmatpush3.bf16.msra.mxu1 %v17456_v61  ;;  %15961 = vmatpush3.bf16.msra.mxu0 %v17457_v1  ;;  %v5780_v3 = vmax.f32 %v5554_v24, 0.0  ;;  %v5782_v12 = vmax.f32 %v5597_v25, 0.0  ;;  %v17469_v7 = vld [vmem:[%s21729_s20 + $0x1a8] sm:$0xff]   ;;  %v17471_v61 = vld [vmem:[%s21729_s20 + $0x1f0] sm:$0xff]   ;;  %v17474_v34 = vld [vmem:[%s21729_s20 + $0x178] sm:$0xff]  }
0x1883   :  { %v5795_v8 = vmax.f32 %v5556_v44, 0.0  ;;  %v5797_v60 = vmax.f32 %v5599_v41, 0.0  ;;  %15940 = vmatprep.subr.bf16.mxu1 %v17458_v58  ;;  %15962 = vmatprep.subr.bf16.mxu0 %v17459_v54  ;;  %v5063_v18 = vrot.slane %v20664_v15, %v20096_v47  ;;  %v5067_v1 = vrot.slane %v20664_v15, %v20099_v50  ;;  %v17473_v58 = vld [vmem:[%s21729_s20 + $0x1b0] sm:$0xff]   ;;  %v17475_v44 = vld [vmem:[%s21729_s20 + $0x1f8] sm:$0xff]  }
0x1884   :  { %v5796_v19 = vmax.f32 %v5558_v16, 0.0  ;;  %v5798_v17 = vmax.f32 %v5601_v33, 0.0  ;;  %v5075_v62 = vrot.slane %v20664_v15, %v20141_v27 }
0x1885   :  { %v20694_v20 = vpack.c.bf16 %v5795_v8, %v5779_v56  ;;  %v20696_v6 = vpack.c.bf16 %v5797_v60, %v5781_v59  ;;  %v17476_v8 = vld [vmem:[%s21729_s20 + $0x138] sm:$0xff]  }
0x1886   :  { %v5812_v2 = vpack.c.bf16 %v5796_v19, %v5780_v3  ;;  %v5814_v9 = vpack.c.bf16 %v5798_v17, %v5782_v12  ;;  %15941 = vmatpush3.bf16.msra.mxu1 %v17460_v57  ;;  %15963 = vmatpush3.bf16.msra.mxu0 %v17461_v51  ;;  %v17477_v60 = vld [vmem:[%s21729_s20 + $0x1b8] sm:$0xff]   ;;  %v17478_v19 = vld [vmem:[%s21729_s20 + $0x240] sm:$0xff]  }
0x1887   :  { %15942 = vmatprep.subr.bf16.mxu1 %v17462_v63  ;;  %15964 = vmatprep.subr.bf16.mxu0 %v17463_v52  ;;  %v17479_v17 = vld [vmem:[%s21729_s20 + $0x2c0] sm:$0xff]  }
0x1888   :  { %6968 = vmatprep.mubr.bf16.mxu1 %v5812_v2  ;;  %7009 = vmatprep.mubr.bf16.mxu0 %v5814_v9 }
0x188a   :  { %15943 = vmatpush3.bf16.msra.mxu1 %v17464_v4  ;;  %15965 = vmatpush3.bf16.msra.mxu0 %v17465_v55 }
0x188b   :  { %15944 = vmatprep.subr.bf16.mxu1 %v17466_v10  ;;  %15966 = vmatprep.subr.bf16.mxu0 %v17467_v11 }
0x188e   :  { %v5637_v22 = vpop.f32.mrb[68].mxu1  ;;  %v5680_v13 = vpop.f32.mrb[64].mxu0  ;;  %15945 = vmatpush3.bf16.msra.mxu1 %v17468_v45  ;;  %15967 = vmatpush3.bf16.msra.mxu0 %v17469_v7 }
0x188f   :  { %v5638_v54 = vadd.f32 %v5637_v22, %v5063_v18  ;;  %v5681_v24 = vadd.f32 %v5680_v13, %v5071_v28  ;;  %v5639_v25 = vpop.f32.mrb[69].mxu1  ;;  %v5682_v40 = vpop.f32.mrb[65].mxu0  ;;  %15946 = vmatprep.subr.bf16.mxu1 %v17470_v21  ;;  %15968 = vmatprep.subr.bf16.mxu0 %v17471_v61  ;;  %v17482_v21 = vld [vmem:[%s21729_s20 + $0x248] sm:$0xff]   ;;  %v17486_v13 = vld [vmem:[%s21729_s20 + $0x250] sm:$0xff]  }
0x1890   :  { %v5640_v41 = vadd.f32 %v5639_v25, %v5067_v1  ;;  %v5683_v43 = vadd.f32 %v5682_v40, %v5075_v62  ;;  %v5641_v46 = vpop.f32.mrb[70].mxu1  ;;  %v5684_v27 = vpop.f32.mrb[66].mxu0  ;;  %v17483_v61 = vld [vmem:[%s21729_s20 + $0x2c8] sm:$0xff]  }
0x1891   :  { %v5642_v16 = vadd.f32 %v5641_v46, %v5063_v18  ;;  %v5685_v33 = vadd.f32 %v5684_v27, %v5071_v28  ;;  %v5643_v57 = vpop.f32.mrb[71].mxu1  ;;  %v5686_v51 = vpop.f32.mrb[67].mxu0  ;;  %v5783_v63 = vmax.f32 %v5638_v54, 0.0  ;;  %v5785_v52 = vmax.f32 %v5681_v24, 0.0  ;;  %v17480_v18 = vld [vmem:[%s21729_s20 + $0x200] sm:$0xff]   ;;  %v17485_v22 = vld [vmem:[%s21729_s20 + $0x288] sm:$0xff]  }
0x1892   :  { %v5644_v56 = vadd.f32 %v5643_v57, %v5067_v1  ;;  %v5687_v59 = vadd.f32 %v5686_v51, %v5075_v62  ;;  %15947 = vmatpush3.bf16.msra.mxu1 %v17472_v23  ;;  %15969 = vmatpush3.bf16.msra.mxu0 %v17473_v58  ;;  %v5784_v2 = vmax.f32 %v5640_v41, 0.0  ;;  %v5786_v9 = vmax.f32 %v5683_v43, 0.0  ;;  %v17481_v28 = vld [vmem:[%s21729_s20 + $0x280] sm:$0xff]   ;;  %v17484_v1 = vld [vmem:[%s21729_s20 + $0x208] sm:$0xff]   ;;  %v17487_v23 = vld [vmem:[%s21729_s20 + $0x2d0] sm:$0xff]  }
0x1893   :  { %v5799_v3 = vmax.f32 %v5642_v16, 0.0  ;;  %v5801_v12 = vmax.f32 %v5685_v33, 0.0  ;;  %15948 = vmatprep.subr.bf16.mxu1 %v17474_v34  ;;  %15970 = vmatprep.subr.bf16.mxu0 %v17475_v44  ;;  %v5079_v62 = vrot.slane %v20664_v15, %v20144_v29  ;;  %v17488_v24 = vld [vmem:[%s21729_s20 + $0x210] sm:$0xff]  }
0x1894   :  { %v5800_v4 = vmax.f32 %v5644_v56, 0.0  ;;  %v5802_v55 = vmax.f32 %v5687_v59, 0.0  ;;  %v17489_v44 = vld [vmem:[%s21729_s20 + $0x290] sm:$0xff]   ;;  %v17492_v56 = vld [vmem:[%s21729_s20 + $0x218] sm:$0xff]  }
0x1895   :  { %v20722_v10 = vpack.c.bf16 %v5799_v3, %v5783_v63  ;;  %v20724_v11 = vpack.c.bf16 %v5801_v12, %v5785_v52  ;;  %v17493_v52 = vld [vmem:[%s21729_s20 + $0x298] sm:$0xff]   ;;  %v17494_v3 = vld [vmem:[%s21729_s20 + $0x260] sm:$0xff]  }
0x1896   :  { %v5816_v45 = vpack.c.bf16 %v5800_v4, %v5784_v2  ;;  %v5818_v7 = vpack.c.bf16 %v5802_v55, %v5786_v9  ;;  %15949 = vmatpush3.bf16.msra.mxu1 %v17476_v8  ;;  %15971 = vmatpush3.bf16.msra.mxu0 %v17477_v60  ;;  %v17495_v2 = vld [vmem:[%s21729_s20 + $0x2e0] sm:$0xff]  }
0x1897   :  { %15978 = vmatprep.subr.bf16.mxu1 %v17478_v19  ;;  %16000 = vmatprep.subr.bf16.mxu0 %v17479_v17 }
0x1899   :  { %6969 = vmatmul.mubr.bf16.vlgmr.msra.gmra.mrb[80].mxu1 %v20694_v20  ;;  %7010 = vmatmul.mubr.bf16.vlgmr.msra.gmra.mrb[76].mxu0 %v20696_v6  ;;  %v5083_v20 = vrot.slane %v20664_v15, %v20147_v31  ;;  %v5091_v6 = vrot.slane %v20664_v15, %v5058_v14  ;;  %v17490_v31 = vld [vmem:[%s21729_s20 + $0x258] sm:$0xff]  }
0x189a   :  { %15979 = vmatpush3.bf16.msra.mxu1 %v17480_v18  ;;  %7050 = vmatprep.mubr.bf16.mxu1 %v5816_v45  ;;  %v17491_v14 = vld [vmem:[%s21729_s20 + $0x2d8] sm:$0xff]   ;;  %v17497_v18 = vld [vmem:[%s21729_s20 + $0x2a0] sm:$0xff]  }
0x189b   :  { %16001 = vmatpush3.bf16.msra.mxu0 %v17481_v28  ;;  %7091 = vmatprep.mubr.bf16.mxu0 %v5818_v7  ;;  %v17496_v7 = vld [vmem:[%s21729_s20 + $0x220] sm:$0xff]   ;;  %v17498_v28 = vld [vmem:[%s21729_s20 + $0x268] sm:$0xff]  }
0x189c   :  { %15980 = vmatprep.subr.bf16.mxu1 %v17482_v21  ;;  %16002 = vmatprep.subr.bf16.mxu0 %v17483_v61  ;;  %v17499_v21 = vld [vmem:[%s21729_s20 + $0x2e8] sm:$0xff]  }
0x189d   :  { %v17500_v61 = vld [vmem:[%s21729_s20 + $0x228] sm:$0xff]  }
0x189e   :  { %v5723_v58 = vpop.f32.mrb[72].mxu1  ;;  %v5766_v54 = vpop.f32.mrb[68].mxu0  ;;  %15981 = vmatpush3.bf16.msra.mxu1 %v17484_v1  ;;  %v17501_v1 = vld [vmem:[%s21729_s20 + $0x2a8] sm:$0xff]  }
0x189f   :  { %v5724_v29 = vadd.f32 %v5723_v58, %v5079_v62  ;;  %v5767_v25 = vadd.f32 %v5766_v54, %v20667_v53  ;;  %16003 = vmatpush3.bf16.msra.mxu0 %v17485_v22  ;;  %v5725_v40 = vpop.f32.mrb[73].mxu1  ;;  %v5768_v34 = vpop.f32.mrb[69].mxu0  ;;  %15982 = vmatprep.subr.bf16.mxu1 %v17486_v13  ;;  %v17503_v22 = vld [vmem:[%s21729_s20 + $0x2f0] sm:$0xff]   ;;  %v17508_v58 = vld [vmem:[%s21729_s20 + $0x238] sm:$0xff]  }
0x18a0   :  { %v5726_v41 = vadd.f32 %v5725_v40, %v5083_v20  ;;  %v5769_v37 = vadd.f32 %v5768_v34, %v5091_v6  ;;  %v5727_v43 = vpop.f32.mrb[74].mxu1  ;;  %v5770_v15 = vpop.f32.mrb[70].mxu0  ;;  %16004 = vmatprep.subr.bf16.mxu0 %v17487_v23  ;;  %v17504_v13 = vld [vmem:[%s21729_s20 + $0x230] sm:$0xff]   ;;  %v17507_v23 = vld [vmem:[%s21729_s20 + $0x2f8] sm:$0xff]   ;;  %v17513_v40 = vld [vmem:[%s21729_s20 + $0x380] sm:$0xff]  }
0x18a1   :  { %v5728_v46 = vadd.f32 %v5727_v43, %v5079_v62  ;;  %v5771_v27 = vadd.f32 %v5770_v15, %v20667_v53  ;;  %v5729_v16 = vpop.f32.mrb[75].mxu1  ;;  %v5772_v33 = vpop.f32.mrb[71].mxu0  ;;  %v5787_v59 = vmax.f32 %v5724_v29, 0.0  ;;  %v5789_v8 = vmax.f32 %v5767_v25, 0.0  ;;  %v17502_v62 = vld [vmem:[%s21729_s20 + $0x270] sm:$0xff]   ;;  %v17509_v54 = vld [vmem:[%s21729_s20 + $0x2b8] sm:$0xff]  }
0x18a2   :  { %v5730_v57 = vadd.f32 %v5729_v16, %v5083_v20  ;;  %v5773_v51 = vadd.f32 %v5772_v33, %v5091_v6  ;;  %15983 = vmatpush3.bf16.msra.mxu1 %v17488_v24  ;;  %v5788_v12 = vmax.f32 %v5726_v41, 0.0  ;;  %v5790_v53 = vmax.f32 %v5769_v37, 0.0  ;;  %v17505_v20 = vld [vmem:[%s21729_s20 + $0x2b0] sm:$0xff]   ;;  %v17506_v6 = vld [vmem:[%s21729_s20 + $0x278] sm:$0xff]   ;;  %v17510_v24 = vld [vmem:[%s21729_s20 + $0x340] sm:$0xff]  }
0x18a3   :  { %v5803_v60 = vmax.f32 %v5728_v46, 0.0  ;;  %v5805_v63 = vmax.f32 %v5771_v27, 0.0  ;;  %16005 = vmatpush3.bf16.msra.mxu0 %v17489_v44  ;;  %15984 = vmatprep.subr.bf16.mxu1 %v17490_v31  ;;  %v17511_v29 = vld [vmem:[%s21729_s20 + $0x3c0] sm:$0xff]   ;;  %v17514_v34 = vld [vmem:[%s21729_s20 + $0x348] sm:$0xff]   ;;  %v17518_v37 = vld [vmem:[%s21729_s20 + $0x350] sm:$0xff]  }
0x18a4   :  { %v5804_v19 = vmax.f32 %v5730_v57, 0.0  ;;  %v5806_v17 = vmax.f32 %v5773_v51, 0.0  ;;  %16006 = vmatprep.subr.bf16.mxu0 %v17491_v14  ;;  %v17512_v25 = vld [vmem:[%s21729_s20 + $0x300] sm:$0xff]   ;;  %v17515_v44 = vld [vmem:[%s21729_s20 + $0x3c8] sm:$0xff]   ;;  %v17519_v43 = vld [vmem:[%s21729_s20 + $0x3d0] sm:$0xff]  }
0x18a5   :  { %v20753_v9 = vpack.c.bf16 %v5803_v60, %v5787_v59  ;;  %v20755_v4 = vpack.c.bf16 %v5805_v63, %v5789_v8  ;;  %v17516_v31 = vld [vmem:[%s21729_s20 + $0x308] sm:$0xff]   ;;  %v17522_v15 = vld [vmem:[%s21729_s20 + $0x358] sm:$0xff]   ;;  %v17526_v16 = vld [vmem:[%s21729_s20 + $0x360] sm:$0xff]  }
0x18a6   :  { %v5820_v55 = vpack.c.bf16 %v5804_v19, %v5788_v12  ;;  %v5822_v45 = vpack.c.bf16 %v5806_v17, %v5790_v53  ;;  %15985 = vmatpush3.bf16.msra.mxu1 %v17492_v56  ;;  %v17517_v41 = vld [vmem:[%s21729_s20 + $0x388] sm:$0xff]   ;;  %v17523_v14 = vld [vmem:[%s21729_s20 + $0x3d8] sm:$0xff]   ;;  %v17527_v33 = vld [vmem:[%s21729_s20 + $0x3e0] sm:$0xff]  }
0x18a7   :  { %16007 = vmatpush3.bf16.msra.mxu0 %v17493_v52  ;;  %15986 = vmatprep.subr.bf16.mxu1 %v17494_v3  ;;  %v17524_v46 = vld [vmem:[%s21729_s20 + $0x318] sm:$0xff]   ;;  %v17528_v57 = vld [vmem:[%s21729_s20 + $0x320] sm:$0xff]   ;;  %v17530_v56 = vld [vmem:[%s21729_s20 + $0x368] sm:$0xff]  }
0x18a8   :  { %16008 = vmatprep.subr.bf16.mxu0 %v17495_v2  ;;  %v17525_v27 = vld [vmem:[%s21729_s20 + $0x398] sm:$0xff]   ;;  %v17529_v51 = vld [vmem:[%s21729_s20 + $0x3a0] sm:$0xff]   ;;  %v17531_v59 = vld [vmem:[%s21729_s20 + $0x3e8] sm:$0xff]  }
0x18a9   :  { %v17532_v8 = vld [vmem:[%s21729_s20 + $0x328] sm:$0xff]   ;;  %v17534_v63 = vld [vmem:[%s21729_s20 + $0x370] sm:$0xff]   ;;  %v17538_v53 = vld [vmem:[%s21729_s20 + $0x378] sm:$0xff]  }
0x18aa   :  { %15987 = vmatpush3.bf16.msra.mxu1 %v17496_v7  ;;  %v17533_v60 = vld [vmem:[%s21729_s20 + $0x3a8] sm:$0xff]   ;;  %v17535_v52 = vld [vmem:[%s21729_s20 + $0x3f0] sm:$0xff]   ;;  %v17539_v19 = vld [vmem:[%s21729_s20 + $0x3f8] sm:$0xff]  }
0x18ab   :  { %16009 = vmatpush3.bf16.msra.mxu0 %v17497_v18  ;;  %15988 = vmatprep.subr.bf16.mxu1 %v17498_v28  ;;  %v17536_v3 = vld [vmem:[%s21729_s20 + $0x330] sm:$0xff]   ;;  %v17540_v17 = vld [vmem:[%s21729_s20 + $0x338] sm:$0xff]  }
0x18ac   :  { %16010 = vmatprep.subr.bf16.mxu0 %v17499_v21  ;;  %v17537_v12 = vld [vmem:[%s21729_s20 + $0x3b0] sm:$0xff]   ;;  %v17541_v2 = vld [vmem:[%s21729_s20 + $0x3b8] sm:$0xff]  }
0x18ad   :  { %v14675_v7 = vld [vmem:[#allocation43] ss:$0 sm:$0xff] }
0x18ae   :  { %15989 = vmatpush3.bf16.msra.mxu1 %v17500_v61 }
0x18af   :  { %16011 = vmatpush3.bf16.msra.mxu0 %v17501_v1  ;;  %15990 = vmatprep.subr.bf16.mxu1 %v17502_v62 }
0x18b0   :  { %16012 = vmatprep.subr.bf16.mxu0 %v17503_v22 }
0x18b2   :  { %15991 = vmatpush3.bf16.msra.mxu1 %v17504_v13 }
0x18b3   :  { %16013 = vmatpush3.bf16.msra.mxu0 %v17505_v20  ;;  %15992 = vmatprep.subr.bf16.mxu1 %v17506_v6 }
0x18b4   :  { %16014 = vmatprep.subr.bf16.mxu0 %v17507_v23 }
0x18b6   :  { %15993 = vmatpush3.bf16.msra.mxu1 %v17508_v58 }
0x18b7   :  { %16015 = vmatpush3.bf16.msra.mxu0 %v17509_v54  ;;  %16022 = vmatprep.subr.bf16.mxu1 %v17510_v24 }
0x18b8   :  { %16044 = vmatprep.subr.bf16.mxu0 %v17511_v29 }
0x18b9   :  { %7051 = vmatmul.mubr.bf16.vlgmr.msra.gmra.mrb[84].mxu1 %v20722_v10  ;;  %v17520_v10 = vld [vmem:[%s21729_s20 + $0x310] sm:$0xff]  }
0x18ba   :  { %7092 = vmatmul.mubr.bf16.vlgmr.msra.gmra.mrb[80].mxu0 %v20724_v11  ;;  %16023 = vmatpush3.bf16.msra.mxu1 %v17512_v25  ;;  %v17521_v11 = vld [vmem:[%s21729_s20 + $0x390] sm:$0xff]  }
0x18bb   :  { %7132 = vmatprep.mubr.bf16.mxu1 %v5820_v55  ;;  %16045 = vmatpush3.bf16.msra.mxu0 %v17513_v40 }
0x18bc   :  { %7173 = vmatprep.mubr.bf16.mxu0 %v5822_v45  ;;  %16024 = vmatprep.subr.bf16.mxu1 %v17514_v34 }
0x18bd   :  { %16046 = vmatprep.subr.bf16.mxu0 %v17515_v44 }
0x18be   :  { %16025 = vmatpush3.bf16.msra.mxu1 %v17516_v31 }
0x18bf   :  { %16047 = vmatpush3.bf16.msra.mxu0 %v17517_v41  ;;  %16026 = vmatprep.subr.bf16.mxu1 %v17518_v37 }
0x18c0   :  { %16048 = vmatprep.subr.bf16.mxu0 %v17519_v43 }
0x18c2   :  { %16027 = vmatpush3.bf16.msra.mxu1 %v17520_v10 }
0x18c3   :  { %16049 = vmatpush3.bf16.msra.mxu0 %v17521_v11  ;;  %16028 = vmatprep.subr.bf16.mxu1 %v17522_v15 }
0x18c4   :  { %16050 = vmatprep.subr.bf16.mxu0 %v17523_v14 }
0x18c6   :  { %16029 = vmatpush3.bf16.msra.mxu1 %v17524_v46 }
0x18c7   :  { %16051 = vmatpush3.bf16.msra.mxu0 %v17525_v27  ;;  %16030 = vmatprep.subr.bf16.mxu1 %v17526_v16 }
0x18c8   :  { %16052 = vmatprep.subr.bf16.mxu0 %v17527_v33 }
0x18ca   :  { %16031 = vmatpush3.bf16.msra.mxu1 %v17528_v57 }
0x18cb   :  { %16053 = vmatpush3.bf16.msra.mxu0 %v17529_v51  ;;  %16032 = vmatprep.subr.bf16.mxu1 %v17530_v56 }
0x18cc   :  { %16054 = vmatprep.subr.bf16.mxu0 %v17531_v59 }
0x18ce   :  { %16033 = vmatpush3.bf16.msra.mxu1 %v17532_v8 }
0x18cf   :  { %16055 = vmatpush3.bf16.msra.mxu0 %v17533_v60  ;;  %16034 = vmatprep.subr.bf16.mxu1 %v17534_v63 }
0x18d0   :  { %16056 = vmatprep.subr.bf16.mxu0 %v17535_v52 }
0x18d2   :  { %16035 = vmatpush3.bf16.msra.mxu1 %v17536_v3 }
0x18d3   :  { %16057 = vmatpush3.bf16.msra.mxu0 %v17537_v12  ;;  %16036 = vmatprep.subr.bf16.mxu1 %v17538_v53 }
0x18d4   :  { %16058 = vmatprep.subr.bf16.mxu0 %v17539_v19 }
0x18d6   :  { %16037 = vmatpush3.bf16.msra.mxu1 %v17540_v17 }
0x18d7   :  { %16059 = vmatpush3.bf16.msra.mxu0 %v17541_v2 }
0x18d8   :  { %16569 = vmatprep.subr.bf16.mxu0 %v19585_v35 }
0x18d9   :  { %7133 = vmatmul.mubr.bf16.vlgmr.msra.gmra.mrb[88].mxu1 %v20753_v9 }
0x18da   :  { %7174 = vmatmul.mubr.bf16.vlgmr.msra.gmra.mrb[84].mxu0 %v20755_v4  ;;  %7361 = vmatprep.mubr.bf16.mxu1 %v19586_v39 }
0x18db   :  { %16577 = vmatprep.mubr.msk.bf16.mxu0 %vm19587_vm0, %v19585_v35 }
0x194c   :  { %v15906_v55 = vpop.f32.mrb[76].mxu1  ;;  %v15928_v45 = vpop.f32.mrb[72].mxu0 }
0x194d   :  { %v15907_v18 = vpop.f32.mrb[77].mxu1  ;;  %v15929_v28 = vpop.f32.mrb[73].mxu0 }
0x194e   :  { %v15908_v21 = vadd.f32 %v15907_v18, %v15906_v55  ;;  %v15930_v61 = vadd.f32 %v15929_v28, %v15928_v45  ;;  %v15909_v1 = vpop.f32.mrb[78].mxu1  ;;  %v15931_v62 = vpop.f32.mrb[74].mxu0 }
0x194f   :  { %v15910_v22 = vpop.f32.mrb[79].mxu1  ;;  %v15932_v13 = vpop.f32.mrb[75].mxu0 }
0x1950   :  { %v6889_v20 = vadd.f32 %v15908_v21, %v14675_v7  ;;  %v15911_v9 = vadd.f32 %v15910_v22, %v15909_v1  ;;  %v15933_v6 = vadd.f32 %v15932_v13, %v15931_v62 }
0x1952   :  { %v6930_v4 = vadd.f32 %v15930_v61, %v6889_v20  ;;  %v6892_v23 = vadd.f32 %v15911_v9, %v14675_v7 }
0x1954   :  { %v6933_v58 = vadd.f32 %v15933_v6, %v6892_v23 }
0x196c   :  { %v15950_v54 = vpop.f32.mrb[80].mxu1  ;;  %v15972_v24 = vpop.f32.mrb[76].mxu0 }
0x196d   :  { %v15951_v29 = vpop.f32.mrb[81].mxu1  ;;  %v15973_v25 = vpop.f32.mrb[77].mxu0 }
0x196e   :  { %v15952_v40 = vadd.f32 %v15951_v29, %v15950_v54  ;;  %v15974_v34 = vadd.f32 %v15973_v25, %v15972_v24  ;;  %v15953_v44 = vpop.f32.mrb[82].mxu1  ;;  %v15975_v31 = vpop.f32.mrb[78].mxu0 }
0x196f   :  { %v15954_v41 = vpop.f32.mrb[83].mxu1  ;;  %v15976_v37 = vpop.f32.mrb[79].mxu0 }
0x1970   :  { %v6971_v43 = vadd.f32 %v15952_v40, %v6930_v4  ;;  %v15955_v10 = vadd.f32 %v15954_v41, %v15953_v44  ;;  %v15977_v11 = vadd.f32 %v15976_v37, %v15975_v31 }
0x1972   :  { %v7012_v15 = vadd.f32 %v15974_v34, %v6971_v43  ;;  %v6974_v14 = vadd.f32 %v15955_v10, %v6933_v58  ;;  %v17544_v10 = vld [vmem:[#allocation47 + $0x4] ss:$12 sps:$4 sm:$0xff]  }
0x1973   :  { %7329 = vmatprep.subr.bf16.mxu1 %v17544_v10 }
0x1974   :  { %v7015_v46 = vadd.f32 %v15977_v11, %v6974_v14  ;;  %v17545_v11 = vld [vmem:[#allocation47 + $0x8] ss:$12 sps:$4 sm:$0xff]   ;;  %v17546_v14 = vld [vmem:[#allocation47 + $0x18] ss:$12 sps:$4 sm:$0xff]  }
0x1975   :  { %16570 = vmatpush3.bf16.msra.mxu0 %v17545_v11  ;;  %v17563_v11 = vld [vmem:[%s21730_s21 + $0x1c] ss:$12 sps:$4 sm:$0xff]  }
0x1976   :  { %16571 = vmatprep.subr.bf16.mxu0 %v19585_v35 }
0x198c   :  { %v15994_v27 = vpop.f32.mrb[84].mxu1 }
0x198d   :  { %v16016_v16 = vpop.f32.mrb[80].mxu0  ;;  %v15995_v33 = vpop.f32.mrb[85].mxu1 }
0x198e   :  { %v15996_v57 = vadd.f32 %v15995_v33, %v15994_v27  ;;  %v16017_v51 = vpop.f32.mrb[81].mxu0  ;;  %v15997_v56 = vpop.f32.mrb[86].mxu1  ;;  %v17552_v27 = vld [vmem:[#allocation47 + $0x34] ss:$12 sps:$4 sm:$0xff]   ;;  %v17553_v33 = vld [vmem:[#allocation47 + $0x38] ss:$12 sps:$4 sm:$0xff]  }
0x198f   :  { %v16018_v59 = vadd.f32 %v16017_v51, %v16016_v16  ;;  %v16019_v8 = vpop.f32.mrb[82].mxu0  ;;  %v15998_v60 = vpop.f32.mrb[87].mxu1  ;;  %v17550_v16 = vld [vmem:[#allocation47 + $0x30] ss:$12 sps:$4 sm:$0xff]   ;;  %v17554_v51 = vld [vmem:[#allocation47 + $0x48] ss:$12 sps:$4 sm:$0xff]  }
0x1990   :  { %v7053_v63 = vadd.f32 %v15996_v57, %v7012_v15  ;;  %v15999_v52 = vadd.f32 %v15998_v60, %v15997_v56  ;;  %v16020_v3 = vpop.f32.mrb[83].mxu0  ;;  %v17548_v15 = vld [vmem:[#allocation47 + $0x1c] ss:$12 sps:$4 sm:$0xff]   ;;  %v17556_v57 = vld [vmem:[#allocation47 + $0x4c] ss:$12 sps:$4 sm:$0xff]  }
0x1991   :  { %v16021_v12 = vadd.f32 %v16020_v3, %v16019_v8  ;;  %v17557_v56 = vld [vmem:[#allocation47 + $0x50] ss:$12 sps:$4 sm:$0xff]  }
0x1992   :  { %v7094_v53 = vadd.f32 %v16018_v59, %v7053_v63  ;;  %v7056_v19 = vadd.f32 %v15999_v52, %v7015_v46  ;;  %v17549_v46 = vld [vmem:[#allocation47 + $0x20] ss:$12 sps:$4 sm:$0xff]  }
0x1993   :  { %16572 = vmatpush3.bf16.msra.mxu0 %v17549_v46  ;;  %v17586_v46 = vld [vmem:[%s21730_s21 + $0x8] ss:$12 sps:$4 sm:$0xff]  }
0x1994   :  { %v7097_v17 = vadd.f32 %v16021_v12, %v7056_v19  ;;  %16573 = vmatprep.subr.bf16.mxu0 %v19585_v35 }
0x1997   :  { %16574 = vmatpush3.bf16.msra.mxu0 %v17553_v33  ;;  %v17569_v33 = vld [vmem:[%s21730_s21 + $0x4c] ss:$12 sps:$4 sm:$0xff]  }
0x1998   :  { %16575 = vmatprep.subr.bf16.mxu0 %v19585_v35 }
0x199b   :  { %16576 = vmatpush3.bf16.msra.mxu0 %v17557_v56  ;;  %v17572_v56 = vld [vmem:[%s21730_s21 + $0x64] ss:$12 sps:$4 sm:$0xff]  }
0x19ac   :  { %v16038_v2 = vpop.f32.mrb[88].mxu1 }
0x19ad   :  { %v16060_v55 = vpop.f32.mrb[84].mxu0  ;;  %v16039_v45 = vpop.f32.mrb[89].mxu1 }
0x19ae   :  { %v16040_v7 = vadd.f32 %v16039_v45, %v16038_v2  ;;  %v16061_v18 = vpop.f32.mrb[85].mxu0  ;;  %v16041_v28 = vpop.f32.mrb[90].mxu1  ;;  %v14805_v45 = vld [vmem:[#allocation46] ss:$0 sm:$0xff] }
0x19af   :  { %v16062_v21 = vadd.f32 %v16061_v18, %v16060_v55  ;;  %v16063_v61 = vpop.f32.mrb[86].mxu0  ;;  %v16042_v1 = vpop.f32.mrb[91].mxu1 }
0x19b0   :  { %v7135_v62 = vadd.f32 %v16040_v7, %v7094_v53  ;;  %v16043_v22 = vadd.f32 %v16042_v1, %v16041_v28  ;;  %v16064_v13 = vpop.f32.mrb[87].mxu0  ;;  %v14804_v53 = vld [vmem:[#allocation44] ss:$0 sm:$0xff] }
0x19b1   :  { %v16065_v20 = vadd.f32 %v16064_v13, %v16063_v61  ;;  %v7244_v61 = vld [vmem:[#allocation49] sm:$0x7] }
0x19b2   :  { %v7176_v9 = vadd.f32 %v16062_v21, %v7135_v62  ;;  %v7138_v6 = vadd.f32 %v16043_v22, %v7097_v17  ;;  %v7250_v1 = vrot.slane %v7244_v61, %v20096_v47  ;;  %v7258_v62 = vrot.slane %v7244_v61, %v20091_v38 }
0x19b3   :  { %v7254_v22 = vrot.slane %v7244_v61, %v20099_v50 }
0x19b4   :  { %v7179_v4 = vadd.f32 %v16065_v20, %v7138_v6  ;;  %v7182_v23 = vadd.f32 %v7176_v9, %v20599_v30 }
0x19b6   :  { %v7186_v58 = vsel %vm3866_vm1, %v7182_v23, 0.0  ;;  %v7183_v54 = vadd.f32 %v7179_v4, %v20601_v32  ;;  %v17542_v32 = vld [vmem:[#allocation47] ss:$12 sps:$4 sm:$0xff]  }
0x19b7   :  { %7187 = vadd.xlane.f32.xlu0 %v7186_v58  ;;  %7330 = vmatpush1.bf16.msra.mxu1 %v17542_v32  ;;  %v17560_v32 = vld [vmem:[%s21730_s21 + $0x4] ss:$12 sps:$4 sm:$0xff]  }
0x19b8   :  { %v7189_v24 = vsel %vm3866_vm1, %v7183_v54, 0.0  ;;  %7331 = vmatprep.subr.bf16.mxu1 %v17548_v15  ;;  %v17566_v15 = vld [vmem:[%s21730_s21 + $0x34] ss:$12 sps:$4 sm:$0xff]  }
0x19b9   :  { %7190 = vadd.xlane.f32.xlu1 %v7189_v24 }
0x19bb   :  { %7332 = vmatpush1.bf16.msra.mxu1 %v17546_v14  ;;  %v17585_v14 = vld [vmem:[%s21730_s21 + $0xc8] ss:$12 sps:$4 sm:$0xff]  }
0x19bc   :  { %7333 = vmatprep.subr.bf16.mxu1 %v17552_v27  ;;  %v17564_v27 = vld [vmem:[%s21730_s21 + $0x30] ss:$12 sps:$4 sm:$0xff]   ;;  %16071 = vmatprep.subr.bf16.mxu0 %v17585_v14  ;;  %v17616_v14 = vld [vmem:[%s21730_s21 + $0x98] ss:$12 sps:$4 sm:$0xff]  }
0x19bf   :  { %7334 = vmatpush1.bf16.msra.mxu1 %v17550_v16  ;;  %v17590_v16 = vld [vmem:[%s21730_s21 + $0xe0] ss:$12 sps:$4 sm:$0xff]  }
0x19c0   :  { %7335 = vmatprep.subr.bf16.mxu1 %v17556_v57  ;;  %v17591_v57 = vld [vmem:[%s21730_s21 + $0x20] ss:$12 sps:$4 sm:$0xff]  }
0x19c3   :  { %7336 = vmatpush1.bf16.msra.mxu1 %v17554_v51  ;;  %v17567_v51 = vld [vmem:[%s21730_s21 + $0x48] ss:$12 sps:$4 sm:$0xff]  }
0x19c4   :  { %8007 = vmatprep.subr.bf16.mxu1 %v17560_v32  ;;  %v17611_v32 = vld [vmem:[%s21730_s21 + $0x80] ss:$12 sps:$4 sm:$0xff]  }
0x1a44   :  { %v7188_v29 = vpop.xlane.xlu0 %7187 }
0x1a45   :  { %v7192_v25 = vmul.f32 0.015625, %v7188_v29 }
0x1a46   :  { %v7191_v40 = vpop.xlane.xlu1 %7190 }
0x1a47   :  { %v7194_v34 = vsub.f32 %v7182_v23, %v7192_v25  ;;  %v7193_v44 = vmul.f32 0.015625, %v7191_v40 }
0x1a49   :  { %v7195_v31 = vsub.f32 %v7183_v54, %v7193_v44  ;;  %v7196_v41 = vmul.f32 %v7194_v34, %v7194_v34 }
0x1a4b   :  { %v7198_v37 = vsel %vm3866_vm1, %v7196_v41, 0.0  ;;  %v7197_v43 = vmul.f32 %v7195_v31, %v7195_v31 }
0x1a4c   :  { %7199 = vadd.xlane.f32.xlu0 %v7198_v37 }
0x1a4d   :  { %v7201_v30 = vsel %vm3866_vm1, %v7197_v43, 0.0 }
0x1a4e   :  { %7202 = vadd.xlane.f32.xlu1 %v7201_v30 }
0x1ad9   :  { %v7200_v59 = vpop.xlane.xlu0 %7199 }
0x1ada   :  { %v7204_v8 = vmul.f32 0.015625, %v7200_v59  ;;  %v17570_v59 = vld [vmem:[%s21730_s21 + $0x60] ss:$12 sps:$4 sm:$0xff]  }
0x1adb   :  { %v7203_v60 = vpop.xlane.xlu1 %7202 }
0x1adc   :  { %v7206_v63 = vadd.f32 1e-05, %v7204_v8  ;;  %v7205_v52 = vmul.f32 0.015625, %v7203_v60  ;;  %v17575_v8 = vld [vmem:[%s21730_s21 + $0x7c] ss:$12 sps:$4 sm:$0xff]  }
0x1add   :  { %v17573_v60 = vld [vmem:[%s21730_s21 + $0x78] ss:$12 sps:$4 sm:$0xff]  }
0x1ade   :  { %18494 = vrsqrt.f32 %v7206_v63  ;;  %v7207_v3 = vadd.f32 1e-05, %v7205_v52  ;;  %v17578_v63 = vld [vmem:[%s21730_s21 + $0x94] ss:$12 sps:$4 sm:$0xff]   ;;  %v17576_v52 = vld [vmem:[%s21730_s21 + $0x90] ss:$12 sps:$4 sm:$0xff]  }
0x1ae0   :  { %18496 = vrsqrt.f32 %v7207_v3  ;;  %v17581_v3 = vld [vmem:[%s21730_s21 + $0xac] ss:$12 sps:$4 sm:$0xff]  }
0x1ae8   :  { %v18495_v12 = vpop.eup %18494 }
0x1ae9   :  { %v7210_v19 = vmul.f32 %v18495_v12, %v7194_v34  ;;  %v17579_v12 = vld [vmem:[%s21730_s21 + $0xa8] ss:$12 sps:$4 sm:$0xff]  }
0x1aea   :  { %v18497_v17 = vpop.eup %18496 }
0x1aeb   :  { %v7218_v2 = vmul.f32 %v14804_v53, %v7210_v19  ;;  %v7211_v55 = vmul.f32 %v18497_v17, %v7195_v31  ;;  %v17582_v19 = vld [vmem:[%s21730_s21 + $0xc0] ss:$12 sps:$4 sm:$0xff]   ;;  %v17589_v17 = vld [vmem:[%s21730_s21 + $0xdc] ss:$12 sps:$4 sm:$0xff]  }
0x1aed   :  { %v7219_v7 = vmul.f32 %v14804_v53, %v7211_v55  ;;  %v7226_v18 = vadd.f32 %v14805_v45, %v7218_v2  ;;  %v17584_v53 = vld [vmem:[%s21730_s21 + $0xc4] ss:$12 sps:$4 sm:$0xff]  }
0x1aee   :  { %v17587_v2 = vld [vmem:[%s21730_s21 + $0xd8] ss:$12 sps:$4 sm:$0xff]  }
0x1aef   :  { %v7227_v28 = vadd.f32 %v14805_v45, %v7219_v7 }
0x1af1   :  { %v7245_v21 = vpack.c.bf16 %v7227_v28, %v7226_v18 }
0x1af3   :  { %14818 = vmatmul.mubr.msk.bf16.vlgmr.msra.gmra.mrb[92].mxu1 %vm3866_vm1, %v7245_v21  ;;  %16578 = vmatmul.mubr.msk.bf16.vlgmr.msra.gmra.mrb[88].mxu0 %vm3866_vm1, %v7245_v21 }
0x1af4   :  { %16072 = vmatpush3.bf16.msra.mxu0 %v17586_v46  ;;  %v17619_v46 = vld [vmem:[%s21730_s21 + $0x16c] ss:$12 sps:$4 sm:$0xff]  }
0x1af5   :  { %16073 = vmatprep.subr.bf16.mxu0 %v17590_v16  ;;  %v17617_v16 = vld [vmem:[%s21730_s21 + $0x168] ss:$12 sps:$4 sm:$0xff]  }
0x1af8   :  { %16074 = vmatpush3.bf16.msra.mxu0 %v17591_v57  ;;  %v17624_v57 = vld [vmem:[%s21730_s21 + $0x184] ss:$12 sps:$4 sm:$0xff]  }
0x1bc6   :  { %v7363_v13 = vpop.f32.mrb[92].mxu1  ;;  %v7406_v20 = vpop.f32.mrb[88].mxu0 }
0x1bc7   :  { %v7364_v9 = vadd.f32 %v7363_v13, %v7250_v1  ;;  %v7365_v6 = vpop.f32.mrb[93].mxu1  ;;  %v16579_v4 = vpop.f32.mrb[89].mxu0  ;;  %v7407_v23 = vadd.f32 %v7406_v20, %v7258_v62 }
0x1bc8   :  { %v7366_v58 = vadd.f32 %v7365_v6, %v7254_v22  ;;  %v7367_v54 = vpop.f32.mrb[94].mxu1  ;;  %v7409_v24 = vpop.f32.mrb[90].mxu0 }
0x1bc9   :  { %v20826_v29 = vadd.f32 %v7364_v9, %v20353_v0  ;;  %v7368_v25 = vadd.f32 %v7367_v54, %v7250_v1  ;;  %v7369_v40 = vpop.f32.mrb[95].mxu1  ;;  %v16580_v34 = vpop.f32.mrb[91].mxu0  ;;  %v7410_v31 = vadd.f32 %v7409_v24, %v7258_v62  ;;  %v20835_v43 = vadd.f32 %v7407_v23, %v20384_v42 }
0x1bca   :  { %v20829_v44 = vadd.f32 %v7366_v58, %v20349_v26  ;;  %v7370_v41 = vadd.f32 %v7369_v40, %v7254_v22  ;;  %v17595_v40 = vld [vmem:[%s21730_s21 + $0xf8] ss:$12 sps:$4 sm:$0xff]   ;;  %v17592_v34 = vld [vmem:[%s21730_s21 + $0xf0] ss:$12 sps:$4 sm:$0xff]  }
0x1bcb   :  { %v20832_v37 = vadd.f32 %v7368_v25, %v20355_v49  ;;  %v20843_v26 = vadd.f32 %v7410_v31, %v20382_v48  ;;  %v17561_v48 = vld [vmem:[%s21730_s21 + $0x18] ss:$12 sps:$4 sm:$0xff]   ;;  %v17594_v25 = vld [vmem:[%s21730_s21 + $0xf4] ss:$12 sps:$4 sm:$0xff]   ;;  %16075 = vmatprep.subr.bf16.mxu0 %v17595_v40 }
0x1bcc   :  { %v20838_v0 = vadd.f32 %v7370_v41, %v20351_v5  ;;  %v7421_v30 = vadd.f32 %v20829_v44, %v20826_v29  ;;  %v17558_v5 = vld [vmem:[%s21730_s21] ss:$12 sps:$4 sm:$0xff]   ;;  %v17600_v41 = vld [vmem:[%s21730_s21 + $0x110] ss:$12 sps:$4 sm:$0xff]  }
0x1bcd   :  { %8008 = vmatpush1.bf16.msra.mxu1 %v17558_v5  ;;  %v17599_v31 = vld [vmem:[%s21730_s21 + $0x10c] ss:$12 sps:$4 sm:$0xff]  }
0x1bce   :  { %v7422_v10 = vadd.f32 %v7421_v30, %v20835_v43  ;;  %v7425_v49 = vadd.f32 %v20838_v0, %v20832_v37  ;;  %8009 = vmatprep.subr.bf16.mxu1 %v17563_v11  ;;  %v17605_v30 = vld [vmem:[%s21730_s21 + $0x128] ss:$12 sps:$4 sm:$0xff]   ;;  %v17607_v5 = vld [vmem:[%s21730_s21 + $0x138] ss:$12 sps:$4 sm:$0xff]   ;;  %v17629_v40 = vld [vmem:[%s21730_s21 + $0x1a0] ss:$12 sps:$4 sm:$0xff]  }
0x1bcf   :  { %v17614_v11 = vld [vmem:[%s21730_s21 + $0x154] ss:$12 sps:$4 sm:$0xff]  }
0x1bd0   :  { %7423 = vadd.xlane.f32.xlu0 %v7422_v10  ;;  %v7426_v42 = vadd.f32 %v7425_v49, %v20843_v26  ;;  %v17606_v10 = vld [vmem:[%s21730_s21 + $0x68] ss:$12 sps:$4 sm:$0xff]  }
0x1bd1   :  { %8010 = vmatpush1.bf16.msra.mxu1 %v17561_v48  ;;  %v17609_v49 = vld [vmem:[%s21730_s21 + $0x13c] ss:$12 sps:$4 sm:$0xff]   ;;  %v17615_v48 = vld [vmem:[%s21730_s21 + $0x158] ss:$12 sps:$4 sm:$0xff]  }
0x1bd2   :  { %7427 = vadd.xlane.f32.xlu1 %v7426_v42  ;;  %8011 = vmatprep.subr.bf16.mxu1 %v17566_v15  ;;  %v17610_v42 = vld [vmem:[%s21730_s21 + $0x140] ss:$12 sps:$4 sm:$0xff]   ;;  %v17612_v15 = vld [vmem:[%s21730_s21 + $0x150] ss:$12 sps:$4 sm:$0xff]  }
0x1bd5   :  { %8012 = vmatpush1.bf16.msra.mxu1 %v17564_v27  ;;  %v17620_v27 = vld [vmem:[%s21730_s21 + $0x170] ss:$12 sps:$4 sm:$0xff]  }
0x1bd6   :  { %8013 = vmatprep.subr.bf16.mxu1 %v17569_v33  ;;  %v17621_v33 = vld [vmem:[%s21730_s21 + $0xb0] ss:$12 sps:$4 sm:$0xff]  }
0x1bd9   :  { %8014 = vmatpush1.bf16.msra.mxu1 %v17567_v51 }
0x1bda   :  { %8015 = vmatprep.subr.bf16.mxu1 %v17572_v56 }
0x1bdd   :  { %8016 = vmatpush1.bf16.msra.mxu1 %v17570_v59 }
0x1bde   :  { %8017 = vmatprep.subr.bf16.mxu1 %v17575_v8 }
0x1be1   :  { %8018 = vmatpush1.bf16.msra.mxu1 %v17573_v60 }
0x1be2   :  { %8019 = vmatprep.subr.bf16.mxu1 %v17578_v63 }
0x1be5   :  { %8020 = vmatpush1.bf16.msra.mxu1 %v17576_v52  ;;  %v20929_v52 = vld [vmem:[#allocation50] sm:$0x7] }
0x1be6   :  { %8021 = vmatprep.subr.bf16.mxu1 %v17581_v3  ;;  %v20931_v3 = vld [vmem:[#allocation52] sm:$0x7] }
0x1be9   :  { %8022 = vmatpush1.bf16.msra.mxu1 %v17579_v12  ;;  %v7471_v12 = vrot.slane %v20929_v52, %v20099_v50 }
0x1bea   :  { %8023 = vmatprep.subr.bf16.mxu1 %v17584_v53  ;;  %v7467_v53 = vrot.slane %v20929_v52, %v20096_v47 }
0x1bed   :  { %8024 = vmatpush1.bf16.msra.mxu1 %v17582_v19 }
0x1bee   :  { %8025 = vmatprep.subr.bf16.mxu1 %v17589_v17 }
0x1bf1   :  { %8026 = vmatpush1.bf16.msra.mxu1 %v17587_v2 }
0x1bf2   :  { %8027 = vmatprep.subr.bf16.mxu1 %v17594_v25  ;;  %v17626_v25 = vld [vmem:[%s21730_s21 + $0x198] ss:$12 sps:$4 sm:$0xff]  }
0x1bf5   :  { %8028 = vmatpush1.bf16.msra.mxu1 %v17592_v34  ;;  %v17632_v34 = vld [vmem:[%s21730_s21 + $0x1b4] ss:$12 sps:$4 sm:$0xff]  }
0x1bf6   :  { %8029 = vmatprep.subr.bf16.mxu1 %v17599_v31  ;;  %v17633_v31 = vld [vmem:[%s21730_s21 + $0x1b8] ss:$12 sps:$4 sm:$0xff]  }
0x1c5d   :  { %v7424_v55 = vpop.xlane.xlu0 %7423 }
0x1c5e   :  { %v7429_v45 = vmul.f32 0.0026041667, %v7424_v55 }
0x1c5f   :  { %v7428_v7 = vpop.xlane.xlu1 %7427 }
0x1c60   :  { %v20874_v18 = vsub.f32 %v20826_v29, %v7429_v45  ;;  %v20877_v28 = vsub.f32 %v20829_v44, %v7429_v45  ;;  %v7430_v21 = vmul.f32 0.0026041667, %v7428_v7  ;;  %v20880_v61 = vsub.f32 %v20835_v43, %v7429_v45  ;;  %v17596_v44 = vld [vmem:[%s21730_s21 + $0x38] ss:$12 sps:$4 sm:$0xff]   ;;  %v17601_v43 = vld [vmem:[%s21730_s21 + $0x50] ss:$12 sps:$4 sm:$0xff]  }
0x1c61   :  { %16076 = vmatpush3.bf16.msra.mxu0 %v17596_v44  ;;  %v7493_v7 = vrot.slane %v20931_v3, %v20099_v50  ;;  %v17630_v44 = vld [vmem:[%s21730_s21 + $0x1b0] ss:$12 sps:$4 sm:$0xff]  }
0x1c62   :  { %v20883_v1 = vsub.f32 %v20832_v37, %v7430_v21  ;;  %v20886_v62 = vsub.f32 %v20838_v0, %v7430_v21  ;;  %v20889_v22 = vsub.f32 %v20843_v26, %v7430_v21  ;;  %v7437_v13 = vmul.f32 %v20874_v18, %v20874_v18  ;;  %v17597_v37 = vld [vmem:[%s21730_s21 + $0x108] ss:$12 sps:$4 sm:$0xff]   ;;  %16077 = vmatprep.subr.bf16.mxu0 %v17600_v41  ;;  %v17604_v0 = vld [vmem:[%s21730_s21 + $0x124] ss:$12 sps:$4 sm:$0xff]   ;;  %v17602_v26 = vld [vmem:[%s21730_s21 + $0x120] ss:$12 sps:$4 sm:$0xff]  }
0x1c63   :  { %v7438_v20 = vmul.f32 %v20877_v28, %v20877_v28  ;;  %v7439_v4 = vmul.f32 %v20880_v61, %v20880_v61  ;;  %8030 = vmatpush1.bf16.msra.mxu1 %v17597_v37  ;;  %v17636_v41 = vld [vmem:[%s21730_s21 + $0x1cc] ss:$12 sps:$4 sm:$0xff]   ;;  %v17634_v37 = vld [vmem:[%s21730_s21 + $0x1c8] ss:$12 sps:$4 sm:$0xff]  }
0x1c64   :  { %v7440_v9 = vmul.f32 %v20883_v1, %v20883_v1  ;;  %v7441_v6 = vmul.f32 %v20886_v62, %v20886_v62  ;;  %v7442_v58 = vmul.f32 %v20889_v22, %v20889_v22  ;;  %8031 = vmatprep.subr.bf16.mxu1 %v17604_v0  ;;  %v17640_v0 = vld [vmem:[%s21730_s21 + $0x1e4] ss:$12 sps:$4 sm:$0xff]  }
0x1c65   :  { %v7443_v23 = vadd.f32 %v7438_v20, %v7437_v13  ;;  %16078 = vmatpush3.bf16.msra.mxu0 %v17601_v43  ;;  %v7489_v13 = vrot.slane %v20931_v3, %v20096_v47  ;;  %v17637_v43 = vld [vmem:[%s21730_s21 + $0x1d0] ss:$12 sps:$4 sm:$0xff]  }
0x1c66   :  { %v7447_v54 = vadd.f32 %v7441_v6, %v7440_v9  ;;  %16079 = vmatprep.subr.bf16.mxu0 %v17605_v30  ;;  %v17638_v30 = vld [vmem:[%s21730_s21 + $0x1e0] ss:$12 sps:$4 sm:$0xff]  }
0x1c67   :  { %v7444_v24 = vadd.f32 %v7443_v23, %v7439_v4  ;;  %8032 = vmatpush1.bf16.msra.mxu1 %v17602_v26  ;;  %v17641_v26 = vld [vmem:[%s21730_s21 + $0x1e8] ss:$12 sps:$4 sm:$0xff]  }
0x1c68   :  { %v7448_v29 = vadd.f32 %v7447_v54, %v7442_v58  ;;  %8033 = vmatprep.subr.bf16.mxu1 %v17609_v49  ;;  %v17622_v58 = vld [vmem:[%s21730_s21 + $0x180] ss:$12 sps:$4 sm:$0xff]   ;;  %v17642_v49 = vld [vmem:[%s21730_s21 + $0x1f8] ss:$12 sps:$4 sm:$0xff]  }
0x1c69   :  { %7445 = vadd.xlane.f32.xlu0 %v7444_v24  ;;  %16080 = vmatpush3.bf16.msra.mxu0 %v17606_v10  ;;  %v17625_v24 = vld [vmem:[%s21730_s21 + $0x188] ss:$12 sps:$4 sm:$0xff]  }
0x1c6a   :  { %7449 = vadd.xlane.f32.xlu1 %v7448_v29  ;;  %16081 = vmatprep.subr.bf16.mxu0 %v17610_v42  ;;  %v17628_v29 = vld [vmem:[%s21730_s21 + $0x19c] ss:$12 sps:$4 sm:$0xff]   ;;  %v17645_v42 = vld [vmem:[%s21730_s21 + $0x200] ss:$12 sps:$4 sm:$0xff]  }
0x1c6b   :  { %8034 = vmatpush1.bf16.msra.mxu1 %v17607_v5  ;;  %v17644_v10 = vld [vmem:[%s21730_s21 + $0x1fc] ss:$12 sps:$4 sm:$0xff]   ;;  %v17648_v5 = vld [vmem:[%s21730_s21 + $0x214] ss:$12 sps:$4 sm:$0xff]  }
0x1c6c   :  { %8035 = vmatprep.subr.bf16.mxu1 %v17614_v11 }
0x1c6d   :  { %16082 = vmatpush3.bf16.msra.mxu0 %v17611_v32 }
0x1c6e   :  { %16083 = vmatprep.subr.bf16.mxu0 %v17615_v48  ;;  %v7475_v48 = vrot.slane %v20929_v52, %v20091_v38  ;;  %v17661_v52 = vld [vmem:[#allocation55 + $0x1c] ss:$12 sps:$4 sm:$0xff]  }
0x1c6f   :  { %8036 = vmatpush1.bf16.msra.mxu1 %v17612_v15  ;;  %v17646_v15 = vld [vmem:[%s21730_s21 + $0x210] ss:$12 sps:$4 sm:$0xff]  }
0x1c70   :  { %8037 = vmatprep.subr.bf16.mxu1 %v17619_v46  ;;  %v17652_v46 = vld [vmem:[%s21730_s21 + $0x22c] ss:$12 sps:$4 sm:$0xff]  }
0x1c71   :  { %16084 = vmatpush3.bf16.msra.mxu0 %v17616_v14  ;;  %v17649_v14 = vld [vmem:[%s21730_s21 + $0x218] ss:$12 sps:$4 sm:$0xff]  }
0x1c72   :  { %16085 = vmatprep.subr.bf16.mxu0 %v17620_v27 }
0x1c73   :  { %8038 = vmatpush1.bf16.msra.mxu1 %v17617_v16 }
0x1c74   :  { %8050 = vmatprep.subr.bf16.mxu1 %v17624_v57 }
0x1c75   :  { %16086 = vmatpush3.bf16.msra.mxu0 %v17621_v33  ;;  %v17650_v33 = vld [vmem:[%s21730_s21 + $0x228] ss:$12 sps:$4 sm:$0xff]  }
0x1c76   :  { %16581 = vmatprep.subr.bf16.mxu0 %v19585_v35 }
0x1cf6   :  { %v7446_v51 = vpop.xlane.xlu0 %7445 }
0x1cf7   :  { %v7451_v56 = vmul.f32 0.0026041667, %v7446_v51  ;;  %v7450_v59 = vpop.xlane.xlu1 %7449  ;;  %v17656_v51 = vld [vmem:[#allocation55 + $0x4] ss:$12 sps:$4 sm:$0xff]  }
0x1cf8   :  { %v7452_v8 = vmul.f32 0.0026041667, %v7450_v59 }
0x1cf9   :  { %v7453_v60 = vadd.f32 0.001, %v7451_v56  ;;  %v17657_v56 = vld [vmem:[#allocation55 + $0xc8] ss:$12 sps:$4 sm:$0xff]  }
0x1cfa   :  { %v7454_v63 = vadd.f32 0.001, %v7452_v8  ;;  %v17654_v8 = vld [vmem:[#allocation55] ss:$12 sps:$4 sm:$0xff]  }
0x1cfb   :  { %18498 = vrsqrt.f32 %v7453_v60 }
0x1cfc   :  { %18500 = vrsqrt.f32 %v7454_v63  ;;  %v17658_v63 = vld [vmem:[#allocation55 + $0x8] ss:$12 sps:$4 sm:$0xff]  }
0x1d05   :  { %v20937_v19 = vpop.eup %18498 }
0x1d06   :  { %v18501_v17 = vpop.eup %18500  ;;  %v7458_v2 = vmul.f32 %v20937_v19, %v20877_v28  ;;  %v7457_v55 = vmul.f32 %v20937_v19, %v20874_v18  ;;  %v7459_v11 = vmul.f32 %v20937_v19, %v20880_v61  ;;  %v17653_v61 = vld [vmem:[%s21730_s21 + $0x230] ss:$12 sps:$4 sm:$0xff]   ;;  %v17666_v19 = vld [vmem:[#allocation55 + $0x34] ss:$12 sps:$4 sm:$0xff]  }
0x1d07   :  { %v7461_v45 = vmul.f32 %v18501_v17, %v20886_v62  ;;  %v7460_v21 = vmul.f32 %v18501_v17, %v20883_v1  ;;  %v7462_v32 = vmul.f32 %v18501_v17, %v20889_v22  ;;  %v7497_v22 = vrot.slane %v20931_v3, %v20091_v38  ;;  %v17662_v3 = vld [vmem:[#allocation55 + $0xe0] ss:$12 sps:$4 sm:$0xff]   ;;  %v17667_v17 = vld [vmem:[#allocation55 + $0xf8] ss:$12 sps:$4 sm:$0xff]  }
0x1d08   :  { %v7480_v20 = vmul.f32 %v7471_v12, %v7458_v2  ;;  %v7479_v9 = vmul.f32 %v7467_v53, %v7457_v55  ;;  %v7481_v16 = vmul.f32 %v7475_v48, %v7459_v11  ;;  %v17664_v2 = vld [vmem:[#allocation55 + $0x30] ss:$12 sps:$4 sm:$0xff]   ;;  %v17668_v55 = vld [vmem:[#allocation55 + $0x38] ss:$12 sps:$4 sm:$0xff]  }
0x1d09   :  { %v7483_v6 = vmul.f32 %v7471_v12, %v7461_v45  ;;  %v7482_v4 = vmul.f32 %v7467_v53, %v7460_v21  ;;  %v7484_v27 = vmul.f32 %v7475_v48, %v7462_v32  ;;  %v17659_v12 = vld [vmem:[#allocation55 + $0x18] ss:$12 sps:$4 sm:$0xff]   ;;  %v17663_v53 = vld [vmem:[#allocation55 + $0x20] ss:$12 sps:$4 sm:$0xff]   ;;  %v17669_v21 = vld [vmem:[#allocation55 + $0x48] ss:$12 sps:$4 sm:$0xff]  }
0x1d0a   :  { %v20949_v28 = vadd.f32 %v7493_v7, %v7480_v20  ;;  %v20953_v62 = vadd.f32 %v7489_v13, %v7479_v9  ;;  %v21011_v59 = vadd.f32 %v7497_v22, %v7481_v16  ;;  %v17671_v45 = vld [vmem:[#allocation55 + $0x4c] ss:$12 sps:$4 sm:$0xff]   ;;  %v17676_v20 = vld [vmem:[#allocation55 + $0x64] ss:$12 sps:$4 sm:$0xff]   ;;  %v17677_v9 = vld [vmem:[#allocation55 + $0x128] ss:$12 sps:$4 sm:$0xff]  }
0x1d0b   :  { %v20951_v18 = vadd.f32 %v7493_v7, %v7483_v6  ;;  %v20955_v23 = vadd.f32 %v7489_v13, %v7482_v4  ;;  %v21009_v57 = vadd.f32 %v7497_v22, %v7484_v27  ;;  %v17672_v7 = vld [vmem:[#allocation55 + $0x110] ss:$12 sps:$4 sm:$0xff]   ;;  %v17674_v6 = vld [vmem:[#allocation55 + $0x60] ss:$12 sps:$4 sm:$0xff]   ;;  %v17678_v4 = vld [vmem:[#allocation55 + $0x68] ss:$12 sps:$4 sm:$0xff]  }
0x1d0c   :  { %v17673_v13 = vld [vmem:[#allocation55 + $0x50] ss:$12 sps:$4 sm:$0xff]   ;;  %v17705_v11 = vld [vmem:[#allocation55 + $0x1b8] ss:$12 sps:$4 sm:$0xff]   ;;  %v17710_v27 = vld [vmem:[#allocation55 + $0x120] ss:$12 sps:$4 sm:$0xff]  }
0x1d0d   :  { %v20959_v1 = vpack.c.bf16 %v20951_v18, %v20949_v28  ;;  %v20964_v54 = vpack.c.bf16 %v20955_v23, %v20953_v62  ;;  %v21015_v60 = vpack.c.bf16 %v21009_v57, %v21011_v59  ;;  %v17702_v32 = vld [vmem:[#allocation55 + $0xf0] ss:$12 sps:$4 sm:$0xff]   ;;  %v17708_v48 = vld [vmem:[#allocation55 + $0x10c] ss:$12 sps:$4 sm:$0xff]   ;;  %v17713_v16 = vld [vmem:[#allocation55 + $0x1e8] ss:$12 sps:$4 sm:$0xff]  }
0x1d0e   :  { %v17716_v22 = vld [vmem:[#allocation55 + $0x13c] ss:$12 sps:$4 sm:$0xff]  }
0x1d0f   :  { %8039 = vmatprep.mubr.bf16.mxu1 %v20959_v1  ;;  %8125 = vmatprep.mubr.bf16.mxu0 %v20959_v1 }
0x1d10   :  { %8040 = vmatmul.mubr.bf16.vlgmr.msra.gmra.mrb[96].mxu1 %v20964_v54  ;;  %8126 = vmatmul.mubr.bf16.vlgmr.msra.gmra.mrb[92].mxu0 %v20964_v54 }
0x1d11   :  { %8051 = vmatpush1.bf16.msra.mxu1 %v17622_v58  ;;  %16582 = vmatpush3.bf16.msra.mxu0 %v17625_v24  ;;  %v17682_v58 = vld [vmem:[#allocation55 + $0x140] ss:$12 sps:$4 sm:$0xff]   ;;  %v17679_v24 = vld [vmem:[#allocation55 + $0x78] ss:$12 sps:$4 sm:$0xff]  }
0x1d12   :  { %8052 = vmatprep.subr.bf16.mxu1 %v17628_v29  ;;  %16583 = vmatprep.subr.bf16.mxu0 %v19585_v35  ;;  %v17683_v29 = vld [vmem:[#allocation55 + $0x80] ss:$12 sps:$4 sm:$0xff]  }
0x1d13   :  { %8082 = vmatprep.mubr.bf16.mxu1 %v19586_v39  ;;  %16597 = vmatprep.mubr.msk.bf16.mxu0 %vm19587_vm0, %v19585_v35 }
0x1d15   :  { %8053 = vmatpush1.bf16.msra.mxu1 %v17626_v25  ;;  %16584 = vmatpush3.bf16.msra.mxu0 %v17629_v40  ;;  %v17686_v25 = vld [vmem:[#allocation55 + $0x94] ss:$12 sps:$4 sm:$0xff]   ;;  %v17687_v40 = vld [vmem:[#allocation55 + $0x158] ss:$12 sps:$4 sm:$0xff]  }
0x1d16   :  { %8054 = vmatprep.subr.bf16.mxu1 %v17632_v34  ;;  %16585 = vmatprep.subr.bf16.mxu0 %v19585_v35  ;;  %v17684_v34 = vld [vmem:[#allocation55 + $0x90] ss:$12 sps:$4 sm:$0xff]  }
0x1d19   :  { %8055 = vmatpush1.bf16.msra.mxu1 %v17630_v44  ;;  %16586 = vmatpush3.bf16.msra.mxu0 %v17633_v31  ;;  %v17688_v44 = vld [vmem:[#allocation55 + $0x98] ss:$12 sps:$4 sm:$0xff]  }
0x1d1a   :  { %8056 = vmatprep.subr.bf16.mxu1 %v17636_v41  ;;  %16587 = vmatprep.subr.bf16.mxu0 %v19585_v35  ;;  %v17691_v31 = vld [vmem:[#allocation55 + $0xac] ss:$12 sps:$4 sm:$0xff]   ;;  %v17692_v41 = vld [vmem:[#allocation55 + $0x170] ss:$12 sps:$4 sm:$0xff]  }
0x1d1d   :  { %8057 = vmatpush1.bf16.msra.mxu1 %v17634_v37  ;;  %16588 = vmatpush3.bf16.msra.mxu0 %v17637_v43  ;;  %v17689_v37 = vld [vmem:[#allocation55 + $0xa8] ss:$12 sps:$4 sm:$0xff]   ;;  %v17693_v43 = vld [vmem:[#allocation55 + $0xb0] ss:$12 sps:$4 sm:$0xff]  }
0x1d1e   :  { %8058 = vmatprep.subr.bf16.mxu1 %v17640_v0  ;;  %16589 = vmatprep.subr.bf16.mxu0 %v19585_v35  ;;  %v17696_v0 = vld [vmem:[#allocation55 + $0xc4] ss:$12 sps:$4 sm:$0xff]  }
0x1d21   :  { %8059 = vmatpush1.bf16.msra.mxu1 %v17638_v30  ;;  %16590 = vmatpush3.bf16.msra.mxu0 %v17641_v26  ;;  %v17694_v30 = vld [vmem:[#allocation55 + $0xc0] ss:$12 sps:$4 sm:$0xff]   ;;  %v17697_v26 = vld [vmem:[#allocation55 + $0x188] ss:$12 sps:$4 sm:$0xff]  }
0x1d22   :  { %8060 = vmatprep.subr.bf16.mxu1 %v17644_v10  ;;  %16591 = vmatprep.subr.bf16.mxu0 %v19585_v35  ;;  %v17700_v10 = vld [vmem:[#allocation55 + $0xdc] ss:$12 sps:$4 sm:$0xff]  }
0x1d25   :  { %8061 = vmatpush1.bf16.msra.mxu1 %v17642_v49  ;;  %16592 = vmatpush3.bf16.msra.mxu0 %v17645_v42  ;;  %v17698_v49 = vld [vmem:[#allocation55 + $0xd8] ss:$12 sps:$4 sm:$0xff]   ;;  %v17701_v42 = vld [vmem:[#allocation55 + $0x1a0] ss:$12 sps:$4 sm:$0xff]  }
0x1d26   :  { %8062 = vmatprep.subr.bf16.mxu1 %v17648_v5  ;;  %16593 = vmatprep.subr.bf16.mxu0 %v19585_v35  ;;  %v17704_v5 = vld [vmem:[#allocation55 + $0xf4] ss:$12 sps:$4 sm:$0xff]  }
0x1d29   :  { %8063 = vmatpush1.bf16.msra.mxu1 %v17646_v15  ;;  %16594 = vmatpush3.bf16.msra.mxu0 %v17649_v14  ;;  %v17706_v15 = vld [vmem:[#allocation55 + $0x108] ss:$12 sps:$4 sm:$0xff]   ;;  %v17709_v14 = vld [vmem:[#allocation55 + $0x1d0] ss:$12 sps:$4 sm:$0xff]  }
0x1d2a   :  { %8064 = vmatprep.subr.bf16.mxu1 %v17652_v46  ;;  %16595 = vmatprep.subr.bf16.mxu0 %v19585_v35  ;;  %v17712_v46 = vld [vmem:[#allocation55 + $0x124] ss:$12 sps:$4 sm:$0xff]  }
0x1d2d   :  { %8065 = vmatpush1.bf16.msra.mxu1 %v17650_v33  ;;  %16596 = vmatpush3.bf16.msra.mxu0 %v17653_v61  ;;  %v17714_v33 = vld [vmem:[#allocation55 + $0x138] ss:$12 sps:$4 sm:$0xff]   ;;  %v17717_v61 = vld [vmem:[#allocation55 + $0x200] ss:$12 sps:$4 sm:$0xff]  }
0x1d2e   :  { %8708 = vmatprep.subr.bf16.mxu0 %v17656_v51  ;;  %16102 = vmatprep.subr.bf16.mxu1 %v17657_v56  ;;  %v17720_v51 = vld [vmem:[#allocation55 + $0x154] ss:$12 sps:$4 sm:$0xff]   ;;  %v17718_v56 = vld [vmem:[#allocation55 + $0x150] ss:$12 sps:$4 sm:$0xff]  }
0x1d30   :  { %8083 = vmatmul.mubr.bf16.vlgmr.msra.gmra.mrb[96].mxu1 %v21015_v60  ;;  %16598 = vmatmul.mubr.bf16.vlgmr.msra.gmra.mrb[96].mxu0 %v21015_v60 }
0x1d31   :  { %8709 = vmatpush1.bf16.msra.mxu0 %v17654_v8  ;;  %8740 = vmatprep.mubr.bf16.mxu0 %v20959_v1  ;;  %v17721_v8 = vld [vmem:[#allocation55 + $0x218] ss:$12 sps:$4 sm:$0xff]  }
0x1d32   :  { %16103 = vmatpush3.bf16.msra.mxu1 %v17658_v63  ;;  %8826 = vmatprep.mubr.bf16.mxu1 %v20959_v1  ;;  %v17681_v1 = vld [vmem:[#allocation55 + $0x7c] ss:$12 sps:$4 sm:$0xff]   ;;  %v17724_v63 = vld [vmem:[#allocation55 + $0x16c] ss:$12 sps:$4 sm:$0xff]  }
0x1d33   :  { %8710 = vmatprep.subr.bf16.mxu0 %v17661_v52  ;;  %16104 = vmatprep.subr.bf16.mxu1 %v17662_v3  ;;  %v17722_v52 = vld [vmem:[#allocation55 + $0x168] ss:$12 sps:$4 sm:$0xff]   ;;  %v17725_v3 = vld [vmem:[#allocation55 + $0x230] ss:$12 sps:$4 sm:$0xff]  }
0x1d35   :  { %8711 = vmatpush1.bf16.msra.mxu0 %v17659_v12  ;;  %v17728_v12 = vld [vmem:[#allocation55 + $0x184] ss:$12 sps:$4 sm:$0xff]  }
0x1d36   :  { %16105 = vmatpush3.bf16.msra.mxu1 %v17663_v53  ;;  %8712 = vmatprep.subr.bf16.mxu0 %v17666_v19  ;;  %v17726_v53 = vld [vmem:[#allocation55 + $0x180] ss:$12 sps:$4 sm:$0xff]   ;;  %v17731_v19 = vld [vmem:[#allocation55 + $0x19c] ss:$12 sps:$4 sm:$0xff]  }
0x1d37   :  { %16106 = vmatprep.subr.bf16.mxu1 %v17667_v17  ;;  %v17729_v17 = vld [vmem:[#allocation55 + $0x198] ss:$12 sps:$4 sm:$0xff]  }
0x1d39   :  { %8713 = vmatpush1.bf16.msra.mxu0 %v17664_v2  ;;  %v17734_v2 = vld [vmem:[#allocation55 + $0x1b4] ss:$12 sps:$4 sm:$0xff]  }
0x1d3a   :  { %16107 = vmatpush3.bf16.msra.mxu1 %v17668_v55  ;;  %8714 = vmatprep.subr.bf16.mxu0 %v17671_v45  ;;  %v17732_v55 = vld [vmem:[#allocation55 + $0x1b0] ss:$12 sps:$4 sm:$0xff]   ;;  %v17737_v45 = vld [vmem:[#allocation55 + $0x1cc] ss:$12 sps:$4 sm:$0xff]  }
0x1d3b   :  { %16108 = vmatprep.subr.bf16.mxu1 %v17672_v7  ;;  %v17735_v7 = vld [vmem:[#allocation55 + $0x1c8] ss:$12 sps:$4 sm:$0xff]  }
0x1d3d   :  { %8715 = vmatpush1.bf16.msra.mxu0 %v17669_v21  ;;  %v17740_v21 = vld [vmem:[#allocation55 + $0x1e4] ss:$12 sps:$4 sm:$0xff]  }
0x1d3e   :  { %16109 = vmatpush3.bf16.msra.mxu1 %v17673_v13  ;;  %8716 = vmatprep.subr.bf16.mxu0 %v17676_v20  ;;  %v17738_v13 = vld [vmem:[#allocation55 + $0x1e0] ss:$12 sps:$4 sm:$0xff]   ;;  %v17741_v20 = vld [vmem:[#allocation55 + $0x1f8] ss:$12 sps:$4 sm:$0xff]  }
0x1d3f   :  { %16110 = vmatprep.subr.bf16.mxu1 %v17677_v9  ;;  %v17746_v9 = vld [vmem:[#allocation55 + $0x214] ss:$12 sps:$4 sm:$0xff]  }
0x1d41   :  { %8717 = vmatpush1.bf16.msra.mxu0 %v17674_v6  ;;  %v17744_v6 = vld [vmem:[#allocation55 + $0x210] ss:$12 sps:$4 sm:$0xff]  }
0x1d42   :  { %16111 = vmatpush3.bf16.msra.mxu1 %v17678_v4  ;;  %8718 = vmatprep.subr.bf16.mxu0 %v17681_v1  ;;  %v17749_v4 = vld [vmem:[#allocation55 + $0x22c] ss:$12 sps:$4 sm:$0xff]   ;;  %v17747_v1 = vld [vmem:[#allocation55 + $0x228] ss:$12 sps:$4 sm:$0xff]  }
0x1d43   :  { %16112 = vmatprep.subr.bf16.mxu1 %v17682_v58  ;;  %v17750_v58 = vld [vmem:[#allocation58] ss:$12 sps:$4 sm:$0xff]  }
0x1d45   :  { %8719 = vmatpush1.bf16.msra.mxu0 %v17679_v24  ;;  %v17752_v24 = vld [vmem:[#allocation58 + $0x4] ss:$12 sps:$4 sm:$0xff]  }
0x1d46   :  { %16113 = vmatpush3.bf16.msra.mxu1 %v17683_v29  ;;  %8720 = vmatprep.subr.bf16.mxu0 %v17686_v25  ;;  %v17755_v29 = vld [vmem:[#allocation58 + $0x1c] ss:$12 sps:$4 sm:$0xff]   ;;  %v17753_v25 = vld [vmem:[#allocation58 + $0x18] ss:$12 sps:$4 sm:$0xff]  }
0x1d47   :  { %16114 = vmatprep.subr.bf16.mxu1 %v17687_v40  ;;  %v17758_v40 = vld [vmem:[#allocation58 + $0x34] ss:$12 sps:$4 sm:$0xff]  }
0x1d49   :  { %8721 = vmatpush1.bf16.msra.mxu0 %v17684_v34  ;;  %v17756_v34 = vld [vmem:[#allocation58 + $0x30] ss:$12 sps:$4 sm:$0xff]  }
0x1d4a   :  { %16115 = vmatpush3.bf16.msra.mxu1 %v17688_v44  ;;  %8722 = vmatprep.subr.bf16.mxu0 %v17691_v31  ;;  %v17761_v44 = vld [vmem:[#allocation58 + $0x4c] ss:$12 sps:$4 sm:$0xff]   ;;  %v17759_v31 = vld [vmem:[#allocation58 + $0x48] ss:$12 sps:$4 sm:$0xff]  }
0x1d4b   :  { %16116 = vmatprep.subr.bf16.mxu1 %v17692_v41  ;;  %v17764_v41 = vld [vmem:[#allocation58 + $0x64] ss:$12 sps:$4 sm:$0xff]  }
0x1d4d   :  { %8723 = vmatpush1.bf16.msra.mxu0 %v17689_v37  ;;  %v17762_v37 = vld [vmem:[#allocation58 + $0x60] ss:$12 sps:$4 sm:$0xff]  }
0x1d4e   :  { %16117 = vmatpush3.bf16.msra.mxu1 %v17693_v43  ;;  %8724 = vmatprep.subr.bf16.mxu0 %v17696_v0  ;;  %v17765_v43 = vld [vmem:[#allocation58 + $0x78] ss:$12 sps:$4 sm:$0xff]   ;;  %v17770_v0 = vld [vmem:[#allocation58 + $0x94] ss:$12 sps:$4 sm:$0xff]  }
0x1d4f   :  { %16601 = vmatprep.subr.bf16.mxu1 %v19585_v35 }
0x1d51   :  { %8827 = vmatmul.mubr.bf16.vlgmr.msra.gmra.mrb[100].mxu1 %v20964_v54  ;;  %8725 = vmatpush1.bf16.msra.mxu0 %v17694_v30  ;;  %v17768_v30 = vld [vmem:[#allocation58 + $0x90] ss:$12 sps:$4 sm:$0xff]  }
0x1d52   :  { %16602 = vmatpush3.bf16.msra.mxu1 %v17697_v26  ;;  %8726 = vmatprep.subr.bf16.mxu0 %v17700_v10  ;;  %v17773_v26 = vld [vmem:[#allocation58 + $0xac] ss:$12 sps:$4 sm:$0xff]   ;;  %v17771_v10 = vld [vmem:[#allocation58 + $0xa8] ss:$12 sps:$4 sm:$0xff]  }
0x1d53   :  { %16603 = vmatprep.subr.bf16.mxu1 %v19585_v35  ;;  %16617 = vmatprep.mubr.msk.bf16.mxu1 %vm19587_vm0, %v19585_v35 }
0x1d55   :  { %8727 = vmatpush1.bf16.msra.mxu0 %v17698_v49  ;;  %v17776_v49 = vld [vmem:[#allocation58 + $0xc4] ss:$12 sps:$4 sm:$0xff]  }
0x1d56   :  { %16604 = vmatpush3.bf16.msra.mxu1 %v17701_v42  ;;  %8728 = vmatprep.subr.bf16.mxu0 %v17704_v5  ;;  %v17777_v42 = vld [vmem:[#allocation58 + $0xc8] ss:$12 sps:$4 sm:$0xff]   ;;  %v17774_v5 = vld [vmem:[#allocation58 + $0xc0] ss:$12 sps:$4 sm:$0xff]  }
0x1d57   :  { %16605 = vmatprep.subr.bf16.mxu1 %v19585_v35 }
0x1d59   :  { %8729 = vmatpush1.bf16.msra.mxu0 %v17702_v32  ;;  %v17778_v32 = vld [vmem:[#allocation58 + $0x8] ss:$12 sps:$4 sm:$0xff]  }
0x1d5a   :  { %16606 = vmatpush3.bf16.msra.mxu1 %v17705_v11  ;;  %8730 = vmatprep.subr.bf16.mxu0 %v17708_v48  ;;  %v17781_v11 = vld [vmem:[#allocation58 + $0xdc] ss:$12 sps:$4 sm:$0xff]   ;;  %v17782_v48 = vld [vmem:[#allocation58 + $0xe0] ss:$12 sps:$4 sm:$0xff]  }
0x1d5b   :  { %16607 = vmatprep.subr.bf16.mxu1 %v19585_v35 }
0x1d5d   :  { %8731 = vmatpush1.bf16.msra.mxu0 %v17706_v15  ;;  %v17783_v15 = vld [vmem:[#allocation58 + $0x20] ss:$12 sps:$4 sm:$0xff]  }
0x1d5e   :  { %16608 = vmatpush3.bf16.msra.mxu1 %v17709_v14  ;;  %8732 = vmatprep.subr.bf16.mxu0 %v17712_v46  ;;  %v17787_v14 = vld [vmem:[#allocation58 + $0xf8] ss:$12 sps:$4 sm:$0xff]  }
0x1d5f   :  { %16609 = vmatprep.subr.bf16.mxu1 %v19585_v35  ;;  %v17779_v46 = vld [vmem:[#allocation58 + $0xd8] ss:$12 sps:$4 sm:$0xff]  }
0x1d61   :  { %8733 = vmatpush1.bf16.msra.mxu0 %v17710_v27  ;;  %v17786_v27 = vld [vmem:[#allocation58 + $0xf4] ss:$12 sps:$4 sm:$0xff]  }
0x1d62   :  { %16610 = vmatpush3.bf16.msra.mxu1 %v17713_v16  ;;  %8734 = vmatprep.subr.bf16.mxu0 %v17716_v22  ;;  %v17788_v16 = vld [vmem:[#allocation58 + $0x38] ss:$12 sps:$4 sm:$0xff]   ;;  %v17792_v22 = vld [vmem:[#allocation58 + $0x110] ss:$12 sps:$4 sm:$0xff]  }
0x1d63   :  { %16611 = vmatprep.subr.bf16.mxu1 %v19585_v35 }
0x1d65   :  { %8735 = vmatpush1.bf16.msra.mxu0 %v17714_v33  ;;  %v17784_v33 = vld [vmem:[#allocation58 + $0xf0] ss:$12 sps:$4 sm:$0xff]  }
0x1d66   :  { %16612 = vmatpush3.bf16.msra.mxu1 %v17717_v61  ;;  %8736 = vmatprep.subr.bf16.mxu0 %v17720_v51  ;;  %v17791_v61 = vld [vmem:[#allocation58 + $0x10c] ss:$12 sps:$4 sm:$0xff]   ;;  %v17793_v51 = vld [vmem:[#allocation58 + $0x50] ss:$12 sps:$4 sm:$0xff]  }
0x1d67   :  { %16613 = vmatprep.subr.bf16.mxu1 %v19585_v35 }
0x1d69   :  { %8737 = vmatpush1.bf16.msra.mxu0 %v17718_v56  ;;  %v17797_v56 = vld [vmem:[#allocation58 + $0x128] ss:$12 sps:$4 sm:$0xff]  }
0x1d6a   :  { %16614 = vmatpush3.bf16.msra.mxu1 %v17721_v8  ;;  %8738 = vmatprep.subr.bf16.mxu0 %v17724_v63  ;;  %v17789_v8 = vld [vmem:[#allocation58 + $0x108] ss:$12 sps:$4 sm:$0xff]   ;;  %v17796_v63 = vld [vmem:[#allocation58 + $0x124] ss:$12 sps:$4 sm:$0xff]  }
0x1d6b   :  { %16615 = vmatprep.subr.bf16.mxu1 %v19585_v35 }
0x1d6d   :  { %8739 = vmatpush1.bf16.msra.mxu0 %v17722_v52  ;;  %v17798_v52 = vld [vmem:[#allocation58 + $0x68] ss:$12 sps:$4 sm:$0xff]  }
0x1d6e   :  { %16616 = vmatpush3.bf16.msra.mxu1 %v17725_v3  ;;  %8751 = vmatprep.subr.bf16.mxu0 %v17728_v12  ;;  %v17802_v3 = vld [vmem:[#allocation58 + $0x140] ss:$12 sps:$4 sm:$0xff]  }
0x1d6f   :  { %9382 = vmatprep.subr.bf16.mxu1 %v17752_v24  ;;  %v17794_v12 = vld [vmem:[#allocation58 + $0x120] ss:$12 sps:$4 sm:$0xff]   ;;  %v17813_v24 = vld [vmem:[#allocation58 + $0xb0] ss:$12 sps:$4 sm:$0xff]  }
0x1d70   :  { %8741 = vmatmul.mubr.bf16.vlgmr.msra.gmra.mrb[100].mxu0 %v20964_v54  ;;  %v17743_v54 = vld [vmem:[#allocation55 + $0x1fc] ss:$12 sps:$4 sm:$0xff]  }
0x1d71   :  { %16618 = vmatmul.mubr.bf16.vlgmr.msra.gmra.mrb[104].mxu1 %v21015_v60  ;;  %8752 = vmatpush1.bf16.msra.mxu0 %v17726_v53  ;;  %v17801_v53 = vld [vmem:[#allocation58 + $0x13c] ss:$12 sps:$4 sm:$0xff]  }
0x1d72   :  { %8753 = vmatprep.subr.bf16.mxu0 %v17731_v19  ;;  %8783 = vmatprep.mubr.bf16.mxu0 %v19586_v39  ;;  %v17803_v19 = vld [vmem:[#allocation58 + $0x80] ss:$12 sps:$4 sm:$0xff]  }
0x1d73   :  { %9383 = vmatpush1.bf16.msra.mxu1 %v17750_v58  ;;  %v17809_v58 = vld [vmem:[#allocation58 + $0x168] ss:$12 sps:$4 sm:$0xff]  }
0x1d74   :  { %9384 = vmatprep.subr.bf16.mxu1 %v17755_v29  ;;  %v17816_v29 = vld [vmem:[#allocation58 + $0x184] ss:$12 sps:$4 sm:$0xff]  }
0x1d75   :  { %8754 = vmatpush1.bf16.msra.mxu0 %v17729_v17  ;;  %v17799_v17 = vld [vmem:[#allocation58 + $0x138] ss:$12 sps:$4 sm:$0xff]  }
0x1d76   :  { %8755 = vmatprep.subr.bf16.mxu0 %v17734_v2 }
0x1d77   :  { %9385 = vmatpush1.bf16.msra.mxu1 %v17753_v25  ;;  %v21037_v25 = vld [vmem:[#allocation53] sm:$0x7] }
0x1d78   :  { %9386 = vmatprep.subr.bf16.mxu1 %v17758_v40  ;;  %v7619_v40 = vrot.slane %v21037_v25, %v20091_v38 }
0x1d79   :  { %8756 = vmatpush1.bf16.msra.mxu0 %v17732_v55 }
0x1d7a   :  { %8757 = vmatprep.subr.bf16.mxu0 %v17737_v45 }
0x1d7b   :  { %9387 = vmatpush1.bf16.msra.mxu1 %v17756_v34 }
0x1d7c   :  { %9388 = vmatprep.subr.bf16.mxu1 %v17761_v44 }
0x1d7d   :  { %8758 = vmatpush1.bf16.msra.mxu0 %v17735_v7 }
0x1d7e   :  { %8759 = vmatprep.subr.bf16.mxu0 %v17740_v21  ;;  %v17806_v21 = vld [vmem:[#allocation58 + $0x154] ss:$12 sps:$4 sm:$0xff]  }
0x1d7f   :  { %9389 = vmatpush1.bf16.msra.mxu1 %v17759_v31 }
0x1d80   :  { %9390 = vmatprep.subr.bf16.mxu1 %v17764_v41 }
0x1d81   :  { %8760 = vmatpush1.bf16.msra.mxu0 %v17738_v13  ;;  %v17807_v13 = vld [vmem:[#allocation58 + $0x158] ss:$12 sps:$4 sm:$0xff]  }
0x1d82   :  { %8761 = vmatprep.subr.bf16.mxu0 %v17743_v54 }
0x1d83   :  { %9391 = vmatpush1.bf16.msra.mxu1 %v17762_v37 }
0x1d85   :  { %8762 = vmatpush1.bf16.msra.mxu0 %v17741_v20  ;;  %v17804_v20 = vld [vmem:[#allocation58 + $0x150] ss:$12 sps:$4 sm:$0xff]  }
0x1d86   :  { %8763 = vmatprep.subr.bf16.mxu0 %v17746_v9  ;;  %v17808_v9 = vld [vmem:[#allocation58 + $0x98] ss:$12 sps:$4 sm:$0xff]  }
0x1d89   :  { %8764 = vmatpush1.bf16.msra.mxu0 %v17744_v6 }
0x1d8a   :  { %8765 = vmatprep.subr.bf16.mxu0 %v17749_v4  ;;  %v17811_v4 = vld [vmem:[#allocation58 + $0x16c] ss:$12 sps:$4 sm:$0xff]  }
0x1d8d   :  { %8766 = vmatpush1.bf16.msra.mxu0 %v17747_v1  ;;  %v17812_v1 = vld [vmem:[#allocation58 + $0x170] ss:$12 sps:$4 sm:$0xff]  }
0x1d8e   :  { %16133 = vmatprep.subr.bf16.mxu0 %v17777_v42 }
0x1d90   :  { %8784 = vmatmul.mubr.bf16.vlgmr.msra.gmra.mrb[100].mxu0 %v21015_v60  ;;  %v17767_v60 = vld [vmem:[#allocation58 + $0x7c] ss:$12 sps:$4 sm:$0xff]  }
0x1d91   :  { %9392 = vmatprep.subr.bf16.mxu1 %v17767_v60  ;;  %16134 = vmatpush3.bf16.msra.mxu0 %v17778_v32 }
0x1d92   :  { %9393 = vmatpush1.bf16.msra.mxu1 %v17765_v43  ;;  %16135 = vmatprep.subr.bf16.mxu0 %v17782_v48 }
0x1d93   :  { %9394 = vmatprep.subr.bf16.mxu1 %v17770_v0 }
0x1d95   :  { %16136 = vmatpush3.bf16.msra.mxu0 %v17783_v15 }
0x1d96   :  { %9395 = vmatpush1.bf16.msra.mxu1 %v17768_v30  ;;  %16137 = vmatprep.subr.bf16.mxu0 %v17787_v14  ;;  %v8307_v14 = vld [vmem:[#allocation56] sm:$0x7] }
0x1d97   :  { %9396 = vmatprep.subr.bf16.mxu1 %v17773_v26 }
0x1d99   :  { %16138 = vmatpush3.bf16.msra.mxu0 %v17788_v16 }
0x1d9a   :  { %9397 = vmatpush1.bf16.msra.mxu1 %v17771_v10  ;;  %16139 = vmatprep.subr.bf16.mxu0 %v17792_v22 }
0x1d9b   :  { %9398 = vmatprep.subr.bf16.mxu1 %v17776_v49 }
0x1d9d   :  { %16140 = vmatpush3.bf16.msra.mxu0 %v17793_v51 }
0x1d9e   :  { %9399 = vmatpush1.bf16.msra.mxu1 %v17774_v5  ;;  %16141 = vmatprep.subr.bf16.mxu0 %v17797_v56 }
0x1d9f   :  { %9400 = vmatprep.subr.bf16.mxu1 %v17781_v11 }
0x1da1   :  { %16142 = vmatpush3.bf16.msra.mxu0 %v17798_v52 }
0x1da2   :  { %9401 = vmatpush1.bf16.msra.mxu1 %v17779_v46  ;;  %16143 = vmatprep.subr.bf16.mxu0 %v17802_v3  ;;  %v8320_v46 = vrot.slane %v8307_v14, %v20091_v38 }
0x1da3   :  { %9402 = vmatprep.subr.bf16.mxu1 %v17786_v27 }
0x1da5   :  { %16144 = vmatpush3.bf16.msra.mxu0 %v17803_v19 }
0x1da6   :  { %9403 = vmatpush1.bf16.msra.mxu1 %v17784_v33  ;;  %16145 = vmatprep.subr.bf16.mxu0 %v17807_v13 }
0x1da7   :  { %9404 = vmatprep.subr.bf16.mxu1 %v17791_v61 }
0x1da9   :  { %16146 = vmatpush3.bf16.msra.mxu0 %v17808_v9 }
0x1daa   :  { %9405 = vmatpush1.bf16.msra.mxu1 %v17789_v8  ;;  %16147 = vmatprep.subr.bf16.mxu0 %v17812_v1 }
0x1dab   :  { %9406 = vmatprep.subr.bf16.mxu1 %v17796_v63 }
0x1dad   :  { %16148 = vmatpush3.bf16.msra.mxu0 %v17813_v24  ;;  %v17817_v24 = vld [vmem:[#allocation58 + $0x188] ss:$12 sps:$4 sm:$0xff]  }
0x1dae   :  { %9407 = vmatpush1.bf16.msra.mxu1 %v17794_v12  ;;  %16621 = vmatprep.subr.bf16.mxu0 %v19585_v35  ;;  %v8312_v12 = vrot.slane %v8307_v14, %v20096_v47 }
0x1daf   :  { %9408 = vmatprep.subr.bf16.mxu1 %v17801_v53  ;;  %v8316_v53 = vrot.slane %v8307_v14, %v20099_v50  ;;  %v17837_v14 = vld [vmem:[#allocation58 + $0x200] ss:$12 sps:$4 sm:$0xff]  }
0x1db2   :  { %9409 = vmatpush1.bf16.msra.mxu1 %v17799_v17 }
0x1db3   :  { %9410 = vmatprep.subr.bf16.mxu1 %v17806_v21 }
0x1db6   :  { %9411 = vmatpush1.bf16.msra.mxu1 %v17804_v20 }
0x1db7   :  { %9412 = vmatprep.subr.bf16.mxu1 %v17811_v4 }
0x1dba   :  { %9413 = vmatpush1.bf16.msra.mxu1 %v17809_v58  ;;  %v17814_v58 = vld [vmem:[#allocation58 + $0x180] ss:$12 sps:$4 sm:$0xff]  }
0x1dbb   :  { %9425 = vmatprep.subr.bf16.mxu1 %v17816_v29  ;;  %v17820_v29 = vld [vmem:[#allocation58 + $0x19c] ss:$12 sps:$4 sm:$0xff]  }
0x1de3   :  { %v16087_v2 = vpop.f32.mrb[92].mxu0 }
0x1de4   :  { %v16088_v55 = vpop.f32.mrb[93].mxu0 }
0x1de5   :  { %v16089_v45 = vadd.f32 %v16088_v55, %v16087_v2  ;;  %v16090_v7 = vpop.f32.mrb[94].mxu0 }
0x1de6   :  { %v16091_v54 = vpop.f32.mrb[95].mxu0 }
0x1de7   :  { %v16092_v6 = vadd.f32 %v16091_v54, %v16090_v7  ;;  %v8128_v34 = vadd.f32 %v16089_v45, %v7619_v40 }
0x1de9   :  { %v8131_v43 = vadd.f32 %v16092_v6, %v7619_v40  ;;  %v17818_v40 = vld [vmem:[#allocation58 + $0x198] ss:$12 sps:$4 sm:$0xff]  }
0x1e03   :  { %v21041_v44 = vpop.f32.mrb[96].mxu1  ;;  %v8168_v31 = vpop.f32.mrb[96].mxu0 }
0x1e04   :  { %v21043_v41 = vadd.f32 %v8168_v31, %v8128_v34  ;;  %v21045_v37 = vpop.f32.mrb[97].mxu1  ;;  %v16599_v60 = vpop.f32.mrb[97].mxu0  ;;  %v17821_v34 = vld [vmem:[#allocation58 + $0x1a0] ss:$12 sps:$4 sm:$0xff]  }
0x1e05   :  { %v21047_v0 = vpop.f32.mrb[98].mxu1  ;;  %v8171_v30 = vpop.f32.mrb[98].mxu0  ;;  %v17824_v31 = vld [vmem:[#allocation58 + $0x1b4] ss:$12 sps:$4 sm:$0xff]   ;;  %v17822_v60 = vld [vmem:[#allocation58 + $0x1b0] ss:$12 sps:$4 sm:$0xff]  }
0x1e06   :  { %v21049_v26 = vadd.f32 %v8171_v30, %v8131_v43  ;;  %v21051_v10 = vpop.f32.mrb[99].mxu1  ;;  %v16600_v49 = vpop.f32.mrb[99].mxu0  ;;  %v17825_v43 = vld [vmem:[#allocation58 + $0x1b8] ss:$12 sps:$4 sm:$0xff]  }
0x1e07   :  { %v17828_v30 = vld [vmem:[#allocation58 + $0x1cc] ss:$12 sps:$4 sm:$0xff]   ;;  %v17826_v49 = vld [vmem:[#allocation58 + $0x1c8] ss:$12 sps:$4 sm:$0xff]  }
0x1e24   :  { %v16118_v42 = vpop.f32.mrb[100].mxu1 }
0x1e25   :  { %v16119_v5 = vpop.f32.mrb[101].mxu1 }
0x1e26   :  { %v16120_v32 = vadd.f32 %v16119_v5, %v16118_v42  ;;  %v16121_v11 = vpop.f32.mrb[102].mxu1  ;;  %v17829_v42 = vld [vmem:[#allocation58 + $0x1d0] ss:$12 sps:$4 sm:$0xff]  }
0x1e27   :  { %v16122_v48 = vpop.f32.mrb[103].mxu1  ;;  %v17832_v5 = vld [vmem:[#allocation58 + $0x1e4] ss:$12 sps:$4 sm:$0xff]  }
0x1e28   :  { %v16123_v15 = vadd.f32 %v16122_v48, %v16121_v11  ;;  %v8829_v27 = vadd.f32 %v16120_v32, %v8320_v46  ;;  %v17830_v32 = vld [vmem:[#allocation58 + $0x1e0] ss:$12 sps:$4 sm:$0xff]   ;;  %v17833_v11 = vld [vmem:[#allocation58 + $0x1e8] ss:$12 sps:$4 sm:$0xff]  }
0x1e29   :  { %v17836_v48 = vld [vmem:[#allocation58 + $0x1fc] ss:$12 sps:$4 sm:$0xff]  }
0x1e2a   :  { %v8832_v61 = vadd.f32 %v16123_v15, %v8320_v46  ;;  %v17834_v15 = vld [vmem:[#allocation58 + $0x1f8] ss:$12 sps:$4 sm:$0xff]   ;;  %v17840_v46 = vld [vmem:[#allocation58 + $0x214] ss:$12 sps:$4 sm:$0xff]  }
0x1e44   :  { %v8869_v16 = vpop.f32.mrb[104].mxu1 }
0x1e45   :  { %v8870_v22 = vadd.f32 %v8869_v16, %v8829_v27  ;;  %v16619_v33 = vpop.f32.mrb[105].mxu1  ;;  %v17838_v27 = vld [vmem:[#allocation58 + $0x210] ss:$12 sps:$4 sm:$0xff]   ;;  %v17841_v16 = vld [vmem:[#allocation58 + $0x218] ss:$12 sps:$4 sm:$0xff]  }
0x1e46   :  { %v8872_v51 = vpop.f32.mrb[106].mxu1  ;;  %v17842_v33 = vld [vmem:[#allocation58 + $0x228] ss:$12 sps:$4 sm:$0xff]  }
0x1e47   :  { %v8873_v56 = vadd.f32 %v8872_v51, %v8832_v61  ;;  %v16620_v8 = vpop.f32.mrb[107].mxu1  ;;  %v8878_v63 = vmax.f32 %v8870_v22, 0.0  ;;  %v17844_v22 = vld [vmem:[#allocation58 + $0x22c] ss:$12 sps:$4 sm:$0xff]   ;;  %v17845_v61 = vld [vmem:[#allocation58 + $0x230] ss:$12 sps:$4 sm:$0xff]   ;;  %v7611_v51 = vrot.slane %v21037_v25, %v20096_v47 }
0x1e49   :  { %v8881_v52 = vmax.f32 %v8873_v56, 0.0  ;;  %v7615_v56 = vrot.slane %v21037_v25, %v20099_v50  ;;  %v16803_v8 = vadd.f32 %v21041_v44, %v7611_v51  ;;  %v14897_v25 = vmul.f32 -1.442695, %v21049_v26 }
0x1e4b   :  { %v21054_v3 = vpack.c.bf16 %v8881_v52, %v8878_v63  ;;  %v16804_v63 = vadd.f32 %v21045_v37, %v7615_v56  ;;  %v16805_v52 = vadd.f32 %v21047_v0, %v7611_v51 }
0x1e63   :  { %v8785_v19 = vpop.f32.mrb[100].mxu0 }
0x1e64   :  { %v16807_v17 = vadd.f32 %v8785_v19, %v8312_v12  ;;  %v8787_v2 = vpop.f32.mrb[101].mxu0 }
0x1e65   :  { %v16808_v55 = vadd.f32 %v8787_v2, %v8316_v53  ;;  %v8789_v45 = vpop.f32.mrb[102].mxu0  ;;  %v16806_v2 = vadd.f32 %v21051_v10, %v7615_v56 }
0x1e66   :  { %v16809_v7 = vadd.f32 %v8789_v45, %v8312_v12  ;;  %v8791_v21 = vpop.f32.mrb[103].mxu0  ;;  %v8876_v54 = vmax.f32 %v16807_v17, 0.0  ;;  %v14894_v17 = vmul.f32 -1.442695, %v21043_v41  ;;  %v14893_v45 = vmul.f32 -1.442695, %v16804_v63 }
0x1e67   :  { %v16810_v13 = vadd.f32 %v8791_v21, %v8316_v53  ;;  %v8877_v9 = vmax.f32 %v16808_v55, 0.0  ;;  %v14892_v53 = vmul.f32 -1.442695, %v16803_v8  ;;  %v14895_v21 = vmul.f32 -1.442695, %v16805_v52 }
0x1e68   :  { %v8879_v20 = vmax.f32 %v16809_v7, 0.0  ;;  %v14896_v44 = vmul.f32 -1.442695, %v16806_v2 }
0x1e69   :  { %v8880_v6 = vmax.f32 %v16810_v13, 0.0  ;;  %18502 = vpow2.f32 %v14892_v53 }
0x1e6a   :  { %v8979_v4 = vpack.c.bf16 %v8879_v20, %v8876_v54  ;;  %18504 = vpow2.f32 %v14894_v17 }
0x1e6b   :  { %v8980_v1 = vpack.c.bf16 %v8880_v6, %v8877_v9  ;;  %18506 = vpow2.f32 %v14893_v45 }
0x1e6c   :  { %18508 = vpow2.f32 %v14895_v21 }
0x1e6d   :  { %9414 = vmatprep.mubr.bf16.mxu1 %v8980_v1  ;;  %9500 = vmatprep.mubr.bf16.mxu0 %v8980_v1  ;;  %18510 = vpow2.f32 %v14897_v25 }
0x1e6e   :  { %9415 = vmatmul.mubr.bf16.vlgmr.msra.gmra.mrb[108].mxu1 %v8979_v4  ;;  %9501 = vmatmul.mubr.bf16.vlgmr.msra.gmra.mrb[104].mxu0 %v8979_v4  ;;  %18512 = vpow2.f32 %v14896_v44  ;;  %v17848_v44 = vld [vmem:[%s21730_s21 + $0x244] ss:$12 sps:$4 sm:$0xff]  }
0x1e6f   :  { %9426 = vmatpush1.bf16.msra.mxu1 %v17814_v58  ;;  %16622 = vmatpush3.bf16.msra.mxu0 %v17817_v24  ;;  %v8978_v24 = vld [vmem:[%s21731_s6] sm:$0x7] }
0x1e70   :  { %9427 = vmatprep.subr.bf16.mxu1 %v17820_v29  ;;  %16623 = vmatprep.subr.bf16.mxu0 %v19585_v35  ;;  %v8994_v29 = vrot.slane %v8978_v24, %v20091_v38 }
0x1e71   :  { %9457 = vmatprep.mubr.bf16.mxu1 %v19586_v39  ;;  %16637 = vmatprep.mubr.msk.bf16.mxu0 %vm19587_vm0, %v19585_v35 }
0x1e73   :  { %9428 = vmatpush1.bf16.msra.mxu1 %v17818_v40  ;;  %16624 = vmatpush3.bf16.msra.mxu0 %v17821_v34  ;;  %v18503_v37 = vpop.eup %18502  ;;  %v8986_v40 = vrot.slane %v8978_v24, %v20096_v47  ;;  %v8990_v34 = vrot.slane %v8978_v24, %v20099_v50  ;;  %v17866_v24 = vld [vmem:[%s21730_s21 + $0x2d4] ss:$12 sps:$4 sm:$0xff]  }
0x1e74   :  { %9429 = vmatprep.subr.bf16.mxu1 %v17824_v31  ;;  %16625 = vmatprep.subr.bf16.mxu0 %v19585_v35  ;;  %v18505_v41 = vpop.eup %18504  ;;  %v8193_v54 = vadd.f32 1.0, %v18503_v37  ;;  %v17849_v37 = vld [vmem:[%s21730_s21 + $0x258] ss:$12 sps:$4 sm:$0xff]  }
0x1e75   :  { %v18507_v0 = vpop.eup %18506  ;;  %v8195_v9 = vadd.f32 1.0, %v18505_v41  ;;  %v17873_v41 = vld [vmem:[%s21730_s21 + $0x308] ss:$12 sps:$4 sm:$0xff]  }
0x1e76   :  { %v18509_v10 = vpop.eup %18508  ;;  %v8194_v4 = vadd.f32 1.0, %v18507_v0  ;;  %18514 = vrcp.f32 %v8193_v54  ;;  %v17874_v0 = vld [vmem:[%s21730_s21 + $0x248] ss:$12 sps:$4 sm:$0xff]   ;;  %v17878_v54 = vld [vmem:[%s21730_s21 + $0x320] ss:$12 sps:$4 sm:$0xff]  }
0x1e77   :  { %9430 = vmatpush1.bf16.msra.mxu1 %v17822_v60  ;;  %16626 = vmatpush3.bf16.msra.mxu0 %v17825_v43  ;;  %v18511_v20 = vpop.eup %18510  ;;  %v8196_v1 = vadd.f32 1.0, %v18509_v10  ;;  %18516 = vrcp.f32 %v8195_v9  ;;  %v17852_v10 = vld [vmem:[%s21730_s21 + $0x270] ss:$12 sps:$4 sm:$0xff]   ;;  %v17879_v9 = vld [vmem:[%s21730_s21 + $0x260] ss:$12 sps:$4 sm:$0xff]  }
0x1e78   :  { %9431 = vmatprep.subr.bf16.mxu1 %v17828_v30  ;;  %16627 = vmatprep.subr.bf16.mxu0 %v19585_v35  ;;  %v18513_v6 = vpop.eup %18512  ;;  %v8198_v58 = vadd.f32 1.0, %v18511_v20  ;;  %18518 = vrcp.f32 %v8194_v4  ;;  %v17857_v20 = vld [vmem:[%s21730_s21 + $0x28c] ss:$12 sps:$4 sm:$0xff]   ;;  %v17860_v4 = vld [vmem:[%s21730_s21 + $0x2a4] ss:$12 sps:$4 sm:$0xff]  }
0x1e79   :  { %v8197_v26 = vadd.f32 1.0, %v18513_v6  ;;  %18520 = vrcp.f32 %v8196_v1  ;;  %v17855_v6 = vld [vmem:[%s21730_s21 + $0x288] ss:$12 sps:$4 sm:$0xff]   ;;  %v17858_v1 = vld [vmem:[%s21730_s21 + $0x2a0] ss:$12 sps:$4 sm:$0xff]  }
0x1e7a   :  { %18522 = vrcp.f32 %v8198_v58  ;;  %v17863_v58 = vld [vmem:[%s21730_s21 + $0x2bc] ss:$12 sps:$4 sm:$0xff]  }
0x1e7b   :  { %9432 = vmatpush1.bf16.msra.mxu1 %v17826_v49  ;;  %16628 = vmatpush3.bf16.msra.mxu0 %v17829_v42  ;;  %18524 = vrcp.f32 %v8197_v26  ;;  %v17861_v26 = vld [vmem:[%s21730_s21 + $0x2b8] ss:$12 sps:$4 sm:$0xff]  }
0x1e7c   :  { %9433 = vmatprep.subr.bf16.mxu1 %v17832_v5  ;;  %16629 = vmatprep.subr.bf16.mxu0 %v19585_v35 }
0x1e7f   :  { %9434 = vmatpush1.bf16.msra.mxu1 %v17830_v32  ;;  %16630 = vmatpush3.bf16.msra.mxu0 %v17833_v11 }
0x1e80   :  { %9435 = vmatprep.subr.bf16.mxu1 %v17836_v48  ;;  %16631 = vmatprep.subr.bf16.mxu0 %v19585_v35  ;;  %v18515_v60 = vpop.eup %18514 }
0x1e81   :  { %v18517_v49 = vpop.eup %18516 }
0x1e83   :  { %9436 = vmatpush1.bf16.msra.mxu1 %v17834_v15  ;;  %16632 = vmatpush3.bf16.msra.mxu0 %v17837_v14  ;;  %v18519_v15 = vpop.eup %18518 }
0x1e84   :  { %9437 = vmatprep.subr.bf16.mxu1 %v17840_v46  ;;  %16633 = vmatprep.subr.bf16.mxu0 %v19585_v35 }
0x1e87   :  { %9438 = vmatpush1.bf16.msra.mxu1 %v17838_v27  ;;  %16634 = vmatpush3.bf16.msra.mxu0 %v17841_v16  ;;  %v18521_v16 = vpop.eup %18520 }
0x1e88   :  { %9439 = vmatprep.subr.bf16.mxu1 %v17844_v22  ;;  %16635 = vmatprep.subr.bf16.mxu0 %v19585_v35  ;;  %v18523_v63 = vpop.eup %18522 }
0x1e89   :  { %v18525_v53 = vpop.eup %18524 }
0x1e8b   :  { %9440 = vmatpush1.bf16.msra.mxu1 %v17842_v33  ;;  %16636 = vmatpush3.bf16.msra.mxu0 %v17845_v61 }
0x1e8c   :  { %10154 = vmatprep.subr.bf16.mxu0 %v17848_v44  ;;  %16164 = vmatprep.subr.bf16.mxu1 %v17873_v41  ;;  %v17899_v44 = vld [vmem:[%s21730_s21 + $0x2c0] ss:$12 sps:$4 sm:$0xff]   ;;  %v17904_v41 = vld [vmem:[%s21730_s21 + $0x2d8] ss:$12 sps:$4 sm:$0xff]  }
0x1e8e   :  { %9458 = vmatmul.mubr.bf16.vlgmr.msra.gmra.mrb[108].mxu1 %v21054_v3  ;;  %16638 = vmatmul.mubr.bf16.vlgmr.msra.gmra.mrb[108].mxu0 %v21054_v3 }
0x1e8f   :  { %16165 = vmatpush3.bf16.msra.mxu1 %v17874_v0  ;;  %v17907_v0 = vld [vmem:[%s21730_s21 + $0x3ac] ss:$12 sps:$4 sm:$0xff]  }
0x1e90   :  { %16166 = vmatprep.subr.bf16.mxu1 %v17878_v54  ;;  %v17905_v54 = vld [vmem:[%s21730_s21 + $0x3a8] ss:$12 sps:$4 sm:$0xff]  }
0x1e93   :  { %16167 = vmatpush3.bf16.msra.mxu1 %v17879_v9  ;;  %v17912_v9 = vld [vmem:[%s21730_s21 + $0x3c4] ss:$12 sps:$4 sm:$0xff]  }
0x1f41   :  { %v16149_v12 = vpop.f32.mrb[104].mxu0 }
0x1f42   :  { %v16150_v19 = vpop.f32.mrb[105].mxu0 }
0x1f43   :  { %v16151_v3 = vadd.f32 %v16150_v19, %v16149_v12  ;;  %v16152_v55 = vpop.f32.mrb[106].mxu0 }
0x1f44   :  { %v16153_v7 = vpop.f32.mrb[107].mxu0 }
0x1f45   :  { %v16154_v13 = vadd.f32 %v16153_v7, %v16152_v55  ;;  %v9503_v31 = vadd.f32 %v16151_v3, %v8994_v29 }
0x1f47   :  { %v9506_v48 = vadd.f32 %v16154_v13, %v8994_v29  ;;  %v17864_v29 = vld [vmem:[%s21730_s21 + $0x2d0] ss:$12 sps:$4 sm:$0xff]  }
0x1f61   :  { %v9459_v43 = vpop.f32.mrb[108].mxu1  ;;  %v9543_v30 = vpop.f32.mrb[108].mxu0 }
0x1f62   :  { %v16811_v42 = vadd.f32 %v9459_v43, %v8986_v40  ;;  %v9544_v5 = vadd.f32 %v9543_v30, %v9503_v31  ;;  %v9461_v32 = vpop.f32.mrb[109].mxu1  ;;  %v16639_v11 = vpop.f32.mrb[109].mxu0  ;;  %v17872_v31 = vld [vmem:[%s21730_s21 + $0x304] ss:$12 sps:$4 sm:$0xff]   ;;  %v17877_v43 = vld [vmem:[%s21730_s21 + $0x31c] ss:$12 sps:$4 sm:$0xff]  }
0x1f63   :  { %v16812_v14 = vadd.f32 %v9461_v32, %v8990_v34  ;;  %v9463_v46 = vpop.f32.mrb[110].mxu1  ;;  %v9546_v27 = vpop.f32.mrb[110].mxu0  ;;  %v17875_v30 = vld [vmem:[%s21730_s21 + $0x318] ss:$12 sps:$4 sm:$0xff]  }
0x1f64   :  { %v9550_v22 = vmul.f32 %v18515_v60, %v16811_v42  ;;  %v9552_v33 = vmul.f32 %v18517_v49, %v9544_v5  ;;  %v16813_v61 = vadd.f32 %v9463_v46, %v8986_v40  ;;  %v9547_v51 = vadd.f32 %v9546_v27, %v9506_v48  ;;  %v9465_v56 = vpop.f32.mrb[111].mxu1  ;;  %v16640_v8 = vpop.f32.mrb[111].mxu0  ;;  %v17869_v40 = vld [vmem:[%s21730_s21 + $0x2ec] ss:$12 sps:$4 sm:$0xff]  }
0x1f65   :  { %v9551_v52 = vmul.f32 %v18519_v15, %v16812_v14  ;;  %v16814_v12 = vadd.f32 %v9465_v56, %v8990_v34  ;;  %v17867_v34 = vld [vmem:[%s21730_s21 + $0x2e8] ss:$12 sps:$4 sm:$0xff]   ;;  %v17870_v60 = vld [vmem:[%s21730_s21 + $0x300] ss:$12 sps:$4 sm:$0xff]  }
0x1f66   :  { %v21085_v19 = vadd.f32 %v9550_v22, %v20953_v62  ;;  %v9553_v17 = vmul.f32 %v18521_v16, %v16813_v61  ;;  %v9555_v2 = vmul.f32 %v18523_v63, %v9547_v51  ;;  %v9558_v21 = vadd.f32 %v9552_v33, %v21011_v59  ;;  %v17851_v59 = vld [vmem:[%s21730_s21 + $0x25c] ss:$12 sps:$4 sm:$0xff]  }
0x1f67   :  { %v21088_v3 = vadd.f32 %v9551_v52, %v20949_v28  ;;  %v9554_v55 = vmul.f32 %v18525_v53, %v16814_v12  ;;  %v17882_v53 = vld [vmem:[%s21730_s21 + $0x334] ss:$12 sps:$4 sm:$0xff]  }
0x1f68   :  { %v21091_v45 = vadd.f32 %v9553_v17, %v20955_v23  ;;  %v9561_v28 = vadd.f32 %v9555_v2, %v21009_v57  ;;  %v17854_v57 = vld [vmem:[%s21730_s21 + $0x274] ss:$12 sps:$4 sm:$0xff]   ;;  %v17880_v17 = vld [vmem:[%s21730_s21 + $0x330] ss:$12 sps:$4 sm:$0xff]   ;;  %v17884_v2 = vld [vmem:[%s21730_s21 + $0x278] ss:$12 sps:$4 sm:$0xff]  }
0x1f69   :  { %v21094_v7 = vadd.f32 %v9554_v55, %v20951_v18  ;;  %v9566_v62 = vadd.f32 %v21088_v3, %v21085_v19  ;;  %v17846_v18 = vld [vmem:[%s21730_s21 + $0x240] ss:$12 sps:$4 sm:$0xff]   ;;  %v17888_v55 = vld [vmem:[%s21730_s21 + $0x350] ss:$12 sps:$4 sm:$0xff]  }
0x1f6a   :  { %10155 = vmatpush1.bf16.msra.mxu0 %v17846_v18  ;;  %v17895_v18 = vld [vmem:[%s21730_s21 + $0x378] ss:$12 sps:$4 sm:$0xff]  }
0x1f6b   :  { %v9567_v13 = vadd.f32 %v9566_v62, %v9558_v21  ;;  %v9570_v25 = vadd.f32 %v21094_v7, %v21091_v45  ;;  %10156 = vmatprep.subr.bf16.mxu0 %v17851_v59  ;;  %v17893_v62 = vld [vmem:[%s21730_s21 + $0x368] ss:$12 sps:$4 sm:$0xff]  }
0x1f6c   :  { %v17902_v59 = vld [vmem:[%s21730_s21 + $0x394] ss:$12 sps:$4 sm:$0xff]  }
0x1f6d   :  { %9568 = vadd.xlane.f32.xlu0 %v9567_v13  ;;  %v9571_v23 = vadd.f32 %v9570_v25, %v9561_v28  ;;  %v17890_v13 = vld [vmem:[%s21730_s21 + $0x360] ss:$12 sps:$4 sm:$0xff]   ;;  %v17897_v25 = vld [vmem:[%s21730_s21 + $0x37c] ss:$12 sps:$4 sm:$0xff]  }
0x1f6e   :  { %10157 = vmatpush1.bf16.msra.mxu0 %v17849_v37  ;;  %v17903_v37 = vld [vmem:[%s21730_s21 + $0x398] ss:$12 sps:$4 sm:$0xff]  }
0x1f6f   :  { %9572 = vadd.xlane.f32.xlu1 %v9571_v23  ;;  %10158 = vmatprep.subr.bf16.mxu0 %v17854_v57  ;;  %v17898_v23 = vld [vmem:[%s21730_s21 + $0x380] ss:$12 sps:$4 sm:$0xff]   ;;  %v17900_v57 = vld [vmem:[%s21730_s21 + $0x390] ss:$12 sps:$4 sm:$0xff]  }
0x1f72   :  { %10159 = vmatpush1.bf16.msra.mxu0 %v17852_v10  ;;  %v17908_v10 = vld [vmem:[%s21730_s21 + $0x3b0] ss:$12 sps:$4 sm:$0xff]  }
0x1f73   :  { %10160 = vmatprep.subr.bf16.mxu0 %v17857_v20  ;;  %v17909_v20 = vld [vmem:[%s21730_s21 + $0x2f0] ss:$12 sps:$4 sm:$0xff]  }
0x1f76   :  { %10161 = vmatpush1.bf16.msra.mxu0 %v17855_v6 }
0x1f77   :  { %10162 = vmatprep.subr.bf16.mxu0 %v17860_v4 }
0x1f7a   :  { %10163 = vmatpush1.bf16.msra.mxu0 %v17858_v1 }
0x1f7b   :  { %10164 = vmatprep.subr.bf16.mxu0 %v17863_v58 }
0x1f7e   :  { %10165 = vmatpush1.bf16.msra.mxu0 %v17861_v26 }
0x1f7f   :  { %10166 = vmatprep.subr.bf16.mxu0 %v17866_v24 }
0x1f82   :  { %10167 = vmatpush1.bf16.msra.mxu0 %v17864_v29  ;;  %v21180_v29 = vld [vmem:[#allocation50 + $0x3] sm:$0x7] }
0x1f83   :  { %10168 = vmatprep.subr.bf16.mxu0 %v17869_v40  ;;  %v21182_v40 = vld [vmem:[#allocation52 + $0x3] sm:$0x7] }
0x1f86   :  { %10169 = vmatpush1.bf16.msra.mxu0 %v17867_v34  ;;  %v9616_v34 = vrot.slane %v21180_v29, %v20099_v50 }
0x1f87   :  { %10170 = vmatprep.subr.bf16.mxu0 %v17872_v31  ;;  %v9612_v31 = vrot.slane %v21180_v29, %v20096_v47 }
0x1f8a   :  { %10171 = vmatpush1.bf16.msra.mxu0 %v17870_v60 }
0x1f8b   :  { %10172 = vmatprep.subr.bf16.mxu0 %v17877_v43 }
0x1f8e   :  { %10173 = vmatpush1.bf16.msra.mxu0 %v17875_v30 }
0x1f8f   :  { %10174 = vmatprep.subr.bf16.mxu0 %v17882_v53  ;;  %v17914_v53 = vld [vmem:[%s21730_s21 + $0x3d8] ss:$12 sps:$4 sm:$0xff]  }
0x1f92   :  { %10175 = vmatpush1.bf16.msra.mxu0 %v17880_v17  ;;  %v17920_v17 = vld [vmem:[%s21730_s21 + $0x3f4] ss:$12 sps:$4 sm:$0xff]  }
0x1ffa   :  { %v9569_v49 = vpop.xlane.xlu0 %9568 }
0x1ffb   :  { %v9574_v42 = vmul.f32 0.0026041667, %v9569_v49 }
0x1ffc   :  { %v9573_v5 = vpop.xlane.xlu1 %9572 }
0x1ffd   :  { %v21127_v32 = vsub.f32 %v21085_v19, %v9574_v42  ;;  %v21130_v11 = vsub.f32 %v21088_v3, %v9574_v42  ;;  %v9575_v48 = vmul.f32 0.0026041667, %v9573_v5  ;;  %v21132_v15 = vsub.f32 %v9558_v21, %v9574_v42  ;;  %v17883_v19 = vld [vmem:[%s21730_s21 + $0x338] ss:$12 sps:$4 sm:$0xff]  }
0x1ffe   :  { %16168 = vmatprep.subr.bf16.mxu1 %v17883_v19  ;;  %v17887_v3 = vld [vmem:[%s21730_s21 + $0x34c] ss:$12 sps:$4 sm:$0xff]   ;;  %v17892_v21 = vld [vmem:[%s21730_s21 + $0x364] ss:$12 sps:$4 sm:$0xff]   ;;  %v9638_v5 = vrot.slane %v21182_v40, %v20099_v50 }
0x1fff   :  { %v21135_v14 = vsub.f32 %v21091_v45, %v9575_v48  ;;  %v21138_v46 = vsub.f32 %v21094_v7, %v9575_v48  ;;  %v21140_v27 = vsub.f32 %v9561_v28, %v9575_v48  ;;  %v9582_v16 = vmul.f32 %v21127_v32, %v21127_v32  ;;  %16169 = vmatpush3.bf16.msra.mxu1 %v17884_v2  ;;  %v17885_v45 = vld [vmem:[%s21730_s21 + $0x348] ss:$12 sps:$4 sm:$0xff]   ;;  %v17889_v7 = vld [vmem:[%s21730_s21 + $0x290] ss:$12 sps:$4 sm:$0xff]   ;;  %v17917_v19 = vld [vmem:[%s21730_s21 + $0x3e0] ss:$12 sps:$4 sm:$0xff]  }
0x2000   :  { %v9583_v22 = vmul.f32 %v21130_v11, %v21130_v11  ;;  %v9584_v51 = vmul.f32 %v21132_v15, %v21132_v15  ;;  %10176 = vmatprep.subr.bf16.mxu0 %v17887_v3  ;;  %16170 = vmatprep.subr.bf16.mxu1 %v17888_v55  ;;  %v17894_v28 = vld [vmem:[%s21730_s21 + $0x2a8] ss:$12 sps:$4 sm:$0xff]   ;;  %v17918_v2 = vld [vmem:[%s21730_s21 + $0x3f0] ss:$12 sps:$4 sm:$0xff]   ;;  %v17921_v3 = vld [vmem:[%s21730_s21 + $0x3f8] ss:$12 sps:$4 sm:$0xff]  }
0x2001   :  { %v9585_v33 = vmul.f32 %v21135_v14, %v21135_v14  ;;  %v9586_v61 = vmul.f32 %v21138_v46, %v21138_v46  ;;  %v9587_v8 = vmul.f32 %v21140_v27, %v21140_v27  ;;  %10177 = vmatpush1.bf16.msra.mxu0 %v17885_v45  ;;  %v17924_v55 = vld [vmem:[%s21730_s21 + $0x40c] ss:$12 sps:$4 sm:$0xff]   ;;  %v17922_v45 = vld [vmem:[%s21730_s21 + $0x408] ss:$12 sps:$4 sm:$0xff]  }
0x2002   :  { %v9588_v56 = vadd.f32 %v9583_v22, %v9582_v16  ;;  %10178 = vmatprep.subr.bf16.mxu0 %v17892_v21  ;;  %v9634_v16 = vrot.slane %v21182_v40, %v20096_v47  ;;  %v17928_v21 = vld [vmem:[%s21730_s21 + $0x424] ss:$12 sps:$4 sm:$0xff]  }
0x2003   :  { %v9592_v63 = vadd.f32 %v9586_v61, %v9585_v33  ;;  %16171 = vmatpush3.bf16.msra.mxu1 %v17889_v7  ;;  %v17925_v7 = vld [vmem:[%s21730_s21 + $0x410] ss:$12 sps:$4 sm:$0xff]  }
0x2004   :  { %v9589_v52 = vadd.f32 %v9588_v56, %v9584_v51  ;;  %16172 = vmatprep.subr.bf16.mxu1 %v17893_v62  ;;  %v17926_v62 = vld [vmem:[%s21730_s21 + $0x420] ss:$12 sps:$4 sm:$0xff]  }
0x2005   :  { %v9593_v12 = vadd.f32 %v9592_v63, %v9587_v8  ;;  %10179 = vmatpush1.bf16.msra.mxu0 %v17890_v13  ;;  %v17910_v8 = vld [vmem:[%s21730_s21 + $0x3c0] ss:$12 sps:$4 sm:$0xff]   ;;  %v17929_v13 = vld [vmem:[%s21730_s21 + $0x428] ss:$12 sps:$4 sm:$0xff]  }
0x2006   :  { %9590 = vadd.xlane.f32.xlu0 %v9589_v52  ;;  %10180 = vmatprep.subr.bf16.mxu0 %v17897_v25  ;;  %v17913_v52 = vld [vmem:[%s21730_s21 + $0x3c8] ss:$12 sps:$4 sm:$0xff]   ;;  %v17930_v25 = vld [vmem:[%s21730_s21 + $0x438] ss:$12 sps:$4 sm:$0xff]  }
0x2007   :  { %9594 = vadd.xlane.f32.xlu1 %v9593_v12  ;;  %16173 = vmatpush3.bf16.msra.mxu1 %v17894_v28  ;;  %v17916_v12 = vld [vmem:[%s21730_s21 + $0x3dc] ss:$12 sps:$4 sm:$0xff]  }
0x2008   :  { %16174 = vmatprep.subr.bf16.mxu1 %v17898_v23  ;;  %v17932_v28 = vld [vmem:[%s21730_s21 + $0x43c] ss:$12 sps:$4 sm:$0xff]   ;;  %v17933_v23 = vld [vmem:[%s21730_s21 + $0x440] ss:$12 sps:$4 sm:$0xff]  }
0x2009   :  { %10181 = vmatpush1.bf16.msra.mxu0 %v17895_v18  ;;  %v17936_v18 = vld [vmem:[%s21730_s21 + $0x454] ss:$12 sps:$4 sm:$0xff]  }
0x200a   :  { %10182 = vmatprep.subr.bf16.mxu0 %v17902_v59 }
0x200b   :  { %16175 = vmatpush3.bf16.msra.mxu1 %v17899_v44 }
0x200c   :  { %16176 = vmatprep.subr.bf16.mxu1 %v17903_v37  ;;  %v9620_v37 = vrot.slane %v21180_v29, %v20091_v38  ;;  %v17949_v29 = vld [vmem:[#allocation55 + $0x25c] ss:$12 sps:$4 sm:$0xff]  }
0x200d   :  { %10183 = vmatpush1.bf16.msra.mxu0 %v17900_v57  ;;  %v17934_v57 = vld [vmem:[%s21730_s21 + $0x450] ss:$12 sps:$4 sm:$0xff]  }
0x200e   :  { %10184 = vmatprep.subr.bf16.mxu0 %v17907_v0  ;;  %v17940_v0 = vld [vmem:[%s21730_s21 + $0x46c] ss:$12 sps:$4 sm:$0xff]  }
0x200f   :  { %16177 = vmatpush3.bf16.msra.mxu1 %v17904_v41  ;;  %v17937_v41 = vld [vmem:[%s21730_s21 + $0x458] ss:$12 sps:$4 sm:$0xff]  }
0x2010   :  { %16178 = vmatprep.subr.bf16.mxu1 %v17908_v10 }
0x2011   :  { %10185 = vmatpush1.bf16.msra.mxu0 %v17905_v54 }
0x2012   :  { %10197 = vmatprep.subr.bf16.mxu0 %v17912_v9 }
0x2013   :  { %16179 = vmatpush3.bf16.msra.mxu1 %v17909_v20  ;;  %v17938_v20 = vld [vmem:[%s21730_s21 + $0x468] ss:$12 sps:$4 sm:$0xff]  }
0x2014   :  { %16641 = vmatprep.subr.bf16.mxu1 %v19585_v35 }
0x2093   :  { %v9591_v6 = vpop.xlane.xlu0 %9590 }
0x2094   :  { %v9596_v4 = vmul.f32 0.0026041667, %v9591_v6  ;;  %v9595_v1 = vpop.xlane.xlu1 %9594  ;;  %v17944_v6 = vld [vmem:[#allocation55 + $0x244] ss:$12 sps:$4 sm:$0xff]  }
0x2095   :  { %v9597_v58 = vmul.f32 0.0026041667, %v9595_v1 }
0x2096   :  { %v9598_v26 = vadd.f32 0.001, %v9596_v4  ;;  %v17945_v4 = vld [vmem:[#allocation55 + $0x308] ss:$12 sps:$4 sm:$0xff]  }
0x2097   :  { %v9599_v24 = vadd.f32 0.001, %v9597_v58  ;;  %v17942_v58 = vld [vmem:[#allocation55 + $0x240] ss:$12 sps:$4 sm:$0xff]  }
0x2098   :  { %18526 = vrsqrt.f32 %v9598_v26 }
0x2099   :  { %18528 = vrsqrt.f32 %v9599_v24  ;;  %v17946_v24 = vld [vmem:[#allocation55 + $0x248] ss:$12 sps:$4 sm:$0xff]  }
0x20a2   :  { %v21188_v60 = vpop.eup %18526 }
0x20a3   :  { %v18529_v43 = vpop.eup %18528  ;;  %v9603_v30 = vmul.f32 %v21188_v60, %v21130_v11  ;;  %v9602_v49 = vmul.f32 %v21188_v60, %v21127_v32  ;;  %v9604_v59 = vmul.f32 %v21188_v60, %v21132_v15  ;;  %v17941_v15 = vld [vmem:[%s21730_s21 + $0x470] ss:$12 sps:$4 sm:$0xff]   ;;  %v17954_v60 = vld [vmem:[#allocation55 + $0x274] ss:$12 sps:$4 sm:$0xff]  }
0x20a4   :  { %v9606_v42 = vmul.f32 %v18529_v43, %v21138_v46  ;;  %v9605_v48 = vmul.f32 %v18529_v43, %v21135_v14  ;;  %v9607_v44 = vmul.f32 %v18529_v43, %v21140_v27  ;;  %v9642_v27 = vrot.slane %v21182_v40, %v20091_v38  ;;  %v17950_v40 = vld [vmem:[#allocation55 + $0x320] ss:$12 sps:$4 sm:$0xff]   ;;  %v17955_v43 = vld [vmem:[#allocation55 + $0x338] ss:$12 sps:$4 sm:$0xff]  }
0x20a5   :  { %v9625_v22 = vmul.f32 %v9616_v34, %v9603_v30  ;;  %v9624_v33 = vmul.f32 %v9612_v31, %v9602_v49  ;;  %v9626_v54 = vmul.f32 %v9620_v37, %v9604_v59  ;;  %v17952_v30 = vld [vmem:[#allocation55 + $0x270] ss:$12 sps:$4 sm:$0xff]   ;;  %v17956_v49 = vld [vmem:[#allocation55 + $0x278] ss:$12 sps:$4 sm:$0xff]  }
0x20a6   :  { %v9628_v61 = vmul.f32 %v9616_v34, %v9606_v42  ;;  %v9627_v51 = vmul.f32 %v9612_v31, %v9605_v48  ;;  %v9629_v10 = vmul.f32 %v9620_v37, %v9607_v44  ;;  %v17947_v34 = vld [vmem:[#allocation55 + $0x258] ss:$12 sps:$4 sm:$0xff]   ;;  %v17951_v31 = vld [vmem:[#allocation55 + $0x260] ss:$12 sps:$4 sm:$0xff]   ;;  %v17957_v48 = vld [vmem:[#allocation55 + $0x288] ss:$12 sps:$4 sm:$0xff]  }
0x20a7   :  { %v21200_v11 = vadd.f32 %v9638_v5, %v9625_v22  ;;  %v21204_v46 = vadd.f32 %v9634_v16, %v9624_v33  ;;  %v21262_v1 = vadd.f32 %v9642_v27, %v9626_v54  ;;  %v17959_v42 = vld [vmem:[#allocation55 + $0x28c] ss:$12 sps:$4 sm:$0xff]   ;;  %v17964_v22 = vld [vmem:[#allocation55 + $0x2a4] ss:$12 sps:$4 sm:$0xff]   ;;  %v17965_v33 = vld [vmem:[#allocation55 + $0x368] ss:$12 sps:$4 sm:$0xff]  }
0x20a8   :  { %v21202_v32 = vadd.f32 %v9638_v5, %v9628_v61  ;;  %v21206_v56 = vadd.f32 %v9634_v16, %v9627_v51  ;;  %v21260_v9 = vadd.f32 %v9642_v27, %v9629_v10  ;;  %v17960_v5 = vld [vmem:[#allocation55 + $0x350] ss:$12 sps:$4 sm:$0xff]   ;;  %v17962_v61 = vld [vmem:[#allocation55 + $0x2a0] ss:$12 sps:$4 sm:$0xff]   ;;  %v17966_v51 = vld [vmem:[#allocation55 + $0x2a8] ss:$12 sps:$4 sm:$0xff]  }
0x20a9   :  { %v17961_v16 = vld [vmem:[#allocation55 + $0x290] ss:$12 sps:$4 sm:$0xff]   ;;  %v17993_v59 = vld [vmem:[#allocation55 + $0x3f8] ss:$12 sps:$4 sm:$0xff]   ;;  %v17998_v10 = vld [vmem:[#allocation55 + $0x360] ss:$12 sps:$4 sm:$0xff]  }
0x20aa   :  { %v21210_v14 = vpack.c.bf16 %v21202_v32, %v21200_v11  ;;  %v21215_v63 = vpack.c.bf16 %v21206_v56, %v21204_v46  ;;  %v21266_v26 = vpack.c.bf16 %v21260_v9, %v21262_v1  ;;  %v17990_v44 = vld [vmem:[#allocation55 + $0x330] ss:$12 sps:$4 sm:$0xff]   ;;  %v17996_v37 = vld [vmem:[#allocation55 + $0x34c] ss:$12 sps:$4 sm:$0xff]   ;;  %v18001_v54 = vld [vmem:[#allocation55 + $0x428] ss:$12 sps:$4 sm:$0xff]  }
0x20ab   :  { %v18004_v27 = vld [vmem:[#allocation55 + $0x37c] ss:$12 sps:$4 sm:$0xff]  }
0x20ac   :  { %10186 = vmatprep.mubr.bf16.mxu0 %v21210_v14  ;;  %10272 = vmatprep.mubr.bf16.mxu1 %v21210_v14 }
0x20ad   :  { %10187 = vmatmul.mubr.bf16.vlgmr.msra.gmra.mrb[112].mxu0 %v21215_v63  ;;  %10273 = vmatmul.mubr.bf16.vlgmr.msra.gmra.mrb[112].mxu1 %v21215_v63 }
0x20ae   :  { %10198 = vmatpush1.bf16.msra.mxu0 %v17910_v8  ;;  %16642 = vmatpush3.bf16.msra.mxu1 %v17913_v52  ;;  %v17970_v8 = vld [vmem:[#allocation55 + $0x380] ss:$12 sps:$4 sm:$0xff]   ;;  %v17967_v52 = vld [vmem:[#allocation55 + $0x2b8] ss:$12 sps:$4 sm:$0xff]  }
0x20af   :  { %10199 = vmatprep.subr.bf16.mxu0 %v17916_v12  ;;  %16643 = vmatprep.subr.bf16.mxu1 %v19585_v35  ;;  %v17971_v12 = vld [vmem:[#allocation55 + $0x2c0] ss:$12 sps:$4 sm:$0xff]  }
0x20b0   :  { %10229 = vmatprep.mubr.bf16.mxu0 %v19586_v39  ;;  %16657 = vmatprep.mubr.msk.bf16.mxu1 %vm19587_vm0, %v19585_v35 }
0x20b2   :  { %10200 = vmatpush1.bf16.msra.mxu0 %v17914_v53  ;;  %16644 = vmatpush3.bf16.msra.mxu1 %v17917_v19  ;;  %v17974_v53 = vld [vmem:[#allocation55 + $0x2d4] ss:$12 sps:$4 sm:$0xff]   ;;  %v17975_v19 = vld [vmem:[#allocation55 + $0x398] ss:$12 sps:$4 sm:$0xff]  }
0x20b3   :  { %10201 = vmatprep.subr.bf16.mxu0 %v17920_v17  ;;  %16645 = vmatprep.subr.bf16.mxu1 %v19585_v35  ;;  %v17972_v17 = vld [vmem:[#allocation55 + $0x2d0] ss:$12 sps:$4 sm:$0xff]  }
0x20b6   :  { %10202 = vmatpush1.bf16.msra.mxu0 %v17918_v2  ;;  %16646 = vmatpush3.bf16.msra.mxu1 %v17921_v3  ;;  %v17976_v2 = vld [vmem:[#allocation55 + $0x2d8] ss:$12 sps:$4 sm:$0xff]  }
0x20b7   :  { %10203 = vmatprep.subr.bf16.mxu0 %v17924_v55  ;;  %16647 = vmatprep.subr.bf16.mxu1 %v19585_v35  ;;  %v17979_v3 = vld [vmem:[#allocation55 + $0x2ec] ss:$12 sps:$4 sm:$0xff]   ;;  %v17980_v55 = vld [vmem:[#allocation55 + $0x3b0] ss:$12 sps:$4 sm:$0xff]  }
0x20ba   :  { %10204 = vmatpush1.bf16.msra.mxu0 %v17922_v45  ;;  %16648 = vmatpush3.bf16.msra.mxu1 %v17925_v7  ;;  %v17977_v45 = vld [vmem:[#allocation55 + $0x2e8] ss:$12 sps:$4 sm:$0xff]   ;;  %v17981_v7 = vld [vmem:[#allocation55 + $0x2f0] ss:$12 sps:$4 sm:$0xff]  }
0x20bb   :  { %10205 = vmatprep.subr.bf16.mxu0 %v17928_v21  ;;  %16649 = vmatprep.subr.bf16.mxu1 %v19585_v35  ;;  %v17984_v21 = vld [vmem:[#allocation55 + $0x304] ss:$12 sps:$4 sm:$0xff]  }
0x20be   :  { %10206 = vmatpush1.bf16.msra.mxu0 %v17926_v62  ;;  %16650 = vmatpush3.bf16.msra.mxu1 %v17929_v13  ;;  %v17982_v62 = vld [vmem:[#allocation55 + $0x300] ss:$12 sps:$4 sm:$0xff]   ;;  %v17985_v13 = vld [vmem:[#allocation55 + $0x3c8] ss:$12 sps:$4 sm:$0xff]  }
0x20bf   :  { %10207 = vmatprep.subr.bf16.mxu0 %v17932_v28  ;;  %16651 = vmatprep.subr.bf16.mxu1 %v19585_v35  ;;  %v17988_v28 = vld [vmem:[#allocation55 + $0x31c] ss:$12 sps:$4 sm:$0xff]  }
0x20c2   :  { %10208 = vmatpush1.bf16.msra.mxu0 %v17930_v25  ;;  %16652 = vmatpush3.bf16.msra.mxu1 %v17933_v23  ;;  %v17986_v25 = vld [vmem:[#allocation55 + $0x318] ss:$12 sps:$4 sm:$0xff]   ;;  %v17989_v23 = vld [vmem:[#allocation55 + $0x3e0] ss:$12 sps:$4 sm:$0xff]  }
0x20c3   :  { %10209 = vmatprep.subr.bf16.mxu0 %v17936_v18  ;;  %16653 = vmatprep.subr.bf16.mxu1 %v19585_v35  ;;  %v17992_v18 = vld [vmem:[#allocation55 + $0x334] ss:$12 sps:$4 sm:$0xff]  }
0x20c6   :  { %10210 = vmatpush1.bf16.msra.mxu0 %v17934_v57  ;;  %16654 = vmatpush3.bf16.msra.mxu1 %v17937_v41  ;;  %v17994_v57 = vld [vmem:[#allocation55 + $0x348] ss:$12 sps:$4 sm:$0xff]   ;;  %v17997_v41 = vld [vmem:[#allocation55 + $0x410] ss:$12 sps:$4 sm:$0xff]  }
0x20c7   :  { %10211 = vmatprep.subr.bf16.mxu0 %v17940_v0  ;;  %16655 = vmatprep.subr.bf16.mxu1 %v19585_v35  ;;  %v18000_v0 = vld [vmem:[#allocation55 + $0x364] ss:$12 sps:$4 sm:$0xff]  }
0x20ca   :  { %10212 = vmatpush1.bf16.msra.mxu0 %v17938_v20  ;;  %16656 = vmatpush3.bf16.msra.mxu1 %v17941_v15  ;;  %v18002_v20 = vld [vmem:[#allocation55 + $0x378] ss:$12 sps:$4 sm:$0xff]   ;;  %v18005_v15 = vld [vmem:[#allocation55 + $0x440] ss:$12 sps:$4 sm:$0xff]  }
0x20cb   :  { %10857 = vmatprep.subr.bf16.mxu1 %v17944_v6  ;;  %16195 = vmatprep.subr.bf16.mxu0 %v17945_v4  ;;  %v18008_v6 = vld [vmem:[#allocation55 + $0x394] ss:$12 sps:$4 sm:$0xff]   ;;  %v18006_v4 = vld [vmem:[#allocation55 + $0x390] ss:$12 sps:$4 sm:$0xff]  }
0x20cd   :  { %10230 = vmatmul.mubr.bf16.vlgmr.msra.gmra.mrb[112].mxu0 %v21266_v26  ;;  %16658 = vmatmul.mubr.bf16.vlgmr.msra.gmra.mrb[116].mxu1 %v21266_v26 }
0x20ce   :  { %10858 = vmatpush1.bf16.msra.mxu1 %v17942_v58  ;;  %10889 = vmatprep.mubr.bf16.mxu1 %v21210_v14  ;;  %v18009_v58 = vld [vmem:[#allocation55 + $0x458] ss:$12 sps:$4 sm:$0xff]  }
0x20cf   :  { %16196 = vmatpush3.bf16.msra.mxu0 %v17946_v24  ;;  %10975 = vmatprep.mubr.bf16.mxu0 %v21210_v14  ;;  %v17969_v14 = vld [vmem:[#allocation55 + $0x2bc] ss:$12 sps:$4 sm:$0xff]   ;;  %v18012_v24 = vld [vmem:[#allocation55 + $0x3ac] ss:$12 sps:$4 sm:$0xff]  }
0x20d0   :  { %10859 = vmatprep.subr.bf16.mxu1 %v17949_v29  ;;  %16197 = vmatprep.subr.bf16.mxu0 %v17950_v40  ;;  %v18010_v29 = vld [vmem:[#allocation55 + $0x3a8] ss:$12 sps:$4 sm:$0xff]   ;;  %v18013_v40 = vld [vmem:[#allocation55 + $0x470] ss:$12 sps:$4 sm:$0xff]  }
0x20d2   :  { %10860 = vmatpush1.bf16.msra.mxu1 %v17947_v34  ;;  %v18016_v34 = vld [vmem:[#allocation55 + $0x3c4] ss:$12 sps:$4 sm:$0xff]  }
0x20d3   :  { %16198 = vmatpush3.bf16.msra.mxu0 %v17951_v31  ;;  %10861 = vmatprep.subr.bf16.mxu1 %v17954_v60  ;;  %v18014_v31 = vld [vmem:[#allocation55 + $0x3c0] ss:$12 sps:$4 sm:$0xff]   ;;  %v18019_v60 = vld [vmem:[#allocation55 + $0x3dc] ss:$12 sps:$4 sm:$0xff]  }
0x20d4   :  { %16199 = vmatprep.subr.bf16.mxu0 %v17955_v43  ;;  %v18017_v43 = vld [vmem:[#allocation55 + $0x3d8] ss:$12 sps:$4 sm:$0xff]  }
0x20d6   :  { %10862 = vmatpush1.bf16.msra.mxu1 %v17952_v30  ;;  %v18022_v30 = vld [vmem:[#allocation55 + $0x3f4] ss:$12 sps:$4 sm:$0xff]  }
0x20d7   :  { %16200 = vmatpush3.bf16.msra.mxu0 %v17956_v49  ;;  %10863 = vmatprep.subr.bf16.mxu1 %v17959_v42  ;;  %v18020_v49 = vld [vmem:[#allocation55 + $0x3f0] ss:$12 sps:$4 sm:$0xff]   ;;  %v18025_v42 = vld [vmem:[#allocation55 + $0x40c] ss:$12 sps:$4 sm:$0xff]  }
0x20d8   :  { %16201 = vmatprep.subr.bf16.mxu0 %v17960_v5  ;;  %v18023_v5 = vld [vmem:[#allocation55 + $0x408] ss:$12 sps:$4 sm:$0xff]  }
0x20da   :  { %10864 = vmatpush1.bf16.msra.mxu1 %v17957_v48  ;;  %v18028_v48 = vld [vmem:[#allocation55 + $0x424] ss:$12 sps:$4 sm:$0xff]  }
0x20db   :  { %16202 = vmatpush3.bf16.msra.mxu0 %v17961_v16  ;;  %10865 = vmatprep.subr.bf16.mxu1 %v17964_v22  ;;  %v18026_v16 = vld [vmem:[#allocation55 + $0x420] ss:$12 sps:$4 sm:$0xff]   ;;  %v18029_v22 = vld [vmem:[#allocation55 + $0x438] ss:$12 sps:$4 sm:$0xff]  }
0x20dc   :  { %16203 = vmatprep.subr.bf16.mxu0 %v17965_v33  ;;  %v18034_v33 = vld [vmem:[#allocation55 + $0x454] ss:$12 sps:$4 sm:$0xff]  }
0x20de   :  { %10866 = vmatpush1.bf16.msra.mxu1 %v17962_v61  ;;  %v18032_v61 = vld [vmem:[#allocation55 + $0x450] ss:$12 sps:$4 sm:$0xff]  }
0x20df   :  { %16204 = vmatpush3.bf16.msra.mxu0 %v17966_v51  ;;  %10867 = vmatprep.subr.bf16.mxu1 %v17969_v14  ;;  %v18037_v51 = vld [vmem:[#allocation55 + $0x46c] ss:$12 sps:$4 sm:$0xff]   ;;  %v18035_v14 = vld [vmem:[#allocation55 + $0x468] ss:$12 sps:$4 sm:$0xff]  }
0x20e0   :  { %16205 = vmatprep.subr.bf16.mxu0 %v17970_v8  ;;  %v18038_v8 = vld [vmem:[#allocation58 + $0x240] ss:$12 sps:$4 sm:$0xff]  }
0x20e2   :  { %10868 = vmatpush1.bf16.msra.mxu1 %v17967_v52  ;;  %v18040_v52 = vld [vmem:[#allocation58 + $0x244] ss:$12 sps:$4 sm:$0xff]  }
0x20e3   :  { %16206 = vmatpush3.bf16.msra.mxu0 %v17971_v12  ;;  %10869 = vmatprep.subr.bf16.mxu1 %v17974_v53  ;;  %v18043_v12 = vld [vmem:[#allocation58 + $0x25c] ss:$12 sps:$4 sm:$0xff]   ;;  %v18041_v53 = vld [vmem:[#allocation58 + $0x258] ss:$12 sps:$4 sm:$0xff]  }
0x20e4   :  { %16207 = vmatprep.subr.bf16.mxu0 %v17975_v19  ;;  %v18046_v19 = vld [vmem:[#allocation58 + $0x274] ss:$12 sps:$4 sm:$0xff]  }
0x20e6   :  { %10870 = vmatpush1.bf16.msra.mxu1 %v17972_v17  ;;  %v18044_v17 = vld [vmem:[#allocation58 + $0x270] ss:$12 sps:$4 sm:$0xff]  }
0x20e7   :  { %16208 = vmatpush3.bf16.msra.mxu0 %v17976_v2  ;;  %10871 = vmatprep.subr.bf16.mxu1 %v17979_v3  ;;  %v18049_v2 = vld [vmem:[#allocation58 + $0x28c] ss:$12 sps:$4 sm:$0xff]   ;;  %v18047_v3 = vld [vmem:[#allocation58 + $0x288] ss:$12 sps:$4 sm:$0xff]  }
0x20e8   :  { %16209 = vmatprep.subr.bf16.mxu0 %v17980_v55  ;;  %v18052_v55 = vld [vmem:[#allocation58 + $0x2a4] ss:$12 sps:$4 sm:$0xff]  }
0x20ea   :  { %10872 = vmatpush1.bf16.msra.mxu1 %v17977_v45  ;;  %v18050_v45 = vld [vmem:[#allocation58 + $0x2a0] ss:$12 sps:$4 sm:$0xff]  }
0x20eb   :  { %16210 = vmatpush3.bf16.msra.mxu0 %v17981_v7  ;;  %10873 = vmatprep.subr.bf16.mxu1 %v17984_v21  ;;  %v18053_v7 = vld [vmem:[#allocation58 + $0x2b8] ss:$12 sps:$4 sm:$0xff]   ;;  %v18058_v21 = vld [vmem:[#allocation58 + $0x2d4] ss:$12 sps:$4 sm:$0xff]  }
0x20ec   :  { %16661 = vmatprep.subr.bf16.mxu0 %v19585_v35 }
0x20ee   :  { %10976 = vmatmul.mubr.bf16.vlgmr.msra.gmra.mrb[116].mxu0 %v21215_v63  ;;  %10874 = vmatpush1.bf16.msra.mxu1 %v17982_v62  ;;  %v18056_v62 = vld [vmem:[#allocation58 + $0x2d0] ss:$12 sps:$4 sm:$0xff]  }
0x20ef   :  { %16662 = vmatpush3.bf16.msra.mxu0 %v17985_v13  ;;  %10875 = vmatprep.subr.bf16.mxu1 %v17988_v28  ;;  %v18061_v13 = vld [vmem:[#allocation58 + $0x2ec] ss:$12 sps:$4 sm:$0xff]   ;;  %v18059_v28 = vld [vmem:[#allocation58 + $0x2e8] ss:$12 sps:$4 sm:$0xff]  }
0x20f0   :  { %16663 = vmatprep.subr.bf16.mxu0 %v19585_v35  ;;  %16677 = vmatprep.mubr.msk.bf16.mxu0 %vm19587_vm0, %v19585_v35 }
0x20f2   :  { %10876 = vmatpush1.bf16.msra.mxu1 %v17986_v25  ;;  %v18064_v25 = vld [vmem:[#allocation58 + $0x304] ss:$12 sps:$4 sm:$0xff]  }
0x20f3   :  { %16664 = vmatpush3.bf16.msra.mxu0 %v17989_v23  ;;  %10877 = vmatprep.subr.bf16.mxu1 %v17992_v18  ;;  %v18065_v23 = vld [vmem:[#allocation58 + $0x308] ss:$12 sps:$4 sm:$0xff]   ;;  %v18062_v18 = vld [vmem:[#allocation58 + $0x300] ss:$12 sps:$4 sm:$0xff]  }
0x20f4   :  { %16665 = vmatprep.subr.bf16.mxu0 %v19585_v35 }
0x20f6   :  { %10878 = vmatpush1.bf16.msra.mxu1 %v17990_v44  ;;  %v18066_v44 = vld [vmem:[#allocation58 + $0x248] ss:$12 sps:$4 sm:$0xff]  }
0x20f7   :  { %16666 = vmatpush3.bf16.msra.mxu0 %v17993_v59  ;;  %10879 = vmatprep.subr.bf16.mxu1 %v17996_v37  ;;  %v18069_v59 = vld [vmem:[#allocation58 + $0x31c] ss:$12 sps:$4 sm:$0xff]   ;;  %v18070_v37 = vld [vmem:[#allocation58 + $0x320] ss:$12 sps:$4 sm:$0xff]  }
0x20f8   :  { %16667 = vmatprep.subr.bf16.mxu0 %v19585_v35 }
0x20fa   :  { %10880 = vmatpush1.bf16.msra.mxu1 %v17994_v57  ;;  %v18071_v57 = vld [vmem:[#allocation58 + $0x260] ss:$12 sps:$4 sm:$0xff]  }
0x20fb   :  { %16668 = vmatpush3.bf16.msra.mxu0 %v17997_v41  ;;  %10881 = vmatprep.subr.bf16.mxu1 %v18000_v0  ;;  %v18075_v41 = vld [vmem:[#allocation58 + $0x338] ss:$12 sps:$4 sm:$0xff]  }
0x20fc   :  { %16669 = vmatprep.subr.bf16.mxu0 %v19585_v35  ;;  %v18067_v0 = vld [vmem:[#allocation58 + $0x318] ss:$12 sps:$4 sm:$0xff]  }
0x20fe   :  { %10882 = vmatpush1.bf16.msra.mxu1 %v17998_v10  ;;  %v18074_v10 = vld [vmem:[#allocation58 + $0x334] ss:$12 sps:$4 sm:$0xff]  }
0x20ff   :  { %16670 = vmatpush3.bf16.msra.mxu0 %v18001_v54  ;;  %10883 = vmatprep.subr.bf16.mxu1 %v18004_v27  ;;  %v18076_v54 = vld [vmem:[#allocation58 + $0x278] ss:$12 sps:$4 sm:$0xff]   ;;  %v18080_v27 = vld [vmem:[#allocation58 + $0x350] ss:$12 sps:$4 sm:$0xff]  }
0x2100   :  { %16671 = vmatprep.subr.bf16.mxu0 %v19585_v35 }
0x2102   :  { %10884 = vmatpush1.bf16.msra.mxu1 %v18002_v20  ;;  %v18072_v20 = vld [vmem:[#allocation58 + $0x330] ss:$12 sps:$4 sm:$0xff]  }
0x2103   :  { %16672 = vmatpush3.bf16.msra.mxu0 %v18005_v15  ;;  %10885 = vmatprep.subr.bf16.mxu1 %v18008_v6  ;;  %v18079_v15 = vld [vmem:[#allocation58 + $0x34c] ss:$12 sps:$4 sm:$0xff]   ;;  %v18081_v6 = vld [vmem:[#allocation58 + $0x290] ss:$12 sps:$4 sm:$0xff]  }
0x2104   :  { %16673 = vmatprep.subr.bf16.mxu0 %v19585_v35 }
0x2106   :  { %10886 = vmatpush1.bf16.msra.mxu1 %v18006_v4  ;;  %v18085_v4 = vld [vmem:[#allocation58 + $0x368] ss:$12 sps:$4 sm:$0xff]  }
0x2107   :  { %16674 = vmatpush3.bf16.msra.mxu0 %v18009_v58  ;;  %10887 = vmatprep.subr.bf16.mxu1 %v18012_v24  ;;  %v18077_v58 = vld [vmem:[#allocation58 + $0x348] ss:$12 sps:$4 sm:$0xff]   ;;  %v18084_v24 = vld [vmem:[#allocation58 + $0x364] ss:$12 sps:$4 sm:$0xff]  }
0x2108   :  { %16675 = vmatprep.subr.bf16.mxu0 %v19585_v35 }
0x210a   :  { %10888 = vmatpush1.bf16.msra.mxu1 %v18010_v29  ;;  %v18086_v29 = vld [vmem:[#allocation58 + $0x2a8] ss:$12 sps:$4 sm:$0xff]  }
0x210b   :  { %16676 = vmatpush3.bf16.msra.mxu0 %v18013_v40  ;;  %10900 = vmatprep.subr.bf16.mxu1 %v18016_v34  ;;  %v18090_v40 = vld [vmem:[#allocation58 + $0x380] ss:$12 sps:$4 sm:$0xff]  }
0x210c   :  { %11533 = vmatprep.subr.bf16.mxu0 %v18040_v52  ;;  %v18082_v34 = vld [vmem:[#allocation58 + $0x360] ss:$12 sps:$4 sm:$0xff]   ;;  %v18101_v52 = vld [vmem:[#allocation58 + $0x2f0] ss:$12 sps:$4 sm:$0xff]  }
0x210d   :  { %10890 = vmatmul.mubr.bf16.vlgmr.msra.gmra.mrb[120].mxu1 %v21215_v63  ;;  %v18031_v63 = vld [vmem:[#allocation55 + $0x43c] ss:$12 sps:$4 sm:$0xff]  }
0x210e   :  { %16678 = vmatmul.mubr.bf16.vlgmr.msra.gmra.mrb[120].mxu0 %v21266_v26  ;;  %10901 = vmatpush1.bf16.msra.mxu1 %v18014_v31  ;;  %v18089_v31 = vld [vmem:[#allocation58 + $0x37c] ss:$12 sps:$4 sm:$0xff]  }
0x210f   :  { %10902 = vmatprep.subr.bf16.mxu1 %v18019_v60  ;;  %10932 = vmatprep.mubr.bf16.mxu1 %v19586_v39  ;;  %v18091_v60 = vld [vmem:[#allocation58 + $0x2c0] ss:$12 sps:$4 sm:$0xff]  }
0x2110   :  { %11534 = vmatpush1.bf16.msra.mxu0 %v18038_v8  ;;  %v18097_v8 = vld [vmem:[#allocation58 + $0x3a8] ss:$12 sps:$4 sm:$0xff]  }
0x2111   :  { %11535 = vmatprep.subr.bf16.mxu0 %v18043_v12  ;;  %v18104_v12 = vld [vmem:[#allocation58 + $0x3c4] ss:$12 sps:$4 sm:$0xff]  }
0x2112   :  { %10903 = vmatpush1.bf16.msra.mxu1 %v18017_v43  ;;  %v18087_v43 = vld [vmem:[#allocation58 + $0x378] ss:$12 sps:$4 sm:$0xff]  }
0x2113   :  { %10904 = vmatprep.subr.bf16.mxu1 %v18022_v30 }
0x2114   :  { %11536 = vmatpush1.bf16.msra.mxu0 %v18041_v53  ;;  %v21288_v53 = vld [vmem:[#allocation53 + $0x3] sm:$0x7] }
0x2115   :  { %11537 = vmatprep.subr.bf16.mxu0 %v18046_v19  ;;  %v9766_v19 = vrot.slane %v21288_v53, %v20091_v38 }
0x2116   :  { %10905 = vmatpush1.bf16.msra.mxu1 %v18020_v49 }
0x2117   :  { %10906 = vmatprep.subr.bf16.mxu1 %v18025_v42 }
0x2118   :  { %11538 = vmatpush1.bf16.msra.mxu0 %v18044_v17 }
0x2119   :  { %11539 = vmatprep.subr.bf16.mxu0 %v18049_v2 }
0x211a   :  { %10907 = vmatpush1.bf16.msra.mxu1 %v18023_v5 }
0x211b   :  { %10908 = vmatprep.subr.bf16.mxu1 %v18028_v48  ;;  %v18094_v48 = vld [vmem:[#allocation58 + $0x394] ss:$12 sps:$4 sm:$0xff]  }
0x211c   :  { %11540 = vmatpush1.bf16.msra.mxu0 %v18047_v3 }
0x211d   :  { %11541 = vmatprep.subr.bf16.mxu0 %v18052_v55 }
0x211e   :  { %10909 = vmatpush1.bf16.msra.mxu1 %v18026_v16  ;;  %v18095_v16 = vld [vmem:[#allocation58 + $0x398] ss:$12 sps:$4 sm:$0xff]  }
0x211f   :  { %10910 = vmatprep.subr.bf16.mxu1 %v18031_v63 }
0x2120   :  { %11542 = vmatpush1.bf16.msra.mxu0 %v18050_v45 }
0x2122   :  { %10911 = vmatpush1.bf16.msra.mxu1 %v18029_v22  ;;  %v18092_v22 = vld [vmem:[#allocation58 + $0x390] ss:$12 sps:$4 sm:$0xff]  }
0x2123   :  { %10912 = vmatprep.subr.bf16.mxu1 %v18034_v33  ;;  %v18096_v33 = vld [vmem:[#allocation58 + $0x2d8] ss:$12 sps:$4 sm:$0xff]  }
0x2126   :  { %10913 = vmatpush1.bf16.msra.mxu1 %v18032_v61 }
0x2127   :  { %10914 = vmatprep.subr.bf16.mxu1 %v18037_v51  ;;  %v18099_v51 = vld [vmem:[#allocation58 + $0x3ac] ss:$12 sps:$4 sm:$0xff]  }
0x212a   :  { %10915 = vmatpush1.bf16.msra.mxu1 %v18035_v14  ;;  %v18100_v14 = vld [vmem:[#allocation58 + $0x3b0] ss:$12 sps:$4 sm:$0xff]  }
0x212b   :  { %16226 = vmatprep.subr.bf16.mxu1 %v18065_v23 }
0x212d   :  { %10933 = vmatmul.mubr.bf16.vlgmr.msra.gmra.mrb[120].mxu1 %v21266_v26  ;;  %v18055_v26 = vld [vmem:[#allocation58 + $0x2bc] ss:$12 sps:$4 sm:$0xff]  }
0x212e   :  { %11543 = vmatprep.subr.bf16.mxu0 %v18055_v26  ;;  %16227 = vmatpush3.bf16.msra.mxu1 %v18066_v44 }
0x212f   :  { %11544 = vmatpush1.bf16.msra.mxu0 %v18053_v7  ;;  %16228 = vmatprep.subr.bf16.mxu1 %v18070_v37 }
0x2130   :  { %11545 = vmatprep.subr.bf16.mxu0 %v18058_v21 }
0x2132   :  { %16229 = vmatpush3.bf16.msra.mxu1 %v18071_v57 }
0x2133   :  { %11546 = vmatpush1.bf16.msra.mxu0 %v18056_v62  ;;  %16230 = vmatprep.subr.bf16.mxu1 %v18075_v41  ;;  %v10456_v41 = vld [vmem:[#allocation56 + $0x3] sm:$0x7] }
0x2134   :  { %11547 = vmatprep.subr.bf16.mxu0 %v18061_v13 }
0x2136   :  { %16231 = vmatpush3.bf16.msra.mxu1 %v18076_v54 }
0x2137   :  { %11548 = vmatpush1.bf16.msra.mxu0 %v18059_v28  ;;  %16232 = vmatprep.subr.bf16.mxu1 %v18080_v27 }
0x2138   :  { %11549 = vmatprep.subr.bf16.mxu0 %v18064_v25 }
0x213a   :  { %16233 = vmatpush3.bf16.msra.mxu1 %v18081_v6 }
0x213b   :  { %11550 = vmatpush1.bf16.msra.mxu0 %v18062_v18  ;;  %16234 = vmatprep.subr.bf16.mxu1 %v18085_v4 }
0x213c   :  { %11551 = vmatprep.subr.bf16.mxu0 %v18069_v59 }
0x213e   :  { %16235 = vmatpush3.bf16.msra.mxu1 %v18086_v29 }
0x213f   :  { %11552 = vmatpush1.bf16.msra.mxu0 %v18067_v0  ;;  %16236 = vmatprep.subr.bf16.mxu1 %v18090_v40  ;;  %v10469_v0 = vrot.slane %v10456_v41, %v20091_v38 }
0x2140   :  { %11553 = vmatprep.subr.bf16.mxu0 %v18074_v10 }
0x2142   :  { %16237 = vmatpush3.bf16.msra.mxu1 %v18091_v60 }
0x2143   :  { %11554 = vmatpush1.bf16.msra.mxu0 %v18072_v20  ;;  %16238 = vmatprep.subr.bf16.mxu1 %v18095_v16 }
0x2144   :  { %11555 = vmatprep.subr.bf16.mxu0 %v18079_v15 }
0x2146   :  { %16239 = vmatpush3.bf16.msra.mxu1 %v18096_v33 }
0x2147   :  { %11556 = vmatpush1.bf16.msra.mxu0 %v18077_v58  ;;  %16240 = vmatprep.subr.bf16.mxu1 %v18100_v14 }
0x2148   :  { %11557 = vmatprep.subr.bf16.mxu0 %v18084_v24 }
0x214a   :  { %16241 = vmatpush3.bf16.msra.mxu1 %v18101_v52  ;;  %v18105_v52 = vld [vmem:[#allocation58 + $0x3c8] ss:$12 sps:$4 sm:$0xff]  }
0x214b   :  { %11558 = vmatpush1.bf16.msra.mxu0 %v18082_v34  ;;  %16681 = vmatprep.subr.bf16.mxu1 %v19585_v35  ;;  %v10461_v34 = vrot.slane %v10456_v41, %v20096_v47 }
0x214c   :  { %11559 = vmatprep.subr.bf16.mxu0 %v18089_v31  ;;  %v10465_v31 = vrot.slane %v10456_v41, %v20099_v50  ;;  %v18125_v41 = vld [vmem:[#allocation58 + $0x440] ss:$12 sps:$4 sm:$0xff]  }
0x214f   :  { %11560 = vmatpush1.bf16.msra.mxu0 %v18087_v43 }
0x2150   :  { %11561 = vmatprep.subr.bf16.mxu0 %v18094_v48 }
0x2153   :  { %11562 = vmatpush1.bf16.msra.mxu0 %v18092_v22 }
0x2154   :  { %11563 = vmatprep.subr.bf16.mxu0 %v18099_v51 }
0x2157   :  { %11564 = vmatpush1.bf16.msra.mxu0 %v18097_v8  ;;  %v18102_v8 = vld [vmem:[#allocation58 + $0x3c0] ss:$12 sps:$4 sm:$0xff]  }
0x2158   :  { %11576 = vmatprep.subr.bf16.mxu0 %v18104_v12  ;;  %v18108_v12 = vld [vmem:[#allocation58 + $0x3dc] ss:$12 sps:$4 sm:$0xff]  }
0x2180   :  { %v16180_v30 = vpop.f32.mrb[112].mxu1 }
0x2181   :  { %v16181_v49 = vpop.f32.mrb[113].mxu1 }
0x2182   :  { %v16182_v42 = vadd.f32 %v16181_v49, %v16180_v30  ;;  %v16183_v5 = vpop.f32.mrb[114].mxu1 }
0x2183   :  { %v16184_v63 = vpop.f32.mrb[115].mxu1 }
0x2184   :  { %v16185_v61 = vadd.f32 %v16184_v63, %v16183_v5  ;;  %v10275_v17 = vadd.f32 %v16182_v42, %v9766_v19 }
0x2186   :  { %v10278_v7 = vadd.f32 %v16185_v61, %v9766_v19  ;;  %v18106_v19 = vld [vmem:[#allocation58 + $0x3d8] ss:$12 sps:$4 sm:$0xff]  }
0x21a0   :  { %v21292_v2 = vpop.f32.mrb[112].mxu0  ;;  %v10315_v3 = vpop.f32.mrb[116].mxu1 }
0x21a1   :  { %v21294_v55 = vadd.f32 %v10315_v3, %v10275_v17  ;;  %v21296_v45 = vpop.f32.mrb[113].mxu0  ;;  %v16659_v26 = vpop.f32.mrb[117].mxu1  ;;  %v18109_v17 = vld [vmem:[#allocation58 + $0x3e0] ss:$12 sps:$4 sm:$0xff]  }
0x21a2   :  { %v21298_v21 = vpop.f32.mrb[114].mxu0  ;;  %v10318_v62 = vpop.f32.mrb[118].mxu1  ;;  %v18112_v3 = vld [vmem:[#allocation58 + $0x3f4] ss:$12 sps:$4 sm:$0xff]   ;;  %v18110_v26 = vld [vmem:[#allocation58 + $0x3f0] ss:$12 sps:$4 sm:$0xff]  }
0x21a3   :  { %v21300_v13 = vadd.f32 %v10318_v62, %v10278_v7  ;;  %v21302_v28 = vpop.f32.mrb[115].mxu0  ;;  %v16660_v25 = vpop.f32.mrb[119].mxu1  ;;  %v18113_v7 = vld [vmem:[#allocation58 + $0x3f8] ss:$12 sps:$4 sm:$0xff]  }
0x21a4   :  { %v18116_v62 = vld [vmem:[#allocation58 + $0x40c] ss:$12 sps:$4 sm:$0xff]   ;;  %v18114_v25 = vld [vmem:[#allocation58 + $0x408] ss:$12 sps:$4 sm:$0xff]  }
0x21c1   :  { %v16211_v23 = vpop.f32.mrb[116].mxu0 }
0x21c2   :  { %v16212_v18 = vpop.f32.mrb[117].mxu0 }
0x21c3   :  { %v16213_v44 = vadd.f32 %v16212_v18, %v16211_v23  ;;  %v16214_v59 = vpop.f32.mrb[118].mxu0  ;;  %v18117_v23 = vld [vmem:[#allocation58 + $0x410] ss:$12 sps:$4 sm:$0xff]  }
0x21c4   :  { %v16215_v37 = vpop.f32.mrb[119].mxu0  ;;  %v18120_v18 = vld [vmem:[#allocation58 + $0x424] ss:$12 sps:$4 sm:$0xff]  }
0x21c5   :  { %v16216_v57 = vadd.f32 %v16215_v37, %v16214_v59  ;;  %v10978_v10 = vadd.f32 %v16213_v44, %v10469_v0  ;;  %v18118_v44 = vld [vmem:[#allocation58 + $0x420] ss:$12 sps:$4 sm:$0xff]   ;;  %v18121_v59 = vld [vmem:[#allocation58 + $0x428] ss:$12 sps:$4 sm:$0xff]  }
0x21c6   :  { %v18124_v37 = vld [vmem:[#allocation58 + $0x43c] ss:$12 sps:$4 sm:$0xff]  }
0x21c7   :  { %v10981_v15 = vadd.f32 %v16216_v57, %v10469_v0  ;;  %v18122_v57 = vld [vmem:[#allocation58 + $0x438] ss:$12 sps:$4 sm:$0xff]   ;;  %v18128_v0 = vld [vmem:[#allocation58 + $0x454] ss:$12 sps:$4 sm:$0xff]  }
0x21e1   :  { %v11018_v54 = vpop.f32.mrb[120].mxu0 }
0x21e2   :  { %v11019_v27 = vadd.f32 %v11018_v54, %v10978_v10  ;;  %v16679_v20 = vpop.f32.mrb[121].mxu0  ;;  %v18126_v10 = vld [vmem:[#allocation58 + $0x450] ss:$12 sps:$4 sm:$0xff]   ;;  %v18129_v54 = vld [vmem:[#allocation58 + $0x458] ss:$12 sps:$4 sm:$0xff]  }
0x21e3   :  { %v11021_v6 = vpop.f32.mrb[122].mxu0  ;;  %v18130_v20 = vld [vmem:[#allocation58 + $0x468] ss:$12 sps:$4 sm:$0xff]  }
0x21e4   :  { %v11022_v4 = vadd.f32 %v11021_v6, %v10981_v15  ;;  %v16680_v58 = vpop.f32.mrb[123].mxu0  ;;  %v11027_v24 = vmax.f32 %v11019_v27, 0.0  ;;  %v18132_v27 = vld [vmem:[#allocation58 + $0x46c] ss:$12 sps:$4 sm:$0xff]   ;;  %v18133_v15 = vld [vmem:[#allocation58 + $0x470] ss:$12 sps:$4 sm:$0xff]   ;;  %v9758_v6 = vrot.slane %v21288_v53, %v20096_v47 }
0x21e6   :  { %v11030_v29 = vmax.f32 %v11022_v4, 0.0  ;;  %v9762_v4 = vrot.slane %v21288_v53, %v20099_v50  ;;  %v16815_v58 = vadd.f32 %v21292_v2, %v9758_v6  ;;  %v15215_v53 = vmul.f32 -1.442695, %v21300_v13 }
0x21e8   :  { %v21305_v40 = vpack.c.bf16 %v11030_v29, %v11027_v24  ;;  %v16816_v24 = vadd.f32 %v21296_v45, %v9762_v4  ;;  %v16817_v29 = vadd.f32 %v21298_v21, %v9758_v6 }
0x2200   :  { %v10934_v60 = vpop.f32.mrb[120].mxu1 }
0x2201   :  { %v16819_v43 = vadd.f32 %v10934_v60, %v10461_v34  ;;  %v10936_v30 = vpop.f32.mrb[121].mxu1 }
0x2202   :  { %v16820_v49 = vadd.f32 %v10936_v30, %v10465_v31  ;;  %v10938_v42 = vpop.f32.mrb[122].mxu1  ;;  %v16818_v30 = vadd.f32 %v21302_v28, %v9762_v4 }
0x2203   :  { %v16821_v5 = vadd.f32 %v10938_v42, %v10461_v34  ;;  %v10940_v48 = vpop.f32.mrb[123].mxu1  ;;  %v11025_v63 = vmax.f32 %v16819_v43, 0.0  ;;  %v15212_v43 = vmul.f32 -1.442695, %v21294_v55  ;;  %v15211_v42 = vmul.f32 -1.442695, %v16816_v24 }
0x2204   :  { %v16822_v16 = vadd.f32 %v10940_v48, %v10465_v31  ;;  %v11026_v33 = vmax.f32 %v16820_v49, 0.0  ;;  %v15210_v31 = vmul.f32 -1.442695, %v16815_v58  ;;  %v15213_v48 = vmul.f32 -1.442695, %v16817_v29 }
0x2205   :  { %v11028_v22 = vmax.f32 %v16821_v5, 0.0  ;;  %v15214_v2 = vmul.f32 -1.442695, %v16818_v30 }
0x2206   :  { %v11029_v61 = vmax.f32 %v16822_v16, 0.0  ;;  %18530 = vpow2.f32 %v15210_v31 }
0x2207   :  { %v11130_v51 = vpack.c.bf16 %v11028_v22, %v11025_v63  ;;  %18532 = vpow2.f32 %v15212_v43 }
0x2208   :  { %v11131_v14 = vpack.c.bf16 %v11029_v61, %v11026_v33  ;;  %18534 = vpow2.f32 %v15211_v42 }
0x2209   :  { %18536 = vpow2.f32 %v15213_v48 }
0x220a   :  { %11565 = vmatprep.mubr.bf16.mxu0 %v11131_v14  ;;  %11651 = vmatprep.mubr.bf16.mxu1 %v11131_v14  ;;  %18538 = vpow2.f32 %v15215_v53 }
0x220b   :  { %11566 = vmatmul.mubr.bf16.vlgmr.msra.gmra.mrb[124].mxu0 %v11130_v51  ;;  %11652 = vmatmul.mubr.bf16.vlgmr.msra.gmra.mrb[124].mxu1 %v11130_v51  ;;  %18540 = vpow2.f32 %v15214_v2  ;;  %v18136_v2 = vld [vmem:[%s21730_s21 + $0x484] ss:$12 sps:$4 sm:$0xff]  }
0x220c   :  { %11577 = vmatpush1.bf16.msra.mxu0 %v18102_v8  ;;  %16682 = vmatpush3.bf16.msra.mxu1 %v18105_v52  ;;  %v15288_v52 = vld [vmem:[%s21731_s6 + $0x3] sm:$0x7] }
0x220d   :  { %11578 = vmatprep.subr.bf16.mxu0 %v18108_v12  ;;  %16683 = vmatprep.subr.bf16.mxu1 %v19585_v35  ;;  %v11145_v12 = vrot.slane %v15288_v52, %v20091_v38 }
0x220e   :  { %11608 = vmatprep.mubr.bf16.mxu0 %v19586_v39  ;;  %16697 = vmatprep.mubr.msk.bf16.mxu1 %vm19587_vm0, %v19585_v35 }
0x2210   :  { %11579 = vmatpush1.bf16.msra.mxu0 %v18106_v19  ;;  %16684 = vmatpush3.bf16.msra.mxu1 %v18109_v17  ;;  %v18531_v45 = vpop.eup %18530  ;;  %v11137_v19 = vrot.slane %v15288_v52, %v20096_v47  ;;  %v11141_v17 = vrot.slane %v15288_v52, %v20099_v50  ;;  %v18154_v52 = vld [vmem:[%s21730_s21 + $0x514] ss:$12 sps:$4 sm:$0xff]  }
0x2211   :  { %11580 = vmatprep.subr.bf16.mxu0 %v18112_v3  ;;  %16685 = vmatprep.subr.bf16.mxu1 %v19585_v35  ;;  %v18533_v55 = vpop.eup %18532  ;;  %v10340_v63 = vadd.f32 1.0, %v18531_v45  ;;  %v18137_v45 = vld [vmem:[%s21730_s21 + $0x498] ss:$12 sps:$4 sm:$0xff]  }
0x2212   :  { %v18535_v21 = vpop.eup %18534  ;;  %v10342_v33 = vadd.f32 1.0, %v18533_v55  ;;  %v18161_v55 = vld [vmem:[%s21730_s21 + $0x548] ss:$12 sps:$4 sm:$0xff]  }
0x2213   :  { %v18537_v28 = vpop.eup %18536  ;;  %v10341_v51 = vadd.f32 1.0, %v18535_v21  ;;  %18542 = vrcp.f32 %v10340_v63  ;;  %v18162_v21 = vld [vmem:[%s21730_s21 + $0x488] ss:$12 sps:$4 sm:$0xff]   ;;  %v18166_v63 = vld [vmem:[%s21730_s21 + $0x560] ss:$12 sps:$4 sm:$0xff]  }
0x2214   :  { %11581 = vmatpush1.bf16.msra.mxu0 %v18110_v26  ;;  %16686 = vmatpush3.bf16.msra.mxu1 %v18113_v7  ;;  %v18539_v22 = vpop.eup %18538  ;;  %v10343_v14 = vadd.f32 1.0, %v18537_v28  ;;  %18544 = vrcp.f32 %v10342_v33  ;;  %v18140_v28 = vld [vmem:[%s21730_s21 + $0x4b0] ss:$12 sps:$4 sm:$0xff]   ;;  %v18167_v33 = vld [vmem:[%s21730_s21 + $0x4a0] ss:$12 sps:$4 sm:$0xff]  }
0x2215   :  { %11582 = vmatprep.subr.bf16.mxu0 %v18116_v62  ;;  %16687 = vmatprep.subr.bf16.mxu1 %v19585_v35  ;;  %v18541_v61 = vpop.eup %18540  ;;  %v10345_v8 = vadd.f32 1.0, %v18539_v22  ;;  %18546 = vrcp.f32 %v10341_v51  ;;  %v18145_v22 = vld [vmem:[%s21730_s21 + $0x4cc] ss:$12 sps:$4 sm:$0xff]   ;;  %v18148_v51 = vld [vmem:[%s21730_s21 + $0x4e4] ss:$12 sps:$4 sm:$0xff]  }
0x2216   :  { %v10344_v13 = vadd.f32 1.0, %v18541_v61  ;;  %18548 = vrcp.f32 %v10343_v14  ;;  %v18143_v61 = vld [vmem:[%s21730_s21 + $0x4c8] ss:$12 sps:$4 sm:$0xff]   ;;  %v18146_v14 = vld [vmem:[%s21730_s21 + $0x4e0] ss:$12 sps:$4 sm:$0xff]  }
0x2217   :  { %18550 = vrcp.f32 %v10345_v8  ;;  %v18151_v8 = vld [vmem:[%s21730_s21 + $0x4fc] ss:$12 sps:$4 sm:$0xff]  }
0x2218   :  { %11583 = vmatpush1.bf16.msra.mxu0 %v18114_v25  ;;  %16688 = vmatpush3.bf16.msra.mxu1 %v18117_v23  ;;  %18552 = vrcp.f32 %v10344_v13  ;;  %v18149_v13 = vld [vmem:[%s21730_s21 + $0x4f8] ss:$12 sps:$4 sm:$0xff]  }
0x2219   :  { %11584 = vmatprep.subr.bf16.mxu0 %v18120_v18  ;;  %16689 = vmatprep.subr.bf16.mxu1 %v19585_v35 }
0x221c   :  { %11585 = vmatpush1.bf16.msra.mxu0 %v18118_v44  ;;  %16690 = vmatpush3.bf16.msra.mxu1 %v18121_v59 }
0x221d   :  { %11586 = vmatprep.subr.bf16.mxu0 %v18124_v37  ;;  %16691 = vmatprep.subr.bf16.mxu1 %v19585_v35  ;;  %v18543_v26 = vpop.eup %18542 }
0x221e   :  { %v18545_v25 = vpop.eup %18544 }
0x2220   :  { %11587 = vmatpush1.bf16.msra.mxu0 %v18122_v57  ;;  %16692 = vmatpush3.bf16.msra.mxu1 %v18125_v41  ;;  %v18547_v57 = vpop.eup %18546 }
0x2221   :  { %11588 = vmatprep.subr.bf16.mxu0 %v18128_v0  ;;  %16693 = vmatprep.subr.bf16.mxu1 %v19585_v35 }
0x2224   :  { %11589 = vmatpush1.bf16.msra.mxu0 %v18126_v10  ;;  %16694 = vmatpush3.bf16.msra.mxu1 %v18129_v54  ;;  %v18549_v54 = vpop.eup %18548 }
0x2225   :  { %11590 = vmatprep.subr.bf16.mxu0 %v18132_v27  ;;  %16695 = vmatprep.subr.bf16.mxu1 %v19585_v35  ;;  %v18551_v24 = vpop.eup %18550 }
0x2226   :  { %v18553_v31 = vpop.eup %18552 }
0x2228   :  { %11591 = vmatpush1.bf16.msra.mxu0 %v18130_v20  ;;  %16696 = vmatpush3.bf16.msra.mxu1 %v18133_v15 }
0x2229   :  { %12305 = vmatprep.subr.bf16.mxu1 %v18136_v2  ;;  %16257 = vmatprep.subr.bf16.mxu0 %v18161_v55  ;;  %v18187_v2 = vld [vmem:[%s21730_s21 + $0x500] ss:$12 sps:$4 sm:$0xff]   ;;  %v18192_v55 = vld [vmem:[%s21730_s21 + $0x518] ss:$12 sps:$4 sm:$0xff]  }
0x222b   :  { %11609 = vmatmul.mubr.bf16.vlgmr.msra.gmra.mrb[124].mxu0 %v21305_v40  ;;  %16698 = vmatmul.mubr.bf16.vlgmr.msra.gmra.mrb[128].mxu1 %v21305_v40 }
0x222c   :  { %16258 = vmatpush3.bf16.msra.mxu0 %v18162_v21  ;;  %v18195_v21 = vld [vmem:[%s21730_s21 + $0x5ec] ss:$12 sps:$4 sm:$0xff]  }
0x222d   :  { %16259 = vmatprep.subr.bf16.mxu0 %v18166_v63  ;;  %v18193_v63 = vld [vmem:[%s21730_s21 + $0x5e8] ss:$12 sps:$4 sm:$0xff]  }
0x2230   :  { %16260 = vmatpush3.bf16.msra.mxu0 %v18167_v33  ;;  %v18200_v33 = vld [vmem:[%s21730_s21 + $0x604] ss:$12 sps:$4 sm:$0xff]  }
0x22de   :  { %v16242_v34 = vpop.f32.mrb[124].mxu1 }
0x22df   :  { %v16243_v60 = vpop.f32.mrb[125].mxu1 }
0x22e0   :  { %v16244_v40 = vadd.f32 %v16243_v60, %v16242_v34  ;;  %v16245_v49 = vpop.f32.mrb[126].mxu1 }
0x22e1   :  { %v16246_v5 = vpop.f32.mrb[127].mxu1 }
0x22e2   :  { %v16247_v16 = vadd.f32 %v16246_v5, %v16245_v49  ;;  %v11654_v3 = vadd.f32 %v16244_v40, %v11145_v12 }
0x22e4   :  { %v11657_v37 = vadd.f32 %v16247_v16, %v11145_v12  ;;  %v18152_v12 = vld [vmem:[%s21730_s21 + $0x510] ss:$12 sps:$4 sm:$0xff]  }
0x22fe   :  { %v11610_v7 = vpop.f32.mrb[124].mxu0  ;;  %v11694_v62 = vpop.f32.mrb[128].mxu1 }
0x22ff   :  { %v16823_v23 = vadd.f32 %v11610_v7, %v11137_v19  ;;  %v11695_v18 = vadd.f32 %v11694_v62, %v11654_v3  ;;  %v11612_v44 = vpop.f32.mrb[125].mxu0  ;;  %v16699_v59 = vpop.f32.mrb[129].mxu1  ;;  %v18160_v3 = vld [vmem:[%s21730_s21 + $0x544] ss:$12 sps:$4 sm:$0xff]   ;;  %v18165_v7 = vld [vmem:[%s21730_s21 + $0x55c] ss:$12 sps:$4 sm:$0xff]  }
0x2300   :  { %v16824_v41 = vadd.f32 %v11612_v44, %v11141_v17  ;;  %v11614_v0 = vpop.f32.mrb[126].mxu0  ;;  %v11697_v10 = vpop.f32.mrb[130].mxu1  ;;  %v18163_v62 = vld [vmem:[%s21730_s21 + $0x558] ss:$12 sps:$4 sm:$0xff]  }
0x2301   :  { %v11701_v27 = vmul.f32 %v18543_v26, %v16823_v23  ;;  %v11703_v20 = vmul.f32 %v18545_v25, %v11695_v18  ;;  %v16825_v15 = vadd.f32 %v11614_v0, %v11137_v19  ;;  %v11698_v6 = vadd.f32 %v11697_v10, %v11657_v37  ;;  %v11616_v4 = vpop.f32.mrb[127].mxu0  ;;  %v16700_v58 = vpop.f32.mrb[131].mxu1  ;;  %v18157_v19 = vld [vmem:[%s21730_s21 + $0x52c] ss:$12 sps:$4 sm:$0xff]  }
0x2302   :  { %v11702_v29 = vmul.f32 %v18547_v57, %v16824_v41  ;;  %v16826_v34 = vadd.f32 %v11616_v4, %v11141_v17  ;;  %v18155_v17 = vld [vmem:[%s21730_s21 + $0x528] ss:$12 sps:$4 sm:$0xff]   ;;  %v18158_v26 = vld [vmem:[%s21730_s21 + $0x540] ss:$12 sps:$4 sm:$0xff]  }
0x2303   :  { %v21336_v60 = vadd.f32 %v11701_v27, %v21204_v46  ;;  %v11704_v43 = vmul.f32 %v18549_v54, %v16825_v15  ;;  %v11706_v30 = vmul.f32 %v18551_v24, %v11698_v6  ;;  %v11709_v48 = vadd.f32 %v11703_v20, %v21262_v1  ;;  %v18139_v1 = vld [vmem:[%s21730_s21 + $0x49c] ss:$12 sps:$4 sm:$0xff]  }
0x2304   :  { %v21339_v40 = vadd.f32 %v11702_v29, %v21200_v11  ;;  %v11705_v49 = vmul.f32 %v18553_v31, %v16826_v34  ;;  %v18170_v31 = vld [vmem:[%s21730_s21 + $0x574] ss:$12 sps:$4 sm:$0xff]  }
0x2305   :  { %v21342_v42 = vadd.f32 %v11704_v43, %v21206_v56  ;;  %v11712_v11 = vadd.f32 %v11706_v30, %v21260_v9  ;;  %v18142_v9 = vld [vmem:[%s21730_s21 + $0x4b4] ss:$12 sps:$4 sm:$0xff]   ;;  %v18168_v43 = vld [vmem:[%s21730_s21 + $0x570] ss:$12 sps:$4 sm:$0xff]   ;;  %v18172_v30 = vld [vmem:[%s21730_s21 + $0x4b8] ss:$12 sps:$4 sm:$0xff]  }
0x2306   :  { %v21345_v5 = vadd.f32 %v11705_v49, %v21202_v32  ;;  %v11717_v46 = vadd.f32 %v21339_v40, %v21336_v60  ;;  %v18134_v32 = vld [vmem:[%s21730_s21 + $0x480] ss:$12 sps:$4 sm:$0xff]   ;;  %v18176_v49 = vld [vmem:[%s21730_s21 + $0x590] ss:$12 sps:$4 sm:$0xff]  }
0x2307   :  { %12306 = vmatpush1.bf16.msra.mxu1 %v18134_v32  ;;  %v18183_v32 = vld [vmem:[%s21730_s21 + $0x5b8] ss:$12 sps:$4 sm:$0xff]  }
0x2308   :  { %v11718_v16 = vadd.f32 %v11717_v46, %v11709_v48  ;;  %v11721_v53 = vadd.f32 %v21345_v5, %v21342_v42  ;;  %12307 = vmatprep.subr.bf16.mxu1 %v18139_v1  ;;  %v18181_v46 = vld [vmem:[%s21730_s21 + $0x5a8] ss:$12 sps:$4 sm:$0xff]  }
0x2309   :  { %v18190_v1 = vld [vmem:[%s21730_s21 + $0x5d4] ss:$12 sps:$4 sm:$0xff]  }
0x230a   :  { %11719 = vadd.xlane.f32.xlu0 %v11718_v16  ;;  %v11722_v56 = vadd.f32 %v11721_v53, %v11712_v11  ;;  %v18178_v16 = vld [vmem:[%s21730_s21 + $0x5a0] ss:$12 sps:$4 sm:$0xff]   ;;  %v18185_v53 = vld [vmem:[%s21730_s21 + $0x5bc] ss:$12 sps:$4 sm:$0xff]  }
0x230b   :  { %12308 = vmatpush1.bf16.msra.mxu1 %v18137_v45  ;;  %v18191_v45 = vld [vmem:[%s21730_s21 + $0x5d8] ss:$12 sps:$4 sm:$0xff]  }
0x230c   :  { %11723 = vadd.xlane.f32.xlu1 %v11722_v56  ;;  %12309 = vmatprep.subr.bf16.mxu1 %v18142_v9  ;;  %v18186_v56 = vld [vmem:[%s21730_s21 + $0x5c0] ss:$12 sps:$4 sm:$0xff]   ;;  %v18188_v9 = vld [vmem:[%s21730_s21 + $0x5d0] ss:$12 sps:$4 sm:$0xff]  }
0x230f   :  { %12310 = vmatpush1.bf16.msra.mxu1 %v18140_v28  ;;  %v18196_v28 = vld [vmem:[%s21730_s21 + $0x5f0] ss:$12 sps:$4 sm:$0xff]  }
0x2310   :  { %12311 = vmatprep.subr.bf16.mxu1 %v18145_v22  ;;  %v18197_v22 = vld [vmem:[%s21730_s21 + $0x530] ss:$12 sps:$4 sm:$0xff]  }
0x2313   :  { %12312 = vmatpush1.bf16.msra.mxu1 %v18143_v61 }
0x2314   :  { %12313 = vmatprep.subr.bf16.mxu1 %v18148_v51 }
0x2317   :  { %12314 = vmatpush1.bf16.msra.mxu1 %v18146_v14 }
0x2318   :  { %12315 = vmatprep.subr.bf16.mxu1 %v18151_v8 }
0x231b   :  { %12316 = vmatpush1.bf16.msra.mxu1 %v18149_v13 }
0x231c   :  { %12317 = vmatprep.subr.bf16.mxu1 %v18154_v52 }
0x231f   :  { %12318 = vmatpush1.bf16.msra.mxu1 %v18152_v12  ;;  %v21431_v12 = vld [vmem:[#allocation50 + $0x6] sm:$0x7] }
0x2320   :  { %12319 = vmatprep.subr.bf16.mxu1 %v18157_v19  ;;  %v21433_v19 = vld [vmem:[#allocation52 + $0x6] sm:$0x7] }
0x2323   :  { %12320 = vmatpush1.bf16.msra.mxu1 %v18155_v17  ;;  %v11767_v17 = vrot.slane %v21431_v12, %v20099_v50 }
0x2324   :  { %12321 = vmatprep.subr.bf16.mxu1 %v18160_v3  ;;  %v11763_v3 = vrot.slane %v21431_v12, %v20096_v47 }
0x2327   :  { %12322 = vmatpush1.bf16.msra.mxu1 %v18158_v26 }
0x2328   :  { %12323 = vmatprep.subr.bf16.mxu1 %v18165_v7 }
0x232b   :  { %12324 = vmatpush1.bf16.msra.mxu1 %v18163_v62 }
0x232c   :  { %12325 = vmatprep.subr.bf16.mxu1 %v18170_v31  ;;  %v18202_v31 = vld [vmem:[%s21730_s21 + $0x618] ss:$12 sps:$4 sm:$0xff]  }
0x232f   :  { %12326 = vmatpush1.bf16.msra.mxu1 %v18168_v43  ;;  %v18208_v43 = vld [vmem:[%s21730_s21 + $0x634] ss:$12 sps:$4 sm:$0xff]  }
0x2397   :  { %v11720_v25 = vpop.xlane.xlu0 %11719 }
0x2398   :  { %v11725_v23 = vmul.f32 0.0026041667, %v11720_v25 }
0x2399   :  { %v11724_v18 = vpop.xlane.xlu1 %11723 }
0x239a   :  { %v21378_v44 = vsub.f32 %v21336_v60, %v11725_v23  ;;  %v21381_v59 = vsub.f32 %v21339_v40, %v11725_v23  ;;  %v11726_v37 = vmul.f32 0.0026041667, %v11724_v18  ;;  %v21383_v57 = vsub.f32 %v11709_v48, %v11725_v23  ;;  %v18171_v60 = vld [vmem:[%s21730_s21 + $0x578] ss:$12 sps:$4 sm:$0xff]  }
0x239b   :  { %16261 = vmatprep.subr.bf16.mxu0 %v18171_v60  ;;  %v18175_v40 = vld [vmem:[%s21730_s21 + $0x58c] ss:$12 sps:$4 sm:$0xff]   ;;  %v18180_v48 = vld [vmem:[%s21730_s21 + $0x5a4] ss:$12 sps:$4 sm:$0xff]   ;;  %v11789_v18 = vrot.slane %v21433_v19, %v20099_v50 }
0x239c   :  { %v21386_v41 = vsub.f32 %v21342_v42, %v11726_v37  ;;  %v21389_v0 = vsub.f32 %v21345_v5, %v11726_v37  ;;  %v21391_v10 = vsub.f32 %v11712_v11, %v11726_v37  ;;  %v11733_v54 = vmul.f32 %v21378_v44, %v21378_v44  ;;  %16262 = vmatpush3.bf16.msra.mxu0 %v18172_v30  ;;  %v18173_v42 = vld [vmem:[%s21730_s21 + $0x588] ss:$12 sps:$4 sm:$0xff]   ;;  %v18177_v5 = vld [vmem:[%s21730_s21 + $0x4d0] ss:$12 sps:$4 sm:$0xff]   ;;  %v18205_v60 = vld [vmem:[%s21730_s21 + $0x620] ss:$12 sps:$4 sm:$0xff]  }
0x239d   :  { %v11734_v27 = vmul.f32 %v21381_v59, %v21381_v59  ;;  %v11735_v6 = vmul.f32 %v21383_v57, %v21383_v57  ;;  %12327 = vmatprep.subr.bf16.mxu1 %v18175_v40  ;;  %16263 = vmatprep.subr.bf16.mxu0 %v18176_v49  ;;  %v18182_v11 = vld [vmem:[%s21730_s21 + $0x4e8] ss:$12 sps:$4 sm:$0xff]   ;;  %v18206_v30 = vld [vmem:[%s21730_s21 + $0x630] ss:$12 sps:$4 sm:$0xff]   ;;  %v18209_v40 = vld [vmem:[%s21730_s21 + $0x638] ss:$12 sps:$4 sm:$0xff]  }
0x239e   :  { %v11736_v20 = vmul.f32 %v21386_v41, %v21386_v41  ;;  %v11737_v15 = vmul.f32 %v21389_v0, %v21389_v0  ;;  %v11738_v58 = vmul.f32 %v21391_v10, %v21391_v10  ;;  %12328 = vmatpush1.bf16.msra.mxu1 %v18173_v42  ;;  %v18212_v49 = vld [vmem:[%s21730_s21 + $0x64c] ss:$12 sps:$4 sm:$0xff]   ;;  %v18210_v42 = vld [vmem:[%s21730_s21 + $0x648] ss:$12 sps:$4 sm:$0xff]  }
0x239f   :  { %v11739_v4 = vadd.f32 %v11734_v27, %v11733_v54  ;;  %12329 = vmatprep.subr.bf16.mxu1 %v18180_v48  ;;  %v11785_v54 = vrot.slane %v21433_v19, %v20096_v47  ;;  %v18216_v48 = vld [vmem:[%s21730_s21 + $0x664] ss:$12 sps:$4 sm:$0xff]  }
0x23a0   :  { %v11743_v24 = vadd.f32 %v11737_v15, %v11736_v20  ;;  %16264 = vmatpush3.bf16.msra.mxu0 %v18177_v5  ;;  %v18213_v5 = vld [vmem:[%s21730_s21 + $0x650] ss:$12 sps:$4 sm:$0xff]  }
0x23a1   :  { %v11740_v29 = vadd.f32 %v11739_v4, %v11735_v6  ;;  %16265 = vmatprep.subr.bf16.mxu0 %v18181_v46  ;;  %v18214_v46 = vld [vmem:[%s21730_s21 + $0x660] ss:$12 sps:$4 sm:$0xff]  }
0x23a2   :  { %v11744_v34 = vadd.f32 %v11743_v24, %v11738_v58  ;;  %12330 = vmatpush1.bf16.msra.mxu1 %v18178_v16  ;;  %v18198_v58 = vld [vmem:[%s21730_s21 + $0x600] ss:$12 sps:$4 sm:$0xff]   ;;  %v18217_v16 = vld [vmem:[%s21730_s21 + $0x668] ss:$12 sps:$4 sm:$0xff]  }
0x23a3   :  { %11741 = vadd.xlane.f32.xlu0 %v11740_v29  ;;  %12331 = vmatprep.subr.bf16.mxu1 %v18185_v53  ;;  %v18201_v29 = vld [vmem:[%s21730_s21 + $0x608] ss:$12 sps:$4 sm:$0xff]   ;;  %v18218_v53 = vld [vmem:[%s21730_s21 + $0x678] ss:$12 sps:$4 sm:$0xff]  }
0x23a4   :  { %11745 = vadd.xlane.f32.xlu1 %v11744_v34  ;;  %16266 = vmatpush3.bf16.msra.mxu0 %v18182_v11  ;;  %v18204_v34 = vld [vmem:[%s21730_s21 + $0x61c] ss:$12 sps:$4 sm:$0xff]  }
0x23a5   :  { %16267 = vmatprep.subr.bf16.mxu0 %v18186_v56  ;;  %v18220_v11 = vld [vmem:[%s21730_s21 + $0x67c] ss:$12 sps:$4 sm:$0xff]   ;;  %v18221_v56 = vld [vmem:[%s21730_s21 + $0x680] ss:$12 sps:$4 sm:$0xff]  }
0x23a6   :  { %12332 = vmatpush1.bf16.msra.mxu1 %v18183_v32  ;;  %v18224_v32 = vld [vmem:[%s21730_s21 + $0x694] ss:$12 sps:$4 sm:$0xff]  }
0x23a7   :  { %12333 = vmatprep.subr.bf16.mxu1 %v18190_v1 }
0x23a8   :  { %16268 = vmatpush3.bf16.msra.mxu0 %v18187_v2 }
0x23a9   :  { %16269 = vmatprep.subr.bf16.mxu0 %v18191_v45  ;;  %v11771_v45 = vrot.slane %v21431_v12, %v20091_v38  ;;  %v18237_v12 = vld [vmem:[#allocation55 + $0x49c] ss:$12 sps:$4 sm:$0xff]  }
0x23aa   :  { %12334 = vmatpush1.bf16.msra.mxu1 %v18188_v9  ;;  %v18222_v9 = vld [vmem:[%s21730_s21 + $0x690] ss:$12 sps:$4 sm:$0xff]  }
0x23ab   :  { %12335 = vmatprep.subr.bf16.mxu1 %v18195_v21  ;;  %v18228_v21 = vld [vmem:[%s21730_s21 + $0x6ac] ss:$12 sps:$4 sm:$0xff]  }
0x23ac   :  { %16270 = vmatpush3.bf16.msra.mxu0 %v18192_v55  ;;  %v18225_v55 = vld [vmem:[%s21730_s21 + $0x698] ss:$12 sps:$4 sm:$0xff]  }
0x23ad   :  { %16271 = vmatprep.subr.bf16.mxu0 %v18196_v28 }
0x23ae   :  { %12336 = vmatpush1.bf16.msra.mxu1 %v18193_v63 }
0x23af   :  { %12348 = vmatprep.subr.bf16.mxu1 %v18200_v33 }
0x23b0   :  { %16272 = vmatpush3.bf16.msra.mxu0 %v18197_v22  ;;  %v18226_v22 = vld [vmem:[%s21730_s21 + $0x6a8] ss:$12 sps:$4 sm:$0xff]  }
0x23b1   :  { %16701 = vmatprep.subr.bf16.mxu0 %v19585_v35 }
0x2430   :  { %v11742_v61 = vpop.xlane.xlu0 %11741 }
0x2431   :  { %v11747_v51 = vmul.f32 0.0026041667, %v11742_v61  ;;  %v11746_v14 = vpop.xlane.xlu1 %11745  ;;  %v18232_v61 = vld [vmem:[#allocation55 + $0x484] ss:$12 sps:$4 sm:$0xff]  }
0x2432   :  { %v11748_v8 = vmul.f32 0.0026041667, %v11746_v14 }
0x2433   :  { %v11749_v13 = vadd.f32 0.001, %v11747_v51  ;;  %v18233_v51 = vld [vmem:[#allocation55 + $0x548] ss:$12 sps:$4 sm:$0xff]  }
0x2434   :  { %v11750_v52 = vadd.f32 0.001, %v11748_v8  ;;  %v18230_v8 = vld [vmem:[#allocation55 + $0x480] ss:$12 sps:$4 sm:$0xff]  }
0x2435   :  { %18554 = vrsqrt.f32 %v11749_v13 }
0x2436   :  { %18556 = vrsqrt.f32 %v11750_v52  ;;  %v18234_v52 = vld [vmem:[#allocation55 + $0x488] ss:$12 sps:$4 sm:$0xff]  }
0x243f   :  { %v21439_v26 = vpop.eup %18554 }
0x2440   :  { %v18557_v7 = vpop.eup %18556  ;;  %v11754_v62 = vmul.f32 %v21439_v26, %v21381_v59  ;;  %v11753_v25 = vmul.f32 %v21439_v26, %v21378_v44  ;;  %v11755_v1 = vmul.f32 %v21439_v26, %v21383_v57  ;;  %v18229_v57 = vld [vmem:[%s21730_s21 + $0x6b0] ss:$12 sps:$4 sm:$0xff]   ;;  %v18242_v26 = vld [vmem:[#allocation55 + $0x4b4] ss:$12 sps:$4 sm:$0xff]  }
0x2441   :  { %v11757_v23 = vmul.f32 %v18557_v7, %v21389_v0  ;;  %v11756_v37 = vmul.f32 %v18557_v7, %v21386_v41  ;;  %v11758_v2 = vmul.f32 %v18557_v7, %v21391_v10  ;;  %v11793_v10 = vrot.slane %v21433_v19, %v20091_v38  ;;  %v18238_v19 = vld [vmem:[#allocation55 + $0x560] ss:$12 sps:$4 sm:$0xff]   ;;  %v18243_v7 = vld [vmem:[#allocation55 + $0x578] ss:$12 sps:$4 sm:$0xff]  }
0x2442   :  { %v11776_v27 = vmul.f32 %v11767_v17, %v11754_v62  ;;  %v11775_v20 = vmul.f32 %v11763_v3, %v11753_v25  ;;  %v11777_v63 = vmul.f32 %v11771_v45, %v11755_v1  ;;  %v18240_v62 = vld [vmem:[#allocation55 + $0x4b0] ss:$12 sps:$4 sm:$0xff]   ;;  %v18244_v25 = vld [vmem:[#allocation55 + $0x4b8] ss:$12 sps:$4 sm:$0xff]  }
0x2443   :  { %v11779_v15 = vmul.f32 %v11767_v17, %v11757_v23  ;;  %v11778_v6 = vmul.f32 %v11763_v3, %v11756_v37  ;;  %v11780_v28 = vmul.f32 %v11771_v45, %v11758_v2  ;;  %v18235_v17 = vld [vmem:[#allocation55 + $0x498] ss:$12 sps:$4 sm:$0xff]   ;;  %v18239_v3 = vld [vmem:[#allocation55 + $0x4a0] ss:$12 sps:$4 sm:$0xff]   ;;  %v18245_v37 = vld [vmem:[#allocation55 + $0x4c8] ss:$12 sps:$4 sm:$0xff]  }
0x2444   :  { %v21451_v59 = vadd.f32 %v11789_v18, %v11776_v27  ;;  %v21455_v0 = vadd.f32 %v11785_v54, %v11775_v20  ;;  %v21513_v14 = vadd.f32 %v11793_v10, %v11777_v63  ;;  %v18247_v23 = vld [vmem:[#allocation55 + $0x4cc] ss:$12 sps:$4 sm:$0xff]   ;;  %v18252_v27 = vld [vmem:[#allocation55 + $0x4e4] ss:$12 sps:$4 sm:$0xff]   ;;  %v18253_v20 = vld [vmem:[#allocation55 + $0x5a8] ss:$12 sps:$4 sm:$0xff]  }
0x2445   :  { %v21453_v44 = vadd.f32 %v11789_v18, %v11779_v15  ;;  %v21457_v4 = vadd.f32 %v11785_v54, %v11778_v6  ;;  %v21511_v33 = vadd.f32 %v11793_v10, %v11780_v28  ;;  %v18248_v18 = vld [vmem:[#allocation55 + $0x590] ss:$12 sps:$4 sm:$0xff]   ;;  %v18250_v15 = vld [vmem:[#allocation55 + $0x4e0] ss:$12 sps:$4 sm:$0xff]   ;;  %v18254_v6 = vld [vmem:[#allocation55 + $0x4e8] ss:$12 sps:$4 sm:$0xff]  }
0x2446   :  { %v18249_v54 = vld [vmem:[#allocation55 + $0x4d0] ss:$12 sps:$4 sm:$0xff]   ;;  %v18281_v1 = vld [vmem:[#allocation55 + $0x638] ss:$12 sps:$4 sm:$0xff]   ;;  %v18286_v28 = vld [vmem:[#allocation55 + $0x5a0] ss:$12 sps:$4 sm:$0xff]  }
0x2447   :  { %v21461_v41 = vpack.c.bf16 %v21453_v44, %v21451_v59  ;;  %v21466_v24 = vpack.c.bf16 %v21457_v4, %v21455_v0  ;;  %v21517_v13 = vpack.c.bf16 %v21511_v33, %v21513_v14  ;;  %v18278_v2 = vld [vmem:[#allocation55 + $0x570] ss:$12 sps:$4 sm:$0xff]   ;;  %v18284_v45 = vld [vmem:[#allocation55 + $0x58c] ss:$12 sps:$4 sm:$0xff]   ;;  %v18289_v63 = vld [vmem:[#allocation55 + $0x668] ss:$12 sps:$4 sm:$0xff]  }
0x2448   :  { %v18292_v10 = vld [vmem:[#allocation55 + $0x5bc] ss:$12 sps:$4 sm:$0xff]  }
0x2449   :  { %12337 = vmatprep.mubr.bf16.mxu1 %v21461_v41  ;;  %12423 = vmatprep.mubr.bf16.mxu0 %v21461_v41 }
0x244a   :  { %12338 = vmatmul.mubr.bf16.vlgmr.msra.gmra.mrb[132].mxu1 %v21466_v24  ;;  %12424 = vmatmul.mubr.bf16.vlgmr.msra.gmra.mrb[128].mxu0 %v21466_v24 }
0x244b   :  { %12349 = vmatpush1.bf16.msra.mxu1 %v18198_v58  ;;  %16702 = vmatpush3.bf16.msra.mxu0 %v18201_v29  ;;  %v18258_v58 = vld [vmem:[#allocation55 + $0x5c0] ss:$12 sps:$4 sm:$0xff]   ;;  %v18255_v29 = vld [vmem:[#allocation55 + $0x4f8] ss:$12 sps:$4 sm:$0xff]  }
0x244c   :  { %12350 = vmatprep.subr.bf16.mxu1 %v18204_v34  ;;  %16703 = vmatprep.subr.bf16.mxu0 %v19585_v35  ;;  %v18259_v34 = vld [vmem:[#allocation55 + $0x500] ss:$12 sps:$4 sm:$0xff]  }
0x244d   :  { %12380 = vmatprep.mubr.bf16.mxu1 %v19586_v39  ;;  %16717 = vmatprep.mubr.msk.bf16.mxu0 %vm19587_vm0, %v19585_v35 }
0x244f   :  { %12351 = vmatpush1.bf16.msra.mxu1 %v18202_v31  ;;  %16704 = vmatpush3.bf16.msra.mxu0 %v18205_v60  ;;  %v18262_v31 = vld [vmem:[#allocation55 + $0x514] ss:$12 sps:$4 sm:$0xff]   ;;  %v18263_v60 = vld [vmem:[#allocation55 + $0x5d8] ss:$12 sps:$4 sm:$0xff]  }
0x2450   :  { %12352 = vmatprep.subr.bf16.mxu1 %v18208_v43  ;;  %16705 = vmatprep.subr.bf16.mxu0 %v19585_v35  ;;  %v18260_v43 = vld [vmem:[#allocation55 + $0x510] ss:$12 sps:$4 sm:$0xff]  }
0x2453   :  { %12353 = vmatpush1.bf16.msra.mxu1 %v18206_v30  ;;  %16706 = vmatpush3.bf16.msra.mxu0 %v18209_v40  ;;  %v18264_v30 = vld [vmem:[#allocation55 + $0x518] ss:$12 sps:$4 sm:$0xff]  }
0x2454   :  { %12354 = vmatprep.subr.bf16.mxu1 %v18212_v49  ;;  %16707 = vmatprep.subr.bf16.mxu0 %v19585_v35  ;;  %v18267_v40 = vld [vmem:[#allocation55 + $0x52c] ss:$12 sps:$4 sm:$0xff]   ;;  %v18268_v49 = vld [vmem:[#allocation55 + $0x5f0] ss:$12 sps:$4 sm:$0xff]  }
0x2457   :  { %12355 = vmatpush1.bf16.msra.mxu1 %v18210_v42  ;;  %16708 = vmatpush3.bf16.msra.mxu0 %v18213_v5  ;;  %v18265_v42 = vld [vmem:[#allocation55 + $0x528] ss:$12 sps:$4 sm:$0xff]   ;;  %v18269_v5 = vld [vmem:[#allocation55 + $0x530] ss:$12 sps:$4 sm:$0xff]  }
0x2458   :  { %12356 = vmatprep.subr.bf16.mxu1 %v18216_v48  ;;  %16709 = vmatprep.subr.bf16.mxu0 %v19585_v35  ;;  %v18272_v48 = vld [vmem:[#allocation55 + $0x544] ss:$12 sps:$4 sm:$0xff]  }
0x245b   :  { %12357 = vmatpush1.bf16.msra.mxu1 %v18214_v46  ;;  %16710 = vmatpush3.bf16.msra.mxu0 %v18217_v16  ;;  %v18270_v46 = vld [vmem:[#allocation55 + $0x540] ss:$12 sps:$4 sm:$0xff]   ;;  %v18273_v16 = vld [vmem:[#allocation55 + $0x608] ss:$12 sps:$4 sm:$0xff]  }
0x245c   :  { %12358 = vmatprep.subr.bf16.mxu1 %v18220_v11  ;;  %16711 = vmatprep.subr.bf16.mxu0 %v19585_v35  ;;  %v18276_v11 = vld [vmem:[#allocation55 + $0x55c] ss:$12 sps:$4 sm:$0xff]  }
0x245f   :  { %12359 = vmatpush1.bf16.msra.mxu1 %v18218_v53  ;;  %16712 = vmatpush3.bf16.msra.mxu0 %v18221_v56  ;;  %v18274_v53 = vld [vmem:[#allocation55 + $0x558] ss:$12 sps:$4 sm:$0xff]   ;;  %v18277_v56 = vld [vmem:[#allocation55 + $0x620] ss:$12 sps:$4 sm:$0xff]  }
0x2460   :  { %12360 = vmatprep.subr.bf16.mxu1 %v18224_v32  ;;  %16713 = vmatprep.subr.bf16.mxu0 %v19585_v35  ;;  %v18280_v32 = vld [vmem:[#allocation55 + $0x574] ss:$12 sps:$4 sm:$0xff]  }
0x2463   :  { %12361 = vmatpush1.bf16.msra.mxu1 %v18222_v9  ;;  %16714 = vmatpush3.bf16.msra.mxu0 %v18225_v55  ;;  %v18282_v9 = vld [vmem:[#allocation55 + $0x588] ss:$12 sps:$4 sm:$0xff]   ;;  %v18285_v55 = vld [vmem:[#allocation55 + $0x650] ss:$12 sps:$4 sm:$0xff]  }
0x2464   :  { %12362 = vmatprep.subr.bf16.mxu1 %v18228_v21  ;;  %16715 = vmatprep.subr.bf16.mxu0 %v19585_v35  ;;  %v18288_v21 = vld [vmem:[#allocation55 + $0x5a4] ss:$12 sps:$4 sm:$0xff]  }
0x2467   :  { %12363 = vmatpush1.bf16.msra.mxu1 %v18226_v22  ;;  %16716 = vmatpush3.bf16.msra.mxu0 %v18229_v57  ;;  %v18290_v22 = vld [vmem:[#allocation55 + $0x5b8] ss:$12 sps:$4 sm:$0xff]   ;;  %v18293_v57 = vld [vmem:[#allocation55 + $0x680] ss:$12 sps:$4 sm:$0xff]  }
0x2468   :  { %13008 = vmatprep.subr.bf16.mxu0 %v18232_v61  ;;  %16288 = vmatprep.subr.bf16.mxu1 %v18233_v51  ;;  %v18296_v61 = vld [vmem:[#allocation55 + $0x5d4] ss:$12 sps:$4 sm:$0xff]   ;;  %v18294_v51 = vld [vmem:[#allocation55 + $0x5d0] ss:$12 sps:$4 sm:$0xff]  }
0x246a   :  { %12381 = vmatmul.mubr.bf16.vlgmr.msra.gmra.mrb[132].mxu1 %v21517_v13  ;;  %16718 = vmatmul.mubr.bf16.vlgmr.msra.gmra.mrb[132].mxu0 %v21517_v13 }
0x246b   :  { %13009 = vmatpush1.bf16.msra.mxu0 %v18230_v8  ;;  %13040 = vmatprep.mubr.bf16.mxu0 %v21461_v41  ;;  %v18297_v8 = vld [vmem:[#allocation55 + $0x698] ss:$12 sps:$4 sm:$0xff]  }
0x246c   :  { %16289 = vmatpush3.bf16.msra.mxu1 %v18234_v52  ;;  %13126 = vmatprep.mubr.bf16.mxu1 %v21461_v41  ;;  %v18257_v41 = vld [vmem:[#allocation55 + $0x4fc] ss:$12 sps:$4 sm:$0xff]   ;;  %v18300_v52 = vld [vmem:[#allocation55 + $0x5ec] ss:$12 sps:$4 sm:$0xff]  }
0x246d   :  { %13010 = vmatprep.subr.bf16.mxu0 %v18237_v12  ;;  %16290 = vmatprep.subr.bf16.mxu1 %v18238_v19  ;;  %v18298_v12 = vld [vmem:[#allocation55 + $0x5e8] ss:$12 sps:$4 sm:$0xff]   ;;  %v18301_v19 = vld [vmem:[#allocation55 + $0x6b0] ss:$12 sps:$4 sm:$0xff]  }
0x246f   :  { %13011 = vmatpush1.bf16.msra.mxu0 %v18235_v17  ;;  %v18304_v17 = vld [vmem:[#allocation55 + $0x604] ss:$12 sps:$4 sm:$0xff]  }
0x2470   :  { %16291 = vmatpush3.bf16.msra.mxu1 %v18239_v3  ;;  %13012 = vmatprep.subr.bf16.mxu0 %v18242_v26  ;;  %v18302_v3 = vld [vmem:[#allocation55 + $0x600] ss:$12 sps:$4 sm:$0xff]   ;;  %v18307_v26 = vld [vmem:[#allocation55 + $0x61c] ss:$12 sps:$4 sm:$0xff]  }
0x2471   :  { %16292 = vmatprep.subr.bf16.mxu1 %v18243_v7  ;;  %v18305_v7 = vld [vmem:[#allocation55 + $0x618] ss:$12 sps:$4 sm:$0xff]  }
0x2473   :  { %13013 = vmatpush1.bf16.msra.mxu0 %v18240_v62  ;;  %v18310_v62 = vld [vmem:[#allocation55 + $0x634] ss:$12 sps:$4 sm:$0xff]  }
0x2474   :  { %16293 = vmatpush3.bf16.msra.mxu1 %v18244_v25  ;;  %13014 = vmatprep.subr.bf16.mxu0 %v18247_v23  ;;  %v18308_v25 = vld [vmem:[#allocation55 + $0x630] ss:$12 sps:$4 sm:$0xff]   ;;  %v18313_v23 = vld [vmem:[#allocation55 + $0x64c] ss:$12 sps:$4 sm:$0xff]  }
0x2475   :  { %16294 = vmatprep.subr.bf16.mxu1 %v18248_v18  ;;  %v18311_v18 = vld [vmem:[#allocation55 + $0x648] ss:$12 sps:$4 sm:$0xff]  }
0x2477   :  { %13015 = vmatpush1.bf16.msra.mxu0 %v18245_v37  ;;  %v18316_v37 = vld [vmem:[#allocation55 + $0x664] ss:$12 sps:$4 sm:$0xff]  }
0x2478   :  { %16295 = vmatpush3.bf16.msra.mxu1 %v18249_v54  ;;  %13016 = vmatprep.subr.bf16.mxu0 %v18252_v27  ;;  %v18314_v54 = vld [vmem:[#allocation55 + $0x660] ss:$12 sps:$4 sm:$0xff]   ;;  %v18317_v27 = vld [vmem:[#allocation55 + $0x678] ss:$12 sps:$4 sm:$0xff]  }
0x2479   :  { %16296 = vmatprep.subr.bf16.mxu1 %v18253_v20  ;;  %v18322_v20 = vld [vmem:[#allocation55 + $0x694] ss:$12 sps:$4 sm:$0xff]  }
0x247b   :  { %13017 = vmatpush1.bf16.msra.mxu0 %v18250_v15  ;;  %v18320_v15 = vld [vmem:[#allocation55 + $0x690] ss:$12 sps:$4 sm:$0xff]  }
0x247c   :  { %16297 = vmatpush3.bf16.msra.mxu1 %v18254_v6  ;;  %13018 = vmatprep.subr.bf16.mxu0 %v18257_v41  ;;  %v18325_v6 = vld [vmem:[#allocation55 + $0x6ac] ss:$12 sps:$4 sm:$0xff]   ;;  %v18323_v41 = vld [vmem:[#allocation55 + $0x6a8] ss:$12 sps:$4 sm:$0xff]  }
0x247d   :  { %16298 = vmatprep.subr.bf16.mxu1 %v18258_v58  ;;  %v18326_v58 = vld [vmem:[#allocation58 + $0x480] ss:$12 sps:$4 sm:$0xff]  }
0x247f   :  { %13019 = vmatpush1.bf16.msra.mxu0 %v18255_v29  ;;  %v18328_v29 = vld [vmem:[#allocation58 + $0x484] ss:$12 sps:$4 sm:$0xff]  }
0x2480   :  { %16299 = vmatpush3.bf16.msra.mxu1 %v18259_v34  ;;  %13020 = vmatprep.subr.bf16.mxu0 %v18262_v31  ;;  %v18331_v34 = vld [vmem:[#allocation58 + $0x49c] ss:$12 sps:$4 sm:$0xff]   ;;  %v18329_v31 = vld [vmem:[#allocation58 + $0x498] ss:$12 sps:$4 sm:$0xff]  }
0x2481   :  { %16300 = vmatprep.subr.bf16.mxu1 %v18263_v60  ;;  %v18334_v60 = vld [vmem:[#allocation58 + $0x4b4] ss:$12 sps:$4 sm:$0xff]  }
0x2483   :  { %13021 = vmatpush1.bf16.msra.mxu0 %v18260_v43  ;;  %v18332_v43 = vld [vmem:[#allocation58 + $0x4b0] ss:$12 sps:$4 sm:$0xff]  }
0x2484   :  { %16301 = vmatpush3.bf16.msra.mxu1 %v18264_v30  ;;  %13022 = vmatprep.subr.bf16.mxu0 %v18267_v40  ;;  %v18337_v30 = vld [vmem:[#allocation58 + $0x4cc] ss:$12 sps:$4 sm:$0xff]   ;;  %v18335_v40 = vld [vmem:[#allocation58 + $0x4c8] ss:$12 sps:$4 sm:$0xff]  }
0x2485   :  { %16302 = vmatprep.subr.bf16.mxu1 %v18268_v49  ;;  %v18340_v49 = vld [vmem:[#allocation58 + $0x4e4] ss:$12 sps:$4 sm:$0xff]  }
0x2487   :  { %13023 = vmatpush1.bf16.msra.mxu0 %v18265_v42  ;;  %v18338_v42 = vld [vmem:[#allocation58 + $0x4e0] ss:$12 sps:$4 sm:$0xff]  }
0x2488   :  { %16303 = vmatpush3.bf16.msra.mxu1 %v18269_v5  ;;  %13024 = vmatprep.subr.bf16.mxu0 %v18272_v48  ;;  %v18341_v5 = vld [vmem:[#allocation58 + $0x4f8] ss:$12 sps:$4 sm:$0xff]   ;;  %v18346_v48 = vld [vmem:[#allocation58 + $0x514] ss:$12 sps:$4 sm:$0xff]  }
0x2489   :  { %16721 = vmatprep.subr.bf16.mxu1 %v19585_v35 }
0x248b   :  { %13127 = vmatmul.mubr.bf16.vlgmr.msra.gmra.mrb[136].mxu1 %v21466_v24  ;;  %13025 = vmatpush1.bf16.msra.mxu0 %v18270_v46  ;;  %v18344_v46 = vld [vmem:[#allocation58 + $0x510] ss:$12 sps:$4 sm:$0xff]  }
0x248c   :  { %16722 = vmatpush3.bf16.msra.mxu1 %v18273_v16  ;;  %13026 = vmatprep.subr.bf16.mxu0 %v18276_v11  ;;  %v18349_v16 = vld [vmem:[#allocation58 + $0x52c] ss:$12 sps:$4 sm:$0xff]   ;;  %v18347_v11 = vld [vmem:[#allocation58 + $0x528] ss:$12 sps:$4 sm:$0xff]  }
0x248d   :  { %16723 = vmatprep.subr.bf16.mxu1 %v19585_v35  ;;  %16737 = vmatprep.mubr.msk.bf16.mxu1 %vm19587_vm0, %v19585_v35 }
0x248f   :  { %13027 = vmatpush1.bf16.msra.mxu0 %v18274_v53  ;;  %v18352_v53 = vld [vmem:[#allocation58 + $0x544] ss:$12 sps:$4 sm:$0xff]  }
0x2490   :  { %16724 = vmatpush3.bf16.msra.mxu1 %v18277_v56  ;;  %13028 = vmatprep.subr.bf16.mxu0 %v18280_v32  ;;  %v18353_v56 = vld [vmem:[#allocation58 + $0x548] ss:$12 sps:$4 sm:$0xff]   ;;  %v18350_v32 = vld [vmem:[#allocation58 + $0x540] ss:$12 sps:$4 sm:$0xff]  }
0x2491   :  { %16725 = vmatprep.subr.bf16.mxu1 %v19585_v35 }
0x2493   :  { %13029 = vmatpush1.bf16.msra.mxu0 %v18278_v2  ;;  %v18354_v2 = vld [vmem:[#allocation58 + $0x488] ss:$12 sps:$4 sm:$0xff]  }
0x2494   :  { %16726 = vmatpush3.bf16.msra.mxu1 %v18281_v1  ;;  %13030 = vmatprep.subr.bf16.mxu0 %v18284_v45  ;;  %v18357_v1 = vld [vmem:[#allocation58 + $0x55c] ss:$12 sps:$4 sm:$0xff]   ;;  %v18358_v45 = vld [vmem:[#allocation58 + $0x560] ss:$12 sps:$4 sm:$0xff]  }
0x2495   :  { %16727 = vmatprep.subr.bf16.mxu1 %v19585_v35 }
0x2497   :  { %13031 = vmatpush1.bf16.msra.mxu0 %v18282_v9  ;;  %v18359_v9 = vld [vmem:[#allocation58 + $0x4a0] ss:$12 sps:$4 sm:$0xff]  }
0x2498   :  { %16728 = vmatpush3.bf16.msra.mxu1 %v18285_v55  ;;  %13032 = vmatprep.subr.bf16.mxu0 %v18288_v21  ;;  %v18363_v55 = vld [vmem:[#allocation58 + $0x578] ss:$12 sps:$4 sm:$0xff]  }
0x2499   :  { %16729 = vmatprep.subr.bf16.mxu1 %v19585_v35  ;;  %v18355_v21 = vld [vmem:[#allocation58 + $0x558] ss:$12 sps:$4 sm:$0xff]  }
0x249b   :  { %13033 = vmatpush1.bf16.msra.mxu0 %v18286_v28  ;;  %v18362_v28 = vld [vmem:[#allocation58 + $0x574] ss:$12 sps:$4 sm:$0xff]  }
0x249c   :  { %16730 = vmatpush3.bf16.msra.mxu1 %v18289_v63  ;;  %13034 = vmatprep.subr.bf16.mxu0 %v18292_v10  ;;  %v18364_v63 = vld [vmem:[#allocation58 + $0x4b8] ss:$12 sps:$4 sm:$0xff]   ;;  %v18368_v10 = vld [vmem:[#allocation58 + $0x590] ss:$12 sps:$4 sm:$0xff]  }
0x249d   :  { %16731 = vmatprep.subr.bf16.mxu1 %v19585_v35 }
0x249f   :  { %13035 = vmatpush1.bf16.msra.mxu0 %v18290_v22  ;;  %v18360_v22 = vld [vmem:[#allocation58 + $0x570] ss:$12 sps:$4 sm:$0xff]  }
0x24a0   :  { %16732 = vmatpush3.bf16.msra.mxu1 %v18293_v57  ;;  %13036 = vmatprep.subr.bf16.mxu0 %v18296_v61  ;;  %v18367_v57 = vld [vmem:[#allocation58 + $0x58c] ss:$12 sps:$4 sm:$0xff]   ;;  %v18369_v61 = vld [vmem:[#allocation58 + $0x4d0] ss:$12 sps:$4 sm:$0xff]  }
0x24a1   :  { %16733 = vmatprep.subr.bf16.mxu1 %v19585_v35 }
0x24a3   :  { %13037 = vmatpush1.bf16.msra.mxu0 %v18294_v51  ;;  %v18373_v51 = vld [vmem:[#allocation58 + $0x5a8] ss:$12 sps:$4 sm:$0xff]  }
0x24a4   :  { %16734 = vmatpush3.bf16.msra.mxu1 %v18297_v8  ;;  %13038 = vmatprep.subr.bf16.mxu0 %v18300_v52  ;;  %v18365_v8 = vld [vmem:[#allocation58 + $0x588] ss:$12 sps:$4 sm:$0xff]   ;;  %v18372_v52 = vld [vmem:[#allocation58 + $0x5a4] ss:$12 sps:$4 sm:$0xff]  }
0x24a5   :  { %16735 = vmatprep.subr.bf16.mxu1 %v19585_v35 }
0x24a7   :  { %13039 = vmatpush1.bf16.msra.mxu0 %v18298_v12  ;;  %v18374_v12 = vld [vmem:[#allocation58 + $0x4e8] ss:$12 sps:$4 sm:$0xff]  }
0x24a8   :  { %16736 = vmatpush3.bf16.msra.mxu1 %v18301_v19  ;;  %13051 = vmatprep.subr.bf16.mxu0 %v18304_v17  ;;  %v18378_v19 = vld [vmem:[#allocation58 + $0x5c0] ss:$12 sps:$4 sm:$0xff]  }
0x24a9   :  { %13684 = vmatprep.subr.bf16.mxu1 %v18328_v29  ;;  %v18370_v17 = vld [vmem:[#allocation58 + $0x5a0] ss:$12 sps:$4 sm:$0xff]   ;;  %v18389_v29 = vld [vmem:[#allocation58 + $0x530] ss:$12 sps:$4 sm:$0xff]  }
0x24aa   :  { %13041 = vmatmul.mubr.bf16.vlgmr.msra.gmra.mrb[136].mxu0 %v21466_v24  ;;  %v18319_v24 = vld [vmem:[#allocation55 + $0x67c] ss:$12 sps:$4 sm:$0xff]  }
0x24ab   :  { %16738 = vmatmul.mubr.bf16.vlgmr.msra.gmra.mrb[140].mxu1 %v21517_v13  ;;  %13052 = vmatpush1.bf16.msra.mxu0 %v18302_v3  ;;  %v18377_v3 = vld [vmem:[#allocation58 + $0x5bc] ss:$12 sps:$4 sm:$0xff]  }
0x24ac   :  { %13053 = vmatprep.subr.bf16.mxu0 %v18307_v26  ;;  %13083 = vmatprep.mubr.bf16.mxu0 %v19586_v39  ;;  %v18379_v26 = vld [vmem:[#allocation58 + $0x500] ss:$12 sps:$4 sm:$0xff]  }
0x24ad   :  { %13685 = vmatpush1.bf16.msra.mxu1 %v18326_v58  ;;  %v18385_v58 = vld [vmem:[#allocation58 + $0x5e8] ss:$12 sps:$4 sm:$0xff]  }
0x24ae   :  { %13686 = vmatprep.subr.bf16.mxu1 %v18331_v34  ;;  %v18392_v34 = vld [vmem:[#allocation58 + $0x604] ss:$12 sps:$4 sm:$0xff]  }
0x24af   :  { %13054 = vmatpush1.bf16.msra.mxu0 %v18305_v7  ;;  %v18375_v7 = vld [vmem:[#allocation58 + $0x5b8] ss:$12 sps:$4 sm:$0xff]  }
0x24b0   :  { %13055 = vmatprep.subr.bf16.mxu0 %v18310_v62 }
0x24b1   :  { %13687 = vmatpush1.bf16.msra.mxu1 %v18329_v31  ;;  %v21539_v31 = vld [vmem:[#allocation53 + $0x6] sm:$0x7] }
0x24b2   :  { %13688 = vmatprep.subr.bf16.mxu1 %v18334_v60  ;;  %v11917_v60 = vrot.slane %v21539_v31, %v20091_v38 }
0x24b3   :  { %13056 = vmatpush1.bf16.msra.mxu0 %v18308_v25 }
0x24b4   :  { %13057 = vmatprep.subr.bf16.mxu0 %v18313_v23 }
0x24b5   :  { %13689 = vmatpush1.bf16.msra.mxu1 %v18332_v43 }
0x24b6   :  { %13690 = vmatprep.subr.bf16.mxu1 %v18337_v30 }
0x24b7   :  { %13058 = vmatpush1.bf16.msra.mxu0 %v18311_v18 }
0x24b8   :  { %13059 = vmatprep.subr.bf16.mxu0 %v18316_v37  ;;  %v18382_v37 = vld [vmem:[#allocation58 + $0x5d4] ss:$12 sps:$4 sm:$0xff]  }
0x24b9   :  { %13691 = vmatpush1.bf16.msra.mxu1 %v18335_v40 }
0x24ba   :  { %13692 = vmatprep.subr.bf16.mxu1 %v18340_v49 }
0x24bb   :  { %13060 = vmatpush1.bf16.msra.mxu0 %v18314_v54  ;;  %v18383_v54 = vld [vmem:[#allocation58 + $0x5d8] ss:$12 sps:$4 sm:$0xff]  }
0x24bc   :  { %13061 = vmatprep.subr.bf16.mxu0 %v18319_v24 }
0x24bd   :  { %13693 = vmatpush1.bf16.msra.mxu1 %v18338_v42 }
0x24bf   :  { %13062 = vmatpush1.bf16.msra.mxu0 %v18317_v27  ;;  %v18380_v27 = vld [vmem:[#allocation58 + $0x5d0] ss:$12 sps:$4 sm:$0xff]  }
0x24c0   :  { %13063 = vmatprep.subr.bf16.mxu0 %v18322_v20  ;;  %v18384_v20 = vld [vmem:[#allocation58 + $0x518] ss:$12 sps:$4 sm:$0xff]  }
0x24c3   :  { %13064 = vmatpush1.bf16.msra.mxu0 %v18320_v15 }
0x24c4   :  { %13065 = vmatprep.subr.bf16.mxu0 %v18325_v6  ;;  %v18387_v6 = vld [vmem:[#allocation58 + $0x5ec] ss:$12 sps:$4 sm:$0xff]  }
0x24c7   :  { %13066 = vmatpush1.bf16.msra.mxu0 %v18323_v41  ;;  %v18388_v41 = vld [vmem:[#allocation58 + $0x5f0] ss:$12 sps:$4 sm:$0xff]  }
0x24c8   :  { %16319 = vmatprep.subr.bf16.mxu0 %v18353_v56 }
0x24ca   :  { %13084 = vmatmul.mubr.bf16.vlgmr.msra.gmra.mrb[136].mxu0 %v21517_v13  ;;  %v18343_v13 = vld [vmem:[#allocation58 + $0x4fc] ss:$12 sps:$4 sm:$0xff]  }
0x24cb   :  { %13694 = vmatprep.subr.bf16.mxu1 %v18343_v13  ;;  %16320 = vmatpush3.bf16.msra.mxu0 %v18354_v2 }
0x24cc   :  { %13695 = vmatpush1.bf16.msra.mxu1 %v18341_v5  ;;  %16321 = vmatprep.subr.bf16.mxu0 %v18358_v45 }
0x24cd   :  { %13696 = vmatprep.subr.bf16.mxu1 %v18346_v48 }
0x24cf   :  { %16322 = vmatpush3.bf16.msra.mxu0 %v18359_v9 }
0x24d0   :  { %13697 = vmatpush1.bf16.msra.mxu1 %v18344_v46  ;;  %16323 = vmatprep.subr.bf16.mxu0 %v18363_v55  ;;  %v12607_v55 = vld [vmem:[#allocation56 + $0x6] sm:$0x7] }
0x24d1   :  { %13698 = vmatprep.subr.bf16.mxu1 %v18349_v16 }
0x24d3   :  { %16324 = vmatpush3.bf16.msra.mxu0 %v18364_v63 }
0x24d4   :  { %13699 = vmatpush1.bf16.msra.mxu1 %v18347_v11  ;;  %16325 = vmatprep.subr.bf16.mxu0 %v18368_v10 }
0x24d5   :  { %13700 = vmatprep.subr.bf16.mxu1 %v18352_v53 }
0x24d7   :  { %16326 = vmatpush3.bf16.msra.mxu0 %v18369_v61 }
0x24d8   :  { %13701 = vmatpush1.bf16.msra.mxu1 %v18350_v32  ;;  %16327 = vmatprep.subr.bf16.mxu0 %v18373_v51 }
0x24d9   :  { %13702 = vmatprep.subr.bf16.mxu1 %v18357_v1 }
0x24db   :  { %16328 = vmatpush3.bf16.msra.mxu0 %v18374_v12 }
0x24dc   :  { %13703 = vmatpush1.bf16.msra.mxu1 %v18355_v21  ;;  %16329 = vmatprep.subr.bf16.mxu0 %v18378_v19  ;;  %v12620_v21 = vrot.slane %v12607_v55, %v20091_v38 }
0x24dd   :  { %13704 = vmatprep.subr.bf16.mxu1 %v18362_v28 }
0x24df   :  { %16330 = vmatpush3.bf16.msra.mxu0 %v18379_v26 }
0x24e0   :  { %13705 = vmatpush1.bf16.msra.mxu1 %v18360_v22  ;;  %16331 = vmatprep.subr.bf16.mxu0 %v18383_v54 }
0x24e1   :  { %13706 = vmatprep.subr.bf16.mxu1 %v18367_v57 }
0x24e3   :  { %16332 = vmatpush3.bf16.msra.mxu0 %v18384_v20 }
0x24e4   :  { %13707 = vmatpush1.bf16.msra.mxu1 %v18365_v8  ;;  %16333 = vmatprep.subr.bf16.mxu0 %v18388_v41 }
0x24e5   :  { %13708 = vmatprep.subr.bf16.mxu1 %v18372_v52 }
0x24e7   :  { %16334 = vmatpush3.bf16.msra.mxu0 %v18389_v29  ;;  %v18393_v29 = vld [vmem:[#allocation58 + $0x608] ss:$12 sps:$4 sm:$0xff]  }
0x24e8   :  { %13709 = vmatpush1.bf16.msra.mxu1 %v18370_v17  ;;  %16741 = vmatprep.subr.bf16.mxu0 %v19585_v35  ;;  %v12612_v17 = vrot.slane %v12607_v55, %v20096_v47 }
0x24e9   :  { %13710 = vmatprep.subr.bf16.mxu1 %v18377_v3  ;;  %v12616_v3 = vrot.slane %v12607_v55, %v20099_v50  ;;  %v18416_v55 = vld [vmem:[#allocation58 + $0x694] ss:$12 sps:$4 sm:$0xff]  }
0x24ec   :  { %13711 = vmatpush1.bf16.msra.mxu1 %v18375_v7 }
0x24ed   :  { %13712 = vmatprep.subr.bf16.mxu1 %v18382_v37 }
0x24f0   :  { %13713 = vmatpush1.bf16.msra.mxu1 %v18380_v27 }
0x24f1   :  { %13714 = vmatprep.subr.bf16.mxu1 %v18387_v6 }
0x24f4   :  { %13715 = vmatpush1.bf16.msra.mxu1 %v18385_v58  ;;  %v18390_v58 = vld [vmem:[#allocation58 + $0x600] ss:$12 sps:$4 sm:$0xff]  }
0x24f5   :  { %13727 = vmatprep.subr.bf16.mxu1 %v18392_v34  ;;  %v18396_v34 = vld [vmem:[#allocation58 + $0x61c] ss:$12 sps:$4 sm:$0xff]  }
0x251d   :  { %v16273_v62 = vpop.f32.mrb[128].mxu0 }
0x251e   :  { %v16274_v25 = vpop.f32.mrb[129].mxu0 }
0x251f   :  { %v16275_v23 = vadd.f32 %v16274_v25, %v16273_v62  ;;  %v16276_v18 = vpop.f32.mrb[130].mxu0 }
0x2520   :  { %v16277_v24 = vpop.f32.mrb[131].mxu0 }
0x2521   :  { %v16278_v15 = vadd.f32 %v16277_v24, %v16276_v18  ;;  %v12426_v43 = vadd.f32 %v16275_v23, %v11917_v60 }
0x2523   :  { %v12429_v5 = vadd.f32 %v16278_v15, %v11917_v60  ;;  %v18394_v60 = vld [vmem:[#allocation58 + $0x618] ss:$12 sps:$4 sm:$0xff]  }
0x253d   :  { %v21543_v30 = vpop.f32.mrb[132].mxu1  ;;  %v12466_v40 = vpop.f32.mrb[132].mxu0 }
0x253e   :  { %v21545_v49 = vadd.f32 %v12466_v40, %v12426_v43  ;;  %v21547_v42 = vpop.f32.mrb[133].mxu1  ;;  %v16719_v13 = vpop.f32.mrb[133].mxu0  ;;  %v18397_v43 = vld [vmem:[#allocation58 + $0x620] ss:$12 sps:$4 sm:$0xff]  }
0x253f   :  { %v21549_v48 = vpop.f32.mrb[134].mxu1  ;;  %v12469_v46 = vpop.f32.mrb[134].mxu0  ;;  %v18400_v40 = vld [vmem:[#allocation58 + $0x634] ss:$12 sps:$4 sm:$0xff]   ;;  %v18398_v13 = vld [vmem:[#allocation58 + $0x630] ss:$12 sps:$4 sm:$0xff]  }
0x2540   :  { %v21551_v16 = vadd.f32 %v12469_v46, %v12429_v5  ;;  %v21553_v11 = vpop.f32.mrb[135].mxu1  ;;  %v16720_v53 = vpop.f32.mrb[135].mxu0  ;;  %v18401_v5 = vld [vmem:[#allocation58 + $0x638] ss:$12 sps:$4 sm:$0xff]  }
0x2541   :  { %v18404_v46 = vld [vmem:[#allocation58 + $0x64c] ss:$12 sps:$4 sm:$0xff]   ;;  %v18402_v53 = vld [vmem:[#allocation58 + $0x648] ss:$12 sps:$4 sm:$0xff]  }
0x255e   :  { %v16304_v56 = vpop.f32.mrb[136].mxu1 }
0x255f   :  { %v16305_v32 = vpop.f32.mrb[137].mxu1 }
0x2560   :  { %v16306_v2 = vadd.f32 %v16305_v32, %v16304_v56  ;;  %v16307_v1 = vpop.f32.mrb[138].mxu1  ;;  %v18405_v56 = vld [vmem:[#allocation58 + $0x650] ss:$12 sps:$4 sm:$0xff]  }
0x2561   :  { %v16308_v45 = vpop.f32.mrb[139].mxu1  ;;  %v18408_v32 = vld [vmem:[#allocation58 + $0x664] ss:$12 sps:$4 sm:$0xff]  }
0x2562   :  { %v16309_v9 = vadd.f32 %v16308_v45, %v16307_v1  ;;  %v13129_v28 = vadd.f32 %v16306_v2, %v12620_v21  ;;  %v18409_v2 = vld [vmem:[#allocation58 + $0x668] ss:$12 sps:$4 sm:$0xff]   ;;  %v18410_v45 = vld [vmem:[#allocation58 + $0x678] ss:$12 sps:$4 sm:$0xff]  }
0x2563   :  { %v18412_v1 = vld [vmem:[#allocation58 + $0x67c] ss:$12 sps:$4 sm:$0xff]  }
0x2564   :  { %v13132_v57 = vadd.f32 %v16309_v9, %v12620_v21  ;;  %v18413_v9 = vld [vmem:[#allocation58 + $0x680] ss:$12 sps:$4 sm:$0xff]   ;;  %v18414_v21 = vld [vmem:[#allocation58 + $0x690] ss:$12 sps:$4 sm:$0xff]  }
0x257e   :  { %v13169_v63 = vpop.f32.mrb[140].mxu1 }
0x257f   :  { %v13170_v10 = vadd.f32 %v13169_v63, %v13129_v28  ;;  %v16739_v22 = vpop.f32.mrb[141].mxu1  ;;  %v18417_v28 = vld [vmem:[#allocation58 + $0x698] ss:$12 sps:$4 sm:$0xff]  }
0x2580   :  { %v13172_v61 = vpop.f32.mrb[142].mxu1  ;;  %v18420_v63 = vld [vmem:[#allocation58 + $0x6ac] ss:$12 sps:$4 sm:$0xff]   ;;  %v18421_v22 = vld [vmem:[#allocation58 + $0x6b0] ss:$12 sps:$4 sm:$0xff]  }
0x2581   :  { %v13173_v51 = vadd.f32 %v13172_v61, %v13132_v57  ;;  %v16740_v8 = vpop.f32.mrb[143].mxu1  ;;  %v13178_v52 = vmax.f32 %v13170_v10, 0.0  ;;  %v18418_v10 = vld [vmem:[#allocation58 + $0x6a8] ss:$12 sps:$4 sm:$0xff]  }
0x2582   :  { %v18422_v57 = vld [vmem:[%s19824_s5 + $0x80] sm:$0xff]   ;;  %v18426_v8 = vld [vmem:[%s19824_s5 + $0x48] sm:$0xff]  }
0x2583   :  { %v13181_v12 = vmax.f32 %v13173_v51, 0.0  ;;  %v18423_v61 = vld [vmem:[%s19824_s5 + $0x40] sm:$0xff]  }
0x2584   :  { %v18424_v51 = vld [vmem:[%s19824_s5] sm:$0xff]  }
0x2585   :  { %v21556_v19 = vpack.c.bf16 %v13181_v12, %v13178_v52  ;;  %v18425_v52 = vld [vmem:[%s19824_s5 + $0x88] sm:$0xff]  }
0x2586   :  { %v18427_v12 = vld [vmem:[%s19824_s5 + $0x8] sm:$0xff]  }
0x259d   :  { %v13085_v26 = vpop.f32.mrb[136].mxu0 }
0x259e   :  { %v16831_v7 = vadd.f32 %v13085_v26, %v12612_v17  ;;  %v13087_v62 = vpop.f32.mrb[137].mxu0  ;;  %v18432_v26 = vld [vmem:[%s19824_s5 + $0x58] sm:$0xff]  }
0x259f   :  { %v16832_v25 = vadd.f32 %v13087_v62, %v12616_v3  ;;  %v13089_v23 = vpop.f32.mrb[138].mxu0  ;;  %v18433_v62 = vld [vmem:[%s19824_s5 + $0x18] sm:$0xff]  }
0x25a0   :  { %v16833_v18 = vadd.f32 %v13089_v23, %v12612_v17  ;;  %v13091_v37 = vpop.f32.mrb[139].mxu0  ;;  %v13176_v24 = vmax.f32 %v16831_v7, 0.0  ;;  %v18428_v17 = vld [vmem:[%s19824_s5 + $0x90] sm:$0xff]   ;;  %v18431_v7 = vld [vmem:[%s19824_s5 + $0x98] sm:$0xff]   ;;  %v18434_v23 = vld [vmem:[%s19824_s5 + $0xa0] sm:$0xff]  }
0x25a1   :  { %v16834_v54 = vadd.f32 %v13091_v37, %v12616_v3  ;;  %v13177_v20 = vmax.f32 %v16832_v25, 0.0  ;;  %v18430_v3 = vld [vmem:[%s19824_s5 + $0x10] sm:$0xff]   ;;  %v18435_v25 = vld [vmem:[%s19824_s5 + $0x60] sm:$0xff]   ;;  %v18437_v37 = vld [vmem:[%s19824_s5 + $0xa8] sm:$0xff]  }
0x25a2   :  { %v13179_v27 = vmax.f32 %v16833_v18, 0.0  ;;  %v18436_v18 = vld [vmem:[%s19824_s5 + $0x20] sm:$0xff]  }
0x25a3   :  { %v13180_v15 = vmax.f32 %v16834_v54, 0.0  ;;  %v18438_v54 = vld [vmem:[%s19824_s5 + $0x68] sm:$0xff]  }
0x25a4   :  { %v13281_v6 = vpack.c.bf16 %v13179_v27, %v13176_v24  ;;  %v18439_v24 = vld [vmem:[%s19824_s5 + $0x28] sm:$0xff]   ;;  %v18440_v27 = vld [vmem:[%s19824_s5 + $0xb0] sm:$0xff]  }
0x25a5   :  { %v13282_v41 = vpack.c.bf16 %v13180_v15, %v13177_v20  ;;  %v18441_v20 = vld [vmem:[%s19824_s5 + $0x70] sm:$0xff]  }
0x25a6   :  { %v18442_v15 = vld [vmem:[%s19824_s5 + $0x30] sm:$0xff]  }
0x25a7   :  { %13716 = vmatprep.mubr.bf16.mxu1 %v13282_v41  ;;  %13802 = vmatprep.mubr.bf16.mxu0 %v13282_v41  ;;  %v18444_v41 = vld [vmem:[%s19824_s5 + $0x78] sm:$0xff]  }
0x25a8   :  { %13717 = vmatmul.mubr.bf16.vlgmr.msra.gmra.mrb[144].mxu1 %v13281_v6  ;;  %13803 = vmatmul.mubr.bf16.vlgmr.msra.gmra.mrb[140].mxu0 %v13281_v6  ;;  %v18443_v6 = vld [vmem:[%s19824_s5 + $0xb8] sm:$0xff]  }
0x25a9   :  { %13728 = vmatpush1.bf16.msra.mxu1 %v18390_v58  ;;  %16742 = vmatpush3.bf16.msra.mxu0 %v18393_v29  ;;  %v18445_v58 = vld [vmem:[%s19824_s5 + $0x38] sm:$0xff]   ;;  %v11909_v29 = vrot.slane %v21539_v31, %v20096_v47 }
0x25aa   :  { %13729 = vmatprep.subr.bf16.mxu1 %v18396_v34  ;;  %16743 = vmatprep.subr.bf16.mxu0 %v19585_v35  ;;  %v11913_v34 = vrot.slane %v21539_v31, %v20099_v50  ;;  %v15534_v31 = vmul.f32 -1.442695, %v21551_v16 }
0x25ab   :  { %13759 = vmatprep.mubr.bf16.mxu1 %v19586_v39  ;;  %16757 = vmatprep.mubr.msk.bf16.mxu0 %vm19587_vm0, %v19585_v35  ;;  %v18406_v39 = vld [vmem:[#allocation58 + $0x660] ss:$12 sps:$4 sm:$0xff]  }
0x25ad   :  { %13730 = vmatpush1.bf16.msra.mxu1 %v18394_v60  ;;  %16744 = vmatpush3.bf16.msra.mxu0 %v18397_v43  ;;  %v16827_v60 = vadd.f32 %v21543_v30, %v11909_v29  ;;  %v16828_v43 = vadd.f32 %v21547_v42, %v11913_v34 }
0x25ae   :  { %13731 = vmatprep.subr.bf16.mxu1 %v18400_v40  ;;  %16745 = vmatprep.subr.bf16.mxu0 %v19585_v35  ;;  %v16829_v40 = vadd.f32 %v21549_v48, %v11909_v29 }
0x25b1   :  { %13732 = vmatpush1.bf16.msra.mxu1 %v18398_v13  ;;  %16746 = vmatpush3.bf16.msra.mxu0 %v18401_v5  ;;  %v15529_v13 = vmul.f32 -1.442695, %v16827_v60 }
0x25b2   :  { %13733 = vmatprep.subr.bf16.mxu1 %v18404_v46  ;;  %16747 = vmatprep.subr.bf16.mxu0 %v19585_v35  ;;  %v15531_v46 = vmul.f32 -1.442695, %v21545_v49 }
0x25b3   :  { %18558 = vpow2.f32 %v15529_v13 }
0x25b4   :  { %18560 = vpow2.f32 %v15531_v46 }
0x25b5   :  { %13734 = vmatpush1.bf16.msra.mxu1 %v18402_v53  ;;  %16748 = vmatpush3.bf16.msra.mxu0 %v18405_v56  ;;  %v16830_v53 = vadd.f32 %v21553_v11, %v11913_v34 }
0x25b6   :  { %13735 = vmatprep.subr.bf16.mxu1 %v18408_v32  ;;  %16749 = vmatprep.subr.bf16.mxu0 %v19585_v35 }
0x25b7   :  { %v15533_v30 = vmul.f32 -1.442695, %v16830_v53 }
0x25b9   :  { %13736 = vmatpush1.bf16.msra.mxu1 %v18406_v39  ;;  %16750 = vmatpush3.bf16.msra.mxu0 %v18409_v2  ;;  %v15530_v39 = vmul.f32 -1.442695, %v16828_v43 }
0x25ba   :  { %13737 = vmatprep.subr.bf16.mxu1 %v18412_v1  ;;  %16751 = vmatprep.subr.bf16.mxu0 %v19585_v35  ;;  %v15532_v1 = vmul.f32 -1.442695, %v16829_v40 }
0x25bb   :  { %18562 = vpow2.f32 %v15530_v39 }
0x25bc   :  { %18564 = vpow2.f32 %v15532_v1 }
0x25bd   :  { %13738 = vmatpush1.bf16.msra.mxu1 %v18410_v45  ;;  %16752 = vmatpush3.bf16.msra.mxu0 %v18413_v9  ;;  %18566 = vpow2.f32 %v15534_v31  ;;  %v18559_v42 = vpop.eup %18558 }
0x25be   :  { %13739 = vmatprep.subr.bf16.mxu1 %v18416_v55  ;;  %16753 = vmatprep.subr.bf16.mxu0 %v19585_v35  ;;  %18568 = vpow2.f32 %v15533_v30  ;;  %v18561_v49 = vpop.eup %18560  ;;  %v12491_v9 = vadd.f32 1.0, %v18559_v42 }
0x25c0   :  { %18570 = vrcp.f32 %v12491_v9 }
0x25c1   :  { %13740 = vmatpush1.bf16.msra.mxu1 %v18414_v21  ;;  %16754 = vmatpush3.bf16.msra.mxu0 %v18417_v28  ;;  %v12493_v21 = vadd.f32 1.0, %v18561_v49 }
0x25c2   :  { %13741 = vmatprep.subr.bf16.mxu1 %v18420_v63  ;;  %16755 = vmatprep.subr.bf16.mxu0 %v19585_v35 }
0x25c3   :  { %18572 = vrcp.f32 %v12493_v21 }
0x25c5   :  { %13742 = vmatpush1.bf16.msra.mxu1 %v18418_v10  ;;  %16756 = vmatpush3.bf16.msra.mxu0 %v18421_v22  ;;  %v18563_v48 = vpop.eup %18562 }
0x25c6   :  { %16761 = vmatprep.subr.bf16.mxu1 %v19585_v35  ;;  %16350 = vmatprep.subr.bf16.mxu0 %v18423_v61  ;;  %v18565_v11 = vpop.eup %18564  ;;  %v12492_v63 = vadd.f32 1.0, %v18563_v48 }
0x25c7   :  { %v18567_v55 = vpop.eup %18566  ;;  %v12494_v10 = vadd.f32 1.0, %v18565_v11 }
0x25c8   :  { %13760 = vmatmul.mubr.bf16.vlgmr.msra.gmra.mrb[144].mxu1 %v21556_v19  ;;  %16758 = vmatmul.mubr.bf16.vlgmr.msra.gmra.mrb[144].mxu0 %v21556_v19  ;;  %v18429_v19 = vld [vmem:[%s19824_s5 + $0x50] sm:$0xff]   ;;  %v18569_v28 = vpop.eup %18568  ;;  %v12496_v22 = vadd.f32 1.0, %v18567_v55  ;;  %18574 = vrcp.f32 %v12492_v63  ;;  %s19594_s5 = smov [#allocation59]  }
0x25c9   :  { %16777 = vmatprep.mubr.msk.bf16.mxu1 %vm19587_vm0, %v19585_v35  ;;  %16762 = vmatpush3.bf16.msra.mxu1 %v18422_v57  ;;  %v12495_v16 = vadd.f32 1.0, %v18569_v28  ;;  %v15607_v57 = vld [vmem:[%s21731_s6 + $0x6] sm:$0x7]  ;;  %18576 = vrcp.f32 %v12494_v10  ;;  %s14186_s1 = sshll.u32 %s19594_s5, 4  ;;  %s14187_s1 = int_to_ptr.vmem [resolvable:$true] %s14186_s1 }
0x25ca   :  { %16351 = vmatpush3.bf16.msra.mxu0 %v18424_v51  ;;  %16763 = vmatprep.subr.bf16.mxu1 %v19585_v35  ;;  %18578 = vrcp.f32 %v12496_v22  ;;  %v13296_v61 = vrot.slane %v15607_v57, %v20091_v38  ;;  %v13288_v51 = vrot.slane %v15607_v57, %v20096_v47  ;;  %s19404_s10 = scalar_lea.vmem %s14187_s1, 768  ;;  %p19409_p3 = scmp.lt.s32.totalorder %s14187_s1, %s14187_s1 }
0x25cb   :  { %16352 = vmatprep.subr.bf16.mxu0 %v18426_v8  ;;  %18580 = vrcp.f32 %v12495_v16  ;;  %v13292_v8 = vrot.slane %v15607_v57, %v20099_v50  ;;  %p19405_p2 = scmp.ne.s32.totalorder %s14187_s1, %s19404_s10  ;;  %p19410_p4 = scmp.lt.s32.totalorder %s19404_s10, %s19404_s10 }
0x25cd   :  { %16764 = vmatpush3.bf16.msra.mxu1 %v18425_v52  ;;  %p19411_p5 = por %p19410_p4, %p19409_p3 }
0x25ce   :  { %16353 = vmatpush3.bf16.msra.mxu0 %v18427_v12  ;;  %16765 = vmatprep.subr.bf16.mxu1 %v19585_v35  ;;  %v18571_v12 = vpop.eup %18570 }
0x25cf   :  { %16354 = vmatprep.subr.bf16.mxu0 %v18429_v19  ;;  %p19412_p6 = pnand %p19411_p5, %p19405_p2 }
0x25d1   :  { %16766 = vmatpush3.bf16.msra.mxu1 %v18428_v17 }
0x25d2   :  { %16355 = vmatpush3.bf16.msra.mxu0 %v18430_v3  ;;  %16767 = vmatprep.subr.bf16.mxu1 %v19585_v35  ;;  %v18573_v3 = vpop.eup %18572 }
0x25d3   :  { %16356 = vmatprep.subr.bf16.mxu0 %v18432_v26 }
0x25d5   :  { %16768 = vmatpush3.bf16.msra.mxu1 %v18431_v7 }
0x25d6   :  { %16357 = vmatpush3.bf16.msra.mxu0 %v18433_v62  ;;  %16769 = vmatprep.subr.bf16.mxu1 %v19585_v35 }
0x25d7   :  { %16358 = vmatprep.subr.bf16.mxu0 %v18435_v25 }
0x25d9   :  { %16770 = vmatpush3.bf16.msra.mxu1 %v18434_v23 }
0x25da   :  { %16771 = vmatprep.subr.bf16.mxu1 %v19585_v35  ;;  %16359 = vmatpush3.bf16.msra.mxu0 %v18436_v18  ;;  %v18575_v18 = vpop.eup %18574 }
0x25db   :  { %16360 = vmatprep.subr.bf16.mxu0 %v18438_v54 }
0x25dd   :  { %16772 = vmatpush3.bf16.msra.mxu1 %v18437_v37 }
0x25de   :  { %16773 = vmatprep.subr.bf16.mxu1 %v19585_v35  ;;  %16361 = vmatpush3.bf16.msra.mxu0 %v18439_v24 }
0x25df   :  { %16362 = vmatprep.subr.bf16.mxu0 %v18441_v20 }
0x25e1   :  { %16774 = vmatpush3.bf16.msra.mxu1 %v18440_v27  ;;  %v18577_v27 = vpop.eup %18576 }
0x25e2   :  { %16775 = vmatprep.subr.bf16.mxu1 %v19585_v35  ;;  %16363 = vmatpush3.bf16.msra.mxu0 %v18442_v15 }
0x25e3   :  { %16364 = vmatprep.subr.bf16.mxu0 %v18444_v41  ;;  %v18579_v41 = vpop.eup %18578 }
0x25e4   :  { %v18581_v34 = vpop.eup %18580 }
0x25e5   :  { %16776 = vmatpush3.bf16.msra.mxu1 %v18443_v6 }
0x25e6   :  { %16365 = vmatpush3.bf16.msra.mxu0 %v18445_v58 }
0x267b   :  { %v16335_v35 = vpop.f32.mrb[140].mxu0 }
0x267c   :  { %v16336_v5 = vpop.f32.mrb[141].mxu0 }
0x267d   :  { %v16337_v56 = vadd.f32 %v16336_v5, %v16335_v35  ;;  %v16338_v32 = vpop.f32.mrb[142].mxu0 }
0x267e   :  { %v16339_v2 = vpop.f32.mrb[143].mxu0 }
0x267f   :  { %v16340_v45 = vadd.f32 %v16339_v2, %v16338_v32  ;;  %v13805_v52 = vadd.f32 %v16337_v56, %v13296_v61 }
0x2681   :  { %v13808_v23 = vadd.f32 %v16340_v45, %v13296_v61 }
0x269b   :  { %v13761_v19 = vpop.f32.mrb[144].mxu1  ;;  %v13845_v17 = vpop.f32.mrb[144].mxu0 }
0x269c   :  { %v16835_v26 = vadd.f32 %v13761_v19, %v13288_v51  ;;  %v13846_v7 = vadd.f32 %v13845_v17, %v13805_v52  ;;  %v13763_v62 = vpop.f32.mrb[145].mxu1  ;;  %v16759_v25 = vpop.f32.mrb[145].mxu0 }
0x269d   :  { %v16836_v37 = vadd.f32 %v13763_v62, %v13292_v8  ;;  %v13765_v54 = vpop.f32.mrb[146].mxu1  ;;  %v13848_v24 = vpop.f32.mrb[146].mxu0 }
0x269e   :  { %v13852_v38 = vmul.f32 %v18571_v12, %v16835_v26  ;;  %v13854_v20 = vmul.f32 %v18573_v3, %v13846_v7  ;;  %v16837_v47 = vadd.f32 %v13765_v54, %v13288_v51  ;;  %v13849_v15 = vadd.f32 %v13848_v24, %v13808_v23  ;;  %v13767_v50 = vpop.f32.mrb[147].mxu1  ;;  %v16760_v6 = vpop.f32.mrb[147].mxu0 }
0x269f   :  { %v13853_v58 = vmul.f32 %v18575_v18, %v16836_v37  ;;  %v16838_v29 = vadd.f32 %v13767_v50, %v13292_v8 }
0x26a0   :  { %v13858_v60 = vadd.f32 %v13852_v38, %v21455_v0  ;;  %v13860_v43 = vadd.f32 %v13854_v20, %v21513_v14  ;;  %v13855_v40 = vmul.f32 %v18577_v27, %v16837_v47  ;;  %v13857_v35 = vmul.f32 %v18579_v41, %v13849_v15 }
0x26a1   :  { %v13859_v13 = vadd.f32 %v13853_v58, %v21451_v59  ;;  %v13856_v5 = vmul.f32 %v18581_v34, %v16838_v29 }
0x26a2   :  { %13864 = vst [vmem:[#allocation59] sm:$0xff] %v13858_v60  ;;  %13866 = vst [vmem:[#allocation59 + $0x10] sm:$0xff] %v13860_v43  ;;  %v13861_v46 = vadd.f32 %v13855_v40, %v21457_v4  ;;  %v13863_v53 = vadd.f32 %v13857_v35, %v21511_v33  ;;  %v13870_v32 = vmax.f32 %v13858_v60, 0.0  ;;  %v13872_v39 = vmax.f32 %v13860_v43, 0.0 }
0x26a3   :  { %13865 = vst [vmem:[#allocation59 + $0x8] sm:$0xff] %v13859_v13  ;;  %v13862_v56 = vadd.f32 %v13856_v5, %v21453_v44  ;;  %v13871_v2 = vmax.f32 %v13859_v13, 0.0 }
0x26a4   :  { %13867 = vst [vmem:[#allocation59 + $0x18] sm:$0xff] %v13861_v46  ;;  %v13873_v0 = vmax.f32 %v13861_v46, 0.0  ;;  %13869 = vst [vmem:[#allocation59 + $0x28] sm:$0xff] %v13863_v53  ;;  %v13875_v14 = vmax.f32 %v13863_v53, 0.0 }
0x26a5   :  { %13868 = vst [vmem:[#allocation59 + $0x20] sm:$0xff] %v13862_v56  ;;  %v13874_v1 = vmax.f32 %v13862_v56, 0.0 }
0x26a6   :  { %v13927_v59 = vpack.c.bf16 %v13875_v14, %v13872_v39  ;;  %v13925_v45 = vpack.c.bf16 %v13873_v0, %v13870_v32 }
0x26a7   :  { %v13926_v31 = vpack.c.bf16 %v13874_v1, %v13871_v2 }
0x26a8   :  { %16778 = vmatmul.mubr.bf16.vlgmr.msra.gmra.mrb[148].mxu1 %v13927_v59 }
0x26a9   :  { %14110 = vmatprep.mubr.bf16.mxu0 %v13926_v31 }
0x26aa   :  { %14111 = vmatmul.mubr.bf16.vlgmr.msra.gmra.mrb[148].mxu0 %v13925_v45 }
0x26ab   :  { %19415 = shalt.err (!%p19412_p6)
}
0x26ac   :  { %s19416_s30 = scalar_lea.hbm %s19834_s24, 768 }
0x26ad   :  { %p19417_p7 = scmp.ne.s32.totalorder %s19834_s24, %s19416_s30  ;;  %p19420_p8 = scmp.lt.u32.totalorder %s19416_s30, %s19834_s24 }
0x26af   :  { %p19422_p9 = pnand %p19420_p8, %p19417_p7 }
0x26b1   :  { %19425 = shalt.err (!%p19422_p9)
}
0x26b2   :  { %14192 = dma.vmem_to_hbm [thread:$0]  %s14187_s1, 768, %s19834_s24, [#allocation4], %s19539_s2, %s19539_s2, %s19540_s7   ;;  %v14161_v12 = vand.u32 127, %v722_v36 }
0x26b3   :  { %v15680_v42 = vld [vmem:[%s19829_s13] ss:$0 sm:$0xff]  ;;  %s19595_s13 = smov [#allocation60]  }
0x26b4   :  { %vm14162_vm7 = vcmp.ge.s32.totalorder %v14161_v12, 2  ;;  %vm14163_vm8 = vcmp.lt.s32.totalorder %v14161_v12, 4  ;;  %s14198_s24 = sshll.u32 %s19595_s13, 4  ;;  %s14199_s24 = int_to_ptr.vmem [resolvable:$true] %s14198_s24 }
0x26b5   :  { %vm14164_vm9 = vmand %vm14162_vm7, %vm14163_vm8  ;;  %s19426_s2 = scalar_lea.vmem %s14199_s24, 256  ;;  %p19431_p11 = scmp.lt.s32.totalorder %s14199_s24, %s14199_s24 }
0x26b6   :  { %p19427_p10 = scmp.ne.s32.totalorder %s14199_s24, %s19426_s2  ;;  %p19432_p12 = scmp.lt.s32.totalorder %s19426_s2, %s19426_s2 }
0x26b8   :  { %p19433_p13 = por %p19432_p12, %p19431_p11 }
0x26ba   :  { %p19434_p0 = pnand %p19433_p13, %p19427_p10 }
0x277b   :  { %v14153_v44 = vpop.f32.mrb[148].mxu1 }
0x277c   :  { %v16779_v4 = vpop.f32.mrb[149].mxu1 }
0x277d   :  { %v16366_v33 = vpop.f32.mrb[148].mxu0  ;;  %v14156_v30 = vpop.f32.mrb[150].mxu1 }
0x277e   :  { %v16367_v49 = vpop.f32.mrb[149].mxu0  ;;  %v16780_v48 = vpop.f32.mrb[151].mxu1 }
0x277f   :  { %v16368_v11 = vadd.f32 %v16367_v49, %v16366_v33  ;;  %v16369_v9 = vpop.f32.mrb[150].mxu0 }
0x2780   :  { %v16370_v55 = vpop.f32.mrb[151].mxu0 }
0x2781   :  { %v14113_v21 = vadd.f32 %v16368_v11, %v15680_v42  ;;  %v16371_v28 = vadd.f32 %v16370_v55, %v16369_v9 }
0x2783   :  { %v14154_v63 = vadd.f32 %v14153_v44, %v14113_v21  ;;  %v14116_v10 = vadd.f32 %v16371_v28, %v15680_v42 }
0x2785   :  { %v15705_v22 = vmul.f32 -1.442695, %v14154_v63  ;;  %v14157_v16 = vadd.f32 %v14156_v30, %v14116_v10 }
0x2787   :  { %18582 = vpow2.f32 %v15705_v22  ;;  %v15706_v57 = vmul.f32 -1.442695, %v14157_v16 }
0x2789   :  { %18584 = vpow2.f32 %v15706_v57 }
0x2791   :  { %v18583_v61 = vpop.eup %18582 }
0x2792   :  { %v14171_v51 = vadd.f32 1.0, %v18583_v61 }
0x2793   :  { %v18585_v8 = vpop.eup %18584 }
0x2794   :  { %18586 = vrcp.f32 %v14171_v51  ;;  %v14172_v52 = vadd.f32 1.0, %v18585_v8 }
0x2796   :  { %18588 = vrcp.f32 %v14172_v52 }
0x279e   :  { %v18587_v19 = vpop.eup %18586 }
0x279f   :  { %v14177_v17 = vsel %vm14164_vm9, %v18587_v19, %v14154_v63 }
0x27a0   :  { %v18589_v3 = vpop.eup %18588  ;;  %14179 = vst [vmem:[#allocation60] sm:$0xff] %v14177_v17 }
0x27a1   :  { %v14178_v26 = vsel %vm14164_vm9, %v18589_v3, %v14157_v16 }
0x27a2   :  { %14180 = vst [vmem:[#allocation60 + $0x8] sm:$0xff] %v14178_v26 }
0x27a3   :  { %19437 = shalt.err (!%p19434_p0)
}
0x27a4   :  { %s19438_s7 = scalar_lea.hbm %s19839_s25, 256 }
0x27a5   :  { %p19439_p1 = scmp.ne.s32.totalorder %s19839_s25, %s19438_s7  ;;  %p19442_p2 = scmp.lt.u32.totalorder %s19438_s7, %s19839_s25 }
0x27a7   :  { %p19444_p3 = pnand %p19442_p2, %p19439_p1 }
0x27a9   :  { %19447 = shalt.err (!%p19444_p3)
}
0x27aa   :  { %14204 = dma.vmem_to_hbm [thread:$0]  %s14199_s24, 256, %s19839_s25, [#allocation61], %s19563_s12, %s19563_s12, %s19564_s11  }
0x27ab   :  { %19486 = dma.done.wait [#allocation4], 768  }
0x27ac   :  { %19487 = vsyncadd [#allocation4], 4294966528 }
0x27ad   :  { %19488 = dma.done.wait [#allocation61], 256  }
0x27ae   :  { %19489 = vsyncadd [#allocation61], 4294967040 }
0x27af   :  { %14211 = vsyncpa [#allocation3], 1 }
0x27b0   :  { %14212 = vsyncpa [#allocation6], 1 }
0x27b1   :  { %14213 = vsyncpa [#allocation9], 1 }
0x27b2   :  { %14214 = vsyncpa [#allocation12], 1 }
0x27b3   :  { %14215 = vsyncpa [#allocation15], 1 }
0x27b4   :  { %14216 = vsyncpa [#allocation18], 1 }
0x27b5   :  { %14217 = vsyncpa [#allocation21], 1 }
0x27b6   :  { %14218 = vsyncpa [#allocation24], 1 }
0x27b7   :  { %14219 = vsyncpa [#allocation27], 1 }
0x27b8   :  { %14220 = vsyncpa [#allocation30], 1 }
0x27b9   :  { %14221 = vsyncpa [#allocation33], 1 }
0x27ba   :  { %14222 = vsyncpa [#allocation36], 1 }
0x27bb   :  { %14223 = vsyncpa [#allocation39], 1 }
0x27bc   :  { %14224 = vsyncpa [#allocation42], 1 }
0x27bd   :  { %14225 = vsyncpa [#allocation45], 1 }
0x27be   :  { %14226 = vsyncpa [#allocation48], 1 }
0x27bf   :  { %14227 = vsyncpa [#allocation51], 1 }
0x27c0   :  { %14228 = vsyncpa [#allocation54], 1 }
0x27c1   :  { %14229 = vsyncpa [#allocation57], 1 }
0x27c2   :  { %14230 = vsyncpa [#allocation4], 1 }
0x27c3   :  { %14231 = vsyncpa [#allocation61], 1 }

</bundles_post_ra>
